<compile_context>
chip_gen: v5e
topology: v5e:2x2
jax: 0.10.0
libtpu: 0.0.40
codegen_flags: <defaults>
</compile_context>

<pallas_src>
import functools

import jax
import jax.numpy as jnp
from jax.experimental import pallas as pl
from jax.experimental.pallas import tpu as pltpu


# -----------------------------------------------------------------------------
# Conv2d (stride=1, arbitrary dilation, "same" padding).
# Glue builds the im2col matrix (k*k*Cin, M) per layer.
# NOTE: the im2col copy costs k^2 x the layer input in HBM bytes; acceptable at
# these channel widths/sizes -- the payoff is a single matmul with contraction
# K = k*k*Cin instead of k*k tiny K<=64 matmuls and k*k grid steps.
# -----------------------------------------------------------------------------
def _conv_kernel(col_ref, w_ref, b_ref, o_ref, *, relu):
    acc = jnp.dot(w_ref[...], col_ref[...], preferred_element_type=jnp.float32)
    acc = acc + b_ref[...]                      # (Cout, 1) broadcast over lanes
    if relu:
        acc = jnp.maximum(acc, 0.0)
    o_ref[...] = acc.astype(o_ref.dtype)        # lane-dense (Cout, TM) store


def conv2d_pallas(x_cf, weight, bias, k, dilation, relu, out_dtype):
    """x_cf: (Cin, N, h, w) channels-first activation (bf16)."""
    Cin, N, h, w = x_cf.shape
    Cout = weight.shape[0]
    M = N * h * w
    pad = dilation * (k - 1) // 2
    xp = jnp.pad(x_cf, ((0, 0), (0, 0), (pad, pad), (pad, pad)))
    taps = [xp[:, :, kh * dilation:kh * dilation + h,
               kw * dilation:kw * dilation + w]
            for kh in range(k) for kw in range(k)]          # each (Cin, N, h, w)
    col = jnp.stack(taps, 0).reshape(k * k * Cin, M).astype(jnp.bfloat16)
    # torch weight (Cout, Cin, K, K) -> (Cout, K*K*Cin) in (kh, kw, cin) order
    w_mat = jnp.transpose(weight, (0, 2, 3, 1)).reshape(Cout, k * k * Cin)
    w_mat = w_mat.astype(jnp.bfloat16)
    b2 = bias.reshape(Cout, 1).astype(jnp.float32)

    KKC = k * k * Cin
    TM = M if M <= 512 else 512                 # lane-dense M tile (mult of 128)
    out = pl.pallas_call(
        functools.partial(_conv_kernel, relu=relu),
        out_shape=jax.ShapeDtypeStruct((Cout, M), out_dtype),
        grid_spec=pltpu.PrefetchScalarGridSpec(
            num_scalar_prefetch=0,
            grid=(pl.cdiv(M, TM),),
            in_specs=[pl.BlockSpec((KKC, TM), lambda i: (0, i)),
                      pl.BlockSpec((Cout, KKC), lambda i: (0, 0)),
                      pl.BlockSpec((Cout, 1), lambda i: (0, 0))],
            out_specs=pl.BlockSpec((Cout, TM), lambda i: (0, i))),
        compiler_params=pltpu.CompilerParams(
            dimension_semantics=("parallel",),
            vmem_limit_bytes=32 * 1024 * 1024),
    )(col, w_mat, b2)
    return out.reshape(Cout, N, h, w)


# -----------------------------------------------------------------------------
# Warp: one grid step per target view k_t; inside, a static loop over the
# ns*N (source, batch) pairs of that view. grid_sample (bilinear, zeros
# padding, align_corners=False) is decomposed into:
#   stage 1: (W,H) source @ (H,hw) weighted y-one-hot  -> (W,hw)  [MXU]
#   stage 2: x-one-hot column select + x-interp, sublane reduce -> (1,hw)
# Out-of-range corners match no one-hot row/col -> zeros padding for free.
# Source images are passed once (no an2 x tiling); dW/dH live in SMEM.
# -----------------------------------------------------------------------------
def _warp_kernel(dw_ref, dh_ref, coord_ref, disp_ref, src_ref, o_ref,
                 *, H, W, N, ns):
    kt = pl.program_id(0)
    hw = H * W

    xx = coord_ref[0:1, :]                                   # (1, hw) f32
    yy = coord_ref[1:2, :]                                   # (1, hw) f32
    rows = jax.lax.broadcasted_iota(jnp.int32, (H, hw), 0)   # y index per row
    cols = jax.lax.broadcasted_iota(jnp.int32, (W, hw), 0)   # x index per row

    outs = []
    for m in range(N * ns):                 # flat b = kt*(N*ns) + m
        n_g = m % N                         # batch index used by the grid
        ks_g = m // N                       # source index used by the grid
        dw = dw_ref[kt, ks_g]
        dh = dh_ref[kt, ks_g]
        disp = disp_ref[0, n_g:n_g + 1, :]                   # (1, hw)

        gx = xx + disp * dw
        gy = yy + disp * dh
        gxn = 2.0 * gx / (W - 1) - 1.0      # module's grid normalization
        gyn = 2.0 * gy / (H - 1) - 1.0
        # torch grid_sample default align_corners=False unnormalization
        ix = ((gxn + 1.0) * W - 1.0) * 0.5
        iy = ((gyn + 1.0) * H - 1.0) * 0.5
        x0f = jnp.floor(ix)
        y0f = jnp.floor(iy)
        x0 = x0f.astype(jnp.int32)
        y0 = y0f.astype(jnp.int32)
        wx1 = ix - x0f
        wx0 = 1.0 - wx1
        wy1 = iy - y0f
        wy0 = 1.0 - wy1

        # Stage 1: weighted y one-hot row gather + y-interp on the MXU.
        sel_rows = (jnp.where(rows == y0, wy0, 0.0)
                    + jnp.where(rows == (y0 + 1), wy1, 0.0))   # (H, hw)
        jrows = jnp.dot(src_ref[m], sel_rows,
                        preferred_element_type=jnp.float32)    # (W, hw)

        # Stage 2: x one-hot column select + x-interp, reduce over W sublanes.
        sel_cols = (jnp.where(cols == x0, wx0, 0.0)
                    + jnp.where(cols == (x0 + 1), wx1, 0.0))   # (W, hw)
        outs.append(jnp.sum(jrows * sel_cols, axis=0, keepdims=True))  # (1, hw)

    o_ref[0] = jnp.concatenate(outs, axis=0)                   # (N*ns, hw)


def warp_pallas(dW, dH, coords, disp3, src_wh, H, W, N, ns, an2):
    hw = H * W
    return pl.pallas_call(
        functools.partial(_warp_kernel, H=H, W=W, N=N, ns=ns),
        out_shape=jax.ShapeDtypeStruct((an2, N * ns, hw), jnp.float32),
        grid_spec=pltpu.PrefetchScalarGridSpec(
            num_scalar_prefetch=0,
            grid=(an2,),
            in_specs=[
                pl.BlockSpec(memory_space=pltpu.MemorySpace.SMEM),   # dW (an2, ns)
                pl.BlockSpec(memory_space=pltpu.MemorySpace.SMEM),   # dH (an2, ns)
                pl.BlockSpec((2, hw), lambda kt: (0, 0)),            # pixel coords
                pl.BlockSpec((1, N, hw), lambda kt: (kt, 0, 0)),     # disp per k_t
                pl.BlockSpec((N * ns, W, H), lambda kt: (0, 0, 0)),  # sources (W,H)
            ],
            out_specs=pl.BlockSpec((1, N * ns, hw), lambda kt: (kt, 0, 0))),
        compiler_params=pltpu.CompilerParams(
            dimension_semantics=("parallel",),
            vmem_limit_bytes=32 * 1024 * 1024),
    )(dW, dH, coords, disp3, src_wh)


# -----------------------------------------------------------------------------
# Parameters (deterministic, synthetic) and forward pass (matches Net_view).
# -----------------------------------------------------------------------------
def make_cfgs(num_source, an2):
    return ((num_source, 16, 7, 2, True), (16, 32, 7, 2, True),
            (32, 64, 5, 1, True), (64, 64, 5, 1, True),
            (64, an2, 3, 1, True), (an2, an2, 3, 1, True),
            (an2, an2, 3, 1, True), (an2, an2, 3, 1, True),
            (an2, an2, 3, 1, False))


def init_params(key, num_source, an2):
    params = []
    for cin, cout, k, d, relu in make_cfgs(num_source, an2):
        key, kw_, kb_ = jax.random.split(key, 3)
        w = jax.random.normal(kw_, (cout, cin, k, k), jnp.float32) / jnp.sqrt(cin * k * k)
        b = 0.01 * jax.random.normal(kb_, (cout,), jnp.float32)
        params.append((w, b))
    return params


@functools.partial(jax.jit, static_argnames=("an",))
def net_view_forward(ind_source, img_source, params, *, an):
    an2 = an * an
    N, ns, h, w = img_source.shape
    hw = h * w
    cfgs = make_cfgs(ns, an2)

    # ---- disp_estimator: 9 convs (Pallas), channels-first, bf16 activations ----
    x = jnp.transpose(img_source, (1, 0, 2, 3)).astype(jnp.bfloat16)   # (C, N, h, w)
    # TODO(synk): fuse all 9 layers into one VMEM-resident pallas_call
    # (activations are only ~64 KiB here) to drop 8 HBM activation round-trips.
    for li, ((wgt, b), (cin, cout, k, d, relu)) in enumerate(zip(params, cfgs)):
        out_dtype = jnp.float32 if li == len(cfgs) - 1 else jnp.bfloat16
        x = conv2d_pallas(x, wgt, b, k, d, relu, out_dtype)
    disp_cf = x                                              # (an2, N, h, w) f32

    # ---- per-(k_t, k_s) disparity offsets (tiny scalar glue -> SMEM) ----
    ind_src = jnp.squeeze(ind_source).astype(jnp.float32)    # (ns,)
    kt = jnp.arange(an2, dtype=jnp.float32)
    ind_t_h, ind_t_w = jnp.floor(kt / an), jnp.mod(kt, an)
    ind_s_h, ind_s_w = jnp.floor(ind_src / an), jnp.mod(ind_src, an)
    dW = (ind_t_w[:, None] - ind_s_w[None, :]).astype(jnp.float32)     # (an2, ns)
    dH = (ind_t_h[:, None] - ind_s_h[None, :]).astype(jnp.float32)     # (an2, ns)

    # exact integer pixel coordinates, computed once outside the kernel
    xx = jnp.tile(jnp.arange(w, dtype=jnp.float32), h)
    yy = jnp.repeat(jnp.arange(h, dtype=jnp.float32), w)
    coords = jnp.stack([xx, yy], axis=0)                     # (2, hw)

    disp3 = disp_cf.reshape(an2, N, hw)
    # sources in warp_img_input order (n*ns + k_s), pre-transposed to (W, H)
    src_wh = jnp.transpose(img_source.reshape(N * ns, h, w),
                           (0, 2, 1)).astype(jnp.float32)

    warped = warp_pallas(dW, dH, coords, disp3, src_wh, h, w, N, ns, an2)
    # flat b ordering (k_t outer, then k_s*N + n) matches torch.cat; flat view:
    warped_img = warped.reshape(N, an2, ns, h, w)

    disp = disp_cf[an2 - 1]                                  # (N, h, w), last loop iter
    return warped_img, disp


if __name__ == "__main__":
    an = 2                       # opt.angular_out
    an2 = an * an
    num_source = 4               # opt.num_source
    N, h, w = 1, 16, 16

    key = jax.random.PRNGKey(0)
    k_img, k_par = jax.random.split(key)
    img_source = jax.random.normal(k_img, (N, num_source, h, w), jnp.float32)
    ind_source = jnp.array([[0, 1, 2, 3]], dtype=jnp.int32)  # source views in an x an grid

    params = init_params(k_par, num_source, an2)
    warped_img, disp = net_view_forward(ind_source, img_source, params, an=an)
    jax.block_until_ready((warped_img, disp))
    assert warped_img.shape == (N, an2, num_source, h, w)
    assert disp.shape == (N, h, w)
    print("KERNEL_OK")
</pallas_src>

<mosaic_0001>
module attributes {stable_mosaic.version = 11 : i64} {
  func.func @_conv_kernel(%arg0: i32, %arg1: memref<196x256xbf16, #tpu.memory_space<vmem>>, %arg2: memref<16x196xbf16, #tpu.memory_space<vmem>>, %arg3: memref<16x1xf32, #tpu.memory_space<vmem>>, %arg4: memref<16x256xbf16, #tpu.memory_space<vmem>>) attributes {dimension_semantics = [#tpu.dimension_semantics<parallel>], iteration_bounds = array<i64: 1>, scalar_prefetch = 0 : i64, scratch_operands = 0 : i64, tpu.core_type = #tpu.core_type<tc>, window_params = [{transform_indices = @transform_0, window_bounds = array<i64: 196, 256>}, {pipeline_mode = #tpu.pipeline_mode<synchronous>, transform_indices = @transform_1, window_bounds = array<i64: 16, 196>}, {pipeline_mode = #tpu.pipeline_mode<synchronous>, transform_indices = @transform_2, window_bounds = array<i64: 16, 1>}, {transform_indices = @transform_3, window_bounds = array<i64: 16, 256>}]} {
    %c0 = arith.constant 0 : index
    %c0_0 = arith.constant 0 : index
    %0 = vector.load %arg2[%c0, %c0_0] : memref<16x196xbf16, #tpu.memory_space<vmem>>, vector<16x196xbf16>
    %c0_1 = arith.constant 0 : index
    %c0_2 = arith.constant 0 : index
    %1 = vector.load %arg1[%c0_1, %c0_2] : memref<196x256xbf16, #tpu.memory_space<vmem>>, vector<196x256xbf16>
    %cst = arith.constant dense<0.000000e+00> : vector<16x256xf32>
    %2 = tpu.matmul %0, %1, %cst {dimension_numbers = #tpu.dot_dimension_numbers<[1], [0], [0], [1], [0, 0, 1, 1], [], []>} : vector<16x196xbf16>, vector<196x256xbf16>, vector<16x256xf32> -> vector<16x256xf32>
    %c0_3 = arith.constant 0 : index
    %c0_4 = arith.constant 0 : index
    %3 = vector.load %arg3[%c0_3, %c0_4] : memref<16x1xf32, #tpu.memory_space<vmem>>, vector<16x1xf32>
    %4 = vector.broadcast %3 : vector<16x1xf32> to vector<16x256xf32>
    %5 = arith.addf %2, %4 : vector<16x256xf32>
    %cst_5 = arith.constant 0.000000e+00 : f32
    %6 = vector.broadcast %cst_5 : f32 to vector<16x256xf32>
    %7 = arith.maximumf %5, %6 : vector<16x256xf32>
    %8 = arith.truncf %7 : vector<16x256xf32> to vector<16x256xbf16>
    %c0_6 = arith.constant 0 : index
    %c0_7 = arith.constant 0 : index
    %9 = vector.load %arg4[%c0_6, %c0_7] : memref<16x256xbf16, #tpu.memory_space<vmem>>, vector<16x256xbf16>
    tpu.vector_store %arg4[%c0_6, %c0_7], %8 {strides = array<i32>} : memref<16x256xbf16, #tpu.memory_space<vmem>>, vector<16x256xbf16>,
    return
  }
  func.func @transform_0(%arg0: i32) -> (i32, i32) {
    %c0_i32 = arith.constant 0 : i32
    %c0_i32_0 = arith.constant 0 : i32
    return %c0_i32, %arg0 : i32, i32
  }
  func.func @transform_1(%arg0: i32) -> (i32, i32) {
    %c0_i32 = arith.constant 0 : i32
    %c0_i32_0 = arith.constant 0 : i32
    %c0_i32_1 = arith.constant 0 : i32
    return %c0_i32, %c0_i32_0 : i32, i32
  }
  func.func @transform_2(%arg0: i32) -> (i32, i32) {
    %c0_i32 = arith.constant 0 : i32
    %c0_i32_0 = arith.constant 0 : i32
    %c0_i32_1 = arith.constant 0 : i32
    return %c0_i32, %c0_i32_0 : i32, i32
  }
  func.func @transform_3(%arg0: i32) -> (i32, i32) {
    %c0_i32 = arith.constant 0 : i32
    %c0_i32_0 = arith.constant 0 : i32
    return %c0_i32, %arg0 : i32, i32
  }
}

module attributes {stable_mosaic.version = 11 : i64} {
  func.func @_conv_kernel(%arg0: i32, %arg1: memref<784x256xbf16, #tpu.memory_space<vmem>>, %arg2: memref<32x784xbf16, #tpu.memory_space<vmem>>, %arg3: memref<32x1xf32, #tpu.memory_space<vmem>>, %arg4: memref<32x256xbf16, #tpu.memory_space<vmem>>) attributes {dimension_semantics = [#tpu.dimension_semantics<parallel>], iteration_bounds = array<i64: 1>, scalar_prefetch = 0 : i64, scratch_operands = 0 : i64, tpu.core_type = #tpu.core_type<tc>, window_params = [{transform_indices = @transform_0, window_bounds = array<i64: 784, 256>}, {pipeline_mode = #tpu.pipeline_mode<synchronous>, transform_indices = @transform_1, window_bounds = array<i64: 32, 784>}, {pipeline_mode = #tpu.pipeline_mode<synchronous>, transform_indices = @transform_2, window_bounds = array<i64: 32, 1>}, {transform_indices = @transform_3, window_bounds = array<i64: 32, 256>}]} {
    %c0 = arith.constant 0 : index
    %c0_0 = arith.constant 0 : index
    %0 = vector.load %arg2[%c0, %c0_0] : memref<32x784xbf16, #tpu.memory_space<vmem>>, vector<32x784xbf16>
    %c0_1 = arith.constant 0 : index
    %c0_2 = arith.constant 0 : index
    %1 = vector.load %arg1[%c0_1, %c0_2] : memref<784x256xbf16, #tpu.memory_space<vmem>>, vector<784x256xbf16>
    %cst = arith.constant dense<0.000000e+00> : vector<32x256xf32>
    %2 = tpu.matmul %0, %1, %cst {dimension_numbers = #tpu.dot_dimension_numbers<[1], [0], [0], [1], [0, 0, 1, 1], [], []>} : vector<32x784xbf16>, vector<784x256xbf16>, vector<32x256xf32> -> vector<32x256xf32>
    %c0_3 = arith.constant 0 : index
    %c0_4 = arith.constant 0 : index
    %3 = vector.load %arg3[%c0_3, %c0_4] : memref<32x1xf32, #tpu.memory_space<vmem>>, vector<32x1xf32>
    %4 = vector.broadcast %3 : vector<32x1xf32> to vector<32x256xf32>
    %5 = arith.addf %2, %4 : vector<32x256xf32>
    %cst_5 = arith.constant 0.000000e+00 : f32
    %6 = vector.broadcast %cst_5 : f32 to vector<32x256xf32>
    %7 = arith.maximumf %5, %6 : vector<32x256xf32>
    %8 = arith.truncf %7 : vector<32x256xf32> to vector<32x256xbf16>
    %c0_6 = arith.constant 0 : index
    %c0_7 = arith.constant 0 : index
    %9 = vector.load %arg4[%c0_6, %c0_7] : memref<32x256xbf16, #tpu.memory_space<vmem>>, vector<32x256xbf16>
    tpu.vector_store %arg4[%c0_6, %c0_7], %8 {strides = array<i32>} : memref<32x256xbf16, #tpu.memory_space<vmem>>, vector<32x256xbf16>,
    return
  }
  func.func @transform_0(%arg0: i32) -> (i32, i32) {
    %c0_i32 = arith.constant 0 : i32
    %c0_i32_0 = arith.constant 0 : i32
    return %c0_i32, %arg0 : i32, i32
  }
  func.func @transform_1(%arg0: i32) -> (i32, i32) {
    %c0_i32 = arith.constant 0 : i32
    %c0_i32_0 = arith.constant 0 : i32
    %c0_i32_1 = arith.constant 0 : i32
    return %c0_i32, %c0_i32_0 : i32, i32
  }
  func.func @transform_2(%arg0: i32) -> (i32, i32) {
    %c0_i32 = arith.constant 0 : i32
    %c0_i32_0 = arith.constant 0 : i32
    %c0_i32_1 = arith.constant 0 : i32
    return %c0_i32, %c0_i32_0 : i32, i32
  }
  func.func @transform_3(%arg0: i32) -> (i32, i32) {
    %c0_i32 = arith.constant 0 : i32
    %c0_i32_0 = arith.constant 0 : i32
    return %c0_i32, %arg0 : i32, i32
  }
}

module attributes {stable_mosaic.version = 11 : i64} {
  func.func @_conv_kernel(%arg0: i32, %arg1: memref<800x256xbf16, #tpu.memory_space<vmem>>, %arg2: memref<64x800xbf16, #tpu.memory_space<vmem>>, %arg3: memref<64x1xf32, #tpu.memory_space<vmem>>, %arg4: memref<64x256xbf16, #tpu.memory_space<vmem>>) attributes {dimension_semantics = [#tpu.dimension_semantics<parallel>], iteration_bounds = array<i64: 1>, scalar_prefetch = 0 : i64, scratch_operands = 0 : i64, tpu.core_type = #tpu.core_type<tc>, window_params = [{transform_indices = @transform_0, window_bounds = array<i64: 800, 256>}, {pipeline_mode = #tpu.pipeline_mode<synchronous>, transform_indices = @transform_1, window_bounds = array<i64: 64, 800>}, {pipeline_mode = #tpu.pipeline_mode<synchronous>, transform_indices = @transform_2, window_bounds = array<i64: 64, 1>}, {transform_indices = @transform_3, window_bounds = array<i64: 64, 256>}]} {
    %c0 = arith.constant 0 : index
    %c0_0 = arith.constant 0 : index
    %0 = vector.load %arg2[%c0, %c0_0] : memref<64x800xbf16, #tpu.memory_space<vmem>>, vector<64x800xbf16>
    %c0_1 = arith.constant 0 : index
    %c0_2 = arith.constant 0 : index
    %1 = vector.load %arg1[%c0_1, %c0_2] : memref<800x256xbf16, #tpu.memory_space<vmem>>, vector<800x256xbf16>
    %cst = arith.constant dense<0.000000e+00> : vector<64x256xf32>
    %2 = tpu.matmul %0, %1, %cst {dimension_numbers = #tpu.dot_dimension_numbers<[1], [0], [0], [1], [0, 0, 1, 1], [], []>} : vector<64x800xbf16>, vector<800x256xbf16>, vector<64x256xf32> -> vector<64x256xf32>
    %c0_3 = arith.constant 0 : index
    %c0_4 = arith.constant 0 : index
    %3 = vector.load %arg3[%c0_3, %c0_4] : memref<64x1xf32, #tpu.memory_space<vmem>>, vector<64x1xf32>
    %4 = vector.broadcast %3 : vector<64x1xf32> to vector<64x256xf32>
    %5 = arith.addf %2, %4 : vector<64x256xf32>
    %cst_5 = arith.constant 0.000000e+00 : f32
    %6 = vector.broadcast %cst_5 : f32 to vector<64x256xf32>
    %7 = arith.maximumf %5, %6 : vector<64x256xf32>
    %8 = arith.truncf %7 : vector<64x256xf32> to vector<64x256xbf16>
    %c0_6 = arith.constant 0 : index
    %c0_7 = arith.constant 0 : index
    %9 = vector.load %arg4[%c0_6, %c0_7] : memref<64x256xbf16, #tpu.memory_space<vmem>>, vector<64x256xbf16>
    tpu.vector_store %arg4[%c0_6, %c0_7], %8 {strides = array<i32>} : memref<64x256xbf16, #tpu.memory_space<vmem>>, vector<64x256xbf16>,
    return
  }
  func.func @transform_0(%arg0: i32) -> (i32, i32) {
    %c0_i32 = arith.constant 0 : i32
    %c0_i32_0 = arith.constant 0 : i32
    return %c0_i32, %arg0 : i32, i32
  }
  func.func @transform_1(%arg0: i32) -> (i32, i32) {
    %c0_i32 = arith.constant 0 : i32
    %c0_i32_0 = arith.constant 0 : i32
    %c0_i32_1 = arith.constant 0 : i32
    return %c0_i32, %c0_i32_0 : i32, i32
  }
  func.func @transform_2(%arg0: i32) -> (i32, i32) {
    %c0_i32 = arith.constant 0 : i32
    %c0_i32_0 = arith.constant 0 : i32
    %c0_i32_1 = arith.constant 0 : i32
    return %c0_i32, %c0_i32_0 : i32, i32
  }
  func.func @transform_3(%arg0: i32) -> (i32, i32) {
    %c0_i32 = arith.constant 0 : i32
    %c0_i32_0 = arith.constant 0 : i32
    return %c0_i32, %arg0 : i32, i32
  }
}

module attributes {stable_mosaic.version = 11 : i64} {
  func.func @_conv_kernel(%arg0: i32, %arg1: memref<1600x256xbf16, #tpu.memory_space<vmem>>, %arg2: memref<64x1600xbf16, #tpu.memory_space<vmem>>, %arg3: memref<64x1xf32, #tpu.memory_space<vmem>>, %arg4: memref<64x256xbf16, #tpu.memory_space<vmem>>) attributes {dimension_semantics = [#tpu.dimension_semantics<parallel>], iteration_bounds = array<i64: 1>, scalar_prefetch = 0 : i64, scratch_operands = 0 : i64, tpu.core_type = #tpu.core_type<tc>, window_params = [{transform_indices = @transform_0, window_bounds = array<i64: 1600, 256>}, {pipeline_mode = #tpu.pipeline_mode<synchronous>, transform_indices = @transform_1, window_bounds = array<i64: 64, 1600>}, {pipeline_mode = #tpu.pipeline_mode<synchronous>, transform_indices = @transform_2, window_bounds = array<i64: 64, 1>}, {transform_indices = @transform_3, window_bounds = array<i64: 64, 256>}]} {
    %c0 = arith.constant 0 : index
    %c0_0 = arith.constant 0 : index
    %0 = vector.load %arg2[%c0, %c0_0] : memref<64x1600xbf16, #tpu.memory_space<vmem>>, vector<64x1600xbf16>
    %c0_1 = arith.constant 0 : index
    %c0_2 = arith.constant 0 : index
    %1 = vector.load %arg1[%c0_1, %c0_2] : memref<1600x256xbf16, #tpu.memory_space<vmem>>, vector<1600x256xbf16>
    %cst = arith.constant dense<0.000000e+00> : vector<64x256xf32>
    %2 = tpu.matmul %0, %1, %cst {dimension_numbers = #tpu.dot_dimension_numbers<[1], [0], [0], [1], [0, 0, 1, 1], [], []>} : vector<64x1600xbf16>, vector<1600x256xbf16>, vector<64x256xf32> -> vector<64x256xf32>
    %c0_3 = arith.constant 0 : index
    %c0_4 = arith.constant 0 : index
    %3 = vector.load %arg3[%c0_3, %c0_4] : memref<64x1xf32, #tpu.memory_space<vmem>>, vector<64x1xf32>
    %4 = vector.broadcast %3 : vector<64x1xf32> to vector<64x256xf32>
    %5 = arith.addf %2, %4 : vector<64x256xf32>
    %cst_5 = arith.constant 0.000000e+00 : f32
    %6 = vector.broadcast %cst_5 : f32 to vector<64x256xf32>
    %7 = arith.maximumf %5, %6 : vector<64x256xf32>
    %8 = arith.truncf %7 : vector<64x256xf32> to vector<64x256xbf16>
    %c0_6 = arith.constant 0 : index
    %c0_7 = arith.constant 0 : index
    %9 = vector.load %arg4[%c0_6, %c0_7] : memref<64x256xbf16, #tpu.memory_space<vmem>>, vector<64x256xbf16>
    tpu.vector_store %arg4[%c0_6, %c0_7], %8 {strides = array<i32>} : memref<64x256xbf16, #tpu.memory_space<vmem>>, vector<64x256xbf16>,
    return
  }
  func.func @transform_0(%arg0: i32) -> (i32, i32) {
    %c0_i32 = arith.constant 0 : i32
    %c0_i32_0 = arith.constant 0 : i32
    return %c0_i32, %arg0 : i32, i32
  }
  func.func @transform_1(%arg0: i32) -> (i32, i32) {
    %c0_i32 = arith.constant 0 : i32
    %c0_i32_0 = arith.constant 0 : i32
    %c0_i32_1 = arith.constant 0 : i32
    return %c0_i32, %c0_i32_0 : i32, i32
  }
  func.func @transform_2(%arg0: i32) -> (i32, i32) {
    %c0_i32 = arith.constant 0 : i32
    %c0_i32_0 = arith.constant 0 : i32
    %c0_i32_1 = arith.constant 0 : i32
    return %c0_i32, %c0_i32_0 : i32, i32
  }
  func.func @transform_3(%arg0: i32) -> (i32, i32) {
    %c0_i32 = arith.constant 0 : i32
    %c0_i32_0 = arith.constant 0 : i32
    return %c0_i32, %arg0 : i32, i32
  }
}

module attributes {stable_mosaic.version = 11 : i64} {
  func.func @_conv_kernel(%arg0: i32, %arg1: memref<576x256xbf16, #tpu.memory_space<vmem>>, %arg2: memref<4x576xbf16, #tpu.memory_space<vmem>>, %arg3: memref<4x1xf32, #tpu.memory_space<vmem>>, %arg4: memref<4x256xbf16, #tpu.memory_space<vmem>>) attributes {dimension_semantics = [#tpu.dimension_semantics<parallel>], iteration_bounds = array<i64: 1>, scalar_prefetch = 0 : i64, scratch_operands = 0 : i64, tpu.core_type = #tpu.core_type<tc>, window_params = [{transform_indices = @transform_0, window_bounds = array<i64: 576, 256>}, {pipeline_mode = #tpu.pipeline_mode<synchronous>, transform_indices = @transform_1, window_bounds = array<i64: 4, 576>}, {pipeline_mode = #tpu.pipeline_mode<synchronous>, transform_indices = @transform_2, window_bounds = array<i64: 4, 1>}, {transform_indices = @transform_3, window_bounds = array<i64: 4, 256>}]} {
    %c0 = arith.constant 0 : index
    %c0_0 = arith.constant 0 : index
    %0 = vector.load %arg2[%c0, %c0_0] : memref<4x576xbf16, #tpu.memory_space<vmem>>, vector<4x576xbf16>
    %c0_1 = arith.constant 0 : index
    %c0_2 = arith.constant 0 : index
    %1 = vector.load %arg1[%c0_1, %c0_2] : memref<576x256xbf16, #tpu.memory_space<vmem>>, vector<576x256xbf16>
    %cst = arith.constant dense<0.000000e+00> : vector<4x256xf32>
    %2 = tpu.matmul %0, %1, %cst {dimension_numbers = #tpu.dot_dimension_numbers<[1], [0], [0], [1], [0, 0, 1, 1], [], []>} : vector<4x576xbf16>, vector<576x256xbf16>, vector<4x256xf32> -> vector<4x256xf32>
    %c0_3 = arith.constant 0 : index
    %c0_4 = arith.constant 0 : index
    %3 = vector.load %arg3[%c0_3, %c0_4] : memref<4x1xf32, #tpu.memory_space<vmem>>, vector<4x1xf32>
    %4 = vector.broadcast %3 : vector<4x1xf32> to vector<4x256xf32>
    %5 = arith.addf %2, %4 : vector<4x256xf32>
    %cst_5 = arith.constant 0.000000e+00 : f32
    %6 = vector.broadcast %cst_5 : f32 to vector<4x256xf32>
    %7 = arith.maximumf %5, %6 : vector<4x256xf32>
    %8 = arith.truncf %7 : vector<4x256xf32> to vector<4x256xbf16>
    %c0_6 = arith.constant 0 : index
    %c0_7 = arith.constant 0 : index
    %9 = vector.load %arg4[%c0_6, %c0_7] : memref<4x256xbf16, #tpu.memory_space<vmem>>, vector<4x256xbf16>
    tpu.vector_store %arg4[%c0_6, %c0_7], %8 {strides = array<i32>} : memref<4x256xbf16, #tpu.memory_space<vmem>>, vector<4x256xbf16>,
    return
  }
  func.func @transform_0(%arg0: i32) -> (i32, i32) {
    %c0_i32 = arith.constant 0 : i32
    %c0_i32_0 = arith.constant 0 : i32
    return %c0_i32, %arg0 : i32, i32
  }
  func.func @transform_1(%arg0: i32) -> (i32, i32) {
    %c0_i32 = arith.constant 0 : i32
    %c0_i32_0 = arith.constant 0 : i32
    %c0_i32_1 = arith.constant 0 : i32
    return %c0_i32, %c0_i32_0 : i32, i32
  }
  func.func @transform_2(%arg0: i32) -> (i32, i32) {
    %c0_i32 = arith.constant 0 : i32
    %c0_i32_0 = arith.constant 0 : i32
    %c0_i32_1 = arith.constant 0 : i32
    return %c0_i32, %c0_i32_0 : i32, i32
  }
  func.func @transform_3(%arg0: i32) -> (i32, i32) {
    %c0_i32 = arith.constant 0 : i32
    %c0_i32_0 = arith.constant 0 : i32
    return %c0_i32, %arg0 : i32, i32
  }
}

module attributes {stable_mosaic.version = 11 : i64} {
  func.func @_conv_kernel(%arg0: i32, %arg1: memref<36x256xbf16, #tpu.memory_space<vmem>>, %arg2: memref<4x36xbf16, #tpu.memory_space<vmem>>, %arg3: memref<4x1xf32, #tpu.memory_space<vmem>>, %arg4: memref<4x256xbf16, #tpu.memory_space<vmem>>) attributes {dimension_semantics = [#tpu.dimension_semantics<parallel>], iteration_bounds = array<i64: 1>, scalar_prefetch = 0 : i64, scratch_operands = 0 : i64, tpu.core_type = #tpu.core_type<tc>, window_params = [{transform_indices = @transform_0, window_bounds = array<i64: 36, 256>}, {pipeline_mode = #tpu.pipeline_mode<synchronous>, transform_indices = @transform_1, window_bounds = array<i64: 4, 36>}, {pipeline_mode = #tpu.pipeline_mode<synchronous>, transform_indices = @transform_2, window_bounds = array<i64: 4, 1>}, {transform_indices = @transform_3, window_bounds = array<i64: 4, 256>}]} {
    %c0 = arith.constant 0 : index
    %c0_0 = arith.constant 0 : index
    %0 = vector.load %arg2[%c0, %c0_0] : memref<4x36xbf16, #tpu.memory_space<vmem>>, vector<4x36xbf16>
    %c0_1 = arith.constant 0 : index
    %c0_2 = arith.constant 0 : index
    %1 = vector.load %arg1[%c0_1, %c0_2] : memref<36x256xbf16, #tpu.memory_space<vmem>>, vector<36x256xbf16>
    %cst = arith.constant dense<0.000000e+00> : vector<4x256xf32>
    %2 = tpu.matmul %0, %1, %cst {dimension_numbers = #tpu.dot_dimension_numbers<[1], [0], [0], [1], [0, 0, 1, 1], [], []>} : vector<4x36xbf16>, vector<36x256xbf16>, vector<4x256xf32> -> vector<4x256xf32>
    %c0_3 = arith.constant 0 : index
    %c0_4 = arith.constant 0 : index
    %3 = vector.load %arg3[%c0_3, %c0_4] : memref<4x1xf32, #tpu.memory_space<vmem>>, vector<4x1xf32>
    %4 = vector.broadcast %3 : vector<4x1xf32> to vector<4x256xf32>
    %5 = arith.addf %2, %4 : vector<4x256xf32>
    %cst_5 = arith.constant 0.000000e+00 : f32
    %6 = vector.broadcast %cst_5 : f32 to vector<4x256xf32>
    %7 = arith.maximumf %5, %6 : vector<4x256xf32>
    %8 = arith.truncf %7 : vector<4x256xf32> to vector<4x256xbf16>
    %c0_6 = arith.constant 0 : index
    %c0_7 = arith.constant 0 : index
    %9 = vector.load %arg4[%c0_6, %c0_7] : memref<4x256xbf16, #tpu.memory_space<vmem>>, vector<4x256xbf16>
    tpu.vector_store %arg4[%c0_6, %c0_7], %8 {strides = array<i32>} : memref<4x256xbf16, #tpu.memory_space<vmem>>, vector<4x256xbf16>,
    return
  }
  func.func @transform_0(%arg0: i32) -> (i32, i32) {
    %c0_i32 = arith.constant 0 : i32
    %c0_i32_0 = arith.constant 0 : i32
    return %c0_i32, %arg0 : i32, i32
  }
  func.func @transform_1(%arg0: i32) -> (i32, i32) {
    %c0_i32 = arith.constant 0 : i32
    %c0_i32_0 = arith.constant 0 : i32
    %c0_i32_1 = arith.constant 0 : i32
    return %c0_i32, %c0_i32_0 : i32, i32
  }
  func.func @transform_2(%arg0: i32) -> (i32, i32) {
    %c0_i32 = arith.constant 0 : i32
    %c0_i32_0 = arith.constant 0 : i32
    %c0_i32_1 = arith.constant 0 : i32
    return %c0_i32, %c0_i32_0 : i32, i32
  }
  func.func @transform_3(%arg0: i32) -> (i32, i32) {
    %c0_i32 = arith.constant 0 : i32
    %c0_i32_0 = arith.constant 0 : i32
    return %c0_i32, %arg0 : i32, i32
  }
}

module attributes {stable_mosaic.version = 11 : i64} {
  func.func @_conv_kernel(%arg0: i32, %arg1: memref<36x256xbf16, #tpu.memory_space<vmem>>, %arg2: memref<4x36xbf16, #tpu.memory_space<vmem>>, %arg3: memref<4x1xf32, #tpu.memory_space<vmem>>, %arg4: memref<4x256xf32, #tpu.memory_space<vmem>>) attributes {dimension_semantics = [#tpu.dimension_semantics<parallel>], iteration_bounds = array<i64: 1>, scalar_prefetch = 0 : i64, scratch_operands = 0 : i64, tpu.core_type = #tpu.core_type<tc>, window_params = [{transform_indices = @transform_0, window_bounds = array<i64: 36, 256>}, {pipeline_mode = #tpu.pipeline_mode<synchronous>, transform_indices = @transform_1, window_bounds = array<i64: 4, 36>}, {pipeline_mode = #tpu.pipeline_mode<synchronous>, transform_indices = @transform_2, window_bounds = array<i64: 4, 1>}, {transform_indices = @transform_3, window_bounds = array<i64: 4, 256>}]} {
    %c0 = arith.constant 0 : index
    %c0_0 = arith.constant 0 : index
    %0 = vector.load %arg2[%c0, %c0_0] : memref<4x36xbf16, #tpu.memory_space<vmem>>, vector<4x36xbf16>
    %c0_1 = arith.constant 0 : index
    %c0_2 = arith.constant 0 : index
    %1 = vector.load %arg1[%c0_1, %c0_2] : memref<36x256xbf16, #tpu.memory_space<vmem>>, vector<36x256xbf16>
    %cst = arith.constant dense<0.000000e+00> : vector<4x256xf32>
    %2 = tpu.matmul %0, %1, %cst {dimension_numbers = #tpu.dot_dimension_numbers<[1], [0], [0], [1], [0, 0, 1, 1], [], []>} : vector<4x36xbf16>, vector<36x256xbf16>, vector<4x256xf32> -> vector<4x256xf32>
    %c0_3 = arith.constant 0 : index
    %c0_4 = arith.constant 0 : index
    %3 = vector.load %arg3[%c0_3, %c0_4] : memref<4x1xf32, #tpu.memory_space<vmem>>, vector<4x1xf32>
    %4 = vector.broadcast %3 : vector<4x1xf32> to vector<4x256xf32>
    %5 = arith.addf %2, %4 : vector<4x256xf32>
    %c0_5 = arith.constant 0 : index
    %c0_6 = arith.constant 0 : index
    %6 = vector.load %arg4[%c0_5, %c0_6] : memref<4x256xf32, #tpu.memory_space<vmem>>, vector<4x256xf32>
    tpu.vector_store %arg4[%c0_5, %c0_6], %5 {strides = array<i32>} : memref<4x256xf32, #tpu.memory_space<vmem>>, vector<4x256xf32>,
    return
  }
  func.func @transform_0(%arg0: i32) -> (i32, i32) {
    %c0_i32 = arith.constant 0 : i32
    %c0_i32_0 = arith.constant 0 : i32
    return %c0_i32, %arg0 : i32, i32
  }
  func.func @transform_1(%arg0: i32) -> (i32, i32) {
    %c0_i32 = arith.constant 0 : i32
    %c0_i32_0 = arith.constant 0 : i32
    %c0_i32_1 = arith.constant 0 : i32
    return %c0_i32, %c0_i32_0 : i32, i32
  }
  func.func @transform_2(%arg0: i32) -> (i32, i32) {
    %c0_i32 = arith.constant 0 : i32
    %c0_i32_0 = arith.constant 0 : i32
    %c0_i32_1 = arith.constant 0 : i32
    return %c0_i32, %c0_i32_0 : i32, i32
  }
  func.func @transform_3(%arg0: i32) -> (i32, i32) {
    %c0_i32 = arith.constant 0 : i32
    %c0_i32_0 = arith.constant 0 : i32
    return %c0_i32, %arg0 : i32, i32
  }
}

module attributes {stable_mosaic.version = 11 : i64} {
  func.func @_warp_kernel(%arg0: i32, %arg1: memref<4x4xf32, #tpu.memory_space<smem>>, %arg2: memref<4x4xf32, #tpu.memory_space<smem>>, %arg3: memref<2x256xf32, #tpu.memory_space<vmem>>, %arg4: memref<1x1x256xf32, #tpu.memory_space<vmem>>, %arg5: memref<4x16x16xf32, #tpu.memory_space<vmem>>, %arg6: memref<1x4x256xf32, #tpu.memory_space<vmem>>) attributes {dimension_semantics = [#tpu.dimension_semantics<parallel>], iteration_bounds = array<i64: 4>, scalar_prefetch = 0 : i64, scratch_operands = 0 : i64, tpu.core_type = #tpu.core_type<tc>, window_params = [{transform_indices = @transform_0, window_bounds = array<i64: 4, 4>}, {transform_indices = @transform_1, window_bounds = array<i64: 4, 4>}, {pipeline_mode = #tpu.pipeline_mode<synchronous>, transform_indices = @transform_2, window_bounds = array<i64: 2, 256>}, {transform_indices = @transform_3, window_bounds = array<i64: 1, 1, 256>}, {pipeline_mode = #tpu.pipeline_mode<synchronous>, transform_indices = @transform_4, window_bounds = array<i64: 4, 16, 16>}, {transform_indices = @transform_5, window_bounds = array<i64: 1, 4, 256>}]} {
    %c0 = arith.constant 0 : index
    %c0_0 = arith.constant 0 : index
    %0 = vector.load %arg3[%c0, %c0_0] : memref<2x256xf32, #tpu.memory_space<vmem>>, vector<1x256xf32>
    %c1 = arith.constant 1 : index
    %c0_1 = arith.constant 0 : index
    %1 = vector.load %arg3[%c1, %c0_1] : memref<2x256xf32, #tpu.memory_space<vmem>>, vector<1x256xf32>
    %2 = tpu.iota {dimensions = array<i32: 0>} : vector<16x256xi32>
    %3 = tpu.iota {dimensions = array<i32: 0>} : vector<16x256xi32>
    %4 = arith.index_cast %arg0 : i32 to index
    %c0_2 = arith.constant 0 : index
    %5 = memref.load %arg1[%4, %c0_2] : memref<4x4xf32, #tpu.memory_space<smem>>
    %6 = arith.index_cast %arg0 : i32 to index
    %c0_3 = arith.constant 0 : index
    %7 = memref.load %arg2[%6, %c0_3] : memref<4x4xf32, #tpu.memory_space<smem>>
    %c0_4 = arith.constant 0 : index
    %c0_5 = arith.constant 0 : index
    %c0_6 = arith.constant 0 : index
    %8 = vector.load %arg4[%c0_4, %c0_5, %c0_6] : memref<1x1x256xf32, #tpu.memory_space<vmem>>, vector<1x1x256xf32>
    %9 = vector.shape_cast %8 : vector<1x1x256xf32> to vector<1x256xf32>
    %10 = vector.broadcast %5 : f32 to vector<1x256xf32>
    %11 = arith.mulf %9, %10 : vector<1x256xf32>
    %12 = arith.addf %0, %11 : vector<1x256xf32>
    %13 = vector.broadcast %7 : f32 to vector<1x256xf32>
    %14 = arith.mulf %9, %13 : vector<1x256xf32>
    %15 = arith.addf %1, %14 : vector<1x256xf32>
    %cst = arith.constant 2.000000e+00 : f32
    %16 = vector.broadcast %cst : f32 to vector<1x256xf32>
    %17 = arith.mulf %16, %12 : vector<1x256xf32>
    %cst_7 = arith.constant 1.500000e+01 : f32
    %18 = vector.broadcast %cst_7 : f32 to vector<1x256xf32>
    %19 = arith.divf %17, %18 : vector<1x256xf32>
    %cst_8 = arith.constant 1.000000e+00 : f32
    %20 = vector.broadcast %cst_8 : f32 to vector<1x256xf32>
    %21 = arith.subf %19, %20 : vector<1x256xf32>
    %cst_9 = arith.constant 2.000000e+00 : f32
    %22 = vector.broadcast %cst_9 : f32 to vector<1x256xf32>
    %23 = arith.mulf %22, %15 : vector<1x256xf32>
    %cst_10 = arith.constant 1.500000e+01 : f32
    %24 = vector.broadcast %cst_10 : f32 to vector<1x256xf32>
    %25 = arith.divf %23, %24 : vector<1x256xf32>
    %cst_11 = arith.constant 1.000000e+00 : f32
    %26 = vector.broadcast %cst_11 : f32 to vector<1x256xf32>
    %27 = arith.subf %25, %26 : vector<1x256xf32>
    %cst_12 = arith.constant 1.000000e+00 : f32
    %28 = vector.broadcast %cst_12 : f32 to vector<1x256xf32>
    %29 = arith.addf %21, %28 : vector<1x256xf32>
    %cst_13 = arith.constant 1.600000e+01 : f32
    %30 = vector.broadcast %cst_13 : f32 to vector<1x256xf32>
    %31 = arith.mulf %29, %30 : vector<1x256xf32>
    %cst_14 = arith.constant 1.000000e+00 : f32
    %32 = vector.broadcast %cst_14 : f32 to vector<1x256xf32>
    %33 = arith.subf %31, %32 : vector<1x256xf32>
    %cst_15 = arith.constant 5.000000e-01 : f32
    %34 = vector.broadcast %cst_15 : f32 to vector<1x256xf32>
    %35 = arith.mulf %33, %34 : vector<1x256xf32>
    %cst_16 = arith.constant 1.000000e+00 : f32
    %36 = vector.broadcast %cst_16 : f32 to vector<1x256xf32>
    %37 = arith.addf %27, %36 : vector<1x256xf32>
    %cst_17 = arith.constant 1.600000e+01 : f32
    %38 = vector.broadcast %cst_17 : f32 to vector<1x256xf32>
    %39 = arith.mulf %37, %38 : vector<1x256xf32>
    %cst_18 = arith.constant 1.000000e+00 : f32
    %40 = vector.broadcast %cst_18 : f32 to vector<1x256xf32>
    %41 = arith.subf %39, %40 : vector<1x256xf32>
    %cst_19 = arith.constant 5.000000e-01 : f32
    %42 = vector.broadcast %cst_19 : f32 to vector<1x256xf32>
    %43 = arith.mulf %41, %42 : vector<1x256xf32>
    %44 = math.floor %35 : vector<1x256xf32>
    %45 = math.floor %43 : vector<1x256xf32>
    %46 = arith.fptosi %44 : vector<1x256xf32> to vector<1x256xi32>
    %47 = arith.fptosi %45 : vector<1x256xf32> to vector<1x256xi32>
    %48 = arith.subf %35, %44 : vector<1x256xf32>
    %cst_20 = arith.constant 1.000000e+00 : f32
    %49 = vector.broadcast %cst_20 : f32 to vector<1x256xf32>
    %50 = arith.subf %49, %48 : vector<1x256xf32>
    %51 = arith.subf %43, %45 : vector<1x256xf32>
    %cst_21 = arith.constant 1.000000e+00 : f32
    %52 = vector.broadcast %cst_21 : f32 to vector<1x256xf32>
    %53 = arith.subf %52, %51 : vector<1x256xf32>
    %54 = vector.broadcast %47 : vector<1x256xi32> to vector<16x256xi32>
    %55 = arith.cmpi eq, %2, %54 : vector<16x256xi32>
    %cst_22 = arith.constant 0.000000e+00 : f32
    %56 = vector.shape_cast %53 : vector<1x256xf32> to vector<1x256xf32>
    %57 = vector.broadcast %56 : vector<1x256xf32> to vector<16x256xf32>
    %58 = vector.broadcast %cst_22 : f32 to vector<16x256xf32>
    %59 = arith.select %55, %57, %58 : vector<16x256xi1>, vector<16x256xf32>
    %c1_i32 = arith.constant 1 : i32
    %60 = vector.broadcast %c1_i32 : i32 to vector<1x256xi32>
    %61 = arith.addi %47, %60 : vector<1x256xi32>
    %62 = vector.broadcast %61 : vector<1x256xi32> to vector<16x256xi32>
    %63 = arith.cmpi eq, %2, %62 : vector<16x256xi32>
    %cst_23 = arith.constant 0.000000e+00 : f32
    %64 = vector.shape_cast %51 : vector<1x256xf32> to vector<1x256xf32>
    %65 = vector.broadcast %64 : vector<1x256xf32> to vector<16x256xf32>
    %66 = vector.broadcast %cst_23 : f32 to vector<16x256xf32>
    %67 = arith.select %63, %65, %66 : vector<16x256xi1>, vector<16x256xf32>
    %68 = arith.addf %59, %67 : vector<16x256xf32>
    %c0_24 = arith.constant 0 : index
    %c0_25 = arith.constant 0 : index
    %c0_26 = arith.constant 0 : index
    %69 = vector.load %arg5[%c0_24, %c0_25, %c0_26] : memref<4x16x16xf32, #tpu.memory_space<vmem>>, vector<1x16x16xf32>
    %70 = vector.shape_cast %69 : vector<1x16x16xf32> to vector<16x16xf32>
    %cst_27 = arith.constant dense<0.000000e+00> : vector<16x256xf32>
    %71 = tpu.matmul %70, %68, %cst_27 {dimension_numbers = #tpu.dot_dimension_numbers<[1], [0], [0], [1], [0, 0, 1, 1], [], []>} : vector<16x16xf32>, vector<16x256xf32>, vector<16x256xf32> -> vector<16x256xf32>
    %72 = vector.broadcast %46 : vector<1x256xi32> to vector<16x256xi32>
    %73 = arith.cmpi eq, %3, %72 : vector<16x256xi32>
    %cst_28 = arith.constant 0.000000e+00 : f32
    %74 = vector.shape_cast %50 : vector<1x256xf32> to vector<1x256xf32>
    %75 = vector.broadcast %74 : vector<1x256xf32> to vector<16x256xf32>
    %76 = vector.broadcast %cst_28 : f32 to vector<16x256xf32>
    %77 = arith.select %73, %75, %76 : vector<16x256xi1>, vector<16x256xf32>
    %c1_i32_29 = arith.constant 1 : i32
    %78 = vector.broadcast %c1_i32_29 : i32 to vector<1x256xi32>
    %79 = arith.addi %46, %78 : vector<1x256xi32>
    %80 = vector.broadcast %79 : vector<1x256xi32> to vector<16x256xi32>
    %81 = arith.cmpi eq, %3, %80 : vector<16x256xi32>
    %cst_30 = arith.constant 0.000000e+00 : f32
    %82 = vector.shape_cast %48 : vector<1x256xf32> to vector<1x256xf32>
    %83 = vector.broadcast %82 : vector<1x256xf32> to vector<16x256xf32>
    %84 = vector.broadcast %cst_30 : f32 to vector<16x256xf32>
    %85 = arith.select %81, %83, %84 : vector<16x256xi1>, vector<16x256xf32>
    %86 = arith.addf %77, %85 : vector<16x256xf32>
    %87 = arith.mulf %71, %86 : vector<16x256xf32>
    %cst_31 = arith.constant dense<0.000000e+00> : vector<256xf32>
    %88 = vector.multi_reduction <add>, %87, %cst_31 [0] : vector<16x256xf32> to vector<256xf32>
    %89 = vector.shape_cast %88 : vector<256xf32> to vector<1x256xf32>
    %90 = arith.index_cast %arg0 : i32 to index
    %c1_32 = arith.constant 1 : index
    %91 = memref.load %arg1[%90, %c1_32] : memref<4x4xf32, #tpu.memory_space<smem>>
    %92 = arith.index_cast %arg0 : i32 to index
    %c1_33 = arith.constant 1 : index
    %93 = memref.load %arg2[%92, %c1_33] : memref<4x4xf32, #tpu.memory_space<smem>>
    %c0_34 = arith.constant 0 : index
    %c0_35 = arith.constant 0 : index
    %c0_36 = arith.constant 0 : index
    %94 = vector.load %arg4[%c0_34, %c0_35, %c0_36] : memref<1x1x256xf32, #tpu.memory_space<vmem>>, vector<1x1x256xf32>
    %95 = vector.shape_cast %94 : vector<1x1x256xf32> to vector<1x256xf32>
    %96 = vector.broadcast %91 : f32 to vector<1x256xf32>
    %97 = arith.mulf %95, %96 : vector<1x256xf32>
    %98 = arith.addf %0, %97 : vector<1x256xf32>
    %99 = vector.broadcast %93 : f32 to vector<1x256xf32>
    %100 = arith.mulf %95, %99 : vector<1x256xf32>
    %101 = arith.addf %1, %100 : vector<1x256xf32>
    %cst_37 = arith.constant 2.000000e+00 : f32
    %102 = vector.broadcast %cst_37 : f32 to vector<1x256xf32>
    %103 = arith.mulf %102, %98 : vector<1x256xf32>
    %cst_38 = arith.constant 1.500000e+01 : f32
    %104 = vector.broadcast %cst_38 : f32 to vector<1x256xf32>
    %105 = arith.divf %103, %104 : vector<1x256xf32>
    %cst_39 = arith.constant 1.000000e+00 : f32
    %106 = vector.broadcast %cst_39 : f32 to vector<1x256xf32>
    %107 = arith.subf %105, %106 : vector<1x256xf32>
    %cst_40 = arith.constant 2.000000e+00 : f32
    %108 = vector.broadcast %cst_40 : f32 to vector<1x256xf32>
    %109 = arith.mulf %108, %101 : vector<1x256xf32>
    %cst_41 = arith.constant 1.500000e+01 : f32
    %110 = vector.broadcast %cst_41 : f32 to vector<1x256xf32>
    %111 = arith.divf %109, %110 : vector<1x256xf32>
    %cst_42 = arith.constant 1.000000e+00 : f32
    %112 = vector.broadcast %cst_42 : f32 to vector<1x256xf32>
    %113 = arith.subf %111, %112 : vector<1x256xf32>
    %cst_43 = arith.constant 1.000000e+00 : f32
    %114 = vector.broadcast %cst_43 : f32 to vector<1x256xf32>
    %115 = arith.addf %107, %114 : vector<1x256xf32>
    %cst_44 = arith.constant 1.600000e+01 : f32
    %116 = vector.broadcast %cst_44 : f32 to vector<1x256xf32>
    %117 = arith.mulf %115, %116 : vector<1x256xf32>
    %cst_45 = arith.constant 1.000000e+00 : f32
    %118 = vector.broadcast %cst_45 : f32 to vector<1x256xf32>
    %119 = arith.subf %117, %118 : vector<1x256xf32>
    %cst_46 = arith.constant 5.000000e-01 : f32
    %120 = vector.broadcast %cst_46 : f32 to vector<1x256xf32>
    %121 = arith.mulf %119, %120 : vector<1x256xf32>
    %cst_47 = arith.constant 1.000000e+00 : f32
    %122 = vector.broadcast %cst_47 : f32 to vector<1x256xf32>
    %123 = arith.addf %113, %122 : vector<1x256xf32>
    %cst_48 = arith.constant 1.600000e+01 : f32
    %124 = vector.broadcast %cst_48 : f32 to vector<1x256xf32>
    %125 = arith.mulf %123, %124 : vector<1x256xf32>
    %cst_49 = arith.constant 1.000000e+00 : f32
    %126 = vector.broadcast %cst_49 : f32 to vector<1x256xf32>
    %127 = arith.subf %125, %126 : vector<1x256xf32>
    %cst_50 = arith.constant 5.000000e-01 : f32
    %128 = vector.broadcast %cst_50 : f32 to vector<1x256xf32>
    %129 = arith.mulf %127, %128 : vector<1x256xf32>
    %130 = math.floor %121 : vector<1x256xf32>
    %131 = math.floor %129 : vector<1x256xf32>
    %132 = arith.fptosi %130 : vector<1x256xf32> to vector<1x256xi32>
    %133 = arith.fptosi %131 : vector<1x256xf32> to vector<1x256xi32>
    %134 = arith.subf %121, %130 : vector<1x256xf32>
    %cst_51 = arith.constant 1.000000e+00 : f32
    %135 = vector.broadcast %cst_51 : f32 to vector<1x256xf32>
    %136 = arith.subf %135, %134 : vector<1x256xf32>
    %137 = arith.subf %129, %131 : vector<1x256xf32>
    %cst_52 = arith.constant 1.000000e+00 : f32
    %138 = vector.broadcast %cst_52 : f32 to vector<1x256xf32>
    %139 = arith.subf %138, %137 : vector<1x256xf32>
    %140 = vector.broadcast %133 : vector<1x256xi32> to vector<16x256xi32>
    %141 = arith.cmpi eq, %2, %140 : vector<16x256xi32>
    %cst_53 = arith.constant 0.000000e+00 : f32
    %142 = vector.shape_cast %139 : vector<1x256xf32> to vector<1x256xf32>
    %143 = vector.broadcast %142 : vector<1x256xf32> to vector<16x256xf32>
    %144 = vector.broadcast %cst_53 : f32 to vector<16x256xf32>
    %145 = arith.select %141, %143, %144 : vector<16x256xi1>, vector<16x256xf32>
    %c1_i32_54 = arith.constant 1 : i32
    %146 = vector.broadcast %c1_i32_54 : i32 to vector<1x256xi32>
    %147 = arith.addi %133, %146 : vector<1x256xi32>
    %148 = vector.broadcast %147 : vector<1x256xi32> to vector<16x256xi32>
    %149 = arith.cmpi eq, %2, %148 : vector<16x256xi32>
    %cst_55 = arith.constant 0.000000e+00 : f32
    %150 = vector.shape_cast %137 : vector<1x256xf32> to vector<1x256xf32>
    %151 = vector.broadcast %150 : vector<1x256xf32> to vector<16x256xf32>
    %152 = vector.broadcast %cst_55 : f32 to vector<16x256xf32>
    %153 = arith.select %149, %151, %152 : vector<16x256xi1>, vector<16x256xf32>
    %154 = arith.addf %145, %153 : vector<16x256xf32>
    %c1_56 = arith.constant 1 : index
    %c0_57 = arith.constant 0 : index
    %c0_58 = arith.constant 0 : index
    %155 = vector.load %arg5[%c1_56, %c0_57, %c0_58] : memref<4x16x16xf32, #tpu.memory_space<vmem>>, vector<1x16x16xf32>
    %156 = vector.shape_cast %155 : vector<1x16x16xf32> to vector<16x16xf32>
    %cst_59 = arith.constant dense<0.000000e+00> : vector<16x256xf32>
    %157 = tpu.matmul %156, %154, %cst_59 {dimension_numbers = #tpu.dot_dimension_numbers<[1], [0], [0], [1], [0, 0, 1, 1], [], []>} : vector<16x16xf32>, vector<16x256xf32>, vector<16x256xf32> -> vector<16x256xf32>
    %158 = vector.broadcast %132 : vector<1x256xi32> to vector<16x256xi32>
    %159 = arith.cmpi eq, %3, %158 : vector<16x256xi32>
    %cst_60 = arith.constant 0.000000e+00 : f32
    %160 = vector.shape_cast %136 : vector<1x256xf32> to vector<1x256xf32>
    %161 = vector.broadcast %160 : vector<1x256xf32> to vector<16x256xf32>
    %162 = vector.broadcast %cst_60 : f32 to vector<16x256xf32>
    %163 = arith.select %159, %161, %162 : vector<16x256xi1>, vector<16x256xf32>
    %c1_i32_61 = arith.constant 1 : i32
    %164 = vector.broadcast %c1_i32_61 : i32 to vector<1x256xi32>
    %165 = arith.addi %132, %164 : vector<1x256xi32>
    %166 = vector.broadcast %165 : vector<1x256xi32> to vector<16x256xi32>
    %167 = arith.cmpi eq, %3, %166 : vector<16x256xi32>
    %cst_62 = arith.constant 0.000000e+00 : f32
    %168 = vector.shape_cast %134 : vector<1x256xf32> to vector<1x256xf32>
    %169 = vector.broadcast %168 : vector<1x256xf32> to vector<16x256xf32>
    %170 = vector.broadcast %cst_62 : f32 to vector<16x256xf32>
    %171 = arith.select %167, %169, %170 : vector<16x256xi1>, vector<16x256xf32>
    %172 = arith.addf %163, %171 : vector<16x256xf32>
    %173 = arith.mulf %157, %172 : vector<16x256xf32>
    %cst_63 = arith.constant dense<0.000000e+00> : vector<256xf32>
    %174 = vector.multi_reduction <add>, %173, %cst_63 [0] : vector<16x256xf32> to vector<256xf32>
    %175 = vector.shape_cast %174 : vector<256xf32> to vector<1x256xf32>
    %176 = arith.index_cast %arg0 : i32 to index
    %c2 = arith.constant 2 : index
    %177 = memref.load %arg1[%176, %c2] : memref<4x4xf32, #tpu.memory_space<smem>>
    %178 = arith.index_cast %arg0 : i32 to index
    %c2_64 = arith.constant 2 : index
    %179 = memref.load %arg2[%178, %c2_64] : memref<4x4xf32, #tpu.memory_space<smem>>
    %c0_65 = arith.constant 0 : index
    %c0_66 = arith.constant 0 : index
    %c0_67 = arith.constant 0 : index
    %180 = vector.load %arg4[%c0_65, %c0_66, %c0_67] : memref<1x1x256xf32, #tpu.memory_space<vmem>>, vector<1x1x256xf32>
    %181 = vector.shape_cast %180 : vector<1x1x256xf32> to vector<1x256xf32>
    %182 = vector.broadcast %177 : f32 to vector<1x256xf32>
    %183 = arith.mulf %181, %182 : vector<1x256xf32>
    %184 = arith.addf %0, %183 : vector<1x256xf32>
    %185 = vector.broadcast %179 : f32 to vector<1x256xf32>
    %186 = arith.mulf %181, %185 : vector<1x256xf32>
    %187 = arith.addf %1, %186 : vector<1x256xf32>
    %cst_68 = arith.constant 2.000000e+00 : f32
    %188 = vector.broadcast %cst_68 : f32 to vector<1x256xf32>
    %189 = arith.mulf %188, %184 : vector<1x256xf32>
    %cst_69 = arith.constant 1.500000e+01 : f32
    %190 = vector.broadcast %cst_69 : f32 to vector<1x256xf32>
    %191 = arith.divf %189, %190 : vector<1x256xf32>
    %cst_70 = arith.constant 1.000000e+00 : f32
    %192 = vector.broadcast %cst_70 : f32 to vector<1x256xf32>
    %193 = arith.subf %191, %192 : vector<1x256xf32>
    %cst_71 = arith.constant 2.000000e+00 : f32
    %194 = vector.broadcast %cst_71 : f32 to vector<1x256xf32>
    %195 = arith.mulf %194, %187 : vector<1x256xf32>
    %cst_72 = arith.constant 1.500000e+01 : f32
    %196 = vector.broadcast %cst_72 : f32 to vector<1x256xf32>
    %197 = arith.divf %195, %196 : vector<1x256xf32>
    %cst_73 = arith.constant 1.000000e+00 : f32
    %198 = vector.broadcast %cst_73 : f32 to vector<1x256xf32>
    %199 = arith.subf %197, %198 : vector<1x256xf32>
    %cst_74 = arith.constant 1.000000e+00 : f32
    %200 = vector.broadcast %cst_74 : f32 to vector<1x256xf32>
    %201 = arith.addf %193, %200 : vector<1x256xf32>
    %cst_75 = arith.constant 1.600000e+01 : f32
    %202 = vector.broadcast %cst_75 : f32 to vector<1x256xf32>
    %203 = arith.mulf %201, %202 : vector<1x256xf32>
    %cst_76 = arith.constant 1.000000e+00 : f32
    %204 = vector.broadcast %cst_76 : f32 to vector<1x256xf32>
    %205 = arith.subf %203, %204 : vector<1x256xf32>
    %cst_77 = arith.constant 5.000000e-01 : f32
    %206 = vector.broadcast %cst_77 : f32 to vector<1x256xf32>
    %207 = arith.mulf %205, %206 : vector<1x256xf32>
    %cst_78 = arith.constant 1.000000e+00 : f32
    %208 = vector.broadcast %cst_78 : f32 to vector<1x256xf32>
    %209 = arith.addf %199, %208 : vector<1x256xf32>
    %cst_79 = arith.constant 1.600000e+01 : f32
    %210 = vector.broadcast %cst_79 : f32 to vector<1x256xf32>
    %211 = arith.mulf %209, %210 : vector<1x256xf32>
    %cst_80 = arith.constant 1.000000e+00 : f32
    %212 = vector.broadcast %cst_80 : f32 to vector<1x256xf32>
    %213 = arith.subf %211, %212 : vector<1x256xf32>
    %cst_81 = arith.constant 5.000000e-01 : f32
    %214 = vector.broadcast %cst_81 : f32 to vector<1x256xf32>
    %215 = arith.mulf %213, %214 : vector<1x256xf32>
    %216 = math.floor %207 : vector<1x256xf32>
    %217 = math.floor %215 : vector<1x256xf32>
    %218 = arith.fptosi %216 : vector<1x256xf32> to vector<1x256xi32>
    %219 = arith.fptosi %217 : vector<1x256xf32> to vector<1x256xi32>
    %220 = arith.subf %207, %216 : vector<1x256xf32>
    %cst_82 = arith.constant 1.000000e+00 : f32
    %221 = vector.broadcast %cst_82 : f32 to vector<1x256xf32>
    %222 = arith.subf %221, %220 : vector<1x256xf32>
    %223 = arith.subf %215, %217 : vector<1x256xf32>
    %cst_83 = arith.constant 1.000000e+00 : f32
    %224 = vector.broadcast %cst_83 : f32 to vector<1x256xf32>
    %225 = arith.subf %224, %223 : vector<1x256xf32>
    %226 = vector.broadcast %219 : vector<1x256xi32> to vector<16x256xi32>
    %227 = arith.cmpi eq, %2, %226 : vector<16x256xi32>
    %cst_84 = arith.constant 0.000000e+00 : f32
    %228 = vector.shape_cast %225 : vector<1x256xf32> to vector<1x256xf32>
    %229 = vector.broadcast %228 : vector<1x256xf32> to vector<16x256xf32>
    %230 = vector.broadcast %cst_84 : f32 to vector<16x256xf32>
    %231 = arith.select %227, %229, %230 : vector<16x256xi1>, vector<16x256xf32>
    %c1_i32_85 = arith.constant 1 : i32
    %232 = vector.broadcast %c1_i32_85 : i32 to vector<1x256xi32>
    %233 = arith.addi %219, %232 : vector<1x256xi32>
    %234 = vector.broadcast %233 : vector<1x256xi32> to vector<16x256xi32>
    %235 = arith.cmpi eq, %2, %234 : vector<16x256xi32>
    %cst_86 = arith.constant 0.000000e+00 : f32
    %236 = vector.shape_cast %223 : vector<1x256xf32> to vector<1x256xf32>
    %237 = vector.broadcast %236 : vector<1x256xf32> to vector<16x256xf32>
    %238 = vector.broadcast %cst_86 : f32 to vector<16x256xf32>
    %239 = arith.select %235, %237, %238 : vector<16x256xi1>, vector<16x256xf32>
    %240 = arith.addf %231, %239 : vector<16x256xf32>
    %c2_87 = arith.constant 2 : index
    %c0_88 = arith.constant 0 : index
    %c0_89 = arith.constant 0 : index
    %241 = vector.load %arg5[%c2_87, %c0_88, %c0_89] : memref<4x16x16xf32, #tpu.memory_space<vmem>>, vector<1x16x16xf32>
    %242 = vector.shape_cast %241 : vector<1x16x16xf32> to vector<16x16xf32>
    %cst_90 = arith.constant dense<0.000000e+00> : vector<16x256xf32>
    %243 = tpu.matmul %242, %240, %cst_90 {dimension_numbers = #tpu.dot_dimension_numbers<[1], [0], [0], [1], [0, 0, 1, 1], [], []>} : vector<16x16xf32>, vector<16x256xf32>, vector<16x256xf32> -> vector<16x256xf32>
    %244 = vector.broadcast %218 : vector<1x256xi32> to vector<16x256xi32>
    %245 = arith.cmpi eq, %3, %244 : vector<16x256xi32>
    %cst_91 = arith.constant 0.000000e+00 : f32
    %246 = vector.shape_cast %222 : vector<1x256xf32> to vector<1x256xf32>
    %247 = vector.broadcast %246 : vector<1x256xf32> to vector<16x256xf32>
    %248 = vector.broadcast %cst_91 : f32 to vector<16x256xf32>
    %249 = arith.select %245, %247, %248 : vector<16x256xi1>, vector<16x256xf32>
    %c1_i32_92 = arith.constant 1 : i32
    %250 = vector.broadcast %c1_i32_92 : i32 to vector<1x256xi32>
    %251 = arith.addi %218, %250 : vector<1x256xi32>
    %252 = vector.broadcast %251 : vector<1x256xi32> to vector<16x256xi32>
    %253 = arith.cmpi eq, %3, %252 : vector<16x256xi32>
    %cst_93 = arith.constant 0.000000e+00 : f32
    %254 = vector.shape_cast %220 : vector<1x256xf32> to vector<1x256xf32>
    %255 = vector.broadcast %254 : vector<1x256xf32> to vector<16x256xf32>
    %256 = vector.broadcast %cst_93 : f32 to vector<16x256xf32>
    %257 = arith.select %253, %255, %256 : vector<16x256xi1>, vector<16x256xf32>
    %258 = arith.addf %249, %257 : vector<16x256xf32>
    %259 = arith.mulf %243, %258 : vector<16x256xf32>
    %cst_94 = arith.constant dense<0.000000e+00> : vector<256xf32>
    %260 = vector.multi_reduction <add>, %259, %cst_94 [0] : vector<16x256xf32> to vector<256xf32>
    %261 = vector.shape_cast %260 : vector<256xf32> to vector<1x256xf32>
    %262 = arith.index_cast %arg0 : i32 to index
    %c3 = arith.constant 3 : index
    %263 = memref.load %arg1[%262, %c3] : memref<4x4xf32, #tpu.memory_space<smem>>
    %264 = arith.index_cast %arg0 : i32 to index
    %c3_95 = arith.constant 3 : index
    %265 = memref.load %arg2[%264, %c3_95] : memref<4x4xf32, #tpu.memory_space<smem>>
    %c0_96 = arith.constant 0 : index
    %c0_97 = arith.constant 0 : index
    %c0_98 = arith.constant 0 : index
    %266 = vector.load %arg4[%c0_96, %c0_97, %c0_98] : memref<1x1x256xf32, #tpu.memory_space<vmem>>, vector<1x1x256xf32>
    %267 = vector.shape_cast %266 : vector<1x1x256xf32> to vector<1x256xf32>
    %268 = vector.broadcast %263 : f32 to vector<1x256xf32>
    %269 = arith.mulf %267, %268 : vector<1x256xf32>
    %270 = arith.addf %0, %269 : vector<1x256xf32>
    %271 = vector.broadcast %265 : f32 to vector<1x256xf32>
    %272 = arith.mulf %267, %271 : vector<1x256xf32>
    %273 = arith.addf %1, %272 : vector<1x256xf32>
    %cst_99 = arith.constant 2.000000e+00 : f32
    %274 = vector.broadcast %cst_99 : f32 to vector<1x256xf32>
    %275 = arith.mulf %274, %270 : vector<1x256xf32>
    %cst_100 = arith.constant 1.500000e+01 : f32
    %276 = vector.broadcast %cst_100 : f32 to vector<1x256xf32>
    %277 = arith.divf %275, %276 : vector<1x256xf32>
    %cst_101 = arith.constant 1.000000e+00 : f32
    %278 = vector.broadcast %cst_101 : f32 to vector<1x256xf32>
    %279 = arith.subf %277, %278 : vector<1x256xf32>
    %cst_102 = arith.constant 2.000000e+00 : f32
    %280 = vector.broadcast %cst_102 : f32 to vector<1x256xf32>
    %281 = arith.mulf %280, %273 : vector<1x256xf32>
    %cst_103 = arith.constant 1.500000e+01 : f32
    %282 = vector.broadcast %cst_103 : f32 to vector<1x256xf32>
    %283 = arith.divf %281, %282 : vector<1x256xf32>
    %cst_104 = arith.constant 1.000000e+00 : f32
    %284 = vector.broadcast %cst_104 : f32 to vector<1x256xf32>
    %285 = arith.subf %283, %284 : vector<1x256xf32>
    %cst_105 = arith.constant 1.000000e+00 : f32
    %286 = vector.broadcast %cst_105 : f32 to vector<1x256xf32>
    %287 = arith.addf %279, %286 : vector<1x256xf32>
    %cst_106 = arith.constant 1.600000e+01 : f32
    %288 = vector.broadcast %cst_106 : f32 to vector<1x256xf32>
    %289 = arith.mulf %287, %288 : vector<1x256xf32>
    %cst_107 = arith.constant 1.000000e+00 : f32
    %290 = vector.broadcast %cst_107 : f32 to vector<1x256xf32>
    %291 = arith.subf %289, %290 : vector<1x256xf32>
    %cst_108 = arith.constant 5.000000e-01 : f32
    %292 = vector.broadcast %cst_108 : f32 to vector<1x256xf32>
    %293 = arith.mulf %291, %292 : vector<1x256xf32>
    %cst_109 = arith.constant 1.000000e+00 : f32
    %294 = vector.broadcast %cst_109 : f32 to vector<1x256xf32>
    %295 = arith.addf %285, %294 : vector<1x256xf32>
    %cst_110 = arith.constant 1.600000e+01 : f32
    %296 = vector.broadcast %cst_110 : f32 to vector<1x256xf32>
    %297 = arith.mulf %295, %296 : vector<1x256xf32>
    %cst_111 = arith.constant 1.000000e+00 : f32
    %298 = vector.broadcast %cst_111 : f32 to vector<1x256xf32>
    %299 = arith.subf %297, %298 : vector<1x256xf32>
    %cst_112 = arith.constant 5.000000e-01 : f32
    %300 = vector.broadcast %cst_112 : f32 to vector<1x256xf32>
    %301 = arith.mulf %299, %300 : vector<1x256xf32>
    %302 = math.floor %293 : vector<1x256xf32>
    %303 = math.floor %301 : vector<1x256xf32>
    %304 = arith.fptosi %302 : vector<1x256xf32> to vector<1x256xi32>
    %305 = arith.fptosi %303 : vector<1x256xf32> to vector<1x256xi32>
    %306 = arith.subf %293, %302 : vector<1x256xf32>
    %cst_113 = arith.constant 1.000000e+00 : f32
    %307 = vector.broadcast %cst_113 : f32 to vector<1x256xf32>
    %308 = arith.subf %307, %306 : vector<1x256xf32>
    %309 = arith.subf %301, %303 : vector<1x256xf32>
    %cst_114 = arith.constant 1.000000e+00 : f32
    %310 = vector.broadcast %cst_114 : f32 to vector<1x256xf32>
    %311 = arith.subf %310, %309 : vector<1x256xf32>
    %312 = vector.broadcast %305 : vector<1x256xi32> to vector<16x256xi32>
    %313 = arith.cmpi eq, %2, %312 : vector<16x256xi32>
    %cst_115 = arith.constant 0.000000e+00 : f32
    %314 = vector.shape_cast %311 : vector<1x256xf32> to vector<1x256xf32>
    %315 = vector.broadcast %314 : vector<1x256xf32> to vector<16x256xf32>
    %316 = vector.broadcast %cst_115 : f32 to vector<16x256xf32>
    %317 = arith.select %313, %315, %316 : vector<16x256xi1>, vector<16x256xf32>
    %c1_i32_116 = arith.constant 1 : i32
    %318 = vector.broadcast %c1_i32_116 : i32 to vector<1x256xi32>
    %319 = arith.addi %305, %318 : vector<1x256xi32>
    %320 = vector.broadcast %319 : vector<1x256xi32> to vector<16x256xi32>
    %321 = arith.cmpi eq, %2, %320 : vector<16x256xi32>
    %cst_117 = arith.constant 0.000000e+00 : f32
    %322 = vector.shape_cast %309 : vector<1x256xf32> to vector<1x256xf32>
    %323 = vector.broadcast %322 : vector<1x256xf32> to vector<16x256xf32>
    %324 = vector.broadcast %cst_117 : f32 to vector<16x256xf32>
    %325 = arith.select %321, %323, %324 : vector<16x256xi1>, vector<16x256xf32>
    %326 = arith.addf %317, %325 : vector<16x256xf32>
    %c3_118 = arith.constant 3 : index
    %c0_119 = arith.constant 0 : index
    %c0_120 = arith.constant 0 : index
    %327 = vector.load %arg5[%c3_118, %c0_119, %c0_120] : memref<4x16x16xf32, #tpu.memory_space<vmem>>, vector<1x16x16xf32>
    %328 = vector.shape_cast %327 : vector<1x16x16xf32> to vector<16x16xf32>
    %cst_121 = arith.constant dense<0.000000e+00> : vector<16x256xf32>
    %329 = tpu.matmul %328, %326, %cst_121 {dimension_numbers = #tpu.dot_dimension_numbers<[1], [0], [0], [1], [0, 0, 1, 1], [], []>} : vector<16x16xf32>, vector<16x256xf32>, vector<16x256xf32> -> vector<16x256xf32>
    %330 = vector.broadcast %304 : vector<1x256xi32> to vector<16x256xi32>
    %331 = arith.cmpi eq, %3, %330 : vector<16x256xi32>
    %cst_122 = arith.constant 0.000000e+00 : f32
    %332 = vector.shape_cast %308 : vector<1x256xf32> to vector<1x256xf32>
    %333 = vector.broadcast %332 : vector<1x256xf32> to vector<16x256xf32>
    %334 = vector.broadcast %cst_122 : f32 to vector<16x256xf32>
    %335 = arith.select %331, %333, %334 : vector<16x256xi1>, vector<16x256xf32>
    %c1_i32_123 = arith.constant 1 : i32
    %336 = vector.broadcast %c1_i32_123 : i32 to vector<1x256xi32>
    %337 = arith.addi %304, %336 : vector<1x256xi32>
    %338 = vector.broadcast %337 : vector<1x256xi32> to vector<16x256xi32>
    %339 = arith.cmpi eq, %3, %338 : vector<16x256xi32>
    %cst_124 = arith.constant 0.000000e+00 : f32
    %340 = vector.shape_cast %306 : vector<1x256xf32> to vector<1x256xf32>
    %341 = vector.broadcast %340 : vector<1x256xf32> to vector<16x256xf32>
    %342 = vector.broadcast %cst_124 : f32 to vector<16x256xf32>
    %343 = arith.select %339, %341, %342 : vector<16x256xi1>, vector<16x256xf32>
    %344 = arith.addf %335, %343 : vector<16x256xf32>
    %345 = arith.mulf %329, %344 : vector<16x256xf32>
    %cst_125 = arith.constant dense<0.000000e+00> : vector<256xf32>
    %346 = vector.multi_reduction <add>, %345, %cst_125 [0] : vector<16x256xf32> to vector<256xf32>
    %347 = vector.shape_cast %346 : vector<256xf32> to vector<1x256xf32>
    %348 = tpu.concatenate %89, %175, %261, %347 in 0 : vector<1x256xf32>, vector<1x256xf32>, vector<1x256xf32>, vector<1x256xf32> -> vector<4x256xf32>
    %c0_126 = arith.constant 0 : index
    %c0_127 = arith.constant 0 : index
    %c0_128 = arith.constant 0 : index
    %349 = vector.load %arg6[%c0_126, %c0_127, %c0_128] : memref<1x4x256xf32, #tpu.memory_space<vmem>>, vector<1x4x256xf32>
    %350 = vector.shape_cast %349 : vector<1x4x256xf32> to vector<4x256xf32>
    %351 = vector.shape_cast %348 : vector<4x256xf32> to vector<1x4x256xf32>
    tpu.vector_store %arg6[%c0_126, %c0_127, %c0_128], %351 {strides = array<i32>} : memref<1x4x256xf32, #tpu.memory_space<vmem>>, vector<1x4x256xf32>,
    return
  }
  func.func @transform_0(%arg0: i32) -> (i32, i32) {
    %c0_i32 = arith.constant 0 : i32
    %c0_i32_0 = arith.constant 0 : i32
    %c0_i32_1 = arith.constant 0 : i32
    return %c0_i32, %c0_i32_0 : i32, i32
  }
  func.func @transform_1(%arg0: i32) -> (i32, i32) {
    %c0_i32 = arith.constant 0 : i32
    %c0_i32_0 = arith.constant 0 : i32
    %c0_i32_1 = arith.constant 0 : i32
    return %c0_i32, %c0_i32_0 : i32, i32
  }
  func.func @transform_2(%arg0: i32) -> (i32, i32) {
    %c0_i32 = arith.constant 0 : i32
    %c0_i32_0 = arith.constant 0 : i32
    %c0_i32_1 = arith.constant 0 : i32
    return %c0_i32, %c0_i32_0 : i32, i32
  }
  func.func @transform_3(%arg0: i32) -> (i32, i32, i32) {
    %c0_i32 = arith.constant 0 : i32
    %c0_i32_0 = arith.constant 0 : i32
    %c0_i32_1 = arith.constant 0 : i32
    return %arg0, %c0_i32, %c0_i32_0 : i32, i32, i32
  }
  func.func @transform_4(%arg0: i32) -> (i32, i32, i32) {
    %c0_i32 = arith.constant 0 : i32
    %c0_i32_0 = arith.constant 0 : i32
    %c0_i32_1 = arith.constant 0 : i32
    %c0_i32_2 = arith.constant 0 : i32
    return %c0_i32, %c0_i32_0, %c0_i32_1 : i32, i32, i32
  }
  func.func @transform_5(%arg0: i32) -> (i32, i32, i32) {
    %c0_i32 = arith.constant 0 : i32
    %c0_i32_0 = arith.constant 0 : i32
    %c0_i32_1 = arith.constant 0 : i32
    return %arg0, %c0_i32, %c0_i32_0 : i32, i32, i32
  }
}

</mosaic_0001>

<bundles_post_ra>
// kernel: net_view_forward.10
= control target key start
LH: loop header
LB: loop body
LE: loop exit
PB: predicated region body
PF: predicated region fallthrough
CT: control target
= control target key end

     0   :  { %vm192_vm0 = vcmask 1041408   ;;  %vm188_vm1 = vcmask 556032   ;;  %s595_s0 = inlined_call_operand.vmem [shape: bf16[196,256], index: 0, kind: input, shape index: {}]   ;;  %s596_s2 = inlined_call_operand.vmem [shape: f32[16,1], index: 2, kind: input, shape index: {}]   ;;  %s597_s1 = inlined_call_operand.vmem [shape: bf16[16,196], index: 1, kind: input, shape index: {}]   ;;  %s598_s3 = inlined_call_operand.vmem [shape: bf16[16,256], index: 3, kind: output, shape index: {}]  }
   0x1   :  { %v333_v0 = vld [vmem:[%s595_s0 + $0x70] sm:$0xf]  ;;  %v390_v1 = vld [vmem:[%s595_s0 + $0x74] sm:$0xf0]  ;;  %v389_v2 = vld [vmem:[%s595_s0 + $0x74] sm:$0xf] }
   0x2   :  { %v334_v3 = vor.u32 %v390_v1, %v333_v0  ;;  %v335_v4 = vld [vmem:[%s595_s0 + $0x78] sm:$0xf0]  ;;  %v325_v5 = vld [vmem:[%s595_s0 + $0x60] sm:$0xf]  ;;  %v388_v6 = vld [vmem:[%s595_s0 + $0x64] sm:$0xf0] }
   0x3   :  { %v338_v7 = vor.u32 %v389_v2, %v335_v4  ;;  %v387_v8 = vld [vmem:[%s595_s0 + $0x64] sm:$0xf]  ;;  %v327_v9 = vld [vmem:[%s595_s0 + $0x68] sm:$0xf0]  ;;  %v326_v11 = vor.u32 %v388_v6, %v325_v5  ;;  %v317_v15 = vld [vmem:[%s595_s0 + $0x50] sm:$0xf] }
   0x4   :  { %v41_v10 = vld [vmem:[%s595_s0 + $0xc0] sm:$0x33]  ;;  %199 = vmatpush.bf16.msra.mxu0 %v334_v3  ;;  %v330_v14 = vor.u32 %v387_v8, %v327_v9  ;;  %v386_v16 = vld [vmem:[%s595_s0 + $0x54] sm:$0xf0]  ;;  %v385_v17 = vld [vmem:[%s595_s0 + $0x54] sm:$0xf] }
   0x5   :  { %v137_v12 = vunpack.c.h.b16 %v41_v10  ;;  %v136_v13 = vunpack.c.l.b16 %v41_v10  ;;  %227 = vmatpush.bf16.msra.mxu2 %v338_v7  ;;  %v319_v19 = vld [vmem:[%s595_s0 + $0x58] sm:$0xf0]  ;;  %v397_v20 = vld [vmem:[%s595_s0 + $0xb4] sm:$0xf]  ;;  %v318_v24 = vor.u32 %v386_v16, %v317_v15  ;;  %v309_v25 = vld [vmem:[%s595_s0 + $0x40] sm:$0xf] }
   0x6   :  { %v367_v21 = vld [vmem:[%s595_s0 + $0xb8] sm:$0xf0]  ;;  %v384_v26 = vld [vmem:[%s595_s0 + $0x44] sm:$0xf0]  ;;  %v322_v28 = vor.u32 %v385_v17, %v319_v19  ;;  %v383_v30 = vld [vmem:[%s595_s0 + $0x44] sm:$0xf] }
   0x7   :  { %v163_v18 = vpack.c.b16 %v137_v12, %v137_v12  ;;  %v162_v22 = vpack.c.b16 %v136_v13, %v136_v13  ;;  %v370_v29 = vor.u32 %v397_v20, %v367_v21  ;;  %v365_v31 = vld [vmem:[%s595_s0 + $0xb0] sm:$0xf]  ;;  %v398_v32 = vld [vmem:[%s595_s0 + $0xb4] sm:$0xf0]  ;;  %v311_v33 = vld [vmem:[%s595_s0 + $0x48] sm:$0xf0]  ;;  %v310_v38 = vor.u32 %v384_v26, %v309_v25 }
   0x8   :  { %200 = vmatpush.bf16.msra.mxu0 %v326_v11  ;;  %v395_v34 = vld [vmem:[%s595_s0 + $0xa4] sm:$0xf]  ;;  %v359_v35 = vld [vmem:[%s595_s0 + $0xa8] sm:$0xf0]  ;;  %v366_v36 = vor.u32 %v398_v32, %v365_v31  ;;  %v357_v37 = vld [vmem:[%s595_s0 + $0xa0] sm:$0xf]  ;;  %v314_v40 = vor.u32 %v383_v30, %v311_v33 }
   0x9   :  { %v197_v23 = vsel %vm192_vm0, %v163_v18, 0  ;;  %v194_v27 = vsel %vm192_vm0, %v162_v22, 0  ;;  %228 = vmatpush.bf16.msra.mxu2 %v330_v14  ;;  %v396_v39 = vld [vmem:[%s595_s0 + $0xa4] sm:$0xf0]  ;;  %v362_v41 = vor.u32 %v395_v34, %v359_v35  ;;  %v301_v42 = vld [vmem:[%s595_s0 + $0x30] sm:$0xf] }
   0xa   :  { %244 = vmatpush.bf16.msra.mxu3 %v197_v23  ;;  %216 = vmatpush.bf16.msra.mxu1 %v194_v27  ;;  %v382_v43 = vld [vmem:[%s595_s0 + $0x34] sm:$0xf0]  ;;  %v381_v44 = vld [vmem:[%s595_s0 + $0x34] sm:$0xf]  ;;  %v303_v45 = vld [vmem:[%s595_s0 + $0x38] sm:$0xf0]  ;;  %v358_v48 = vor.u32 %v396_v39, %v357_v37 }
   0xb   :  { %v393_v46 = vld [vmem:[%s595_s0 + $0x94] sm:$0xf]  ;;  %v351_v47 = vld [vmem:[%s595_s0 + $0x98] sm:$0xf0]  ;;  %v349_v49 = vld [vmem:[%s595_s0 + $0x90] sm:$0xf]  ;;  %v302_v51 = vor.u32 %v382_v43, %v301_v42  ;;  %v306_v52 = vor.u32 %v381_v44, %v303_v45 }
   0xc   :  { %201 = vmatpush.bf16.msra.mxu0 %v318_v24  ;;  %v394_v50 = vld [vmem:[%s595_s0 + $0x94] sm:$0xf0]  ;;  %v354_v53 = vor.u32 %v393_v46, %v351_v47  ;;  %v293_v54 = vld [vmem:[%s595_s0 + $0x20] sm:$0xf]  ;;  %v380_v55 = vld [vmem:[%s595_s0 + $0x24] sm:$0xf0] }
   0xd   :  { %229 = vmatpush.bf16.msra.mxu2 %v322_v28  ;;  %v379_v56 = vld [vmem:[%s595_s0 + $0x24] sm:$0xf]  ;;  %v295_v57 = vld [vmem:[%s595_s0 + $0x28] sm:$0xf0]  ;;  %v350_v60 = vor.u32 %v394_v50, %v349_v49  ;;  %v341_v61 = vld [vmem:[%s595_s0 + $0x80] sm:$0xf]  ;;  %v294_v0 = vor.u32 %v380_v55, %v293_v54 }
   0xe   :  { %245 = vmatpush.bf16.msra.mxu3 %v370_v29  ;;  %217 = vmatpush.bf16.msra.mxu1 %v366_v36  ;;  %v391_v58 = vld [vmem:[%s595_s0 + $0x84] sm:$0xf]  ;;  %v343_v59 = vld [vmem:[%s595_s0 + $0x88] sm:$0xf0]  ;;  %v392_v62 = vld [vmem:[%s595_s0 + $0x84] sm:$0xf0]  ;;  %v298_v3 = vor.u32 %v379_v56, %v295_v57 }
   0xf   :  { %v42_v63 = vld [vmem:[%s596_s2] sm:$0xff]  ;;  %v285_v1 = vld [vmem:[%s595_s0 + $0x10] sm:$0xf]  ;;  %v401_v2 = vmov 0   ;;  %v346_v4 = vor.u32 %v391_v58, %v343_v59  ;;  %v378_v5 = vld [vmem:[%s595_s0 + $0x14] sm:$0xf0]  ;;  %v342_v10 = vor.u32 %v392_v62, %v341_v61 }
  0x10   :  { %202 = vmatpush.bf16.msra.mxu0 %v310_v38  ;;  %400 = vset.pattern.permute.xlu0 %v401_v2  ;;  %v373_v6 = vld [vmem:[%s597_s1 + $0x4] sm:$0xf]  ;;  %v271_v7 = vld [vmem:[%s597_s1 + $0x8] sm:$0xf0]  ;;  %v377_v8 = vld [vmem:[%s595_s0 + $0x14] sm:$0xf]  ;;  %v286_v11 = vor.u32 %v378_v5, %v285_v1 }
  0x11   :  { %230 = vmatpush.bf16.msra.mxu2 %v314_v40  ;;  %v287_v9 = vld [vmem:[%s595_s0 + $0x18] sm:$0xf0]  ;;  %46 = vperm.xlu0 %400, %v42_v63   ;;  %v274_v12 = vor.u32 %v373_v6, %v271_v7  ;;  %v277_v14 = vld [vmem:[%s595_s0] sm:$0xf]  ;;  %v376_v15 = vld [vmem:[%s595_s0 + $0x4] sm:$0xf0] }
  0x12   :  { %246 = vmatpush.bf16.msra.mxu3 %v362_v41  ;;  %218 = vmatpush.bf16.msra.mxu1 %v358_v48  ;;  %v290_v13 = vor.u32 %v377_v8, %v287_v9  ;;  %v375_v16 = vld [vmem:[%s595_s0 + $0x4] sm:$0xf]  ;;  %v279_v17 = vld [vmem:[%s595_s0 + $0x8] sm:$0xf0]  ;;  %v278_v19 = vor.u32 %v376_v15, %v277_v14  ;;  %v269_v20 = vld [vmem:[%s597_s1] sm:$0xf] }
  0x13   :  { %v43_v18 = vld [vmem:[%s596_s2 + $0x8] sm:$0xff]  ;;  %v282_v22 = vor.u32 %v375_v16, %v279_v17 }
  0x14   :  { %203 = vmatpush.bf16.msra.mxu0 %v302_v51  ;;  %v374_v21 = vld [vmem:[%s597_s1 + $0x4] sm:$0xf0] }
  0x15   :  { %231 = vmatpush.bf16.msra.mxu2 %v306_v52  ;;  %v270_v23 = vor.u32 %v374_v21, %v269_v20 }
  0x16   :  { %247 = vmatpush.bf16.msra.mxu3 %v354_v53  ;;  %219 = vmatpush.bf16.msra.mxu1 %v350_v60 }
  0x18   :  { %204 = vmatpush.bf16.msra.mxu0 %v294_v0 }
  0x19   :  { %232 = vmatpush.bf16.msra.mxu2 %v298_v3  ;;  %51 = vperm.xlu0 %400, %v43_v18  }
  0x1a   :  { %248 = vmatpush.bf16.msra.mxu3 %v346_v4  ;;  %220 = vmatpush.bf16.msra.mxu1 %v342_v10 }
  0x1c   :  { %205 = vmatpush.bf16.msra.mxu0 %v286_v11 }
  0x1d   :  { %372 = vmatmul.msk.bf16.vlgmr.msra.gmra.mxu3 %vm188_vm1, %v274_v12  ;;  %233 = vmatpush.bf16.msra.mxu2 %v290_v13 }
  0x1e   :  { %371 = vmatmul.msk.bf16.vlgmr.msra.gmra.mxu1 %vm188_vm1, %v274_v12 }
  0x20   :  { %206 = vmatpush.bf16.msra.mxu0 %v278_v19 }
  0x21   :  { %234 = vmatpush.bf16.msra.mxu2 %v282_v22 }
  0x23   :  { %207 = vmatmul.bf16.vlgmr.msra.gmra.mxu0 %v270_v23 }
  0x24   :  { %235 = vmatmul.bf16.vlgmr.msra.gmra.mxu2 %v270_v23 }
  0x83   :  { %v47_v25 = vpop.permute.xlu0 %46 }
  0x8b   :  { %v52_v35 = vpop.permute.xlu0 %51 }
  0x9b   :  { %v222_v27 = vpop.f32.mrf.mxu1 }
  0xa0   :  { %v208_v24 = vpop.f32.mrf.mxu0  ;;  %v250_v29 = vpop.f32.mrf.mxu3 }
  0xa1   :  { %v209_v26 = vadd.f32 %v208_v24, %v47_v25 }
  0xa3   :  { %v223_v28 = vadd.f32 %v222_v27, %v209_v26  ;;  %v224_v39 = vpop.f32.mrf.mxu1 }
  0xa5   :  { %v255_v33 = vmax.f32 %v223_v28, 0.0 }
  0xa7   :  { %v236_v30 = vpop.f32.mrf.mxu2 }
  0xa8   :  { %v237_v31 = vadd.f32 %v236_v30, %v47_v25  ;;  %v210_v32 = vpop.f32.mrf.mxu0  ;;  %v252_v43 = vpop.f32.mrf.mxu3 }
  0xa9   :  { %v211_v37 = vadd.f32 %v210_v32, %v52_v35 }
  0xaa   :  { %v251_v34 = vadd.f32 %v250_v29, %v237_v31 }
  0xab   :  { %v225_v41 = vadd.f32 %v224_v39, %v211_v37 }
  0xac   :  { %v256_v36 = vmax.f32 %v251_v34, 0.0 }
  0xad   :  { %v257_v45 = vmax.f32 %v225_v41, 0.0 }
  0xae   :  { %v259_v38 = vpack.c.bf16 %v256_v36, %v255_v33 }
  0xaf   :  { %v238_v40 = vpop.f32.mrf.mxu2 }
  0xb0   :  { %261 = vst [vmem:[%s598_s3] sm:$0xff] %v259_v38  ;;  %v239_v42 = vadd.f32 %v238_v40, %v52_v35 }
  0xb2   :  { %v253_v44 = vadd.f32 %v252_v43, %v239_v42 }
  0xb4   :  { %v258_v46 = vmax.f32 %v253_v44, 0.0 }
  0xb6   :  { %v260_v47 = vpack.c.bf16 %v258_v46, %v257_v45 }
  0xb8   :  { %262 = vst [vmem:[%s598_s3 + $0x8] sm:$0xff] %v260_v47 }

// kernel: net_view_forward.11
= control target key start
LH: loop header
LB: loop body
LE: loop exit
PB: predicated region body
PF: predicated region fallthrough
CT: control target
= control target key end

     0   :  { %vm713_vm0 = vcmask 130048   ;;  %s2386_s0 = inlined_call_operand.vmem [shape: bf16[784,256], index: 0, kind: input, shape index: {}]   ;;  %s2387_s1 = inlined_call_operand.vmem [shape: bf16[32,784], index: 1, kind: input, shape index: {}]   ;;  %s2388_s2 = inlined_call_operand.vmem [shape: f32[32,1], index: 2, kind: input, shape index: {}]   ;;  %s2389_s3 = inlined_call_operand.vmem [shape: bf16[32,256], index: 3, kind: output, shape index: {}]  }
   0x1   :  { %v1120_v0 = vld [vmem:[%s2386_s0 + $0x70] sm:$0xf]  ;;  %v1487_v1 = vld [vmem:[%s2386_s0 + $0x74] sm:$0xf0]  ;;  %v1112_v11 = vld [vmem:[%s2386_s0 + $0x60] sm:$0xf] }
   0x2   :  { %v1184_v2 = vld [vmem:[%s2386_s0 + $0xf0] sm:$0xf]  ;;  %v1121_v3 = vor.u32 %v1487_v1, %v1120_v0  ;;  %v1503_v4 = vld [vmem:[%s2386_s0 + $0xf4] sm:$0xf0]  ;;  %v1485_v13 = vld [vmem:[%s2386_s0 + $0x64] sm:$0xf0] }
   0x3   :  { %v1248_v5 = vld [vmem:[%s2386_s0 + $0x170] sm:$0xf]  ;;  %v1519_v6 = vld [vmem:[%s2386_s0 + $0x174] sm:$0xf0]  ;;  %v1185_v7 = vor.u32 %v1503_v4, %v1184_v2  ;;  %v1176_v14 = vld [vmem:[%s2386_s0 + $0xe0] sm:$0xf]  ;;  %v1113_v16 = vor.u32 %v1485_v13, %v1112_v11 }
   0x4   :  { %v1249_v8 = vor.u32 %v1519_v6, %v1248_v5  ;;  %v1312_v9 = vld [vmem:[%s2386_s0 + $0x1f0] sm:$0xf]  ;;  %v1535_v10 = vld [vmem:[%s2386_s0 + $0x1f4] sm:$0xf0]  ;;  %720 = vmatpush.bf16.msra.mxu0 %v1121_v3  ;;  %v1501_v15 = vld [vmem:[%s2386_s0 + $0xe4] sm:$0xf0] }
   0x5   :  { %v1313_v12 = vor.u32 %v1535_v10, %v1312_v9  ;;  %739 = vmatpush.bf16.msra.mxu1 %v1185_v7  ;;  %v1177_v17 = vor.u32 %v1501_v15, %v1176_v14  ;;  %v1240_v18 = vld [vmem:[%s2386_s0 + $0x160] sm:$0xf]  ;;  %v1517_v19 = vld [vmem:[%s2386_s0 + $0x164] sm:$0xf0]  ;;  %v1104_v23 = vld [vmem:[%s2386_s0 + $0x50] sm:$0xf] }
   0x6   :  { %758 = vmatpush.bf16.msra.mxu2 %v1249_v8  ;;  %v1304_v20 = vld [vmem:[%s2386_s0 + $0x1e0] sm:$0xf]  ;;  %v1241_v21 = vor.u32 %v1517_v19, %v1240_v18  ;;  %v1533_v22 = vld [vmem:[%s2386_s0 + $0x1e4] sm:$0xf0]  ;;  %v1483_v24 = vld [vmem:[%s2386_s0 + $0x54] sm:$0xf0] }
   0x7   :  { %777 = vmatpush.bf16.msra.mxu3 %v1313_v12  ;;  %v1305_v25 = vor.u32 %v1533_v22, %v1304_v20  ;;  %v1168_v26 = vld [vmem:[%s2386_s0 + $0xd0] sm:$0xf]  ;;  %v1499_v27 = vld [vmem:[%s2386_s0 + $0xd4] sm:$0xf0]  ;;  %v1105_v29 = vor.u32 %v1483_v24, %v1104_v23  ;;  %v1096_v35 = vld [vmem:[%s2386_s0 + $0x40] sm:$0xf] }
   0x8   :  { %v1232_v28 = vld [vmem:[%s2386_s0 + $0x150] sm:$0xf]  ;;  %721 = vmatpush.bf16.msra.mxu0 %v1113_v16  ;;  %v1515_v30 = vld [vmem:[%s2386_s0 + $0x154] sm:$0xf0]  ;;  %v1169_v33 = vor.u32 %v1499_v27, %v1168_v26  ;;  %v1481_v36 = vld [vmem:[%s2386_s0 + $0x44] sm:$0xf0] }
   0x9   :  { %v1296_v31 = vld [vmem:[%s2386_s0 + $0x1d0] sm:$0xf]  ;;  %v1531_v32 = vld [vmem:[%s2386_s0 + $0x1d4] sm:$0xf0]  ;;  %740 = vmatpush.bf16.msra.mxu1 %v1177_v17  ;;  %v1233_v34 = vor.u32 %v1515_v30, %v1232_v28  ;;  %v1160_v37 = vld [vmem:[%s2386_s0 + $0xc0] sm:$0xf]  ;;  %v1097_v44 = vor.u32 %v1481_v36, %v1096_v35 }
   0xa   :  { %759 = vmatpush.bf16.msra.mxu2 %v1241_v21  ;;  %v1297_v38 = vor.u32 %v1531_v32, %v1296_v31  ;;  %v1497_v39 = vld [vmem:[%s2386_s0 + $0xc4] sm:$0xf0]  ;;  %v1224_v40 = vld [vmem:[%s2386_s0 + $0x140] sm:$0xf]  ;;  %v1088_v47 = vld [vmem:[%s2386_s0 + $0x30] sm:$0xf] }
   0xb   :  { %778 = vmatpush.bf16.msra.mxu3 %v1305_v25  ;;  %v1513_v41 = vld [vmem:[%s2386_s0 + $0x144] sm:$0xf0]  ;;  %v1288_v42 = vld [vmem:[%s2386_s0 + $0x1c0] sm:$0xf]  ;;  %v1161_v45 = vor.u32 %v1497_v39, %v1160_v37  ;;  %v1479_v48 = vld [vmem:[%s2386_s0 + $0x34] sm:$0xf0] }
   0xc   :  { %v1529_v43 = vld [vmem:[%s2386_s0 + $0x1c4] sm:$0xf0]  ;;  %722 = vmatpush.bf16.msra.mxu0 %v1105_v29  ;;  %v1225_v46 = vor.u32 %v1513_v41, %v1224_v40  ;;  %v1152_v49 = vld [vmem:[%s2386_s0 + $0xb0] sm:$0xf]  ;;  %v1495_v51 = vld [vmem:[%s2386_s0 + $0xb4] sm:$0xf0]  ;;  %v1089_v56 = vor.u32 %v1479_v48, %v1088_v47 }
   0xd   :  { %741 = vmatpush.bf16.msra.mxu1 %v1169_v33  ;;  %v1289_v50 = vor.u32 %v1529_v43, %v1288_v42  ;;  %v1216_v52 = vld [vmem:[%s2386_s0 + $0x130] sm:$0xf]  ;;  %v1511_v53 = vld [vmem:[%s2386_s0 + $0x134] sm:$0xf0]  ;;  %v1153_v57 = vor.u32 %v1495_v51, %v1152_v49  ;;  %v1080_v59 = vld [vmem:[%s2386_s0 + $0x20] sm:$0xf] }
   0xe   :  { %760 = vmatpush.bf16.msra.mxu2 %v1233_v34  ;;  %v1280_v54 = vld [vmem:[%s2386_s0 + $0x1b0] sm:$0xf]  ;;  %v1527_v55 = vld [vmem:[%s2386_s0 + $0x1b4] sm:$0xf0]  ;;  %v1217_v58 = vor.u32 %v1511_v53, %v1216_v52  ;;  %v1477_v60 = vld [vmem:[%s2386_s0 + $0x24] sm:$0xf0] }
   0xf   :  { %779 = vmatpush.bf16.msra.mxu3 %v1297_v38  ;;  %v1144_v61 = vld [vmem:[%s2386_s0 + $0xa0] sm:$0xf]  ;;  %v1281_v62 = vor.u32 %v1527_v55, %v1280_v54  ;;  %v1493_v63 = vld [vmem:[%s2386_s0 + $0xa4] sm:$0xf0]  ;;  %v1081_v4 = vor.u32 %v1477_v60, %v1080_v59  ;;  %v1072_v7 = vld [vmem:[%s2386_s0 + $0x10] sm:$0xf] }
  0x10   :  { %723 = vmatpush.bf16.msra.mxu0 %v1097_v44  ;;  %v1208_v0 = vld [vmem:[%s2386_s0 + $0x120] sm:$0xf]  ;;  %v1509_v1 = vld [vmem:[%s2386_s0 + $0x124] sm:$0xf0]  ;;  %v1145_v5 = vor.u32 %v1493_v63, %v1144_v61  ;;  %v1475_v8 = vld [vmem:[%s2386_s0 + $0x14] sm:$0xf0] }
  0x11   :  { %742 = vmatpush.bf16.msra.mxu1 %v1161_v45  ;;  %v1272_v2 = vld [vmem:[%s2386_s0 + $0x1a0] sm:$0xf]  ;;  %v1525_v3 = vld [vmem:[%s2386_s0 + $0x1a4] sm:$0xf0]  ;;  %v1209_v6 = vor.u32 %v1509_v1, %v1208_v0  ;;  %v1136_v9 = vld [vmem:[%s2386_s0 + $0x90] sm:$0xf]  ;;  %v1073_v17 = vor.u32 %v1475_v8, %v1072_v7 }
  0x12   :  { %761 = vmatpush.bf16.msra.mxu2 %v1225_v46  ;;  %v1273_v10 = vor.u32 %v1525_v3, %v1272_v2  ;;  %v1491_v11 = vld [vmem:[%s2386_s0 + $0x94] sm:$0xf0]  ;;  %v1200_v12 = vld [vmem:[%s2386_s0 + $0x110] sm:$0xf]  ;;  %v1064_v16 = vld [vmem:[%s2386_s0] sm:$0xf] }
  0x13   :  { %780 = vmatpush.bf16.msra.mxu3 %v1289_v50  ;;  %v1507_v13 = vld [vmem:[%s2386_s0 + $0x114] sm:$0xf0]  ;;  %v1264_v14 = vld [vmem:[%s2386_s0 + $0x190] sm:$0xf]  ;;  %v1473_v18 = vld [vmem:[%s2386_s0 + $0x4] sm:$0xf0]  ;;  %v1137_v21 = vor.u32 %v1491_v11, %v1136_v9 }
  0x14   :  { %724 = vmatpush.bf16.msra.mxu0 %v1089_v56  ;;  %v1523_v15 = vld [vmem:[%s2386_s0 + $0x194] sm:$0xf0]  ;;  %v1128_v19 = vld [vmem:[%s2386_s0 + $0x80] sm:$0xf]  ;;  %v1489_v20 = vld [vmem:[%s2386_s0 + $0x84] sm:$0xf0]  ;;  %v1201_v22 = vor.u32 %v1507_v13, %v1200_v12  ;;  %v1065_v33 = vor.u32 %v1473_v18, %v1064_v16 }
  0x15   :  { %743 = vmatpush.bf16.msra.mxu1 %v1153_v57  ;;  %v1192_v23 = vld [vmem:[%s2386_s0 + $0x100] sm:$0xf]  ;;  %v1505_v24 = vld [vmem:[%s2386_s0 + $0x104] sm:$0xf0]  ;;  %v1265_v26 = vor.u32 %v1523_v15, %v1264_v14  ;;  %v1461_v29 = vld [vmem:[%s2387_s1 + $0x18] sm:$0xf0]  ;;  %v1129_v37 = vor.u32 %v1489_v20, %v1128_v19 }
  0x16   :  { %762 = vmatpush.bf16.msra.mxu2 %v1217_v58  ;;  %v1256_v25 = vld [vmem:[%s2386_s0 + $0x180] sm:$0xf]  ;;  %v1521_v27 = vld [vmem:[%s2386_s0 + $0x184] sm:$0xf0]  ;;  %v1458_v30 = vld [vmem:[%s2387_s1 + $0x4] sm:$0xf]  ;;  %v1193_v38 = vor.u32 %v1505_v24, %v1192_v23 }
  0x17   :  { %781 = vmatpush.bf16.msra.mxu3 %v1281_v62  ;;  %v1008_v28 = vld [vmem:[%s2387_s1] sm:$0xf]  ;;  %v1569_v32 = vld [vmem:[%s2386_s0 + $0x304] sm:$0xf0]  ;;  %v1440_v35 = vld [vmem:[%s2386_s0 + $0x2f0] sm:$0xf]  ;;  %v1257_v42 = vor.u32 %v1521_v27, %v1256_v25 }
  0x18   :  { %725 = vmatpush.bf16.msra.mxu0 %v1081_v4  ;;  %v1448_v31 = vld [vmem:[%s2386_s0 + $0x300] sm:$0xf]  ;;  %v1567_v36 = vld [vmem:[%s2386_s0 + $0x2f4] sm:$0xf0]  ;;  %v1016_v39 = vld [vmem:[%s2387_s1 + $0x8] sm:$0xf]  ;;  %v1837_v47 = vor.u32 %v1461_v29, %v1008_v28 }
  0x19   :  { %744 = vmatpush.bf16.msra.mxu1 %v1145_v5  ;;  %v1010_v34 = vld [vmem:[%s2387_s1 + $0x1c] sm:$0xf0]  ;;  %v1462_v40 = vld [vmem:[%s2387_s1 + $0x20] sm:$0xf0]  ;;  %v1459_v41 = vld [vmem:[%s2387_s1 + $0xc] sm:$0xf]  ;;  %v1449_v44 = vor.u32 %v1569_v32, %v1448_v31  ;;  %v1441_v48 = vor.u32 %v1567_v36, %v1440_v35 }
  0x1a   :  { %763 = vmatpush.bf16.msra.mxu2 %v1209_v6  ;;  %v1018_v43 = vld [vmem:[%s2387_s1 + $0x24] sm:$0xf0]  ;;  %v1376_v45 = vld [vmem:[%s2386_s0 + $0x270] sm:$0xf]  ;;  %v1551_v46 = vld [vmem:[%s2386_s0 + $0x274] sm:$0xf0]  ;;  %v1845_v51 = vor.u32 %v1458_v30, %v1010_v34  ;;  %v1847_v52 = vor.u32 %v1462_v40, %v1016_v39 }
  0x1b   :  { %782 = vmatpush.bf16.msra.mxu3 %v1273_v10  ;;  %v1486_v49 = vld [vmem:[%s2386_s0 + $0x74] sm:$0xf]  ;;  %v1122_v50 = vld [vmem:[%s2386_s0 + $0x78] sm:$0xf0]  ;;  %v1432_v53 = vld [vmem:[%s2386_s0 + $0x2e0] sm:$0xf]  ;;  %v1855_v56 = vor.u32 %v1459_v41, %v1018_v43  ;;  %v1377_v57 = vor.u32 %v1551_v46, %v1376_v45 }
  0x1c   :  { %726 = vmatpush.bf16.msra.mxu0 %v1073_v17  ;;  %v1565_v54 = vld [vmem:[%s2386_s0 + $0x2e4] sm:$0xf0]  ;;  %v1582_v55 = vmov 0   ;;  %v1125_v58 = vor.u32 %v1486_v49, %v1122_v50  ;;  %v1368_v59 = vld [vmem:[%s2386_s0 + $0x260] sm:$0xf]  ;;  %v131_v24 = vld [vmem:[%s2388_s2 + $0x10] sm:$0xff] }
  0x1d   :  { %745 = vmatpush.bf16.msra.mxu1 %v1137_v21  ;;  %1580 = vset.pattern.permute.xlu0 %v1582_v55  ;;  %v1549_v60 = vld [vmem:[%s2386_s0 + $0x264] sm:$0xf0]  ;;  %v1433_v61 = vor.u32 %v1565_v54, %v1432_v53  ;;  %v1484_v62 = vld [vmem:[%s2386_s0 + $0x64] sm:$0xf]  ;;  %v1114_v63 = vld [vmem:[%s2386_s0 + $0x68] sm:$0xf0] }
  0x1e   :  { %764 = vmatpush.bf16.msra.mxu2 %v1201_v22  ;;  %v129_v0 = vld [vmem:[%s2388_s2] sm:$0xff]  ;;  %v1424_v1 = vld [vmem:[%s2386_s0 + $0x2d0] sm:$0xf]  ;;  %v1563_v2 = vld [vmem:[%s2386_s0 + $0x2d4] sm:$0xf0]  ;;  %v1369_v3 = vor.u32 %v1549_v60, %v1368_v59  ;;  %v1117_v4 = vor.u32 %v1484_v62, %v1114_v63  ;;  %1581 = vset.pattern.permute.xlu1 %v1582_v55 }
  0x1f   :  { %783 = vmatpush.bf16.msra.mxu3 %v1265_v26  ;;  %v1360_v5 = vld [vmem:[%s2386_s0 + $0x250] sm:$0xf]  ;;  %v1547_v6 = vld [vmem:[%s2386_s0 + $0x254] sm:$0xf0]  ;;  %135 = vperm.xlu0 %1580, %v129_v0   ;;  %v1425_v7 = vor.u32 %v1563_v2, %v1424_v1  ;;  %v1482_v8 = vld [vmem:[%s2386_s0 + $0x54] sm:$0xf] }
  0x20   :  { %727 = vmatpush.bf16.msra.mxu0 %v1065_v33  ;;  %v1106_v9 = vld [vmem:[%s2386_s0 + $0x58] sm:$0xf0]  ;;  %v1416_v10 = vld [vmem:[%s2386_s0 + $0x2c0] sm:$0xf]  ;;  %v1561_v11 = vld [vmem:[%s2386_s0 + $0x2c4] sm:$0xf0]  ;;  %v1361_v12 = vor.u32 %v1547_v6, %v1360_v5  ;;  %145 = vperm.xlu1 %1581, %v131_v24  }
  0x21   :  { %746 = vmatpush.bf16.msra.mxu1 %v1129_v37  ;;  %v1352_v13 = vld [vmem:[%s2386_s0 + $0x240] sm:$0xf]  ;;  %v1545_v14 = vld [vmem:[%s2386_s0 + $0x244] sm:$0xf0]  ;;  %v1480_v15 = vld [vmem:[%s2386_s0 + $0x44] sm:$0xf]  ;;  %v1109_v16 = vor.u32 %v1482_v8, %v1106_v9  ;;  %v1417_v20 = vor.u32 %v1561_v11, %v1416_v10 }
  0x22   :  { %765 = vmatpush.bf16.msra.mxu2 %v1193_v38  ;;  %v1098_v17 = vld [vmem:[%s2386_s0 + $0x48] sm:$0xf0]  ;;  %v1036_v18 = vld [vmem:[%s2387_s1 + $0x38] sm:$0xf]  ;;  %v1468_v19 = vld [vmem:[%s2387_s1 + $0x50] sm:$0xf0]  ;;  %v1353_v28 = vor.u32 %v1545_v14, %v1352_v13 }
  0x23   :  { %784 = vmatpush.bf16.msra.mxu3 %v1257_v42  ;;  %728 = vmatmul.bf16.vlgmr.msra.gmra.mxu0 %v1837_v47  ;;  %v1465_v21 = vld [vmem:[%s2387_s1 + $0x3c] sm:$0xf]  ;;  %v1038_v22 = vld [vmem:[%s2387_s1 + $0x54] sm:$0xf0]  ;;  %v130_v23 = vld [vmem:[%s2388_s2 + $0x8] sm:$0xff]  ;;  %v1101_v32 = vor.u32 %v1480_v15, %v1098_v17  ;;  %v1957_v36 = vor.u32 %v1468_v19, %v1036_v18 }
  0x24   :  { %747 = vmatmul.bf16.vlgmr.msra.gmra.mxu1 %v1845_v51  ;;  %796 = vmatpush.bf16.msrb.mxu0 %v1377_v57  ;;  %v1044_v25 = vld [vmem:[%s2387_s1 + $0x40] sm:$0xf]  ;;  %v1408_v26 = vld [vmem:[%s2386_s0 + $0x2b0] sm:$0xf]  ;;  %v1559_v27 = vld [vmem:[%s2386_s0 + $0x2b4] sm:$0xf0]  ;;  %v1968_v41 = vor.u32 %v1465_v21, %v1038_v22 }
  0x25   :  { %815 = vmatpush.bf16.msrb.mxu1 %v1441_v48  ;;  %766 = vmatmul.bf16.vlgmr.msra.gmra.mxu2 %v1847_v52  ;;  %v1469_v29 = vld [vmem:[%s2387_s1 + $0x58] sm:$0xf0]  ;;  %v1466_v30 = vld [vmem:[%s2387_s1 + $0x44] sm:$0xf]  ;;  %v1046_v31 = vld [vmem:[%s2387_s1 + $0x5c] sm:$0xf0]  ;;  %v1409_v37 = vor.u32 %v1559_v27, %v1408_v26 }
  0x26   :  { %841 = vmatpush.bf16.msrb.mxu2 %v1449_v44  ;;  %785 = vmatmul.bf16.vlgmr.msra.gmra.mxu3 %v1855_v56  ;;  %v1344_v33 = vld [vmem:[%s2386_s0 + $0x230] sm:$0xf]  ;;  %v1543_v34 = vld [vmem:[%s2386_s0 + $0x234] sm:$0xf0]  ;;  %v1478_v35 = vld [vmem:[%s2386_s0 + $0x34] sm:$0xf]  ;;  %v1970_v42 = vor.u32 %v1469_v29, %v1044_v25  ;;  %v1978_v46 = vor.u32 %v1466_v30, %v1046_v31 }
  0x27   :  { %853 = vmatpush.bf16.msrb.mxu3 %v1125_v58  ;;  %140 = vperm.xlu0 %1580, %v130_v23   ;;  %v1090_v38 = vld [vmem:[%s2386_s0 + $0x38] sm:$0xf0]  ;;  %v1534_v39 = vld [vmem:[%s2386_s0 + $0x1f4] sm:$0xf]  ;;  %v1400_v43 = vld [vmem:[%s2386_s0 + $0x2a0] sm:$0xf]  ;;  %v1345_v48 = vor.u32 %v1543_v34, %v1344_v33 }
  0x28   :  { %797 = vmatpush.bf16.msrb.mxu0 %v1369_v3  ;;  %v1314_v40 = vld [vmem:[%s2386_s0 + $0x1f8] sm:$0xf0]  ;;  %v1557_v44 = vld [vmem:[%s2386_s0 + $0x2a4] sm:$0xf0]  ;;  %v1336_v49 = vld [vmem:[%s2386_s0 + $0x220] sm:$0xf]  ;;  %v1093_v50 = vor.u32 %v1478_v35, %v1090_v38 }
  0x29   :  { %816 = vmatpush.bf16.msrb.mxu1 %v1433_v61  ;;  %v1317_v45 = vor.u32 %v1534_v39, %v1314_v40  ;;  %v1541_v53 = vld [vmem:[%s2386_s0 + $0x224] sm:$0xf0]  ;;  %v1532_v54 = vld [vmem:[%s2386_s0 + $0x1e4] sm:$0xf]  ;;  %v1306_v55 = vld [vmem:[%s2386_s0 + $0x1e8] sm:$0xf0]  ;;  %v1401_v57 = vor.u32 %v1557_v44, %v1400_v43 }
  0x2a   :  { %v1476_v58 = vld [vmem:[%s2386_s0 + $0x24] sm:$0xf]  ;;  %v1082_v59 = vld [vmem:[%s2386_s0 + $0x28] sm:$0xf0]  ;;  %v132_v60 = vld [vmem:[%s2388_s2 + $0x18] sm:$0xff]  ;;  %v1309_v61 = vor.u32 %v1532_v54, %v1306_v55  ;;  %v1337_v0 = vor.u32 %v1541_v53, %v1336_v49 }
  0x2b   :  { %854 = vmatpush.bf16.msrb.mxu3 %v1117_v4  ;;  %910 = vmatpush.bf16.msra.mxu2 %v1317_v45  ;;  %v1392_v62 = vld [vmem:[%s2386_s0 + $0x290] sm:$0xf]  ;;  %v1555_v63 = vld [vmem:[%s2386_s0 + $0x294] sm:$0xf0]  ;;  %v1530_v1 = vld [vmem:[%s2386_s0 + $0x1d4] sm:$0xf]  ;;  %v1085_v3 = vor.u32 %v1476_v58, %v1082_v59 }
  0x2c   :  { %798 = vmatpush.bf16.msrb.mxu0 %v1361_v12  ;;  %v1298_v2 = vld [vmem:[%s2386_s0 + $0x1d8] sm:$0xf0]  ;;  %v1328_v4 = vld [vmem:[%s2386_s0 + $0x210] sm:$0xf]  ;;  %v1539_v5 = vld [vmem:[%s2386_s0 + $0x214] sm:$0xf0]  ;;  %150 = vperm.xlu1 %1581, %v132_v60   ;;  %v1393_v6 = vor.u32 %v1555_v63, %v1392_v62 }
  0x2d   :  { %817 = vmatpush.bf16.msrb.mxu1 %v1425_v7  ;;  %v1474_v7 = vld [vmem:[%s2386_s0 + $0x14] sm:$0xf]  ;;  %v1074_v8 = vld [vmem:[%s2386_s0 + $0x18] sm:$0xf0]  ;;  %v1384_v9 = vld [vmem:[%s2386_s0 + $0x280] sm:$0xf]  ;;  %v1301_v10 = vor.u32 %v1530_v1, %v1298_v2  ;;  %v1329_v14 = vor.u32 %v1539_v5, %v1328_v4 }
  0x2e   :  { %v1553_v11 = vld [vmem:[%s2386_s0 + $0x284] sm:$0xf0]  ;;  %v1528_v12 = vld [vmem:[%s2386_s0 + $0x1c4] sm:$0xf]  ;;  %v1290_v13 = vld [vmem:[%s2386_s0 + $0x1c8] sm:$0xf0]  ;;  %v1077_v18 = vor.u32 %v1474_v7, %v1074_v8 }
  0x2f   :  { %855 = vmatpush.bf16.msrb.mxu3 %v1109_v16  ;;  %911 = vmatpush.bf16.msra.mxu2 %v1309_v61  ;;  %v1320_v15 = vld [vmem:[%s2386_s0 + $0x200] sm:$0xf]  ;;  %v1518_v16 = vld [vmem:[%s2386_s0 + $0x174] sm:$0xf]  ;;  %v1250_v17 = vld [vmem:[%s2386_s0 + $0x178] sm:$0xf0]  ;;  %v1385_v22 = vor.u32 %v1553_v11, %v1384_v9 }
  0x30   :  { %799 = vmatpush.bf16.msrb.mxu0 %v1353_v28  ;;  %v1537_v19 = vld [vmem:[%s2386_s0 + $0x204] sm:$0xf0]  ;;  %v1066_v21 = vld [vmem:[%s2386_s0 + $0x8] sm:$0xf0]  ;;  %v1024_v23 = vld [vmem:[%s2387_s1 + $0x10] sm:$0xf]  ;;  %v1293_v28 = vor.u32 %v1528_v12, %v1290_v13  ;;  %v1253_v29 = vor.u32 %v1518_v16, %v1250_v17 }
  0x31   :  { %818 = vmatpush.bf16.msrb.mxu1 %v1417_v20  ;;  %v1472_v20 = vld [vmem:[%s2386_s0 + $0x4] sm:$0xf]  ;;  %v1463_v24 = vld [vmem:[%s2387_s1 + $0x28] sm:$0xf0]  ;;  %v1502_v25 = vld [vmem:[%s2386_s0 + $0xf4] sm:$0xf]  ;;  %v1321_v33 = vor.u32 %v1537_v19, %v1320_v15 }
  0x32   :  { %v1186_v26 = vld [vmem:[%s2386_s0 + $0xf8] sm:$0xf0]  ;;  %v1550_v27 = vld [vmem:[%s2386_s0 + $0x274] sm:$0xf]  ;;  %v1026_v35 = vld [vmem:[%s2387_s1 + $0x2c] sm:$0xf0]  ;;  %v1069_v38 = vor.u32 %v1472_v20, %v1066_v21  ;;  %v2110_v54 = vor.u32 %v1463_v24, %v1024_v23 }
  0x33   :  { %856 = vmatpush.bf16.msrb.mxu3 %v1101_v32  ;;  %733 = vmatmul.bf16.gmra.mxu0 %v1957_v36  ;;  %v1378_v30 = vld [vmem:[%s2386_s0 + $0x278] sm:$0xf0]  ;;  %v1526_v31 = vld [vmem:[%s2386_s0 + $0x1b4] sm:$0xf]  ;;  %v1189_v40 = vor.u32 %v1502_v25, %v1186_v26  ;;  %v1500_v43 = vld [vmem:[%s2386_s0 + $0xe4] sm:$0xf] }
  0x34   :  { %752 = vmatmul.bf16.gmra.mxu1 %v1968_v41  ;;  %800 = vmatpush.bf16.msrb.mxu0 %v1345_v48  ;;  %v1282_v32 = vld [vmem:[%s2386_s0 + $0x1b8] sm:$0xf0]  ;;  %v1460_v34 = vld [vmem:[%s2387_s1 + $0x14] sm:$0xf]  ;;  %v1178_v44 = vld [vmem:[%s2386_s0 + $0xe8] sm:$0xf0]  ;;  %v1381_v45 = vor.u32 %v1550_v27, %v1378_v30 }
  0x35   :  { %819 = vmatpush.bf16.msrb.mxu1 %v1409_v37  ;;  %771 = vmatmul.bf16.gmra.mxu2 %v1970_v42  ;;  %v1032_v37 = vld [vmem:[%s2387_s1 + $0x18] sm:$0xf]  ;;  %v1464_v39 = vld [vmem:[%s2387_s1 + $0x30] sm:$0xf0]  ;;  %v1516_v48 = vld [vmem:[%s2386_s0 + $0x164] sm:$0xf]  ;;  %v1285_v53 = vor.u32 %v1526_v31, %v1282_v32  ;;  %v2112_v55 = vor.u32 %v1460_v34, %v1026_v35  ;;  %v1181_v61 = vor.u32 %v1500_v43, %v1178_v44 }
  0x36   :  { %790 = vmatmul.bf16.gmra.mxu3 %v1978_v46  ;;  %912 = vmatpush.bf16.msra.mxu2 %v1301_v10  ;;  %v1242_v49 = vld [vmem:[%s2386_s0 + $0x168] sm:$0xf0]  ;;  %v1524_v58 = vld [vmem:[%s2386_s0 + $0x1a4] sm:$0xf]  ;;  %v2123_v60 = vor.u32 %v1464_v39, %v1032_v37  ;;  %v1498_v63 = vld [vmem:[%s2386_s0 + $0xd4] sm:$0xf] }
  0x37   :  { %857 = vmatpush.bf16.msrb.mxu3 %v1093_v50  ;;  %v1548_v50 = vld [vmem:[%s2386_s0 + $0x264] sm:$0xf]  ;;  %v1274_v59 = vld [vmem:[%s2386_s0 + $0x1a8] sm:$0xf0]  ;;  %v1245_v62 = vor.u32 %v1516_v48, %v1242_v49  ;;  %v1514_v2 = vld [vmem:[%s2386_s0 + $0x154] sm:$0xf] }
  0x38   :  { %801 = vmatpush.bf16.msrb.mxu0 %v1337_v0  ;;  %v1170_v0 = vld [vmem:[%s2386_s0 + $0xd8] sm:$0xf0]  ;;  %v1546_v4 = vld [vmem:[%s2386_s0 + $0x254] sm:$0xf]  ;;  %v1277_v5 = vor.u32 %v1524_v58, %v1274_v59  ;;  %v1496_v11 = vld [vmem:[%s2386_s0 + $0xc4] sm:$0xf] }
  0x39   :  { %820 = vmatpush.bf16.msrb.mxu1 %v1401_v57  ;;  %v1370_v57 = vld [vmem:[%s2386_s0 + $0x268] sm:$0xf0]  ;;  %v1522_v7 = vld [vmem:[%s2386_s0 + $0x194] sm:$0xf]  ;;  %v1266_v8 = vld [vmem:[%s2386_s0 + $0x198] sm:$0xf0]  ;;  %v1173_v9 = vor.u32 %v1498_v63, %v1170_v0 }
  0x3a   :  { %913 = vmatpush.bf16.msra.mxu2 %v1293_v28  ;;  %v1373_v1 = vor.u32 %v1548_v50, %v1370_v57  ;;  %v1162_v12 = vld [vmem:[%s2386_s0 + $0xc8] sm:$0xf0]  ;;  %v1544_v15 = vld [vmem:[%s2386_s0 + $0x244] sm:$0xf]  ;;  %v1269_v16 = vor.u32 %v1522_v7, %v1266_v8  ;;  %v1566_v20 = vld [vmem:[%s2386_s0 + $0x2f4] sm:$0xf] }
  0x3b   :  { %858 = vmatpush.bf16.msrb.mxu3 %v1085_v3  ;;  %v1234_v3 = vld [vmem:[%s2386_s0 + $0x158] sm:$0xf0]  ;;  %v1354_v17 = vld [vmem:[%s2386_s0 + $0x248] sm:$0xf0]  ;;  %v1494_v24 = vld [vmem:[%s2386_s0 + $0xb4] sm:$0xf] }
  0x3c   :  { %802 = vmatpush.bf16.msrb.mxu0 %v1329_v14  ;;  %v1237_v10 = vor.u32 %v1514_v2, %v1234_v3  ;;  %v1512_v14 = vld [vmem:[%s2386_s0 + $0x144] sm:$0xf]  ;;  %v1258_v19 = vld [vmem:[%s2386_s0 + $0x188] sm:$0xf0]  ;;  %v1442_v21 = vld [vmem:[%s2386_s0 + $0x2f8] sm:$0xf0]  ;;  %v1357_v25 = vor.u32 %v1544_v15, %v1354_v17 }
  0x3d   :  { %821 = vmatpush.bf16.msrb.mxu1 %v1393_v6  ;;  %v1362_v6 = vld [vmem:[%s2386_s0 + $0x258] sm:$0xf0]  ;;  %v1052_v26 = vld [vmem:[%s2387_s1 + $0x48] sm:$0xf]  ;;  %v1510_v28 = vld [vmem:[%s2386_s0 + $0x134] sm:$0xf]  ;;  %v2208_v34 = vor.u32 %v1566_v20, %v1442_v21 }
  0x3e   :  { %914 = vmatpush.bf16.msra.mxu2 %v1285_v53  ;;  %v1365_v13 = vor.u32 %v1546_v4, %v1362_v6  ;;  %v1154_v27 = vld [vmem:[%s2386_s0 + $0xb8] sm:$0xf0]  ;;  %v1470_v31 = vld [vmem:[%s2387_s1 + $0x60] sm:$0xf0]  ;;  %v1542_v32 = vld [vmem:[%s2386_s0 + $0x234] sm:$0xf] }
  0x3f   :  { %859 = vmatpush.bf16.msrb.mxu3 %v1077_v18  ;;  %v1520_v18 = vld [vmem:[%s2386_s0 + $0x184] sm:$0xf]  ;;  %v1467_v35 = vld [vmem:[%s2387_s1 + $0x4c] sm:$0xf]  ;;  %v1054_v37 = vld [vmem:[%s2387_s1 + $0x64] sm:$0xf0]  ;;  %v2237_v57 = vor.u32 %v1470_v31, %v1052_v26 }
  0x40   :  { %803 = vmatpush.bf16.msrb.mxu0 %v1321_v33  ;;  %v1261_v30 = vor.u32 %v1520_v18, %v1258_v19  ;;  %v1346_v33 = vld [vmem:[%s2386_s0 + $0x238] sm:$0xf0]  ;;  %v1471_v39 = vld [vmem:[%s2387_s1 + $0x68] sm:$0xf0]  ;;  %v1492_v44 = vld [vmem:[%s2386_s0 + $0xa4] sm:$0xf]  ;;  %v2239_v58 = vor.u32 %v1467_v35, %v1054_v37 }
  0x41   :  { %822 = vmatpush.bf16.msrb.mxu1 %v1385_v22  ;;  %v1165_v22 = vor.u32 %v1496_v11, %v1162_v12  ;;  %v1349_v48 = vor.u32 %v1542_v32, %v1346_v33  ;;  %v1508_v49 = vld [vmem:[%s2386_s0 + $0x124] sm:$0xf]  ;;  %v1210_v50 = vld [vmem:[%s2386_s0 + $0x128] sm:$0xf0]  ;;  %v1490_v2 = vld [vmem:[%s2386_s0 + $0x94] sm:$0xf] }
  0x42   :  { %915 = vmatpush.bf16.msra.mxu2 %v1277_v5  ;;  %v1540_v53 = vld [vmem:[%s2386_s0 + $0x224] sm:$0xf]  ;;  %v1338_v59 = vld [vmem:[%s2386_s0 + $0x228] sm:$0xf0]  ;;  %v1138_v3 = vld [vmem:[%s2386_s0 + $0x98] sm:$0xf0] }
  0x43   :  { %860 = vmatpush.bf16.msrb.mxu3 %v1069_v38  ;;  %804 = vmatmul.bf16.vlgmr.msrb.gmra.mxu0 %v2110_v54  ;;  %v1060_v38 = vld [vmem:[%s2387_s1 + $0x50] sm:$0xf]  ;;  %v1341_v4 = vor.u32 %v1540_v53, %v1338_v59  ;;  %v1506_v5 = vld [vmem:[%s2386_s0 + $0x114] sm:$0xf]  ;;  %v1202_v6 = vld [vmem:[%s2386_s0 + $0x118] sm:$0xf0]  ;;  %v1141_v12 = vor.u32 %v1490_v2, %v1138_v3 }
  0x44   :  { %872 = vmatpush.bf16.msra.mxu0 %v1189_v40  ;;  %823 = vmatmul.bf16.vlgmr.msrb.gmra.mxu1 %v2112_v55  ;;  %v1157_v40 = vor.u32 %v1494_v24, %v1154_v27  ;;  %v2251_v63 = vor.u32 %v1471_v39, %v1060_v38  ;;  %v1538_v7 = vld [vmem:[%s2386_s0 + $0x214] sm:$0xf]  ;;  %v1426_v11 = vld [vmem:[%s2386_s0 + $0x2d8] sm:$0xf0]  ;;  %v1130_v15 = vld [vmem:[%s2386_s0 + $0x88] sm:$0xf0] }
  0x45   :  { %891 = vmatpush.bf16.msra.mxu1 %v1253_v29  ;;  %1454 = vmatmul.msk.bf16.vlgmr.msrb.gmra.mxu2 %vm713_vm0, %v2123_v60  ;;  %v1218_v29 = vld [vmem:[%s2386_s0 + $0x138] sm:$0xf0]  ;;  %v1536_v18 = vld [vmem:[%s2386_s0 + $0x204] sm:$0xf]  ;;  %v1322_v19 = vld [vmem:[%s2386_s0 + $0x208] sm:$0xf0] }
  0x46   :  { %861 = vmatmul.bf16.vlgmr.msrb.gmra.mxu3 %v1837_v47  ;;  %v1226_v47 = vld [vmem:[%s2386_s0 + $0x148] sm:$0xf0]  ;;  %916 = vmatpush.bf16.msra.mxu2 %v1269_v16  ;;  %v1221_v43 = vor.u32 %v1510_v28, %v1218_v29  ;;  %v1504_v16 = vld [vmem:[%s2386_s0 + $0x104] sm:$0xf]  ;;  %v1325_v26 = vor.u32 %v1536_v18, %v1322_v19  ;;  %v1558_v29 = vld [vmem:[%s2386_s0 + $0x2b4] sm:$0xf] }
  0x47   :  { %929 = vmatpush.bf16.msra.mxu3 %v1381_v45  ;;  %v1229_v23 = vor.u32 %v1512_v14, %v1226_v47  ;;  %v1146_v45 = vld [vmem:[%s2386_s0 + $0xa8] sm:$0xf0]  ;;  %v1488_v14 = vld [vmem:[%s2386_s0 + $0x84] sm:$0xf]  ;;  %v1554_v35 = vld [vmem:[%s2386_s0 + $0x294] sm:$0xf] }
  0x48   :  { %873 = vmatpush.bf16.msra.mxu0 %v1181_v61  ;;  %v1564_v61 = vld [vmem:[%s2386_s0 + $0x2e4] sm:$0xf]  ;;  %v1149_v0 = vor.u32 %v1492_v44, %v1146_v45  ;;  %v1450_v21 = vld [vmem:[%s2386_s0 + $0x308] sm:$0xf0]  ;;  %v1394_v37 = vld [vmem:[%s2386_s0 + $0x298] sm:$0xf0] }
  0x49   :  { %892 = vmatpush.bf16.msra.mxu1 %v1245_v62  ;;  %v1434_v62 = vld [vmem:[%s2386_s0 + $0x2e8] sm:$0xf0]  ;;  %v1568_v20 = vld [vmem:[%s2386_s0 + $0x304] sm:$0xf]  ;;  %v1397_v38 = vor.u32 %v1554_v35, %v1394_v37 }
  0x4a   :  { %917 = vmatpush.bf16.msra.mxu2 %v1261_v30  ;;  %v1437_v8 = vor.u32 %v1564_v61, %v1434_v62  ;;  %v1560_v24 = vld [vmem:[%s2386_s0 + $0x2c4] sm:$0xf]  ;;  %v1453_v27 = vor.u32 %v1568_v20, %v1450_v21  ;;  %v1410_v30 = vld [vmem:[%s2386_s0 + $0x2b8] sm:$0xf0]  ;;  %v1402_v33 = vld [vmem:[%s2386_s0 + $0x2a8] sm:$0xf0] }
  0x4b   :  { %930 = vmatpush.bf16.msra.mxu3 %v1373_v1  ;;  %v1213_v1 = vor.u32 %v1508_v49, %v1210_v50  ;;  %v1413_v31 = vor.u32 %v1558_v29, %v1410_v30  ;;  %v1556_v32 = vld [vmem:[%s2386_s0 + $0x2a4] sm:$0xf] }
  0x4c   :  { %874 = vmatpush.bf16.msra.mxu0 %v1173_v9  ;;  %v1330_v9 = vld [vmem:[%s2386_s0 + $0x218] sm:$0xf0] }
  0x4d   :  { %893 = vmatpush.bf16.msra.mxu1 %v1237_v10  ;;  %v1562_v10 = vld [vmem:[%s2386_s0 + $0x2d4] sm:$0xf]  ;;  %v1333_v47 = vor.u32 %v1538_v7, %v1330_v9 }
  0x4e   :  { %1570 = vmatpush.bf16.msrb.mxu2 %v2208_v34  ;;  %v1429_v17 = vor.u32 %v1562_v10, %v1426_v11 }
  0x4f   :  { %931 = vmatpush.bf16.msra.mxu3 %v1365_v13  ;;  %v1205_v13 = vor.u32 %v1506_v5, %v1202_v6 }
  0x50   :  { %875 = vmatpush.bf16.msra.mxu0 %v1165_v22  ;;  %v1133_v22 = vor.u32 %v1488_v14, %v1130_v15 }
  0x51   :  { %894 = vmatpush.bf16.msra.mxu1 %v1229_v23 }
  0x52   :  { %1571 = vmatpush.bf16.msrb.mxu2 %v1437_v8 }
  0x53   :  { %932 = vmatpush.bf16.msra.mxu3 %v1357_v25  ;;  %809 = vmatmul.bf16.gmra.mxu0 %v2237_v57  ;;  %v1418_v25 = vld [vmem:[%s2386_s0 + $0x2c8] sm:$0xf0] }
  0x54   :  { %876 = vmatpush.bf16.msra.mxu0 %v1157_v40  ;;  %828 = vmatmul.bf16.gmra.mxu1 %v2239_v58  ;;  %v1421_v28 = vor.u32 %v1560_v24, %v1418_v25 }
  0x55   :  { %895 = vmatpush.bf16.msra.mxu1 %v1221_v43  ;;  %1455 = vmatmul.msk.bf16.gmra.mxu2 %vm713_vm0, %v2251_v63 }
  0x56   :  { %866 = vmatmul.bf16.gmra.mxu3 %v1957_v36  ;;  %v1194_v36 = vld [vmem:[%s2386_s0 + $0x108] sm:$0xf0]  ;;  %1572 = vmatpush.bf16.msrb.mxu2 %v1429_v17 }
  0x57   :  { %933 = vmatpush.bf16.msra.mxu3 %v1349_v48  ;;  %v1197_v23 = vor.u32 %v1504_v16, %v1194_v36 }
  0x58   :  { %877 = vmatpush.bf16.msra.mxu0 %v1149_v0 }
  0x59   :  { %896 = vmatpush.bf16.msra.mxu1 %v1213_v1 }
  0x5a   :  { %1573 = vmatpush.bf16.msrb.mxu2 %v1421_v28 }
  0x5b   :  { %934 = vmatpush.bf16.msra.mxu3 %v1341_v4 }
  0x5c   :  { %878 = vmatpush.bf16.msra.mxu0 %v1141_v12 }
  0x5d   :  { %897 = vmatpush.bf16.msra.mxu1 %v1205_v13 }
  0x5e   :  { %1574 = vmatpush.bf16.msrb.mxu2 %v1413_v31 }
  0x5f   :  { %935 = vmatpush.bf16.msra.mxu3 %v1333_v47 }
  0x60   :  { %879 = vmatpush.bf16.msra.mxu0 %v1133_v22 }
  0x61   :  { %898 = vmatpush.bf16.msra.mxu1 %v1197_v23 }
  0x63   :  { %936 = vmatpush.bf16.msra.mxu3 %v1325_v26  ;;  %880 = vmatmul.bf16.vlgmr.msra.gmra.mxu0 %v1845_v51  ;;  %v1552_v51 = vld [vmem:[%s2386_s0 + $0x284] sm:$0xf] }
  0x64   :  { %948 = vmatpush.bf16.msrb.mxu0 %v2208_v34  ;;  %899 = vmatmul.bf16.vlgmr.msra.gmra.mxu1 %v1847_v52  ;;  %v1405_v34 = vor.u32 %v1556_v32, %v1402_v33  ;;  %v1386_v52 = vld [vmem:[%s2386_s0 + $0x288] sm:$0xf0] }
  0x65   :  { %974 = vmatpush.bf16.msrb.mxu1 %v1453_v27  ;;  %918 = vmatmul.bf16.vlgmr.msra.gmra.mxu2 %v1855_v56  ;;  %v1389_v56 = vor.u32 %v1552_v51, %v1386_v52 }
  0x66   :  { %937 = vmatmul.bf16.vlgmr.msra.gmra.mxu3 %v2110_v54  ;;  %1575 = vmatpush.bf16.msrb.mxu2 %v1405_v34 }
  0x67   :  { %1578 = vmatpush.bf16.msrb.mxu3 %v1453_v27 }
  0x68   :  { %949 = vmatpush.bf16.msrb.mxu0 %v1437_v8 }
  0x6a   :  { %1576 = vmatpush.bf16.msrb.mxu2 %v1397_v38 }
  0x6c   :  { %950 = vmatpush.bf16.msrb.mxu0 %v1429_v17 }
  0x6e   :  { %1577 = vmatpush.bf16.msrb.mxu2 %v1389_v56 }
  0x70   :  { %951 = vmatpush.bf16.msrb.mxu0 %v1421_v28 }
  0x73   :  { %885 = vmatmul.bf16.gmra.mxu0 %v1968_v41 }
  0x74   :  { %952 = vmatpush.bf16.msrb.mxu0 %v1413_v31  ;;  %904 = vmatmul.bf16.gmra.mxu1 %v1970_v42 }
  0x75   :  { %923 = vmatmul.bf16.gmra.mxu2 %v1978_v46 }
  0x76   :  { %942 = vmatmul.bf16.gmra.mxu3 %v2237_v57 }
  0x78   :  { %953 = vmatpush.bf16.msrb.mxu0 %v1405_v34 }
  0x7c   :  { %954 = vmatpush.bf16.msrb.mxu0 %v1397_v38 }
  0x80   :  { %955 = vmatpush.bf16.msrb.mxu0 %v1389_v56 }
  0x83   :  { %956 = vmatmul.bf16.vlgmr.msrb.gmra.mxu0 %v2112_v55 }
  0x84   :  { %1456 = vmatmul.msk.bf16.vlgmr.msrb.gmra.mxu1 %vm713_vm0, %v2123_v60 }
  0x85   :  { %961 = vmatmul.bf16.vlgmr.msrb.gmra.mxu2 %v2239_v58 }
  0x86   :  { %1457 = vmatmul.msk.bf16.vlgmr.msrb.gmra.mxu3 %vm713_vm0, %v2251_v63 }
  0x91   :  { %v136_v54 = vpop.permute.xlu0 %135 }
  0x92   :  { %v146_v53 = vpop.permute.xlu1 %145 }
  0x99   :  { %v2351_v46 = vpop.permute.xlu0 %140 }
  0x9e   :  { %v2356_v2 = vpop.permute.xlu1 %150 }
  0xa0   :  { %v729_v41 = vpop.f32.mrf.mxu0 }
  0xa1   :  { %v730_v39 = vadd.f32 %v729_v41, %v136_v54  ;;  %v748_v42 = vpop.f32.mrf.mxu1 }
  0xa3   :  { %v749_v40 = vadd.f32 %v748_v42, %v730_v39 }
  0xa8   :  { %v767_v43 = vpop.f32.mrf.mxu2  ;;  %v731_v48 = vpop.f32.mrf.mxu0 }
  0xa9   :  { %v768_v44 = vadd.f32 %v767_v43, %v749_v40  ;;  %v786_v45 = vpop.f32.mrf.mxu3  ;;  %v732_v55 = vadd.f32 %v731_v48, %v2351_v46  ;;  %v750_v49 = vpop.f32.mrf.mxu1 }
  0xab   :  { %v787_v60 = vadd.f32 %v786_v45, %v768_v44  ;;  %v751_v50 = vadd.f32 %v750_v49, %v732_v55 }
  0xb0   :  { %v769_v57 = vpop.f32.mrf.mxu2  ;;  %v734_v61 = vpop.f32.mrf.mxu0 }
  0xb1   :  { %v770_v58 = vadd.f32 %v769_v57, %v751_v50  ;;  %v788_v59 = vpop.f32.mrf.mxu3  ;;  %v735_v62 = vadd.f32 %v734_v61, %v146_v53  ;;  %v753_v63 = vpop.f32.mrf.mxu1 }
  0xb3   :  { %v2354_v0 = vadd.f32 %v788_v59, %v770_v58  ;;  %v754_v1 = vadd.f32 %v753_v63, %v735_v62 }
  0xb8   :  { %v772_v3 = vpop.f32.mrf.mxu2  ;;  %v736_v6 = vpop.f32.mrf.mxu0 }
  0xb9   :  { %v773_v4 = vadd.f32 %v772_v3, %v754_v1  ;;  %v791_v5 = vpop.f32.mrf.mxu3  ;;  %v737_v7 = vadd.f32 %v736_v6, %v2356_v2  ;;  %v755_v8 = vpop.f32.mrf.mxu1 }
  0xbb   :  { %v792_v9 = vadd.f32 %v791_v5, %v773_v4  ;;  %v756_v10 = vadd.f32 %v755_v8, %v737_v7 }
  0xc0   :  { %v774_v11 = vpop.f32.mrf.mxu2  ;;  %v805_v14 = vpop.f32.mrf.mxu0 }
  0xc1   :  { %v775_v12 = vadd.f32 %v774_v11, %v756_v10  ;;  %v793_v13 = vpop.f32.mrf.mxu3  ;;  %v824_v47 = vpop.f32.mrf.mxu1  ;;  %v806_v45 = vadd.f32 %v805_v14, %v787_v60 }
  0xc3   :  { %v2359_v15 = vadd.f32 %v793_v13, %v775_v12  ;;  %v825_v57 = vadd.f32 %v824_v47, %v806_v45 }
  0xc8   :  { %v843_v16 = vpop.f32.mrf.mxu2  ;;  %v807_v17 = vpop.f32.mrf.mxu0 }
  0xc9   :  { %v862_v36 = vpop.f32.mrf.mxu3  ;;  %v826_v18 = vpop.f32.mrf.mxu1  ;;  %v844_v1 = vadd.f32 %v843_v16, %v825_v57  ;;  %v808_v60 = vadd.f32 %v807_v17, %v2354_v0 }
  0xca   :  { %v863_v52 = vadd.f32 %v862_v36, %v136_v54 }
  0xcb   :  { %v986_v10 = vmax.f32 %v844_v1, 0.0  ;;  %v827_v14 = vadd.f32 %v826_v18, %v808_v60 }
  0xd0   :  { %v2361_v19 = vpop.f32.mrf.mxu2  ;;  %v810_v21 = vpop.f32.mrf.mxu0 }
  0xd1   :  { %v864_v20 = vpop.f32.mrf.mxu3  ;;  %v829_v22 = vpop.f32.mrf.mxu1  ;;  %v811_v5 = vadd.f32 %v810_v21, %v792_v9 }
  0xd2   :  { %v865_v48 = vadd.f32 %v864_v20, %v2351_v46 }
  0xd3   :  { %v830_v12 = vadd.f32 %v829_v22, %v811_v5 }
  0xd8   :  { %v848_v23 = vpop.f32.mrf.mxu2  ;;  %v812_v25 = vpop.f32.mrf.mxu0 }
  0xd9   :  { %v867_v24 = vpop.f32.mrf.mxu3  ;;  %v2363_v26 = vpop.f32.mrf.mxu1  ;;  %v813_v17 = vadd.f32 %v812_v25, %v2359_v15 }
  0xda   :  { %v868_v44 = vadd.f32 %v867_v24, %v146_v53  ;;  %v849_v24 = vadd.f32 %v848_v23, %v830_v12 }
  0xe0   :  { %v2365_v27 = vpop.f32.mrf.mxu2  ;;  %v881_v29 = vpop.f32.mrf.mxu0 }
  0xe1   :  { %v869_v28 = vpop.f32.mrf.mxu3  ;;  %v900_v30 = vpop.f32.mrf.mxu1  ;;  %v882_v56 = vadd.f32 %v881_v29, %v863_v52 }
  0xe2   :  { %v870_v6 = vadd.f32 %v869_v28, %v2356_v2  ;;  %v846_v2 = vadd.f32 %v2361_v19, %v827_v14 }
  0xe3   :  { %v901_v43 = vadd.f32 %v900_v30, %v882_v56 }
  0xe8   :  { %v919_v31 = vpop.f32.mrf.mxu2  ;;  %v883_v33 = vpop.f32.mrf.mxu0 }
  0xe9   :  { %v938_v32 = vpop.f32.mrf.mxu3  ;;  %v902_v34 = vpop.f32.mrf.mxu1  ;;  %v920_v55 = vadd.f32 %v919_v31, %v901_v43  ;;  %v884_v50 = vadd.f32 %v883_v33, %v865_v48  ;;  %v990_v31 = vmax.f32 %v849_v24, 0.0  ;;  %v988_v33 = vmax.f32 %v846_v2, 0.0 }
  0xeb   :  { %v939_v58 = vadd.f32 %v938_v32, %v920_v55  ;;  %v903_v3 = vadd.f32 %v902_v34, %v884_v50  ;;  %v832_v34 = vadd.f32 %v2363_v26, %v813_v17 }
  0xf0   :  { %v921_v35 = vpop.f32.mrf.mxu2  ;;  %v886_v38 = vpop.f32.mrf.mxu0 }
  0xf1   :  { %v940_v37 = vpop.f32.mrf.mxu3  ;;  %v905_v51 = vpop.f32.mrf.mxu1  ;;  %v887_v49 = vadd.f32 %v886_v38, %v868_v44  ;;  %v922_v46 = vadd.f32 %v921_v35, %v903_v3 }
  0xf3   :  { %v906_v62 = vadd.f32 %v905_v51, %v887_v49  ;;  %v941_v47 = vadd.f32 %v940_v37, %v922_v46  ;;  %v851_v51 = vadd.f32 %v2365_v27, %v832_v34 }
  0xf5   :  { %v992_v56 = vmax.f32 %v851_v51, 0.0 }
  0xf8   :  { %v924_v41 = vpop.f32.mrf.mxu2  ;;  %v888_v42 = vpop.f32.mrf.mxu0 }
  0xf9   :  { %v943_v39 = vpop.f32.mrf.mxu3  ;;  %v907_v40 = vpop.f32.mrf.mxu1  ;;  %v925_v53 = vadd.f32 %v924_v41, %v906_v62  ;;  %v889_v8 = vadd.f32 %v888_v42, %v870_v6 }
  0xfb   :  { %v944_v13 = vadd.f32 %v943_v39, %v925_v53  ;;  %v908_v29 = vadd.f32 %v907_v40, %v889_v8 }
 0x100   :  { %v926_v59 = vpop.f32.mrf.mxu2  ;;  %v957_v63 = vpop.f32.mrf.mxu0 }
 0x101   :  { %v945_v61 = vpop.f32.mrf.mxu3  ;;  %v976_v54 = vpop.f32.mrf.mxu1  ;;  %v958_v4 = vadd.f32 %v957_v63, %v939_v58  ;;  %v927_v22 = vadd.f32 %v926_v59, %v908_v29 }
 0x103   :  { %v977_v7 = vadd.f32 %v976_v54, %v958_v4  ;;  %v946_v35 = vadd.f32 %v945_v61, %v927_v22 }
 0x105   :  { %v987_v11 = vmax.f32 %v977_v7, 0.0 }
 0x107   :  { %v994_v36 = vpack.c.bf16 %v987_v11, %v986_v10 }
 0x108   :  { %v962_v20 = vpop.f32.mrf.mxu2  ;;  %v959_v21 = vpop.f32.mrf.mxu0 }
 0x109   :  { %v981_v16 = vpop.f32.mrf.mxu3  ;;  %v963_v9 = vadd.f32 %v962_v20, %v944_v13  ;;  %998 = vst [vmem:[%s2389_s3] sm:$0xff] %v994_v36  ;;  %v960_v0 = vadd.f32 %v959_v21, %v941_v47  ;;  %v978_v18 = vpop.f32.mrf.mxu1 }
 0x10b   :  { %v982_v28 = vadd.f32 %v981_v16, %v963_v9  ;;  %v979_v30 = vadd.f32 %v978_v18, %v960_v0 }
 0x10d   :  { %v991_v32 = vmax.f32 %v982_v28, 0.0  ;;  %v989_v23 = vmax.f32 %v979_v30, 0.0 }
 0x10f   :  { %v996_v37 = vpack.c.bf16 %v991_v32, %v990_v31  ;;  %v995_v19 = vpack.c.bf16 %v989_v23, %v988_v33 }
 0x110   :  { %v964_v38 = vpop.f32.mrf.mxu2 }
 0x111   :  { %1000 = vst [vmem:[%s2389_s3 + $0x10] sm:$0xff] %v996_v37  ;;  %v965_v15 = vadd.f32 %v964_v38, %v946_v35  ;;  %v983_v25 = vpop.f32.mrf.mxu3 }
 0x112   :  { %999 = vst [vmem:[%s2389_s3 + $0x8] sm:$0xff] %v995_v19 }
 0x113   :  { %v984_v52 = vadd.f32 %v983_v25, %v965_v15 }
 0x115   :  { %v993_v41 = vmax.f32 %v984_v52, 0.0 }
 0x117   :  { %v997_v26 = vpack.c.bf16 %v993_v41, %v992_v56 }
 0x119   :  { %1001 = vst [vmem:[%s2389_s3 + $0x18] sm:$0xff] %v997_v26 }

// kernel: net_view_forward.12
= control target key start
LH: loop header
LB: loop body
LE: loop exit
PB: predicated region body
PF: predicated region fallthrough
CT: control target
= control target key end

     0   :  { %v1958_v41 = vmov 0   ;;  %vm835_vm0 = vcmask 261120   ;;  %s3028_s0 = inlined_call_operand.vmem [shape: bf16[800,256], index: 0, kind: input, shape index: {}]   ;;  %s3029_s2 = inlined_call_operand.vmem [shape: f32[64,1], index: 2, kind: input, shape index: {}]   ;;  %s3030_s1 = inlined_call_operand.vmem [shape: bf16[64,800], index: 1, kind: input, shape index: {}]   ;;  %s3031_s3 = inlined_call_operand.vmem [shape: bf16[64,256], index: 3, kind: output, shape index: {}]  }
   0x1   :  { %v1460_v0 = vld [vmem:[%s3028_s0 + $0x70] sm:$0xf]  ;;  %v1853_v1 = vld [vmem:[%s3028_s0 + $0x74] sm:$0xf0]  ;;  %v1452_v5 = vld [vmem:[%s3028_s0 + $0x60] sm:$0xf]  ;;  %1955 = vset.pattern.permute.xlu0 %v1958_v41  ;;  %1956 = vset.pattern.permute.xlu1 %v1958_v41 }
   0x2   :  { %v1524_v2 = vld [vmem:[%s3028_s0 + $0xf0] sm:$0xf]  ;;  %v1461_v3 = vor.u32 %v1853_v1, %v1460_v0  ;;  %v1869_v4 = vld [vmem:[%s3028_s0 + $0xf4] sm:$0xf0]  ;;  %v1851_v6 = vld [vmem:[%s3028_s0 + $0x64] sm:$0xf0]  ;;  %1957 = vset.pattern.permute.xlu2 %v1958_v41 }
   0x3   :  { %v1525_v7 = vor.u32 %v1869_v4, %v1524_v2  ;;  %v1516_v8 = vld [vmem:[%s3028_s0 + $0xe0] sm:$0xf]  ;;  %v1867_v9 = vld [vmem:[%s3028_s0 + $0xe4] sm:$0xf0]  ;;  %v1453_v10 = vor.u32 %v1851_v6, %v1452_v5  ;;  %v1444_v12 = vld [vmem:[%s3028_s0 + $0x50] sm:$0xf] }
   0x4   :  { %1938 = vmatpush.bf16.msra.mxu2 %v1461_v3  ;;  %848 = vmatpush.bf16.msra.mxu0 %v1461_v3  ;;  %v1517_v11 = vor.u32 %v1867_v9, %v1516_v8  ;;  %v1849_v13 = vld [vmem:[%s3028_s0 + $0x54] sm:$0xf0]  ;;  %v1508_v14 = vld [vmem:[%s3028_s0 + $0xd0] sm:$0xf]  ;;  %v1436_v18 = vld [vmem:[%s3028_s0 + $0x40] sm:$0xf] }
   0x5   :  { %1946 = vmatpush.bf16.msra.mxu3 %v1525_v7  ;;  %877 = vmatpush.bf16.msra.mxu1 %v1525_v7  ;;  %v1865_v15 = vld [vmem:[%s3028_s0 + $0xd4] sm:$0xf0]  ;;  %v1445_v16 = vor.u32 %v1849_v13, %v1444_v12  ;;  %v1847_v19 = vld [vmem:[%s3028_s0 + $0x44] sm:$0xf0]  ;;  %v1500_v20 = vld [vmem:[%s3028_s0 + $0xc0] sm:$0xf] }
   0x6   :  { %v1509_v17 = vor.u32 %v1865_v15, %v1508_v14  ;;  %v1863_v21 = vld [vmem:[%s3028_s0 + $0xc4] sm:$0xf0]  ;;  %v1437_v22 = vor.u32 %v1847_v19, %v1436_v18  ;;  %v1428_v24 = vld [vmem:[%s3028_s0 + $0x30] sm:$0xf]  ;;  %v1845_v25 = vld [vmem:[%s3028_s0 + $0x34] sm:$0xf0] }
   0x7   :  { %v1501_v23 = vor.u32 %v1863_v21, %v1500_v20  ;;  %v1492_v26 = vld [vmem:[%s3028_s0 + $0xb0] sm:$0xf]  ;;  %v1861_v27 = vld [vmem:[%s3028_s0 + $0xb4] sm:$0xf0]  ;;  %v1429_v28 = vor.u32 %v1845_v25, %v1428_v24  ;;  %v1420_v30 = vld [vmem:[%s3028_s0 + $0x20] sm:$0xf] }
   0x8   :  { %1939 = vmatpush.bf16.msra.mxu2 %v1453_v10  ;;  %849 = vmatpush.bf16.msra.mxu0 %v1453_v10  ;;  %v1493_v29 = vor.u32 %v1861_v27, %v1492_v26  ;;  %v1843_v31 = vld [vmem:[%s3028_s0 + $0x24] sm:$0xf0]  ;;  %v1484_v32 = vld [vmem:[%s3028_s0 + $0xa0] sm:$0xf]  ;;  %v1412_v36 = vld [vmem:[%s3028_s0 + $0x10] sm:$0xf] }
   0x9   :  { %1947 = vmatpush.bf16.msra.mxu3 %v1517_v11  ;;  %878 = vmatpush.bf16.msra.mxu1 %v1517_v11  ;;  %v1859_v33 = vld [vmem:[%s3028_s0 + $0xa4] sm:$0xf0]  ;;  %v1421_v34 = vor.u32 %v1843_v31, %v1420_v30  ;;  %v1841_v37 = vld [vmem:[%s3028_s0 + $0x14] sm:$0xf0]  ;;  %v147_v38 = vld [vmem:[%s3029_s2] sm:$0xff] }
   0xa   :  { %v1485_v35 = vor.u32 %v1859_v33, %v1484_v32  ;;  %v1476_v39 = vld [vmem:[%s3028_s0 + $0x90] sm:$0xf]  ;;  %v1857_v40 = vld [vmem:[%s3028_s0 + $0x94] sm:$0xf0]  ;;  %157 = vperm.xlu0 %1955, %v147_v38   ;;  %v1413_v42 = vor.u32 %v1841_v37, %v1412_v36  ;;  %v1404_v43 = vld [vmem:[%s3028_s0] sm:$0xf] }
   0xb   :  { %v1477_v44 = vor.u32 %v1857_v40, %v1476_v39  ;;  %v1839_v45 = vld [vmem:[%s3028_s0 + $0x4] sm:$0xf0]  ;;  %v1468_v46 = vld [vmem:[%s3028_s0 + $0x80] sm:$0xf]  ;;  %v1348_v48 = vld [vmem:[%s3030_s1 + $0x70] sm:$0xf] }
   0xc   :  { %1940 = vmatpush.bf16.msra.mxu2 %v1445_v16  ;;  %850 = vmatpush.bf16.msra.mxu0 %v1445_v16  ;;  %v1855_v47 = vld [vmem:[%s3028_s0 + $0x84] sm:$0xf0]  ;;  %v1827_v49 = vld [vmem:[%s3030_s1 + $0x88] sm:$0xf0]  ;;  %v1588_v50 = vld [vmem:[%s3028_s0 + $0x170] sm:$0xf]  ;;  %v1405_v57 = vor.u32 %v1839_v45, %v1404_v43 }
   0xd   :  { %1948 = vmatpush.bf16.msra.mxu3 %v1509_v17  ;;  %879 = vmatpush.bf16.msra.mxu1 %v1509_v17  ;;  %v1885_v51 = vld [vmem:[%s3028_s0 + $0x174] sm:$0xf0]  ;;  %v1824_v52 = vld [vmem:[%s3030_s1 + $0x74] sm:$0xf]  ;;  %v1350_v53 = vld [vmem:[%s3030_s1 + $0x8c] sm:$0xf0]  ;;  %v1469_v61 = vor.u32 %v1855_v47, %v1468_v46  ;;  %v2132_v6 = vor.u32 %v1827_v49, %v1348_v48 }
   0xe   :  { %v1652_v54 = vld [vmem:[%s3028_s0 + $0x1f0] sm:$0xf]  ;;  %v1901_v55 = vld [vmem:[%s3028_s0 + $0x1f4] sm:$0xf0]  ;;  %v1292_v56 = vld [vmem:[%s3030_s1] sm:$0xf]  ;;  %v1589_v62 = vor.u32 %v1885_v51, %v1588_v50  ;;  %v2145_v11 = vor.u32 %v1824_v52, %v1350_v53 }
   0xf   :  { %v1813_v58 = vld [vmem:[%s3030_s1 + $0x18] sm:$0xf0]  ;;  %v1716_v59 = vld [vmem:[%s3028_s0 + $0x270] sm:$0xf]  ;;  %v1917_v60 = vld [vmem:[%s3028_s0 + $0x274] sm:$0xf0]  ;;  %v1653_v2 = vor.u32 %v1901_v55, %v1652_v54 }
  0x10   :  { %1941 = vmatpush.bf16.msra.mxu2 %v1437_v22  ;;  %851 = vmatpush.bf16.msra.mxu0 %v1437_v22  ;;  %v1810_v63 = vld [vmem:[%s3030_s1 + $0x4] sm:$0xf]  ;;  %v1294_v0 = vld [vmem:[%s3030_s1 + $0x1c] sm:$0xf0]  ;;  %v1883_v3 = vld [vmem:[%s3028_s0 + $0x164] sm:$0xf0]  ;;  %v2134_v7 = vor.u32 %v1813_v58, %v1292_v56  ;;  %v1717_v12 = vor.u32 %v1917_v60, %v1716_v59 }
  0x11   :  { %1949 = vmatpush.bf16.msra.mxu3 %v1501_v23  ;;  %880 = vmatpush.bf16.msra.mxu1 %v1501_v23  ;;  %v1580_v1 = vld [vmem:[%s3028_s0 + $0x160] sm:$0xf]  ;;  %v148_v5 = vld [vmem:[%s3029_s2 + $0x8] sm:$0xff]  ;;  %v1780_v9 = vld [vmem:[%s3028_s0 + $0x2f0] sm:$0xf]  ;;  %v2147_v13 = vor.u32 %v1810_v63, %v1294_v0 }
  0x12   :  { %v1644_v4 = vld [vmem:[%s3028_s0 + $0x1e0] sm:$0xf]  ;;  %v1899_v8 = vld [vmem:[%s3028_s0 + $0x1e4] sm:$0xf0]  ;;  %v1933_v10 = vld [vmem:[%s3028_s0 + $0x2f4] sm:$0xf0]  ;;  %162 = vperm.xlu0 %1955, %v148_v5   ;;  %v1581_v14 = vor.u32 %v1883_v3, %v1580_v1 }
  0x13   :  { %v1708_v15 = vld [vmem:[%s3028_s0 + $0x260] sm:$0xf]  ;;  %v1915_v16 = vld [vmem:[%s3028_s0 + $0x264] sm:$0xf0]  ;;  %v1645_v17 = vor.u32 %v1899_v8, %v1644_v4  ;;  %v1781_v18 = vor.u32 %v1933_v10, %v1780_v9  ;;  %v1572_v19 = vld [vmem:[%s3028_s0 + $0x150] sm:$0xf] }
  0x14   :  { %1942 = vmatpush.bf16.msra.mxu2 %v1429_v28  ;;  %852 = vmatpush.bf16.msra.mxu0 %v1429_v28  ;;  %v1881_v20 = vld [vmem:[%s3028_s0 + $0x154] sm:$0xf0]  ;;  %v1636_v21 = vld [vmem:[%s3028_s0 + $0x1d0] sm:$0xf]  ;;  %v1772_v23 = vld [vmem:[%s3028_s0 + $0x2e0] sm:$0xf]  ;;  %v1709_v25 = vor.u32 %v1915_v16, %v1708_v15 }
  0x15   :  { %1950 = vmatpush.bf16.msra.mxu3 %v1493_v29  ;;  %881 = vmatpush.bf16.msra.mxu1 %v1493_v29  ;;  %v1897_v22 = vld [vmem:[%s3028_s0 + $0x1d4] sm:$0xf0]  ;;  %v1931_v24 = vld [vmem:[%s3028_s0 + $0x2e4] sm:$0xf0]  ;;  %v149_v26 = vld [vmem:[%s3029_s2 + $0x10] sm:$0xff]  ;;  %v1573_v27 = vor.u32 %v1881_v20, %v1572_v19 }
  0x16   :  { %v1700_v28 = vld [vmem:[%s3028_s0 + $0x250] sm:$0xf]  ;;  %v1913_v29 = vld [vmem:[%s3028_s0 + $0x254] sm:$0xf0]  ;;  %v1637_v30 = vor.u32 %v1897_v22, %v1636_v21  ;;  %v1773_v31 = vor.u32 %v1931_v24, %v1772_v23  ;;  %v1564_v32 = vld [vmem:[%s3028_s0 + $0x140] sm:$0xf]  ;;  %167 = vperm.xlu1 %1956, %v149_v26  }
  0x17   :  { %v1879_v33 = vld [vmem:[%s3028_s0 + $0x144] sm:$0xf0]  ;;  %v1764_v36 = vld [vmem:[%s3028_s0 + $0x2d0] sm:$0xf]  ;;  %v1929_v37 = vld [vmem:[%s3028_s0 + $0x2d4] sm:$0xf0]  ;;  %v1701_v38 = vor.u32 %v1913_v29, %v1700_v28 }
  0x18   :  { %1943 = vmatpush.bf16.msra.mxu2 %v1421_v34  ;;  %853 = vmatpush.bf16.msra.mxu0 %v1421_v34  ;;  %v1628_v34 = vld [vmem:[%s3028_s0 + $0x1c0] sm:$0xf]  ;;  %v1911_v40 = vld [vmem:[%s3028_s0 + $0x244] sm:$0xf0]  ;;  %v1565_v41 = vor.u32 %v1879_v33, %v1564_v32  ;;  %v1877_v43 = vld [vmem:[%s3028_s0 + $0x134] sm:$0xf0]  ;;  %v1765_v46 = vor.u32 %v1929_v37, %v1764_v36 }
  0x19   :  { %1951 = vmatpush.bf16.msra.mxu3 %v1485_v35  ;;  %882 = vmatpush.bf16.msra.mxu1 %v1485_v35  ;;  %v1895_v35 = vld [vmem:[%s3028_s0 + $0x1c4] sm:$0xf0]  ;;  %v1692_v39 = vld [vmem:[%s3028_s0 + $0x240] sm:$0xf]  ;;  %v1834_v48 = vld [vmem:[%s3030_s1 + $0xc0] sm:$0xf0] }
  0x1a   :  { %v1629_v45 = vor.u32 %v1895_v35, %v1628_v34  ;;  %v1376_v47 = vld [vmem:[%s3030_s1 + $0xa8] sm:$0xf]  ;;  %v1620_v49 = vld [vmem:[%s3028_s0 + $0x1b0] sm:$0xf]  ;;  %v1893_v50 = vld [vmem:[%s3028_s0 + $0x1b4] sm:$0xf0] }
  0x1b   :  { %v1756_v51 = vld [vmem:[%s3028_s0 + $0x2c0] sm:$0xf]  ;;  %v1831_v52 = vld [vmem:[%s3030_s1 + $0xac] sm:$0xf]  ;;  %v1378_v53 = vld [vmem:[%s3030_s1 + $0xc4] sm:$0xf0]  ;;  %v1621_v1 = vor.u32 %v1893_v50, %v1620_v49  ;;  %v2276_v8 = vor.u32 %v1834_v48, %v1376_v47 }
  0x1c   :  { %1944 = vmatpush.bf16.msra.mxu2 %v1413_v42  ;;  %854 = vmatpush.bf16.msra.mxu0 %v1413_v42  ;;  %v1556_v42 = vld [vmem:[%s3028_s0 + $0x130] sm:$0xf]  ;;  %v1927_v54 = vld [vmem:[%s3028_s0 + $0x2c4] sm:$0xf0]  ;;  %v1320_v55 = vld [vmem:[%s3030_s1 + $0x38] sm:$0xf]  ;;  %v2289_v15 = vor.u32 %v1831_v52, %v1378_v53 }
  0x1d   :  { %1952 = vmatpush.bf16.msra.mxu3 %v1477_v44  ;;  %883 = vmatpush.bf16.msra.mxu1 %v1477_v44  ;;  %v153_v44 = vld [vmem:[%s3029_s2 + $0x30] sm:$0xff]  ;;  %v150_v59 = vld [vmem:[%s3029_s2 + $0x18] sm:$0xff]  ;;  %v151_v60 = vld [vmem:[%s3029_s2 + $0x20] sm:$0xff] }
  0x1e   :  { %v1820_v56 = vld [vmem:[%s3030_s1 + $0x50] sm:$0xf0]  ;;  %187 = vperm.xlu0 %1955, %v153_v44   ;;  %v1684_v58 = vld [vmem:[%s3028_s0 + $0x230] sm:$0xf]  ;;  %v1817_v63 = vld [vmem:[%s3030_s1 + $0x3c] sm:$0xf]  ;;  %177 = vperm.xlu2 %1957, %v151_v60  }
  0x1f   :  { %v1322_v0 = vld [vmem:[%s3030_s1 + $0x54] sm:$0xf0]  ;;  %v1548_v3 = vld [vmem:[%s3028_s0 + $0x120] sm:$0xf]  ;;  %v1875_v4 = vld [vmem:[%s3028_s0 + $0x124] sm:$0xf0]  ;;  %v2278_v9 = vor.u32 %v1820_v56, %v1320_v55  ;;  %172 = vperm.xlu1 %1956, %v150_v59  }
  0x20   :  { %1945 = vmatpush.bf16.msra.mxu2 %v1405_v57  ;;  %855 = vmatpush.bf16.msra.mxu0 %v1405_v57  ;;  %v1693_v57 = vor.u32 %v1911_v40, %v1692_v39  ;;  %v1612_v5 = vld [vmem:[%s3028_s0 + $0x1a0] sm:$0xf]  ;;  %v1891_v10 = vld [vmem:[%s3028_s0 + $0x1a4] sm:$0xf0]  ;;  %v1540_v23 = vld [vmem:[%s3028_s0 + $0x110] sm:$0xf] }
  0x21   :  { %1953 = vmatpush.bf16.msra.mxu3 %v1469_v61  ;;  %884 = vmatpush.bf16.msra.mxu1 %v1469_v61  ;;  %v1557_v61 = vor.u32 %v1877_v43, %v1556_v42  ;;  %v1676_v19 = vld [vmem:[%s3028_s0 + $0x220] sm:$0xf]  ;;  %v1907_v20 = vld [vmem:[%s3028_s0 + $0x224] sm:$0xf0]  ;;  %v1613_v21 = vor.u32 %v1891_v10, %v1612_v5  ;;  %v1873_v24 = vld [vmem:[%s3028_s0 + $0x114] sm:$0xf0] }
  0x22   :  { %v1889_v26 = vld [vmem:[%s3028_s0 + $0x194] sm:$0xf0]  ;;  %v1923_v28 = vld [vmem:[%s3028_s0 + $0x2a4] sm:$0xf0]  ;;  %v1677_v29 = vor.u32 %v1907_v20, %v1676_v19  ;;  %v1541_v32 = vor.u32 %v1873_v24, %v1540_v23  ;;  %v1668_v33 = vld [vmem:[%s3028_s0 + $0x210] sm:$0xf] }
  0x23   :  { %866 = vmatmul.bf16.vlgmr.msra.gmra.mxu2 %v2132_v6  ;;  %856 = vmatmul.bf16.vlgmr.msra.gmra.mxu0 %v2134_v7  ;;  %v1905_v34 = vld [vmem:[%s3028_s0 + $0x214] sm:$0xf0]  ;;  %v1532_v35 = vld [vmem:[%s3028_s0 + $0x100] sm:$0xf]  ;;  %v1887_v40 = vld [vmem:[%s3028_s0 + $0x184] sm:$0xf0] }
  0x24   :  { %906 = vmatpush.bf16.msrb.mxu2 %v1589_v62  ;;  %895 = vmatmul.bf16.vlgmr.msra.gmra.mxu3 %v2145_v11  ;;  %v1909_v62 = vld [vmem:[%s3028_s0 + $0x234] sm:$0xf0]  ;;  %v1596_v39 = vld [vmem:[%s3028_s0 + $0x180] sm:$0xf]  ;;  %v1796_v43 = vld [vmem:[%s3028_s0 + $0x310] sm:$0xf]  ;;  %v1669_v44 = vor.u32 %v1905_v34, %v1668_v33 }
  0x25   :  { %935 = vmatpush.bf16.msrb.mxu3 %v1653_v2  ;;  %964 = vmatpush.bf16.msrb.mxu0 %v1717_v12  ;;  %v1757_v2 = vor.u32 %v1927_v54, %v1756_v51  ;;  %v1748_v12 = vld [vmem:[%s3028_s0 + $0x2b0] sm:$0xf]  ;;  %v1685_v16 = vor.u32 %v1909_v62, %v1684_v58  ;;  %v1921_v42 = vld [vmem:[%s3028_s0 + $0x294] sm:$0xf0]  ;;  %v1462_v47 = vld [vmem:[%s3028_s0 + $0x78] sm:$0xf0]  ;;  %v1597_v51 = vor.u32 %v1887_v40, %v1596_v39 }
  0x26   :  { %885 = vmatmul.bf16.vlgmr.msra.gmra.mxu1 %v2147_v13  ;;  %v1660_v49 = vld [vmem:[%s3028_s0 + $0x200] sm:$0xf]  ;;  %v1903_v50 = vld [vmem:[%s3028_s0 + $0x204] sm:$0xf0]  ;;  %v1814_v54 = vld [vmem:[%s3030_s1 + $0x20] sm:$0xf0] }
  0x27   :  { %993 = vmatpush.bf16.msrb.mxu1 %v1781_v18  ;;  %v1549_v18 = vor.u32 %v1875_v4, %v1548_v3  ;;  %v1300_v53 = vld [vmem:[%s3030_s1 + $0x8] sm:$0xf]  ;;  %v1868_v55 = vld [vmem:[%s3028_s0 + $0xf4] sm:$0xf]  ;;  %v1526_v56 = vld [vmem:[%s3028_s0 + $0xf8] sm:$0xf0]  ;;  %v1661_v62 = vor.u32 %v1903_v50, %v1660_v49 }
  0x28   :  { %907 = vmatpush.bf16.msrb.mxu2 %v1581_v14  ;;  %v1925_v14 = vld [vmem:[%s3028_s0 + $0x2b4] sm:$0xf0]  ;;  %v1724_v59 = vld [vmem:[%s3028_s0 + $0x280] sm:$0xf]  ;;  %v1919_v60 = vld [vmem:[%s3028_s0 + $0x284] sm:$0xf0]  ;;  %v1529_v3 = vor.u32 %v1868_v55, %v1526_v56 }
  0x29   :  { %936 = vmatpush.bf16.msrb.mxu3 %v1645_v17  ;;  %965 = vmatpush.bf16.msrb.mxu0 %v1709_v25  ;;  %v2291_v17 = vor.u32 %v1817_v63, %v1322_v0  ;;  %v1749_v22 = vor.u32 %v1925_v14, %v1748_v12  ;;  %v1604_v25 = vld [vmem:[%s3028_s0 + $0x190] sm:$0xf]  ;;  %v1302_v63 = vld [vmem:[%s3030_s1 + $0x24] sm:$0xf0]  ;;  %v1884_v4 = vld [vmem:[%s3028_s0 + $0x174] sm:$0xf]  ;;  %v1725_v10 = vor.u32 %v1919_v60, %v1724_v59 }
  0x2a   :  { %v1605_v36 = vor.u32 %v1889_v26, %v1604_v25  ;;  %v1308_v0 = vld [vmem:[%s3030_s1 + $0x10] sm:$0xf]  ;;  %v1590_v5 = vld [vmem:[%s3028_s0 + $0x178] sm:$0xf0]  ;;  %v1850_v14 = vld [vmem:[%s3028_s0 + $0x64] sm:$0xf] }
  0x2b   :  { %994 = vmatpush.bf16.msrb.mxu1 %v1773_v31  ;;  %v152_v31 = vld [vmem:[%s3029_s2 + $0x28] sm:$0xff]  ;;  %v1310_v12 = vld [vmem:[%s3030_s1 + $0x2c] sm:$0xf0]  ;;  %v1866_v20 = vld [vmem:[%s3028_s0 + $0xe4] sm:$0xf]  ;;  %v1593_v23 = vor.u32 %v1884_v4, %v1590_v5 }
  0x2c   :  { %908 = vmatpush.bf16.msrb.mxu2 %v1573_v27  ;;  %v1740_v27 = vld [vmem:[%s3028_s0 + $0x2a0] sm:$0xf]  ;;  %182 = vperm.xlu2 %1957, %v152_v31   ;;  %v1882_v26 = vld [vmem:[%s3028_s0 + $0x164] sm:$0xf]  ;;  %v1864_v31 = vld [vmem:[%s3028_s0 + $0xd4] sm:$0xf] }
  0x2d   :  { %937 = vmatpush.bf16.msrb.mxu3 %v1637_v30  ;;  %966 = vmatpush.bf16.msrb.mxu0 %v1701_v38  ;;  %v154_v30 = vld [vmem:[%s3029_s2 + $0x38] sm:$0xff]  ;;  %v1741_v37 = vor.u32 %v1923_v28, %v1740_v27  ;;  %v1871_v38 = vld [vmem:[%s3028_s0 + $0x104] sm:$0xf0]  ;;  %v1582_v27 = vld [vmem:[%s3028_s0 + $0x168] sm:$0xf0] }
  0x2e   :  { %192 = vperm.xlu1 %1956, %v154_v30   ;;  %v1533_v48 = vor.u32 %v1871_v38, %v1532_v35  ;;  %v1848_v28 = vld [vmem:[%s3028_s0 + $0x54] sm:$0xf]  ;;  %v1585_v33 = vor.u32 %v1882_v26, %v1582_v27  ;;  %v1788_v34 = vld [vmem:[%s3028_s0 + $0x300] sm:$0xf]  ;;  %v1935_v35 = vld [vmem:[%s3028_s0 + $0x304] sm:$0xf0] }
  0x2f   :  { %995 = vmatpush.bf16.msrb.mxu1 %v1765_v46  ;;  %v1852_v46 = vld [vmem:[%s3028_s0 + $0x74] sm:$0xf]  ;;  %v1574_v38 = vld [vmem:[%s3028_s0 + $0x158] sm:$0xf0]  ;;  %v1789_v39 = vor.u32 %v1935_v35, %v1788_v34  ;;  %v1846_v40 = vld [vmem:[%s3028_s0 + $0x44] sm:$0xf] }
  0x30   :  { %909 = vmatpush.bf16.msrb.mxu2 %v1565_v41  ;;  %v1732_v41 = vld [vmem:[%s3028_s0 + $0x290] sm:$0xf]  ;;  %v1328_v49 = vld [vmem:[%s3030_s1 + $0x40] sm:$0xf]  ;;  %v1821_v50 = vld [vmem:[%s3030_s1 + $0x58] sm:$0xf0] }
  0x31   :  { %938 = vmatpush.bf16.msrb.mxu3 %v1629_v45  ;;  %967 = vmatpush.bf16.msrb.mxu0 %v1693_v57  ;;  %v1937_v45 = vld [vmem:[%s3028_s0 + $0x314] sm:$0xf0]  ;;  %v1733_v52 = vor.u32 %v1921_v42, %v1732_v41  ;;  %v1811_v57 = vld [vmem:[%s3030_s1 + $0xc] sm:$0xf]  ;;  %v1860_v55 = vld [vmem:[%s3028_s0 + $0xb4] sm:$0xf]  ;;  %v2531_v5 = vor.u32 %v1821_v50, %v1328_v49 }
  0x32   :  { %v1797_v58 = vor.u32 %v1937_v45, %v1796_v43  ;;  %v1438_v41 = vld [vmem:[%s3028_s0 + $0x48] sm:$0xf0]  ;;  %v1862_v43 = vld [vmem:[%s3028_s0 + $0xc4] sm:$0xf]  ;;  %v1494_v56 = vld [vmem:[%s3028_s0 + $0xb8] sm:$0xf0] }
  0x33   :  { %996 = vmatpush.bf16.msrb.mxu1 %v1757_v2  ;;  %871 = vmatmul.bf16.gmra.mxu2 %v2276_v8  ;;  %v1812_v2 = vld [vmem:[%s3030_s1 + $0x14] sm:$0xf]  ;;  %v1822_v59 = vld [vmem:[%s3030_s1 + $0x60] sm:$0xf0]  ;;  %v1497_v4 = vor.u32 %v1860_v55, %v1494_v56  ;;  %v1486_v27 = vld [vmem:[%s3028_s0 + $0xa8] sm:$0xf0] }
  0x34   :  { %910 = vmatpush.bf16.msrb.mxu2 %v1557_v61  ;;  %861 = vmatmul.bf16.gmra.mxu0 %v2278_v9  ;;  %v1465_v61 = vor.u32 %v1852_v46, %v1462_v47  ;;  %v2429_v24 = vor.u32 %v1812_v2, %v1310_v12  ;;  %v1441_v46 = vor.u32 %v1846_v40, %v1438_v41  ;;  %v1878_v47 = vld [vmem:[%s3028_s0 + $0x144] sm:$0xf]  ;;  %v1856_v34 = vld [vmem:[%s3028_s0 + $0x94] sm:$0xf]  ;;  %v1478_v35 = vld [vmem:[%s3028_s0 + $0x98] sm:$0xf0] }
  0x35   :  { %939 = vmatpush.bf16.msrb.mxu3 %v1621_v1  ;;  %968 = vmatpush.bf16.msrb.mxu0 %v1685_v16  ;;  %v1815_v1 = vld [vmem:[%s3030_s1 + $0x28] sm:$0xf0]  ;;  %v1842_v2 = vld [vmem:[%s3028_s0 + $0x24] sm:$0xf]  ;;  %v1358_v49 = vld [vmem:[%s3030_s1 + $0x94] sm:$0xf0] }
  0x36   :  { %900 = vmatmul.bf16.gmra.mxu3 %v2289_v15  ;;  %890 = vmatmul.bf16.gmra.mxu1 %v2291_v17  ;;  %v1454_v16 = vld [vmem:[%s3028_s0 + $0x68] sm:$0xf0]  ;;  %v2419_v19 = vor.u32 %v1815_v1, %v1308_v0  ;;  %v1558_v0 = vld [vmem:[%s3028_s0 + $0x138] sm:$0xf0]  ;;  %v1338_v1 = vld [vmem:[%s3030_s1 + $0x64] sm:$0xf0] }
  0x37   :  { %997 = vmatpush.bf16.msrb.mxu1 %v1749_v22  ;;  %v2427_v22 = vor.u32 %v1811_v57, %v1302_v63  ;;  %v1457_v25 = vor.u32 %v1850_v14, %v1454_v16  ;;  %v1330_v57 = vld [vmem:[%s3030_s1 + $0x5c] sm:$0xf0]  ;;  %v1876_v63 = vld [vmem:[%s3028_s0 + $0x134] sm:$0xf]  ;;  %v1854_v41 = vld [vmem:[%s3028_s0 + $0x84] sm:$0xf] }
  0x38   :  { %911 = vmatpush.bf16.msrb.mxu2 %v1549_v18  ;;  %v2417_v18 = vor.u32 %v1814_v54, %v1300_v53  ;;  %v1818_v54 = vld [vmem:[%s3030_s1 + $0x44] sm:$0xf]  ;;  %v1561_v14 = vor.u32 %v1876_v63, %v1558_v0  ;;  %v1718_v63 = vld [vmem:[%s3028_s0 + $0x278] sm:$0xf0] }
  0x39   :  { %940 = vmatpush.bf16.msrb.mxu3 %v1613_v21  ;;  %969 = vmatpush.bf16.msrb.mxu0 %v1677_v29  ;;  %v1518_v21 = vld [vmem:[%s3028_s0 + $0xe8] sm:$0xf0]  ;;  %v1446_v29 = vld [vmem:[%s3028_s0 + $0x58] sm:$0xf0]  ;;  %v2535_v12 = vor.u32 %v1818_v54, %v1330_v57  ;;  %v1826_v50 = vld [vmem:[%s3030_s1 + $0x84] sm:$0xf] }
  0x3a   :  { %v1521_v30 = vor.u32 %v1866_v20, %v1518_v21  ;;  %v1840_v21 = vld [vmem:[%s3028_s0 + $0x14] sm:$0xf]  ;;  %v1870_v56 = vld [vmem:[%s3028_s0 + $0x104] sm:$0xf]  ;;  %v1534_v57 = vld [vmem:[%s3028_s0 + $0x108] sm:$0xf0] }
  0x3b   :  { %998 = vmatpush.bf16.msrb.mxu1 %v1741_v37  ;;  %v1880_v37 = vld [vmem:[%s3028_s0 + $0x154] sm:$0xf]  ;;  %v1898_v0 = vld [vmem:[%s3028_s0 + $0x1e4] sm:$0xf] }
  0x3c   :  { %912 = vmatpush.bf16.msrb.mxu2 %v1541_v32  ;;  %v1510_v32 = vld [vmem:[%s3028_s0 + $0xd8] sm:$0xf0]  ;;  %v1577_v45 = vor.u32 %v1880_v37, %v1574_v38  ;;  %v1872_v37 = vld [vmem:[%s3028_s0 + $0x114] sm:$0xf] }
  0x3d   :  { %941 = vmatpush.bf16.msrb.mxu3 %v1605_v36  ;;  %970 = vmatpush.bf16.msrb.mxu0 %v1669_v44  ;;  %v1449_v36 = vor.u32 %v1848_v28, %v1446_v29  ;;  %v1513_v42 = vor.u32 %v1864_v31, %v1510_v32  ;;  %v1502_v44 = vld [vmem:[%s3028_s0 + $0xc8] sm:$0xf0]  ;;  %v1874_v29 = vld [vmem:[%s3028_s0 + $0x124] sm:$0xf]  ;;  %v1542_v38 = vld [vmem:[%s3028_s0 + $0x118] sm:$0xf0] }
  0x3e   :  { %v1505_v53 = vor.u32 %v1862_v43, %v1502_v44  ;;  %v1838_v31 = vld [vmem:[%s3028_s0 + $0x4] sm:$0xf]  ;;  %v1545_v40 = vor.u32 %v1872_v37, %v1542_v38  ;;  %v1356_v43 = vld [vmem:[%s3030_s1 + $0x78] sm:$0xf]  ;;  %v1828_v44 = vld [vmem:[%s3030_s1 + $0x90] sm:$0xf0] }
  0x3f   :  { %999 = vmatpush.bf16.msrb.mxu1 %v1733_v52  ;;  %v1430_v52 = vld [vmem:[%s3028_s0 + $0x38] sm:$0xf0] }
  0x40   :  { %913 = vmatpush.bf16.msrb.mxu2 %v1533_v48  ;;  %v1566_v48 = vld [vmem:[%s3028_s0 + $0x148] sm:$0xf0] }
  0x41   :  { %942 = vmatpush.bf16.msrb.mxu3 %v1597_v51  ;;  %971 = vmatpush.bf16.msrb.mxu0 %v1661_v62  ;;  %v1844_v51 = vld [vmem:[%s3028_s0 + $0x34] sm:$0xf]  ;;  %v1569_v60 = vor.u32 %v1878_v47, %v1566_v48  ;;  %v1825_v48 = vld [vmem:[%s3030_s1 + $0x7c] sm:$0xf] }
  0x42   :  { %v1433_v62 = vor.u32 %v1844_v51, %v1430_v52  ;;  %v1366_v51 = vld [vmem:[%s3030_s1 + $0x9c] sm:$0xf0]  ;;  %v2609_v52 = vor.u32 %v1828_v44, %v1356_v43  ;;  %v2613_v54 = vor.u32 %v1825_v48, %v1358_v49  ;;  %v1912_v43 = vld [vmem:[%s3028_s0 + $0x254] sm:$0xf] }
  0x43   :  { %1000 = vmatpush.bf16.msrb.mxu1 %v1725_v10  ;;  %914 = vmatmul.bf16.vlgmr.msrb.gmra.mxu2 %v2417_v18  ;;  %v2615_v55 = vor.u32 %v1826_v50, %v1366_v51  ;;  %v1894_v50 = vld [vmem:[%s3028_s0 + $0x1c4] sm:$0xf]  ;;  %v1630_v51 = vld [vmem:[%s3028_s0 + $0x1c8] sm:$0xf0] }
  0x44   :  { %1028 = vmatpush.bf16.msra.mxu2 %v1797_v58  ;;  %972 = vmatmul.bf16.vlgmr.msrb.gmra.mxu0 %v2419_v19  ;;  %v1336_v58 = vld [vmem:[%s3030_s1 + $0x48] sm:$0xf] }
  0x45   :  { %1051 = vmatpush.bf16.msra.mxu3 %v1465_v61  ;;  %1080 = vmatpush.bf16.msra.mxu0 %v1529_v3  ;;  %v1819_v61 = vld [vmem:[%s3030_s1 + $0x4c] sm:$0xf]  ;;  %v2533_v10 = vor.u32 %v1822_v59, %v1336_v58  ;;  %v1537_v58 = vor.u32 %v1870_v56, %v1534_v57  ;;  %v1900_v59 = vld [vmem:[%s3028_s0 + $0x1f4] sm:$0xf]  ;;  %v1910_v56 = vld [vmem:[%s3028_s0 + $0x244] sm:$0xf]  ;;  %v1633_v57 = vor.u32 %v1894_v50, %v1630_v51 }
  0x46   :  { %943 = vmatmul.bf16.vlgmr.msrb.gmra.mxu3 %v2427_v22  ;;  %1001 = vmatmul.bf16.vlgmr.msrb.gmra.mxu1 %v2429_v24  ;;  %v1422_v3 = vld [vmem:[%s3028_s0 + $0x28] sm:$0xf0]  ;;  %v2537_v16 = vor.u32 %v1819_v61, %v1338_v1  ;;  %v1916_v61 = vld [vmem:[%s3028_s0 + $0x274] sm:$0xf] }
  0x47   :  { %1109 = vmatpush.bf16.msra.mxu1 %v1593_v23  ;;  %v1425_v20 = vor.u32 %v1842_v2, %v1422_v3  ;;  %v1414_v23 = vld [vmem:[%s3028_s0 + $0x18] sm:$0xf0]  ;;  %v1646_v1 = vld [vmem:[%s3028_s0 + $0x1e8] sm:$0xf0]  ;;  %v1721_v2 = vor.u32 %v1916_v61, %v1718_v63  ;;  %v1914_v3 = vld [vmem:[%s3028_s0 + $0x264] sm:$0xf] }
  0x48   :  { %1029 = vmatpush.bf16.msra.mxu2 %v1789_v39  ;;  %v1417_v26 = vor.u32 %v1840_v21, %v1414_v23  ;;  %v1782_v21 = vld [vmem:[%s3028_s0 + $0x2f8] sm:$0xf0]  ;;  %v1936_v23 = vld [vmem:[%s3028_s0 + $0x314] sm:$0xf]  ;;  %v1316_v63 = vld [vmem:[%s3030_s1 + $0x18] sm:$0xf] }
  0x49   :  { %1052 = vmatpush.bf16.msra.mxu3 %v1457_v25  ;;  %1081 = vmatpush.bf16.msra.mxu0 %v1521_v30  ;;  %v1858_v25 = vld [vmem:[%s3028_s0 + $0xa4] sm:$0xf]  ;;  %v1550_v30 = vld [vmem:[%s3028_s0 + $0x128] sm:$0xf0] }
  0x4a   :  { %v1489_v28 = vor.u32 %v1858_v25, %v1486_v27  ;;  %v1553_v32 = vor.u32 %v1874_v29, %v1550_v30  ;;  %v1798_v25 = vld [vmem:[%s3028_s0 + $0x318] sm:$0xf0]  ;;  %v1384_v29 = vld [vmem:[%s3030_s1 + $0xb0] sm:$0xf]  ;;  %v1835_v30 = vld [vmem:[%s3030_s1 + $0xc8] sm:$0xf0] }
  0x4b   :  { %1110 = vmatpush.bf16.msra.mxu1 %v1585_v33  ;;  %v1406_v33 = vld [vmem:[%s3028_s0 + $0x8] sm:$0xf0]  ;;  %v2687_v37 = vor.u32 %v1835_v30, %v1384_v29  ;;  %v1924_v29 = vld [vmem:[%s3028_s0 + $0x2b4] sm:$0xf]  ;;  %v1344_v30 = vld [vmem:[%s3030_s1 + $0x50] sm:$0xf] }
  0x4c   :  { %v1409_v39 = vor.u32 %v1838_v31, %v1406_v33  ;;  %v1392_v31 = vld [vmem:[%s3030_s1 + $0xb8] sm:$0xf]  ;;  %v1832_v33 = vld [vmem:[%s3030_s1 + $0xb4] sm:$0xf]  ;;  %v1598_v50 = vld [vmem:[%s3028_s0 + $0x188] sm:$0xf0] }
  0x4d   :  { %1053 = vmatpush.bf16.msra.mxu3 %v1449_v36  ;;  %1082 = vmatpush.bf16.msra.mxu0 %v1513_v42  ;;  %v1481_v36 = vor.u32 %v1856_v34, %v1478_v35  ;;  %v1470_v42 = vld [vmem:[%s3028_s0 + $0x88] sm:$0xf0]  ;;  %v1386_v34 = vld [vmem:[%s3030_s1 + $0xcc] sm:$0xf0]  ;;  %v1833_v35 = vld [vmem:[%s3030_s1 + $0xbc] sm:$0xf] }
  0x4e   :  { %v1473_v47 = vor.u32 %v1854_v41, %v1470_v42  ;;  %v1896_v41 = vld [vmem:[%s3028_s0 + $0x1d4] sm:$0xf]  ;;  %v1638_v42 = vld [vmem:[%s3028_s0 + $0x1d8] sm:$0xf0] }
  0x4f   :  { %1111 = vmatpush.bf16.msra.mxu1 %v1577_v45  ;;  %v1364_v45 = vld [vmem:[%s3030_s1 + $0x80] sm:$0xf]  ;;  %v1641_v44 = vor.u32 %v1896_v41, %v1638_v42  ;;  %v1790_v41 = vld [vmem:[%s3028_s0 + $0x308] sm:$0xf0] }
  0x51   :  { %1054 = vmatpush.bf16.msra.mxu3 %v1441_v46  ;;  %1083 = vmatpush.bf16.msra.mxu0 %v1505_v53  ;;  %v1829_v46 = vld [vmem:[%s3030_s1 + $0x98] sm:$0xf0] }
  0x52   :  { %v2611_v53 = vor.u32 %v1829_v46, %v1364_v45  ;;  %v1702_v45 = vld [vmem:[%s3028_s0 + $0x258] sm:$0xf0]  ;;  %v1930_v46 = vld [vmem:[%s3028_s0 + $0x2e4] sm:$0xf] }
  0x53   :  { %1112 = vmatpush.bf16.msra.mxu1 %v1569_v60  ;;  %919 = vmatmul.bf16.gmra.mxu2 %v2531_v5  ;;  %v1654_v60 = vld [vmem:[%s3028_s0 + $0x1f8] sm:$0xf0]  ;;  %v1705_v48 = vor.u32 %v1912_v43, %v1702_v45  ;;  %v1888_v43 = vld [vmem:[%s3028_s0 + $0x194] sm:$0xf] }
  0x54   :  { %977 = vmatmul.bf16.gmra.mxu0 %v2533_v10  ;;  %v1904_v45 = vld [vmem:[%s3028_s0 + $0x214] sm:$0xf] }
  0x55   :  { %1055 = vmatpush.bf16.msra.mxu3 %v1433_v62  ;;  %1084 = vmatpush.bf16.msra.mxu0 %v1497_v4  ;;  %v1657_v62 = vor.u32 %v1900_v59, %v1654_v60  ;;  %v1710_v4 = vld [vmem:[%s3028_s0 + $0x268] sm:$0xf0]  ;;  %v1928_v59 = vld [vmem:[%s3028_s0 + $0x2d4] sm:$0xf]  ;;  %v1766_v60 = vld [vmem:[%s3028_s0 + $0x2d8] sm:$0xf0] }
  0x56   :  { %948 = vmatmul.bf16.gmra.mxu3 %v2535_v12  ;;  %1006 = vmatmul.bf16.gmra.mxu1 %v2537_v16 }
  0x57   :  { %1113 = vmatpush.bf16.msra.mxu1 %v1561_v14  ;;  %v1932_v14 = vld [vmem:[%s3028_s0 + $0x2f4] sm:$0xf]  ;;  %1138 = vmatpush.bf16.msrb.mxu2 %v1657_v62  ;;  %v1769_v62 = vor.u32 %v1928_v59, %v1766_v60  ;;  %v1372_v60 = vld [vmem:[%s3030_s1 + $0x88] sm:$0xf] }
  0x58   :  { %v1785_v27 = vor.u32 %v1932_v14, %v1782_v21 }
  0x59   :  { %1056 = vmatpush.bf16.msra.mxu3 %v1425_v20  ;;  %1085 = vmatpush.bf16.msra.mxu0 %v1489_v28  ;;  %v1649_v20 = vor.u32 %v1898_v0, %v1646_v1  ;;  %v1801_v28 = vor.u32 %v1936_v23, %v1798_v25  ;;  %v1816_v0 = vld [vmem:[%s3030_s1 + $0x30] sm:$0xf0]  ;;  %v1614_v25 = vld [vmem:[%s3028_s0 + $0x1a8] sm:$0xf0] }
  0x5a   :  { %v2741_v1 = vor.u32 %v1816_v0, %v1316_v63  ;;  %v1734_v63 = vld [vmem:[%s3028_s0 + $0x298] sm:$0xf0] }
  0x5b   :  { %1114 = vmatpush.bf16.msra.mxu1 %v1553_v32  ;;  %1139 = vmatpush.bf16.msrb.mxu2 %v1649_v20  ;;  %v1836_v32 = vld [vmem:[%s3030_s1 + $0xd0] sm:$0xf0]  ;;  %v1758_v20 = vld [vmem:[%s3028_s0 + $0x2c8] sm:$0xf0] }
  0x5c   :  { %v2689_v38 = vor.u32 %v1836_v32, %v1392_v31  ;;  %v1823_v31 = vld [vmem:[%s3030_s1 + $0x68] sm:$0xf0] }
  0x5d   :  { %1057 = vmatpush.bf16.msra.mxu3 %v1417_v26  ;;  %1086 = vmatpush.bf16.msra.mxu0 %v1481_v36  ;;  %v1713_v26 = vor.u32 %v1914_v3, %v1710_v4  ;;  %v1394_v36 = vld [vmem:[%s3030_s1 + $0xd4] sm:$0xf0]  ;;  %v1622_v3 = vld [vmem:[%s3028_s0 + $0x1b8] sm:$0xf0]  ;;  %v1908_v4 = vld [vmem:[%s3028_s0 + $0x234] sm:$0xf] }
  0x5f   :  { %1115 = vmatpush.bf16.msra.mxu1 %v1545_v40  ;;  %v2693_v40 = vor.u32 %v1833_v35, %v1394_v36  ;;  %1140 = vmatpush.bf16.msrb.mxu2 %v1641_v44  ;;  %v2790_v35 = vor.u32 %v1823_v31, %v1344_v30  ;;  %v1934_v36 = vld [vmem:[%s3028_s0 + $0x304] sm:$0xf]  ;;  %v1606_v44 = vld [vmem:[%s3028_s0 + $0x198] sm:$0xf0] }
  0x60   :  { %v1793_v42 = vor.u32 %v1934_v36, %v1790_v41 }
  0x61   :  { %1058 = vmatpush.bf16.msra.mxu3 %v1409_v39  ;;  %1087 = vmatpush.bf16.msra.mxu0 %v1473_v47  ;;  %v2691_v39 = vor.u32 %v1832_v33, %v1386_v34  ;;  %v1774_v47 = vld [vmem:[%s3028_s0 + $0x2e8] sm:$0xf0]  ;;  %v1750_v33 = vld [vmem:[%s3028_s0 + $0x2b8] sm:$0xf0] }
  0x62   :  { %v1777_v49 = vor.u32 %v1930_v46, %v1774_v47  ;;  %v1753_v34 = vor.u32 %v1924_v29, %v1750_v33  ;;  %v1609_v46 = vor.u32 %v1888_v43, %v1606_v44  ;;  %v1742_v47 = vld [vmem:[%s3028_s0 + $0x2a8] sm:$0xf0] }
  0x63   :  { %924 = vmatmul.bf16.gmra.mxu2 %v2609_v52  ;;  %1116 = vmatpush.bf16.msra.mxu1 %v1537_v58  ;;  %v1694_v58 = vld [vmem:[%s3028_s0 + $0x248] sm:$0xf0] }
  0x64   :  { %982 = vmatmul.bf16.gmra.mxu0 %v2611_v53  ;;  %v1697_v61 = vor.u32 %v1910_v56, %v1694_v58  ;;  %1141 = vmatpush.bf16.msrb.mxu2 %v1633_v57  ;;  %v1902_v56 = vld [vmem:[%s3028_s0 + $0x204] sm:$0xf]  ;;  %v1662_v57 = vld [vmem:[%s3028_s0 + $0x208] sm:$0xf0]  ;;  %v1920_v58 = vld [vmem:[%s3028_s0 + $0x294] sm:$0xf] }
  0x65   :  { %1167 = vmatpush.bf16.msrb.mxu3 %v1721_v2  ;;  %1196 = vmatpush.bf16.msrb.mxu0 %v1785_v27  ;;  %v1892_v2 = vld [vmem:[%s3028_s0 + $0x1b4] sm:$0xf]  ;;  %v1906_v27 = vld [vmem:[%s3028_s0 + $0x224] sm:$0xf]  ;;  %v1737_v0 = vor.u32 %v1920_v58, %v1734_v63 }
  0x66   :  { %953 = vmatmul.bf16.gmra.mxu3 %v2613_v54  ;;  %1011 = vmatmul.bf16.gmra.mxu1 %v2615_v55  ;;  %v1625_v14 = vor.u32 %v1892_v2, %v1622_v3 }
  0x67   :  { %1231 = vmatpush.bf16.msrb.mxu1 %v1801_v28  ;;  %v1678_v28 = vld [vmem:[%s3028_s0 + $0x228] sm:$0xf0] }
  0x68   :  { %1142 = vmatpush.bf16.msrb.mxu2 %v1625_v14  ;;  %v1681_v32 = vor.u32 %v1906_v27, %v1678_v28  ;;  %v1726_v14 = vld [vmem:[%s3028_s0 + $0x288] sm:$0xf0] }
  0x69   :  { %1168 = vmatpush.bf16.msrb.mxu3 %v1713_v26  ;;  %1197 = vmatpush.bf16.msrb.mxu0 %v1777_v49 }
  0x6b   :  { %1232 = vmatpush.bf16.msrb.mxu1 %v1793_v42 }
  0x6d   :  { %1169 = vmatpush.bf16.msrb.mxu3 %v1705_v48  ;;  %1198 = vmatpush.bf16.msrb.mxu0 %v1769_v62  ;;  %v1665_v62 = vor.u32 %v1902_v56, %v1662_v57 }
  0x71   :  { %1170 = vmatpush.bf16.msrb.mxu3 %v1697_v61  ;;  %v1830_v61 = vld [vmem:[%s3030_s1 + $0xa0] sm:$0xf0] }
  0x72   :  { %v2847_v2 = vor.u32 %v1830_v61, %v1372_v60 }
  0x73   :  { %929 = vmatmul.bf16.gmra.mxu2 %v2687_v37 }
  0x74   :  { %987 = vmatmul.bf16.gmra.mxu0 %v2689_v38 }
  0x76   :  { %958 = vmatmul.bf16.gmra.mxu3 %v2691_v39  ;;  %1016 = vmatmul.bf16.gmra.mxu1 %v2693_v40 }
  0x7c   :  { %v2836_v59 = vpop.permute.xlu0 %157 }
  0x83   :  { %1802 = vmatmul.msk.bf16.vlgmr.msra.gmra.mxu2 %vm835_vm0, %v2741_v1 }
  0x84   :  { %1088 = vmatmul.bf16.vlgmr.msra.gmra.mxu0 %v2147_v13  ;;  %v1686_v13 = vld [vmem:[%s3028_s0 + $0x238] sm:$0xf0] }
  0x85   :  { %v1689_v21 = vor.u32 %v1908_v4, %v1686_v13  ;;  %v1918_v4 = vld [vmem:[%s3028_s0 + $0x284] sm:$0xf] }
  0x86   :  { %1059 = vmatmul.bf16.vlgmr.msra.gmra.mxu3 %v2134_v7  ;;  %1117 = vmatmul.bf16.vlgmr.msra.gmra.mxu1 %v2417_v18  ;;  %v1926_v7 = vld [vmem:[%s3028_s0 + $0x2c4] sm:$0xf] }
  0x87   :  { %v1761_v23 = vor.u32 %v1926_v7, %v1758_v20  ;;  %1171 = vmatpush.bf16.msrb.mxu3 %v1689_v21  ;;  %v1890_v18 = vld [vmem:[%s3028_s0 + $0x1a4] sm:$0xf]  ;;  %v1729_v7 = vor.u32 %v1918_v4, %v1726_v14  ;;  %v2856_v21 = vpop.permute.xlu2 %177 }
  0x88   :  { %v1617_v26 = vor.u32 %v1890_v18, %v1614_v25  ;;  %v2863_v25 = vpop.permute.xlu0 %162  ;;  %v2866_v29 = vpop.permute.xlu1 %167 }
  0x89   :  { %1199 = vmatpush.bf16.msrb.mxu0 %v1761_v23 }
  0x8a   :  { %1143 = vmatpush.bf16.msrb.mxu2 %v1617_v26 }
  0x8b   :  { %1172 = vmatpush.bf16.msrb.mxu3 %v1681_v32 }
  0x8d   :  { %1200 = vmatpush.bf16.msrb.mxu0 %v1753_v34 }
  0x8e   :  { %1144 = vmatpush.bf16.msrb.mxu2 %v1609_v46 }
  0x8f   :  { %v2871_v33 = vpop.permute.xlu2 %182 }
  0x93   :  { %1803 = vmatmul.msk.bf16.gmra.mxu2 %vm835_vm0, %v2790_v35 }
  0x94   :  { %1093 = vmatmul.bf16.gmra.mxu0 %v2291_v17  ;;  %v1922_v17 = vld [vmem:[%s3028_s0 + $0x2a4] sm:$0xf] }
  0x95   :  { %v1745_v49 = vor.u32 %v1922_v17, %v1742_v47  ;;  %v2891_v47 = vpop.permute.xlu0 %187 }
  0x96   :  { %1064 = vmatmul.bf16.gmra.mxu3 %v2278_v9  ;;  %1122 = vmatmul.bf16.gmra.mxu1 %v2531_v5  ;;  %v1670_v9 = vld [vmem:[%s3028_s0 + $0x218] sm:$0xf0]  ;;  %v1886_v5 = vld [vmem:[%s3028_s0 + $0x184] sm:$0xf] }
  0x97   :  { %v1673_v48 = vor.u32 %v1904_v45, %v1670_v9  ;;  %1201 = vmatpush.bf16.msrb.mxu0 %v1745_v49  ;;  %v1601_v51 = vor.u32 %v1886_v5, %v1598_v50  ;;  %v2885_v9 = vpop.permute.xlu1 %172 }
  0x99   :  { %1173 = vmatpush.bf16.msrb.mxu3 %v1673_v48  ;;  %1145 = vmatpush.bf16.msrb.mxu2 %v1601_v51 }
  0x9b   :  { %1202 = vmatpush.bf16.msrb.mxu0 %v1737_v0 }
  0x9d   :  { %1174 = vmatpush.bf16.msrb.mxu3 %v1665_v62 }
  0x9f   :  { %1203 = vmatpush.bf16.msrb.mxu0 %v1729_v7 }
  0xa0   :  { %v857_v3 = vpop.f32.mrf.mxu0  ;;  %v2898_v60 = vpop.permute.xlu1 %192 }
  0xa1   :  { %v858_v13 = vadd.f32 %v857_v3, %v2836_v59 }
  0xa3   :  { %v886_v20 = vpop.f32.mrf.mxu1  ;;  %1804 = vmatmul.msk.bf16.gmra.mxu2 %vm835_vm0, %v2847_v2 }
  0xa4   :  { %v887_v23 = vadd.f32 %v886_v20, %v858_v13  ;;  %1098 = vmatmul.bf16.gmra.mxu0 %v2145_v11 }
  0xa6   :  { %1069 = vmatmul.bf16.gmra.mxu3 %v2132_v6  ;;  %1127 = vmatmul.bf16.gmra.mxu1 %v2609_v52  ;;  %v867_v18 = vpop.f32.mrf.mxu2  ;;  %v1400_v6 = vld [vmem:[%s3030_s1 + $0xc0] sm:$0xf]  ;;  %v1837_v52 = vld [vmem:[%s3030_s1 + $0xd8] sm:$0xf0] }
  0xa7   :  { %v868_v26 = vadd.f32 %v867_v18, %v2856_v21  ;;  %v896_v27 = vpop.f32.mrf.mxu3  ;;  %v2880_v42 = vor.u32 %v1837_v52, %v1400_v6 }
  0xa8   :  { %v859_v28 = vpop.f32.mrf.mxu0 }
  0xa9   :  { %v2868_v30 = vadd.f32 %v896_v27, %v868_v26  ;;  %v860_v31 = vadd.f32 %v859_v28, %v2863_v25 }
  0xab   :  { %v888_v32 = vpop.f32.mrf.mxu1 }
  0xac   :  { %v889_v11 = vadd.f32 %v888_v32, %v860_v31 }
  0xae   :  { %v869_v34 = vpop.f32.mrf.mxu2 }
  0xaf   :  { %v870_v36 = vadd.f32 %v869_v34, %v2871_v33  ;;  %v898_v41 = vpop.f32.mrf.mxu3 }
  0xb1   :  { %v862_v43 = vpop.f32.mrf.mxu0  ;;  %v2882_v44 = vadd.f32 %v898_v41, %v870_v36 }
  0xb2   :  { %v863_v45 = vadd.f32 %v862_v43, %v2866_v29 }
  0xb3   :  { %v891_v46 = vpop.f32.mrf.mxu1  ;;  %1805 = vmatmul.msk.bf16.gmra.mxu2 %vm835_vm0, %v2880_v42 }
  0xb4   :  { %v892_v17 = vadd.f32 %v891_v46, %v863_v45  ;;  %1103 = vmatmul.bf16.gmra.mxu0 %v2289_v15 }
  0xb6   :  { %1074 = vmatmul.bf16.gmra.mxu3 %v2276_v8  ;;  %1132 = vmatmul.bf16.gmra.mxu1 %v2687_v37  ;;  %v872_v48 = vpop.f32.mrf.mxu2 }
  0xb7   :  { %v873_v49 = vadd.f32 %v872_v48, %v2891_v47 }
  0xb9   :  { %v901_v5 = vpop.f32.mrf.mxu3  ;;  %v864_v50 = vpop.f32.mrf.mxu0 }
  0xba   :  { %v2895_v51 = vadd.f32 %v901_v5, %v873_v49  ;;  %v865_v56 = vadd.f32 %v864_v50, %v2885_v9 }
  0xbb   :  { %v893_v57 = vpop.f32.mrf.mxu1 }
  0xbc   :  { %v894_v58 = vadd.f32 %v893_v57, %v865_v56 }
  0xbe   :  { %v874_v15 = vpop.f32.mrf.mxu2 }
  0xbf   :  { %v875_v8 = vadd.f32 %v874_v15, %v2898_v60 }
  0xc1   :  { %v903_v61 = vpop.f32.mrf.mxu3  ;;  %v973_v62 = vpop.f32.mrf.mxu0 }
  0xc2   :  { %v2901_v63 = vadd.f32 %v903_v61, %v875_v8 }
  0xc3   :  { %v1002_v37 = vpop.f32.mrf.mxu1  ;;  %1146 = vmatmul.bf16.vlgmr.msrb.gmra.mxu2 %v2427_v22 }
  0xc4   :  { %1204 = vmatmul.bf16.vlgmr.msrb.gmra.mxu0 %v2429_v24 }
  0xc6   :  { %1175 = vmatmul.bf16.vlgmr.msrb.gmra.mxu3 %v2419_v19  ;;  %1806 = vmatmul.msk.bf16.vlgmr.msrb.gmra.mxu1 %vm835_vm0, %v2741_v1  ;;  %v915_v0 = vpop.f32.mrf.mxu2 }
  0xc7   :  { %v916_v3 = vadd.f32 %v915_v0, %v887_v23 }
  0xc9   :  { %v944_v4 = vpop.f32.mrf.mxu3  ;;  %v975_v14 = vpop.f32.mrf.mxu0 }
  0xca   :  { %v945_v13 = vadd.f32 %v944_v4, %v916_v3 }
  0xcb   :  { %v1004_v7 = vpop.f32.mrf.mxu1 }
  0xcc   :  { %v974_v20 = vadd.f32 %v973_v62, %v945_v13 }
  0xce   :  { %v2908_v18 = vadd.f32 %v1002_v37, %v974_v20  ;;  %v917_v26 = vpop.f32.mrf.mxu2 }
  0xcf   :  { %v918_v27 = vadd.f32 %v917_v26, %v889_v11 }
  0xd1   :  { %v946_v28 = vpop.f32.mrf.mxu3  ;;  %v978_v22 = vpop.f32.mrf.mxu0 }
  0xd2   :  { %v947_v31 = vadd.f32 %v946_v28, %v918_v27 }
  0xd3   :  { %v1007_v24 = vpop.f32.mrf.mxu1  ;;  %1151 = vmatmul.bf16.gmra.mxu2 %v2535_v12 }
  0xd4   :  { %v976_v32 = vadd.f32 %v975_v14, %v947_v31  ;;  %1209 = vmatmul.bf16.gmra.mxu0 %v2537_v16 }
  0xd6   :  { %1180 = vmatmul.bf16.gmra.mxu3 %v2533_v10  ;;  %1807 = vmatmul.msk.bf16.gmra.mxu1 %vm835_vm0, %v2790_v35  ;;  %v2915_v19 = vadd.f32 %v1004_v7, %v976_v32  ;;  %v920_v1 = vpop.f32.mrf.mxu2 }
  0xd7   :  { %v921_v23 = vadd.f32 %v920_v1, %v892_v17 }
  0xd9   :  { %v949_v6 = vpop.f32.mrf.mxu3  ;;  %v980_v11 = vpop.f32.mrf.mxu0 }
  0xda   :  { %v950_v52 = vadd.f32 %v949_v6, %v921_v23 }
  0xdb   :  { %v1009_v34 = vpop.f32.mrf.mxu1 }
  0xdc   :  { %v979_v36 = vadd.f32 %v978_v22, %v950_v52 }
  0xde   :  { %v1008_v41 = vadd.f32 %v1007_v24, %v979_v36  ;;  %v922_v43 = vpop.f32.mrf.mxu2 }
  0xdf   :  { %v923_v45 = vadd.f32 %v922_v43, %v894_v58 }
  0xe1   :  { %v951_v12 = vpop.f32.mrf.mxu3  ;;  %v983_v46 = vpop.f32.mrf.mxu0 }
  0xe2   :  { %v952_v16 = vadd.f32 %v951_v12, %v923_v45 }
  0xe3   :  { %v1012_v48 = vpop.f32.mrf.mxu1  ;;  %1156 = vmatmul.bf16.gmra.mxu2 %v2613_v54 }
  0xe4   :  { %v981_v10 = vadd.f32 %v980_v11, %v952_v16  ;;  %1214 = vmatmul.bf16.gmra.mxu0 %v2615_v55 }
  0xe6   :  { %1185 = vmatmul.bf16.gmra.mxu3 %v2611_v53  ;;  %1808 = vmatmul.msk.bf16.gmra.mxu1 %vm835_vm0, %v2847_v2  ;;  %v1010_v35 = vadd.f32 %v1009_v34, %v981_v10  ;;  %v925_v17 = vpop.f32.mrf.mxu2 }
  0xe7   :  { %v926_v49 = vadd.f32 %v925_v17, %v2868_v30 }
  0xe9   :  { %v954_v5 = vpop.f32.mrf.mxu3  ;;  %v985_v50 = vpop.f32.mrf.mxu0 }
  0xea   :  { %v955_v56 = vadd.f32 %v954_v5, %v926_v49 }
  0xeb   :  { %v1014_v57 = vpop.f32.mrf.mxu1 }
  0xec   :  { %v984_v58 = vadd.f32 %v983_v46, %v955_v56 }
  0xee   :  { %v1013_v15 = vadd.f32 %v1012_v48, %v984_v58  ;;  %v927_v8 = vpop.f32.mrf.mxu2 }
  0xef   :  { %v928_v54 = vadd.f32 %v927_v8, %v2882_v44 }
  0xf1   :  { %v956_v61 = vpop.f32.mrf.mxu3  ;;  %v988_v55 = vpop.f32.mrf.mxu0 }
  0xf2   :  { %v957_v62 = vadd.f32 %v956_v61, %v928_v54 }
  0xf3   :  { %v1017_v53 = vpop.f32.mrf.mxu1  ;;  %1161 = vmatmul.bf16.gmra.mxu2 %v2691_v39 }
  0xf4   :  { %v986_v37 = vadd.f32 %v985_v50, %v957_v62  ;;  %1219 = vmatmul.bf16.gmra.mxu0 %v2693_v40 }
  0xf6   :  { %1190 = vmatmul.bf16.gmra.mxu3 %v2689_v38  ;;  %1809 = vmatmul.msk.bf16.gmra.mxu1 %vm835_vm0, %v2880_v42  ;;  %v1015_v2 = vadd.f32 %v1014_v57, %v986_v37  ;;  %v930_v30 = vpop.f32.mrf.mxu2 }
  0xf7   :  { %v931_v0 = vadd.f32 %v930_v30, %v2895_v51 }
  0xf9   :  { %v959_v3 = vpop.f32.mrf.mxu3  ;;  %v990_v44 = vpop.f32.mrf.mxu0 }
  0xfa   :  { %v960_v4 = vadd.f32 %v959_v3, %v931_v0 }
  0xfb   :  { %v1019_v14 = vpop.f32.mrf.mxu1 }
  0xfc   :  { %v989_v13 = vadd.f32 %v988_v55, %v960_v4 }
  0xfe   :  { %v1018_v7 = vadd.f32 %v1017_v53, %v989_v13  ;;  %v932_v20 = vpop.f32.mrf.mxu2 }
  0xff   :  { %v933_v39 = vadd.f32 %v932_v20, %v2901_v63 }
 0x101   :  { %v961_v26 = vpop.f32.mrf.mxu3  ;;  %v1089_v40 = vpop.f32.mrf.mxu0 }
 0x102   :  { %v962_v27 = vadd.f32 %v961_v26, %v933_v39 }
 0x103   :  { %v1118_v38 = vpop.f32.mrf.mxu1 }
 0x104   :  { %v991_v28 = vadd.f32 %v990_v44, %v962_v27 }
 0x106   :  { %v1020_v22 = vadd.f32 %v1019_v14, %v991_v28  ;;  %v1031_v42 = vpop.f32.mrf.mxu2 }
 0x107   :  { %v2932_v31 = vadd.f32 %v1031_v42, %v2908_v18 }
 0x109   :  { %v1060_v51 = vpop.f32.mrf.mxu3  ;;  %v1091_v24 = vpop.f32.mrf.mxu0 }
 0x10a   :  { %v1061_v55 = vadd.f32 %v1060_v51, %v2836_v59  ;;  %v1254_v51 = vmax.f32 %v2932_v31, 0.0 }
 0x10b   :  { %v1120_v32 = vpop.f32.mrf.mxu1 }
 0x10c   :  { %v1090_v30 = vadd.f32 %v1089_v40, %v1061_v55 }
 0x10e   :  { %v1033_v1 = vpop.f32.mrf.mxu2  ;;  %v1119_v44 = vadd.f32 %v1118_v38, %v1090_v30 }
 0x10f   :  { %v2935_v23 = vadd.f32 %v1033_v1, %v2915_v19 }
 0x111   :  { %v1062_v6 = vpop.f32.mrf.mxu3  ;;  %v1094_v11 = vpop.f32.mrf.mxu0  ;;  %v1256_v31 = vmax.f32 %v2935_v23, 0.0 }
 0x112   :  { %v1063_v3 = vadd.f32 %v1062_v6, %v2863_v25 }
 0x113   :  { %v1123_v63 = vpop.f32.mrf.mxu1 }
 0x114   :  { %v1092_v20 = vadd.f32 %v1091_v24, %v1063_v3 }
 0x116   :  { %v1036_v52 = vpop.f32.mrf.mxu2 }
 0x117   :  { %v2937_v34 = vadd.f32 %v1036_v52, %v1008_v41 }
 0x119   :  { %v1065_v36 = vpop.f32.mrf.mxu3  ;;  %v2939_v43 = vpop.f32.mrf.mxu0 }
 0x11a   :  { %v1066_v59 = vadd.f32 %v1065_v36, %v2866_v29 }
 0x11b   :  { %v2941_v45 = vpop.f32.mrf.mxu1 }
 0x11c   :  { %v1095_v38 = vadd.f32 %v1094_v11, %v1066_v59 }
 0x11e   :  { %v1038_v18 = vpop.f32.mrf.mxu2 }
 0x11f   :  { %v2943_v12 = vadd.f32 %v1038_v18, %v1010_v35 }
 0x121   :  { %v1067_v46 = vpop.f32.mrf.mxu3  ;;  %v2945_v16 = vpop.f32.mrf.mxu0 }
 0x122   :  { %v1068_v29 = vadd.f32 %v1067_v46, %v2885_v9 }
 0x123   :  { %v2947_v48 = vpop.f32.mrf.mxu1 }
 0x124   :  { %v1097_v11 = vadd.f32 %v2939_v43, %v1068_v29 }
 0x126   :  { %v1041_v19 = vpop.f32.mrf.mxu2  ;;  %v1126_v46 = vadd.f32 %v2941_v45, %v1097_v11 }
 0x127   :  { %v2949_v10 = vadd.f32 %v1041_v19, %v1013_v15 }
 0x129   :  { %v1070_v17 = vpop.f32.mrf.mxu3  ;;  %v2951_v49 = vpop.f32.mrf.mxu0 }
 0x12a   :  { %v1071_v9 = vadd.f32 %v1070_v17, %v2856_v21 }
 0x12b   :  { %v2953_v41 = vpop.f32.mrf.mxu1 }
 0x12e   :  { %v1043_v5 = vpop.f32.mrf.mxu2 }
 0x12f   :  { %v2955_v50 = vadd.f32 %v1043_v5, %v1015_v2 }
 0x131   :  { %v2957_v56 = vpop.f32.mrf.mxu3  ;;  %v2959_v35 = vpop.f32.mrf.mxu0 }
 0x132   :  { %v1073_v21 = vadd.f32 %v2957_v56, %v2871_v33 }
 0x133   :  { %v2961_v57 = vpop.f32.mrf.mxu1 }
 0x136   :  { %v1046_v58 = vpop.f32.mrf.mxu2 }
 0x137   :  { %v2963_v8 = vadd.f32 %v1046_v58, %v1018_v7 }
 0x139   :  { %v2965_v54 = vpop.f32.mrf.mxu3  ;;  %v2967_v15 = vpop.f32.mrf.mxu0 }
 0x13a   :  { %v1076_v33 = vadd.f32 %v2965_v54, %v2891_v47 }
 0x13b   :  { %v2969_v61 = vpop.f32.mrf.mxu1 }
 0x13e   :  { %v1048_v62 = vpop.f32.mrf.mxu2 }
 0x13f   :  { %v2972_v53 = vadd.f32 %v1048_v62, %v1020_v22  ;;  %v1121_v22 = vadd.f32 %v1120_v32, %v1092_v20  ;;  %v1124_v32 = vadd.f32 %v1123_v63, %v1095_v38  ;;  %v1262_v38 = vmax.f32 %v2949_v10, 0.0 }
 0x141   :  { %v2974_v37 = vpop.f32.mrf.mxu3  ;;  %v1205_v2 = vpop.f32.mrf.mxu0 }
 0x143   :  { %v1234_v0 = vpop.f32.mrf.mxu1 }
 0x146   :  { %v1147_v4 = vpop.f32.mrf.mxu2 }
 0x147   :  { %v1148_v14 = vadd.f32 %v1147_v4, %v1119_v44  ;;  %v1258_v4 = vmax.f32 %v2937_v34, 0.0 }
 0x149   :  { %v1176_v13 = vpop.f32.mrf.mxu3  ;;  %v1207_v7 = vpop.f32.mrf.mxu0 }
 0x14a   :  { %v1177_v39 = vadd.f32 %v1176_v13, %v1148_v14 }
 0x14b   :  { %v1236_v26 = vpop.f32.mrf.mxu1 }
 0x14c   :  { %v1206_v27 = vadd.f32 %v1205_v2, %v1177_v39 }
 0x14e   :  { %v1235_v28 = vadd.f32 %v1234_v0, %v1206_v27  ;;  %v1149_v42 = vpop.f32.mrf.mxu2 }
 0x14f   :  { %v1150_v1 = vadd.f32 %v1149_v42, %v1121_v22 }
 0x150   :  { %v1255_v40 = vmax.f32 %v1235_v28, 0.0  ;;  %v1260_v28 = vmax.f32 %v2943_v12, 0.0 }
 0x151   :  { %v1178_v52 = vpop.f32.mrf.mxu3  ;;  %v1210_v25 = vpop.f32.mrf.mxu0 }
 0x152   :  { %v1270_v6 = vpack.c.bf16 %v1255_v40, %v1254_v51  ;;  %v1179_v18 = vadd.f32 %v1178_v52, %v1150_v1  ;;  %v1102_v51 = vadd.f32 %v2951_v49, %v1073_v21 }
 0x153   :  { %v1239_v19 = vpop.f32.mrf.mxu1 }
 0x154   :  { %1278 = vst [vmem:[%s3031_s3] sm:$0xff] %v1270_v6  ;;  %v1208_v24 = vadd.f32 %v1207_v7, %v1179_v18  ;;  %v1100_v7 = vadd.f32 %v2945_v16, %v1071_v9  ;;  %v1131_v56 = vadd.f32 %v2953_v41, %v1102_v51  ;;  %v1078_v41 = vadd.f32 %v2974_v37, %v2898_v60 }
 0x156   :  { %v1237_v36 = vadd.f32 %v1236_v26, %v1208_v24  ;;  %v1152_v5 = vpop.f32.mrf.mxu2  ;;  %v1129_v17 = vadd.f32 %v2947_v48, %v1100_v7  ;;  %v1105_v24 = vadd.f32 %v2959_v35, %v1076_v33 }
 0x157   :  { %v1153_v55 = vadd.f32 %v1152_v5, %v1124_v32  ;;  %v1264_v5 = vmax.f32 %v2955_v50, 0.0  ;;  %v1266_v50 = vmax.f32 %v2963_v8, 0.0 }
 0x158   :  { %v1257_v58 = vmax.f32 %v1237_v36, 0.0  ;;  %v1134_v32 = vadd.f32 %v2961_v57, %v1105_v24 }
 0x159   :  { %v1181_v62 = vpop.f32.mrf.mxu3  ;;  %v1212_v0 = vpop.f32.mrf.mxu0 }
 0x15a   :  { %v1271_v2 = vpack.c.bf16 %v1257_v58, %v1256_v31  ;;  %v1182_v30 = vadd.f32 %v1181_v62, %v1153_v55  ;;  %v1107_v62 = vadd.f32 %v2967_v15, %v1078_v41 }
 0x15b   :  { %v1241_v44 = vpop.f32.mrf.mxu1 }
 0x15c   :  { %1279 = vst [vmem:[%s3031_s3 + $0x8] sm:$0xff] %v1271_v2  ;;  %v1211_v3 = vadd.f32 %v1210_v25, %v1182_v30  ;;  %v1136_v57 = vadd.f32 %v2969_v61, %v1107_v62 }
 0x15e   :  { %v1240_v63 = vadd.f32 %v1239_v19, %v1211_v3  ;;  %v1154_v23 = vpop.f32.mrf.mxu2 }
 0x15f   :  { %v1155_v13 = vadd.f32 %v1154_v23, %v1126_v46 }
 0x160   :  { %v1259_v14 = vmax.f32 %v1240_v63, 0.0 }
 0x161   :  { %v1183_v43 = vpop.f32.mrf.mxu3  ;;  %v1215_v27 = vpop.f32.mrf.mxu0 }
 0x162   :  { %v1272_v20 = vpack.c.bf16 %v1259_v14, %v1258_v4  ;;  %v1184_v39 = vadd.f32 %v1183_v43, %v1155_v13  ;;  %v1268_v13 = vmax.f32 %v2972_v53, 0.0 }
 0x163   :  { %v1244_v34 = vpop.f32.mrf.mxu1 }
 0x164   :  { %1280 = vst [vmem:[%s3031_s3 + $0x10] sm:$0xff] %v1272_v20  ;;  %v1213_v26 = vadd.f32 %v1212_v0, %v1184_v39 }
 0x166   :  { %v1242_v45 = vadd.f32 %v1241_v44, %v1213_v26  ;;  %v1157_v59 = vpop.f32.mrf.mxu2 }
 0x167   :  { %v1158_v16 = vadd.f32 %v1157_v59, %v1129_v17 }
 0x168   :  { %v1261_v22 = vmax.f32 %v1242_v45, 0.0 }
 0x169   :  { %v1186_v42 = vpop.f32.mrf.mxu3  ;;  %v1217_v25 = vpop.f32.mrf.mxu0 }
 0x16a   :  { %v1273_v40 = vpack.c.bf16 %v1261_v22, %v1260_v28  ;;  %v1187_v1 = vadd.f32 %v1186_v42, %v1158_v16 }
 0x16b   :  { %v1246_v19 = vpop.f32.mrf.mxu1 }
 0x16c   :  { %1281 = vst [vmem:[%s3031_s3 + $0x18] sm:$0xff] %v1273_v40  ;;  %v1216_v52 = vadd.f32 %v1215_v27, %v1187_v1 }
 0x16e   :  { %v1245_v48 = vadd.f32 %v1244_v34, %v1216_v52  ;;  %v1159_v12 = vpop.f32.mrf.mxu2 }
 0x16f   :  { %v1160_v18 = vadd.f32 %v1159_v12, %v1131_v56 }
 0x170   :  { %v1263_v6 = vmax.f32 %v1245_v48, 0.0 }
 0x171   :  { %v1188_v49 = vpop.f32.mrf.mxu3  ;;  %v1220_v35 = vpop.f32.mrf.mxu0 }
 0x172   :  { %v1274_v29 = vpack.c.bf16 %v1263_v6, %v1262_v38  ;;  %v1189_v36 = vadd.f32 %v1188_v49, %v1160_v18 }
 0x173   :  { %v1249_v30 = vpop.f32.mrf.mxu1 }
 0x174   :  { %1282 = vst [vmem:[%s3031_s3 + $0x20] sm:$0xff] %v1274_v29  ;;  %v1218_v47 = vadd.f32 %v1217_v25, %v1189_v36 }
 0x176   :  { %v1247_v54 = vadd.f32 %v1246_v19, %v1218_v47  ;;  %v1162_v10 = vpop.f32.mrf.mxu2 }
 0x177   :  { %v1163_v58 = vadd.f32 %v1162_v10, %v1134_v32 }
 0x178   :  { %v1265_v31 = vmax.f32 %v1247_v54, 0.0 }
 0x179   :  { %v1191_v55 = vpop.f32.mrf.mxu3  ;;  %v1222_v15 = vpop.f32.mrf.mxu0 }
 0x17a   :  { %v1275_v11 = vpack.c.bf16 %v1265_v31, %v1264_v5  ;;  %v1192_v2 = vadd.f32 %v1191_v55, %v1163_v58 }
 0x17b   :  { %v1251_v4 = vpop.f32.mrf.mxu1 }
 0x17c   :  { %1283 = vst [vmem:[%s3031_s3 + $0x28] sm:$0xff] %v1275_v11  ;;  %v1221_v60 = vadd.f32 %v1220_v35, %v1192_v2 }
 0x17e   :  { %v1250_v37 = vadd.f32 %v1249_v30, %v1221_v60  ;;  %v1164_v0 = vpop.f32.mrf.mxu2 }
 0x17f   :  { %v1165_v44 = vadd.f32 %v1164_v0, %v1136_v57 }
 0x180   :  { %v1267_v3 = vmax.f32 %v1250_v37, 0.0 }
 0x181   :  { %v1193_v9 = vpop.f32.mrf.mxu3 }
 0x182   :  { %v1276_v63 = vpack.c.bf16 %v1267_v3, %v1266_v50  ;;  %v1194_v46 = vadd.f32 %v1193_v9, %v1165_v44 }
 0x184   :  { %1284 = vst [vmem:[%s3031_s3 + $0x30] sm:$0xff] %v1276_v63  ;;  %v1223_v23 = vadd.f32 %v1222_v15, %v1194_v46 }
 0x186   :  { %v1252_v14 = vadd.f32 %v1251_v4, %v1223_v23 }
 0x188   :  { %v1269_v43 = vmax.f32 %v1252_v14, 0.0 }
 0x18a   :  { %v1277_v61 = vpack.c.bf16 %v1269_v43, %v1268_v13 }
 0x18c   :  { %1285 = vst [vmem:[%s3031_s3 + $0x38] sm:$0xff] %v1277_v61 }

// kernel: net_view_forward.13
= control target key start
LH: loop header
LB: loop body
LE: loop exit
PB: predicated region body
PF: predicated region fallthrough
CT: control target
= control target key end

     0   :  { %v3670_v41 = vmov 0   ;;  %vm1579_vm0 = vcmask 523264   ;;  %s5691_s0 = inlined_call_operand.vmem [shape: bf16[1600,256], index: 0, kind: input, shape index: {}]   ;;  %s5692_s2 = inlined_call_operand.vmem [shape: f32[64,1], index: 2, kind: input, shape index: {}]   ;;  %s5693_s1 = inlined_call_operand.vmem [shape: bf16[64,1600], index: 1, kind: input, shape index: {}]   ;;  %s5694_s3 = inlined_call_operand.vmem [shape: bf16[64,256], index: 3, kind: output, shape index: {}]  }
   0x1   :  { %v2648_v0 = vld [vmem:[%s5691_s0 + $0x70] sm:$0xf]  ;;  %v3465_v1 = vld [vmem:[%s5691_s0 + $0x74] sm:$0xf0]  ;;  %v2640_v5 = vld [vmem:[%s5691_s0 + $0x60] sm:$0xf]  ;;  %3667 = vset.pattern.permute.xlu0 %v3670_v41  ;;  %3668 = vset.pattern.permute.xlu1 %v3670_v41 }
   0x2   :  { %v2712_v2 = vld [vmem:[%s5691_s0 + $0xf0] sm:$0xf]  ;;  %v2649_v3 = vor.u32 %v3465_v1, %v2648_v0  ;;  %v3481_v4 = vld [vmem:[%s5691_s0 + $0xf4] sm:$0xf0]  ;;  %v3463_v6 = vld [vmem:[%s5691_s0 + $0x64] sm:$0xf0]  ;;  %3669 = vset.pattern.permute.xlu2 %v3670_v41 }
   0x3   :  { %v2713_v7 = vor.u32 %v3481_v4, %v2712_v2  ;;  %v2704_v8 = vld [vmem:[%s5691_s0 + $0xe0] sm:$0xf]  ;;  %v3479_v9 = vld [vmem:[%s5691_s0 + $0xe4] sm:$0xf0]  ;;  %v2641_v10 = vor.u32 %v3463_v6, %v2640_v5  ;;  %v2632_v12 = vld [vmem:[%s5691_s0 + $0x50] sm:$0xf] }
   0x4   :  { %3650 = vmatpush.bf16.msra.mxu2 %v2649_v3  ;;  %1592 = vmatpush.bf16.msra.mxu0 %v2649_v3  ;;  %v2705_v11 = vor.u32 %v3479_v9, %v2704_v8  ;;  %v3461_v13 = vld [vmem:[%s5691_s0 + $0x54] sm:$0xf0]  ;;  %v2696_v14 = vld [vmem:[%s5691_s0 + $0xd0] sm:$0xf]  ;;  %v2624_v18 = vld [vmem:[%s5691_s0 + $0x40] sm:$0xf] }
   0x5   :  { %3658 = vmatpush.bf16.msra.mxu3 %v2713_v7  ;;  %1621 = vmatpush.bf16.msra.mxu1 %v2713_v7  ;;  %v3477_v15 = vld [vmem:[%s5691_s0 + $0xd4] sm:$0xf0]  ;;  %v2633_v16 = vor.u32 %v3461_v13, %v2632_v12  ;;  %v3459_v19 = vld [vmem:[%s5691_s0 + $0x44] sm:$0xf0]  ;;  %v2688_v20 = vld [vmem:[%s5691_s0 + $0xc0] sm:$0xf] }
   0x6   :  { %v2697_v17 = vor.u32 %v3477_v15, %v2696_v14  ;;  %v3475_v21 = vld [vmem:[%s5691_s0 + $0xc4] sm:$0xf0]  ;;  %v2625_v22 = vor.u32 %v3459_v19, %v2624_v18  ;;  %v2616_v24 = vld [vmem:[%s5691_s0 + $0x30] sm:$0xf]  ;;  %v3457_v25 = vld [vmem:[%s5691_s0 + $0x34] sm:$0xf0] }
   0x7   :  { %v2689_v23 = vor.u32 %v3475_v21, %v2688_v20  ;;  %v2680_v26 = vld [vmem:[%s5691_s0 + $0xb0] sm:$0xf]  ;;  %v3473_v27 = vld [vmem:[%s5691_s0 + $0xb4] sm:$0xf0]  ;;  %v2617_v28 = vor.u32 %v3457_v25, %v2616_v24  ;;  %v2608_v30 = vld [vmem:[%s5691_s0 + $0x20] sm:$0xf] }
   0x8   :  { %3651 = vmatpush.bf16.msra.mxu2 %v2641_v10  ;;  %1593 = vmatpush.bf16.msra.mxu0 %v2641_v10  ;;  %v2681_v29 = vor.u32 %v3473_v27, %v2680_v26  ;;  %v3455_v31 = vld [vmem:[%s5691_s0 + $0x24] sm:$0xf0]  ;;  %v2672_v32 = vld [vmem:[%s5691_s0 + $0xa0] sm:$0xf]  ;;  %v2600_v36 = vld [vmem:[%s5691_s0 + $0x10] sm:$0xf] }
   0x9   :  { %3659 = vmatpush.bf16.msra.mxu3 %v2705_v11  ;;  %1622 = vmatpush.bf16.msra.mxu1 %v2705_v11  ;;  %v3471_v33 = vld [vmem:[%s5691_s0 + $0xa4] sm:$0xf0]  ;;  %v2609_v34 = vor.u32 %v3455_v31, %v2608_v30  ;;  %v3453_v37 = vld [vmem:[%s5691_s0 + $0x14] sm:$0xf0]  ;;  %v271_v38 = vld [vmem:[%s5692_s2] sm:$0xff] }
   0xa   :  { %v2673_v35 = vor.u32 %v3471_v33, %v2672_v32  ;;  %v2664_v39 = vld [vmem:[%s5691_s0 + $0x90] sm:$0xf]  ;;  %v3469_v40 = vld [vmem:[%s5691_s0 + $0x94] sm:$0xf0]  ;;  %281 = vperm.xlu0 %3667, %v271_v38   ;;  %v2601_v42 = vor.u32 %v3453_v37, %v2600_v36  ;;  %v2592_v43 = vld [vmem:[%s5691_s0] sm:$0xf] }
   0xb   :  { %v2665_v44 = vor.u32 %v3469_v40, %v2664_v39  ;;  %v3451_v45 = vld [vmem:[%s5691_s0 + $0x4] sm:$0xf0]  ;;  %v2656_v46 = vld [vmem:[%s5691_s0 + $0x80] sm:$0xf]  ;;  %v2488_v48 = vld [vmem:[%s5693_s1 + $0xd0] sm:$0xf] }
   0xc   :  { %3652 = vmatpush.bf16.msra.mxu2 %v2633_v16  ;;  %1594 = vmatpush.bf16.msra.mxu0 %v2633_v16  ;;  %v3467_v47 = vld [vmem:[%s5691_s0 + $0x84] sm:$0xf0]  ;;  %v3430_v49 = vld [vmem:[%s5693_s1 + $0x100] sm:$0xf0]  ;;  %v2776_v50 = vld [vmem:[%s5691_s0 + $0x170] sm:$0xf]  ;;  %v2593_v57 = vor.u32 %v3451_v45, %v2592_v43 }
   0xd   :  { %3660 = vmatpush.bf16.msra.mxu3 %v2697_v17  ;;  %1623 = vmatpush.bf16.msra.mxu1 %v2697_v17  ;;  %v3497_v51 = vld [vmem:[%s5691_s0 + $0x174] sm:$0xf0]  ;;  %v3424_v52 = vld [vmem:[%s5693_s1 + $0xd4] sm:$0xf]  ;;  %v2490_v53 = vld [vmem:[%s5693_s1 + $0x104] sm:$0xf0]  ;;  %v2657_v61 = vor.u32 %v3467_v47, %v2656_v46  ;;  %v3844_v6 = vor.u32 %v3430_v49, %v2488_v48 }
   0xe   :  { %v2840_v54 = vld [vmem:[%s5691_s0 + $0x1f0] sm:$0xf]  ;;  %v3513_v55 = vld [vmem:[%s5691_s0 + $0x1f4] sm:$0xf0]  ;;  %v2384_v56 = vld [vmem:[%s5693_s1] sm:$0xf]  ;;  %v2777_v62 = vor.u32 %v3497_v51, %v2776_v50  ;;  %v3857_v11 = vor.u32 %v3424_v52, %v2490_v53 }
   0xf   :  { %v3404_v58 = vld [vmem:[%s5693_s1 + $0x30] sm:$0xf0]  ;;  %v2904_v59 = vld [vmem:[%s5691_s0 + $0x270] sm:$0xf]  ;;  %v3529_v60 = vld [vmem:[%s5691_s0 + $0x274] sm:$0xf0]  ;;  %v2841_v2 = vor.u32 %v3513_v55, %v2840_v54 }
  0x10   :  { %3653 = vmatpush.bf16.msra.mxu2 %v2625_v22  ;;  %1595 = vmatpush.bf16.msra.mxu0 %v2625_v22  ;;  %v3398_v63 = vld [vmem:[%s5693_s1 + $0x4] sm:$0xf]  ;;  %v2386_v0 = vld [vmem:[%s5693_s1 + $0x34] sm:$0xf0]  ;;  %v2768_v1 = vld [vmem:[%s5691_s0 + $0x160] sm:$0xf]  ;;  %v3846_v7 = vor.u32 %v3404_v58, %v2384_v56  ;;  %v2905_v12 = vor.u32 %v3529_v60, %v2904_v59 }
  0x11   :  { %3661 = vmatpush.bf16.msra.mxu3 %v2689_v23  ;;  %1624 = vmatpush.bf16.msra.mxu1 %v2689_v23  ;;  %v3495_v3 = vld [vmem:[%s5691_s0 + $0x164] sm:$0xf0]  ;;  %v2832_v4 = vld [vmem:[%s5691_s0 + $0x1e0] sm:$0xf]  ;;  %v2968_v9 = vld [vmem:[%s5691_s0 + $0x2f0] sm:$0xf]  ;;  %v3859_v13 = vor.u32 %v3398_v63, %v2386_v0 }
  0x12   :  { %v272_v5 = vld [vmem:[%s5692_s2 + $0x8] sm:$0xff]  ;;  %v3545_v10 = vld [vmem:[%s5691_s0 + $0x2f4] sm:$0xf0]  ;;  %v2769_v14 = vor.u32 %v3495_v3, %v2768_v1  ;;  %v2896_v15 = vld [vmem:[%s5691_s0 + $0x260] sm:$0xf] }
  0x13   :  { %v3511_v8 = vld [vmem:[%s5691_s0 + $0x1e4] sm:$0xf0]  ;;  %286 = vperm.xlu0 %3667, %v272_v5   ;;  %v2969_v18 = vor.u32 %v3545_v10, %v2968_v9  ;;  %v2760_v19 = vld [vmem:[%s5691_s0 + $0x150] sm:$0xf]  ;;  %v3493_v20 = vld [vmem:[%s5691_s0 + $0x154] sm:$0xf0] }
  0x14   :  { %3654 = vmatpush.bf16.msra.mxu2 %v2617_v28  ;;  %1596 = vmatpush.bf16.msra.mxu0 %v2617_v28  ;;  %v3527_v16 = vld [vmem:[%s5691_s0 + $0x264] sm:$0xf0]  ;;  %v2833_v17 = vor.u32 %v3511_v8, %v2832_v4  ;;  %v2824_v21 = vld [vmem:[%s5691_s0 + $0x1d0] sm:$0xf]  ;;  %v3509_v22 = vld [vmem:[%s5691_s0 + $0x1d4] sm:$0xf0]  ;;  %v2761_v27 = vor.u32 %v3493_v20, %v2760_v19 }
  0x15   :  { %3662 = vmatpush.bf16.msra.mxu3 %v2681_v29  ;;  %1625 = vmatpush.bf16.msra.mxu1 %v2681_v29  ;;  %v2960_v23 = vld [vmem:[%s5691_s0 + $0x2e0] sm:$0xf]  ;;  %v3543_v24 = vld [vmem:[%s5691_s0 + $0x2e4] sm:$0xf0]  ;;  %v2897_v25 = vor.u32 %v3527_v16, %v2896_v15  ;;  %v273_v26 = vld [vmem:[%s5692_s2 + $0x10] sm:$0xff]  ;;  %v2825_v30 = vor.u32 %v3509_v22, %v2824_v21 }
  0x16   :  { %v2888_v28 = vld [vmem:[%s5691_s0 + $0x250] sm:$0xf]  ;;  %v3525_v29 = vld [vmem:[%s5691_s0 + $0x254] sm:$0xf0]  ;;  %v2961_v31 = vor.u32 %v3543_v24, %v2960_v23  ;;  %v2752_v32 = vld [vmem:[%s5691_s0 + $0x140] sm:$0xf]  ;;  %291 = vperm.xlu1 %3668, %v273_v26  }
  0x17   :  { %v3491_v33 = vld [vmem:[%s5691_s0 + $0x144] sm:$0xf0]  ;;  %v2952_v36 = vld [vmem:[%s5691_s0 + $0x2d0] sm:$0xf]  ;;  %v3541_v37 = vld [vmem:[%s5691_s0 + $0x2d4] sm:$0xf0]  ;;  %v2889_v38 = vor.u32 %v3525_v29, %v2888_v28 }
  0x18   :  { %3655 = vmatpush.bf16.msra.mxu2 %v2609_v34  ;;  %1597 = vmatpush.bf16.msra.mxu0 %v2609_v34  ;;  %v2816_v34 = vld [vmem:[%s5691_s0 + $0x1c0] sm:$0xf]  ;;  %v3523_v40 = vld [vmem:[%s5691_s0 + $0x244] sm:$0xf0]  ;;  %v2753_v41 = vor.u32 %v3491_v33, %v2752_v32  ;;  %v3489_v43 = vld [vmem:[%s5691_s0 + $0x134] sm:$0xf0]  ;;  %v2953_v46 = vor.u32 %v3541_v37, %v2952_v36 }
  0x19   :  { %3663 = vmatpush.bf16.msra.mxu3 %v2673_v35  ;;  %1626 = vmatpush.bf16.msra.mxu1 %v2673_v35  ;;  %v3507_v35 = vld [vmem:[%s5691_s0 + $0x1c4] sm:$0xf0]  ;;  %v2880_v39 = vld [vmem:[%s5691_s0 + $0x240] sm:$0xf]  ;;  %v2540_v47 = vld [vmem:[%s5693_s1 + $0x138] sm:$0xf] }
  0x1a   :  { %v2817_v45 = vor.u32 %v3507_v35, %v2816_v34  ;;  %v3443_v48 = vld [vmem:[%s5693_s1 + $0x168] sm:$0xf0]  ;;  %v2808_v49 = vld [vmem:[%s5691_s0 + $0x1b0] sm:$0xf]  ;;  %v3505_v50 = vld [vmem:[%s5691_s0 + $0x1b4] sm:$0xf0] }
  0x1b   :  { %v2944_v51 = vld [vmem:[%s5691_s0 + $0x2c0] sm:$0xf]  ;;  %v3437_v52 = vld [vmem:[%s5693_s1 + $0x13c] sm:$0xf]  ;;  %v2542_v53 = vld [vmem:[%s5693_s1 + $0x16c] sm:$0xf0]  ;;  %v2809_v1 = vor.u32 %v3505_v50, %v2808_v49  ;;  %v3988_v8 = vor.u32 %v3443_v48, %v2540_v47 }
  0x1c   :  { %3656 = vmatpush.bf16.msra.mxu2 %v2601_v42  ;;  %1598 = vmatpush.bf16.msra.mxu0 %v2601_v42  ;;  %v2744_v42 = vld [vmem:[%s5691_s0 + $0x130] sm:$0xf]  ;;  %v3539_v54 = vld [vmem:[%s5691_s0 + $0x2c4] sm:$0xf0]  ;;  %v3417_v56 = vld [vmem:[%s5693_s1 + $0x98] sm:$0xf0]  ;;  %v4001_v15 = vor.u32 %v3437_v52, %v2542_v53 }
  0x1d   :  { %3664 = vmatpush.bf16.msra.mxu3 %v2665_v44  ;;  %1627 = vmatpush.bf16.msra.mxu1 %v2665_v44  ;;  %v277_v44 = vld [vmem:[%s5692_s2 + $0x30] sm:$0xff]  ;;  %v2436_v55 = vld [vmem:[%s5693_s1 + $0x68] sm:$0xf]  ;;  %v274_v59 = vld [vmem:[%s5692_s2 + $0x18] sm:$0xff] }
  0x1e   :  { %311 = vperm.xlu0 %3667, %v277_v44   ;;  %v2872_v58 = vld [vmem:[%s5691_s0 + $0x230] sm:$0xf]  ;;  %v275_v60 = vld [vmem:[%s5692_s2 + $0x20] sm:$0xff]  ;;  %v3411_v63 = vld [vmem:[%s5693_s1 + $0x6c] sm:$0xf]  ;;  %v3990_v9 = vor.u32 %v3417_v56, %v2436_v55  ;;  %296 = vperm.xlu1 %3668, %v274_v59  }
  0x1f   :  { %v2438_v0 = vld [vmem:[%s5693_s1 + $0x9c] sm:$0xf0]  ;;  %301 = vperm.xlu2 %3669, %v275_v60   ;;  %v3487_v4 = vld [vmem:[%s5691_s0 + $0x124] sm:$0xf0]  ;;  %v2728_v23 = vld [vmem:[%s5691_s0 + $0x110] sm:$0xf] }
  0x20   :  { %3657 = vmatpush.bf16.msra.mxu2 %v2593_v57  ;;  %1599 = vmatpush.bf16.msra.mxu0 %v2593_v57  ;;  %v2881_v57 = vor.u32 %v3523_v40, %v2880_v39  ;;  %v2736_v3 = vld [vmem:[%s5691_s0 + $0x120] sm:$0xf]  ;;  %v3503_v10 = vld [vmem:[%s5691_s0 + $0x1a4] sm:$0xf0]  ;;  %v3485_v24 = vld [vmem:[%s5691_s0 + $0x114] sm:$0xf0] }
  0x21   :  { %3665 = vmatpush.bf16.msra.mxu3 %v2657_v61  ;;  %1628 = vmatpush.bf16.msra.mxu1 %v2657_v61  ;;  %v2745_v61 = vor.u32 %v3489_v43, %v2744_v42  ;;  %v2800_v5 = vld [vmem:[%s5691_s0 + $0x1a0] sm:$0xf]  ;;  %v3519_v20 = vld [vmem:[%s5691_s0 + $0x224] sm:$0xf0]  ;;  %v3501_v26 = vld [vmem:[%s5691_s0 + $0x194] sm:$0xf0]  ;;  %v2729_v32 = vor.u32 %v3485_v24, %v2728_v23 }
  0x22   :  { %v2864_v19 = vld [vmem:[%s5691_s0 + $0x220] sm:$0xf]  ;;  %v2801_v21 = vor.u32 %v3503_v10, %v2800_v5  ;;  %v3535_v28 = vld [vmem:[%s5691_s0 + $0x2a4] sm:$0xf0]  ;;  %v2856_v33 = vld [vmem:[%s5691_s0 + $0x210] sm:$0xf] }
  0x23   :  { %1610 = vmatmul.bf16.vlgmr.msra.gmra.mxu2 %v3844_v6  ;;  %1600 = vmatmul.bf16.vlgmr.msra.gmra.mxu0 %v3846_v7  ;;  %v2865_v29 = vor.u32 %v3519_v20, %v2864_v19  ;;  %v3517_v34 = vld [vmem:[%s5691_s0 + $0x214] sm:$0xf0]  ;;  %v2720_v35 = vld [vmem:[%s5691_s0 + $0x100] sm:$0xf]  ;;  %v3499_v40 = vld [vmem:[%s5691_s0 + $0x184] sm:$0xf0] }
  0x24   :  { %1650 = vmatpush.bf16.msrb.mxu2 %v2777_v62  ;;  %1639 = vmatmul.bf16.vlgmr.msra.gmra.mxu3 %v3857_v11  ;;  %v3521_v62 = vld [vmem:[%s5691_s0 + $0x234] sm:$0xf0]  ;;  %v2784_v39 = vld [vmem:[%s5691_s0 + $0x180] sm:$0xf]  ;;  %v3032_v43 = vld [vmem:[%s5691_s0 + $0x370] sm:$0xf]  ;;  %v2857_v44 = vor.u32 %v3517_v34, %v2856_v33 }
  0x25   :  { %1679 = vmatpush.bf16.msrb.mxu3 %v2841_v2  ;;  %1708 = vmatpush.bf16.msrb.mxu0 %v2905_v12  ;;  %v2945_v2 = vor.u32 %v3539_v54, %v2944_v51  ;;  %v2936_v12 = vld [vmem:[%s5691_s0 + $0x2b0] sm:$0xf]  ;;  %v2873_v16 = vor.u32 %v3521_v62, %v2872_v58  ;;  %v3533_v42 = vld [vmem:[%s5691_s0 + $0x294] sm:$0xf0]  ;;  %v2848_v49 = vld [vmem:[%s5691_s0 + $0x200] sm:$0xf]  ;;  %v2785_v51 = vor.u32 %v3499_v40, %v2784_v39 }
  0x26   :  { %1629 = vmatmul.bf16.vlgmr.msra.gmra.mxu1 %v3859_v13  ;;  %v3577_v47 = vld [vmem:[%s5691_s0 + $0x3f4] sm:$0xf0]  ;;  %v3515_v50 = vld [vmem:[%s5691_s0 + $0x204] sm:$0xf0]  ;;  %v3405_v54 = vld [vmem:[%s5693_s1 + $0x38] sm:$0xf0] }
  0x27   :  { %1737 = vmatpush.bf16.msrb.mxu1 %v2969_v18  ;;  %v2737_v18 = vor.u32 %v3487_v4, %v2736_v3  ;;  %v2392_v53 = vld [vmem:[%s5693_s1 + $0x8] sm:$0xf]  ;;  %v3160_v55 = vld [vmem:[%s5691_s0 + $0x470] sm:$0xf]  ;;  %v3593_v56 = vld [vmem:[%s5691_s0 + $0x474] sm:$0xf0] }
  0x28   :  { %1651 = vmatpush.bf16.msrb.mxu2 %v2769_v14  ;;  %v3537_v14 = vld [vmem:[%s5691_s0 + $0x2b4] sm:$0xf0]  ;;  %v2394_v58 = vld [vmem:[%s5693_s1 + $0x3c] sm:$0xf0]  ;;  %v2402_v3 = vld [vmem:[%s5693_s1 + $0x44] sm:$0xf0]  ;;  %v3161_v10 = vor.u32 %v3593_v56, %v3160_v55  ;;  %v4132_v19 = vor.u32 %v3405_v54, %v2392_v53 }
  0x29   :  { %1680 = vmatpush.bf16.msrb.mxu3 %v2833_v17  ;;  %1709 = vmatpush.bf16.msrb.mxu0 %v2897_v25  ;;  %v4003_v17 = vor.u32 %v3411_v63, %v2438_v0  ;;  %v2937_v22 = vor.u32 %v3537_v14, %v2936_v12  ;;  %v2792_v25 = vld [vmem:[%s5691_s0 + $0x190] sm:$0xf]  ;;  %v2912_v60 = vld [vmem:[%s5691_s0 + $0x280] sm:$0xf]  ;;  %v2849_v63 = vor.u32 %v3515_v50, %v2848_v49  ;;  %v3559_v5 = vld [vmem:[%s5691_s0 + $0x364] sm:$0xf0] }
  0x2a   :  { %v2793_v36 = vor.u32 %v3501_v26, %v2792_v25  ;;  %v2400_v0 = vld [vmem:[%s5693_s1 + $0x10] sm:$0xf]  ;;  %v3024_v4 = vld [vmem:[%s5691_s0 + $0x360] sm:$0xf]  ;;  %v3591_v23 = vld [vmem:[%s5691_s0 + $0x464] sm:$0xf0] }
  0x2b   :  { %1738 = vmatpush.bf16.msrb.mxu1 %v2961_v31  ;;  %v276_v31 = vld [vmem:[%s5692_s2 + $0x28] sm:$0xff]  ;;  %v3088_v14 = vld [vmem:[%s5691_s0 + $0x3e0] sm:$0xf]  ;;  %v3025_v25 = vor.u32 %v3559_v5, %v3024_v4  ;;  %v3553_v53 = vld [vmem:[%s5691_s0 + $0x334] sm:$0xf0] }
  0x2c   :  { %1652 = vmatpush.bf16.msrb.mxu2 %v2761_v27  ;;  %v2928_v27 = vld [vmem:[%s5691_s0 + $0x2a0] sm:$0xf]  ;;  %306 = vperm.xlu2 %3669, %v276_v31   ;;  %v3080_v31 = vld [vmem:[%s5691_s0 + $0x3d0] sm:$0xf]  ;;  %v3587_v49 = vld [vmem:[%s5691_s0 + $0x444] sm:$0xf0] }
  0x2d   :  { %1681 = vmatpush.bf16.msrb.mxu3 %v2825_v30  ;;  %1710 = vmatpush.bf16.msrb.mxu0 %v2889_v38  ;;  %v278_v30 = vld [vmem:[%s5692_s2 + $0x38] sm:$0xff]  ;;  %v2929_v37 = vor.u32 %v3535_v28, %v2928_v27  ;;  %v3483_v38 = vld [vmem:[%s5691_s0 + $0x104] sm:$0xf0]  ;;  %v3016_v28 = vld [vmem:[%s5691_s0 + $0x350] sm:$0xf] }
  0x2e   :  { %316 = vperm.xlu1 %3668, %v278_v30   ;;  %v2721_v48 = vor.u32 %v3483_v38, %v2720_v35  ;;  %v3216_v34 = vld [vmem:[%s5691_s0 + $0x4e0] sm:$0xf]  ;;  %v3607_v35 = vld [vmem:[%s5691_s0 + $0x4e4] sm:$0xf0]  ;;  %v2444_v54 = vld [vmem:[%s5693_s1 + $0x70] sm:$0xf] }
  0x2f   :  { %1739 = vmatpush.bf16.msrb.mxu1 %v2953_v46  ;;  %v3096_v46 = vld [vmem:[%s5691_s0 + $0x3f0] sm:$0xf]  ;;  %v3008_v40 = vld [vmem:[%s5691_s0 + $0x340] sm:$0xf]  ;;  %v3418_v55 = vld [vmem:[%s5693_s1 + $0xa0] sm:$0xf0] }
  0x30   :  { %1653 = vmatpush.bf16.msrb.mxu2 %v2753_v41  ;;  %v2920_v41 = vld [vmem:[%s5691_s0 + $0x290] sm:$0xf]  ;;  %v3097_v62 = vor.u32 %v3577_v47, %v3096_v46  ;;  %v3605_v47 = vld [vmem:[%s5691_s0 + $0x4d4] sm:$0xf0]  ;;  %v3413_v5 = vld [vmem:[%s5693_s1 + $0x7c] sm:$0xf] }
  0x31   :  { %1682 = vmatpush.bf16.msrb.mxu3 %v2817_v45  ;;  %1711 = vmatpush.bf16.msrb.mxu0 %v2881_v57  ;;  %v3561_v45 = vld [vmem:[%s5691_s0 + $0x374] sm:$0xf0]  ;;  %v2921_v52 = vor.u32 %v3533_v42, %v2920_v41  ;;  %v3399_v57 = vld [vmem:[%s5693_s1 + $0xc] sm:$0xf]  ;;  %v3555_v41 = vld [vmem:[%s5691_s0 + $0x344] sm:$0xf0]  ;;  %v3217_v42 = vor.u32 %v3607_v35, %v3216_v34 }
  0x32   :  { %v3033_v59 = vor.u32 %v3561_v45, %v3032_v43  ;;  %v4145_v24 = vor.u32 %v3399_v57, %v2394_v58  ;;  %v3072_v43 = vld [vmem:[%s5691_s0 + $0x3c0] sm:$0xf]  ;;  %v3208_v46 = vld [vmem:[%s5691_s0 + $0x4d0] sm:$0xf]  ;;  %v3009_v50 = vor.u32 %v3555_v41, %v3008_v40  ;;  %v3569_v58 = vld [vmem:[%s5691_s0 + $0x3b4] sm:$0xf0] }
  0x33   :  { %1740 = vmatpush.bf16.msrb.mxu1 %v2945_v2  ;;  %1615 = vmatmul.bf16.gmra.mxu2 %v3988_v8  ;;  %v3400_v2 = vld [vmem:[%s5693_s1 + $0x14] sm:$0xf]  ;;  %v3209_v56 = vor.u32 %v3605_v47, %v3208_v46  ;;  %v3064_v57 = vld [vmem:[%s5691_s0 + $0x3b0] sm:$0xf]  ;;  %v3120_v40 = vld [vmem:[%s5691_s0 + $0x420] sm:$0xf] }
  0x34   :  { %1654 = vmatpush.bf16.msrb.mxu2 %v2745_v61  ;;  %1605 = vmatmul.bf16.gmra.mxu0 %v3990_v9  ;;  %v3531_v61 = vld [vmem:[%s5691_s0 + $0x284] sm:$0xf0]  ;;  %v4147_v26 = vor.u32 %v3400_v2, %v2402_v3  ;;  %v2452_v2 = vld [vmem:[%s5693_s1 + $0x78] sm:$0xf]  ;;  %v3419_v3 = vld [vmem:[%s5693_s1 + $0xa8] sm:$0xf0] }
  0x35   :  { %1683 = vmatpush.bf16.msrb.mxu3 %v2809_v1  ;;  %1712 = vmatpush.bf16.msrb.mxu0 %v2873_v16  ;;  %v3406_v1 = vld [vmem:[%s5693_s1 + $0x40] sm:$0xf0]  ;;  %v2913_v12 = vor.u32 %v3531_v61, %v2912_v60  ;;  %v3575_v16 = vld [vmem:[%s5691_s0 + $0x3e4] sm:$0xf0]  ;;  %v3200_v60 = vld [vmem:[%s5691_s0 + $0x4c0] sm:$0xf] }
  0x36   :  { %1644 = vmatmul.bf16.gmra.mxu3 %v4001_v15  ;;  %1634 = vmatmul.bf16.gmra.mxu1 %v4003_v17  ;;  %v4134_v20 = vor.u32 %v3406_v1, %v2400_v0  ;;  %v3089_v27 = vor.u32 %v3575_v16, %v3088_v14  ;;  %v3412_v61 = vld [vmem:[%s5693_s1 + $0x74] sm:$0xf]  ;;  %v3585_v0 = vld [vmem:[%s5691_s0 + $0x434] sm:$0xf0]  ;;  %v2446_v1 = vld [vmem:[%s5693_s1 + $0xa4] sm:$0xf0] }
  0x37   :  { %1741 = vmatpush.bf16.msrb.mxu1 %v2937_v22  ;;  %v3152_v22 = vld [vmem:[%s5691_s0 + $0x460] sm:$0xf]  ;;  %v3551_v14 = vld [vmem:[%s5691_s0 + $0x324] sm:$0xf0]  ;;  %v2454_v16 = vld [vmem:[%s5693_s1 + $0xac] sm:$0xf0] }
  0x38   :  { %1655 = vmatpush.bf16.msrb.mxu2 %v2737_v18  ;;  %v3224_v18 = vld [vmem:[%s5691_s0 + $0x4f0] sm:$0xf]  ;;  %v3153_v33 = vor.u32 %v3591_v23, %v3152_v22  ;;  %v3567_v22 = vld [vmem:[%s5691_s0 + $0x3a4] sm:$0xf0]  ;;  %v2976_v46 = vld [vmem:[%s5691_s0 + $0x300] sm:$0xf] }
  0x39   :  { %1684 = vmatpush.bf16.msrb.mxu3 %v2801_v21  ;;  %1713 = vmatpush.bf16.msrb.mxu0 %v2865_v29  ;;  %v3609_v21 = vld [vmem:[%s5691_s0 + $0x4f4] sm:$0xf0]  ;;  %v2984_v35 = vld [vmem:[%s5691_s0 + $0x310] sm:$0xf]  ;;  %v3583_v41 = vld [vmem:[%s5691_s0 + $0x424] sm:$0xf0] }
  0x3a   :  { %v3557_v29 = vld [vmem:[%s5691_s0 + $0x354] sm:$0xf0]  ;;  %v3225_v30 = vor.u32 %v3609_v21, %v3224_v18  ;;  %v3056_v21 = vld [vmem:[%s5691_s0 + $0x3a0] sm:$0xf]  ;;  %v3547_v47 = vld [vmem:[%s5691_s0 + $0x304] sm:$0xf0] }
  0x3b   :  { %1742 = vmatpush.bf16.msrb.mxu1 %v2929_v37  ;;  %v3589_v37 = vld [vmem:[%s5691_s0 + $0x454] sm:$0xf0]  ;;  %v3017_v38 = vor.u32 %v3557_v29, %v3016_v28  ;;  %v3192_v28 = vld [vmem:[%s5691_s0 + $0x4b0] sm:$0xf] }
  0x3c   :  { %1656 = vmatpush.bf16.msrb.mxu2 %v2729_v32  ;;  %v3573_v32 = vld [vmem:[%s5691_s0 + $0x3d4] sm:$0xf0] }
  0x3d   :  { %1685 = vmatpush.bf16.msrb.mxu3 %v2793_v36  ;;  %1714 = vmatpush.bf16.msrb.mxu0 %v2857_v44  ;;  %v3144_v36 = vld [vmem:[%s5691_s0 + $0x450] sm:$0xf]  ;;  %v3081_v39 = vor.u32 %v3573_v32, %v3080_v31  ;;  %v3571_v44 = vld [vmem:[%s5691_s0 + $0x3c4] sm:$0xf0]  ;;  %v3601_v29 = vld [vmem:[%s5691_s0 + $0x4b4] sm:$0xf0]  ;;  %v4273_v32 = vor.u32 %v3413_v5, %v2454_v16 }
  0x3e   :  { %v3145_v45 = vor.u32 %v3589_v37, %v3144_v36  ;;  %v3193_v34 = vor.u32 %v3601_v29, %v3192_v28  ;;  %v3549_v36 = vld [vmem:[%s5691_s0 + $0x314] sm:$0xf0]  ;;  %v3048_v37 = vld [vmem:[%s5691_s0 + $0x390] sm:$0xf] }
  0x3f   :  { %1743 = vmatpush.bf16.msrb.mxu1 %v2921_v52  ;;  %v3000_v52 = vld [vmem:[%s5691_s0 + $0x330] sm:$0xf]  ;;  %v2506_v5 = vld [vmem:[%s5693_s1 + $0x114] sm:$0xf0] }
  0x40   :  { %1657 = vmatpush.bf16.msrb.mxu2 %v2721_v48  ;;  %v3136_v48 = vld [vmem:[%s5691_s0 + $0x440] sm:$0xf]  ;;  %v3001_v4 = vor.u32 %v3553_v53, %v3000_v52  ;;  %v3112_v52 = vld [vmem:[%s5691_s0 + $0x410] sm:$0xf]  ;;  %v3625_v28 = vld [vmem:[%s5691_s0 + $0x574] sm:$0xf0] }
  0x41   :  { %1686 = vmatpush.bf16.msrb.mxu3 %v2785_v51  ;;  %1715 = vmatpush.bf16.msrb.mxu0 %v2849_v63  ;;  %v3073_v51 = vor.u32 %v3571_v44, %v3072_v43  ;;  %v3128_v63 = vld [vmem:[%s5691_s0 + $0x430] sm:$0xf]  ;;  %v3121_v43 = vor.u32 %v3583_v41, %v3120_v40  ;;  %v3184_v44 = vld [vmem:[%s5691_s0 + $0x4a0] sm:$0xf]  ;;  %v3649_v41 = vld [vmem:[%s5691_s0 + $0x634] sm:$0xf0] }
  0x42   :  { %v3129_v23 = vor.u32 %v3585_v0, %v3128_v63  ;;  %v2504_v63 = vld [vmem:[%s5693_s1 + $0xe0] sm:$0xf]  ;;  %v3432_v0 = vld [vmem:[%s5693_s1 + $0x110] sm:$0xf0]  ;;  %v3352_v29 = vld [vmem:[%s5691_s0 + $0x5f0] sm:$0xf] }
  0x43   :  { %1744 = vmatpush.bf16.msrb.mxu1 %v2913_v12  ;;  %1658 = vmatmul.bf16.vlgmr.msrb.gmra.mxu2 %v4132_v19  ;;  %v2992_v12 = vld [vmem:[%s5691_s0 + $0x320] sm:$0xf]  ;;  %v3384_v40 = vld [vmem:[%s5691_s0 + $0x630] sm:$0xf] }
  0x44   :  { %1766 = vmatpush.bf16.msra.mxu2 %v3033_v59  ;;  %1716 = vmatmul.bf16.vlgmr.msrb.gmra.mxu0 %v4134_v20  ;;  %v3137_v59 = vor.u32 %v3587_v49, %v3136_v48  ;;  %v2993_v31 = vor.u32 %v3551_v14, %v2992_v12  ;;  %v2977_v49 = vor.u32 %v3547_v47, %v2976_v46  ;;  %v2548_v47 = vld [vmem:[%s5693_s1 + $0x140] sm:$0xf] }
  0x45   :  { %1795 = vmatpush.bf16.msra.mxu3 %v3097_v62  ;;  %1824 = vmatpush.bf16.msra.mxu0 %v3161_v10  ;;  %v3603_v62 = vld [vmem:[%s5691_s0 + $0x4c4] sm:$0xf0]  ;;  %v3065_v10 = vor.u32 %v3569_v58, %v3064_v57  ;;  %v4359_v12 = vor.u32 %v3432_v0, %v2504_v63  ;;  %v3637_v63 = vld [vmem:[%s5691_s0 + $0x5d4] sm:$0xf0] }
  0x46   :  { %1687 = vmatmul.bf16.vlgmr.msrb.gmra.mxu3 %v4145_v24  ;;  %1745 = vmatmul.bf16.vlgmr.msrb.gmra.mxu1 %v4147_v26  ;;  %v3201_v18 = vor.u32 %v3603_v62, %v3200_v60  ;;  %v3579_v60 = vld [vmem:[%s5691_s0 + $0x404] sm:$0xf0]  ;;  %v3431_v62 = vld [vmem:[%s5693_s1 + $0x108] sm:$0xf0] }
  0x47   :  { %1853 = vmatpush.bf16.msra.mxu1 %v3225_v30  ;;  %v4271_v30 = vor.u32 %v3412_v61, %v2446_v1  ;;  %v2496_v61 = vld [vmem:[%s5693_s1 + $0xd8] sm:$0xf] }
  0x48   :  { %1767 = vmatpush.bf16.msra.mxu2 %v3025_v25  ;;  %v4261_v25 = vor.u32 %v3418_v55, %v2444_v54  ;;  %v3581_v54 = vld [vmem:[%s5691_s0 + $0x414] sm:$0xf0]  ;;  %v3176_v55 = vld [vmem:[%s5691_s0 + $0x490] sm:$0xf] }
  0x49   :  { %1796 = vmatpush.bf16.msra.mxu3 %v3089_v27  ;;  %1825 = vmatpush.bf16.msra.mxu0 %v3153_v33  ;;  %v4263_v27 = vor.u32 %v3419_v3, %v2452_v2  ;;  %v3057_v33 = vor.u32 %v3567_v22, %v3056_v21  ;;  %v3113_v57 = vor.u32 %v3581_v54, %v3112_v52  ;;  %v3425_v2 = vld [vmem:[%s5693_s1 + $0xdc] sm:$0xf]  ;;  %v2498_v3 = vld [vmem:[%s5693_s1 + $0x10c] sm:$0xf0]  ;;  %v3595_v21 = vld [vmem:[%s5691_s0 + $0x484] sm:$0xf0] }
  0x4a   :  { %v4361_v14 = vor.u32 %v3425_v2, %v2498_v3  ;;  %v2550_v52 = vld [vmem:[%s5693_s1 + $0x174] sm:$0xf0]  ;;  %v2558_v54 = vld [vmem:[%s5693_s1 + $0x17c] sm:$0xf0]  ;;  %v2642_v2 = vld [vmem:[%s5691_s0 + $0x68] sm:$0xf0] }
  0x4b   :  { %1854 = vmatpush.bf16.msra.mxu1 %v3217_v42  ;;  %v3264_v3 = vld [vmem:[%s5691_s0 + $0x540] sm:$0xf] }
  0x4c   :  { %1768 = vmatpush.bf16.msra.mxu2 %v3017_v38  ;;  %v2985_v38 = vor.u32 %v3549_v36, %v2984_v35  ;;  %v3280_v35 = vld [vmem:[%s5691_s0 + $0x560] sm:$0xf]  ;;  %v3623_v36 = vld [vmem:[%s5691_s0 + $0x564] sm:$0xf0] }
  0x4d   :  { %1797 = vmatpush.bf16.msra.mxu3 %v3081_v39  ;;  %1826 = vmatpush.bf16.msra.mxu0 %v3145_v45  ;;  %v3565_v39 = vld [vmem:[%s5691_s0 + $0x394] sm:$0xf0]  ;;  %v3599_v45 = vld [vmem:[%s5691_s0 + $0x4a4] sm:$0xf0] }
  0x4e   :  { %v3049_v42 = vor.u32 %v3565_v39, %v3048_v37  ;;  %v3185_v48 = vor.u32 %v3599_v45, %v3184_v44  ;;  %v3344_v37 = vld [vmem:[%s5691_s0 + $0x5e0] sm:$0xf]  ;;  %v3639_v39 = vld [vmem:[%s5691_s0 + $0x5e4] sm:$0xf0]  ;;  %v3464_v44 = vld [vmem:[%s5691_s0 + $0x74] sm:$0xf] }
  0x4f   :  { %1855 = vmatpush.bf16.msra.mxu1 %v3209_v56  ;;  %v3597_v56 = vld [vmem:[%s5691_s0 + $0x494] sm:$0xf0]  ;;  %v2650_v45 = vld [vmem:[%s5691_s0 + $0x78] sm:$0xf0] }
  0x50   :  { %1769 = vmatpush.bf16.msra.mxu2 %v3009_v50  ;;  %v3040_v50 = vld [vmem:[%s5691_s0 + $0x380] sm:$0xf]  ;;  %v3177_v58 = vor.u32 %v3597_v56, %v3176_v55  ;;  %v2653_v46 = vor.u32 %v3464_v44, %v2650_v45 }
  0x51   :  { %1798 = vmatpush.bf16.msra.mxu3 %v3073_v51  ;;  %1827 = vmatpush.bf16.msra.mxu0 %v3137_v59  ;;  %v3563_v51 = vld [vmem:[%s5691_s0 + $0x384] sm:$0xf0]  ;;  %v3104_v59 = vld [vmem:[%s5691_s0 + $0x400] sm:$0xf] }
  0x52   :  { %v3041_v53 = vor.u32 %v3563_v51, %v3040_v50  ;;  %v3105_v1 = vor.u32 %v3579_v60, %v3104_v59  ;;  %v3445_v50 = vld [vmem:[%s5693_s1 + $0x178] sm:$0xf0]  ;;  %v3438_v51 = vld [vmem:[%s5693_s1 + $0x144] sm:$0xf]  ;;  %v3272_v59 = vld [vmem:[%s5691_s0 + $0x550] sm:$0xf] }
  0x53   :  { %1856 = vmatpush.bf16.msra.mxu1 %v3201_v18  ;;  %1663 = vmatmul.bf16.gmra.mxu2 %v4261_v25  ;;  %v3168_v18 = vld [vmem:[%s5691_s0 + $0x480] sm:$0xf]  ;;  %v3621_v60 = vld [vmem:[%s5691_s0 + $0x554] sm:$0xf0] }
  0x54   :  { %1770 = vmatpush.bf16.msra.mxu2 %v3001_v4  ;;  %1721 = vmatmul.bf16.gmra.mxu0 %v4263_v27  ;;  %v3426_v4 = vld [vmem:[%s5693_s1 + $0xe4] sm:$0xf]  ;;  %v3169_v22 = vor.u32 %v3595_v21, %v3168_v18  ;;  %v3328_v18 = vld [vmem:[%s5691_s0 + $0x5c0] sm:$0xf]  ;;  %v3635_v21 = vld [vmem:[%s5691_s0 + $0x5c4] sm:$0xf0] }
  0x55   :  { %1799 = vmatpush.bf16.msra.mxu3 %v3065_v10  ;;  %1828 = vmatpush.bf16.msra.mxu0 %v3129_v23  ;;  %v4357_v10 = vor.u32 %v3431_v62, %v2496_v61  ;;  %v4363_v16 = vor.u32 %v3426_v4, %v2506_v5  ;;  %v3288_v23 = vld [vmem:[%s5691_s0 + $0x570] sm:$0xf]  ;;  %v3273_v62 = vor.u32 %v3621_v60, %v3272_v59  ;;  %v3619_v5 = vld [vmem:[%s5691_s0 + $0x544] sm:$0xf0]  ;;  %v2626_v59 = vld [vmem:[%s5691_s0 + $0x48] sm:$0xf0] }
  0x56   :  { %1692 = vmatmul.bf16.gmra.mxu3 %v4271_v30  ;;  %1750 = vmatmul.bf16.gmra.mxu1 %v4273_v32  ;;  %v3336_v61 = vld [vmem:[%s5691_s0 + $0x5d0] sm:$0xf]  ;;  %v3248_v60 = vld [vmem:[%s5691_s0 + $0x520] sm:$0xf] }
  0x57   :  { %1857 = vmatpush.bf16.msra.mxu1 %v3193_v34  ;;  %v3337_v0 = vor.u32 %v3637_v63, %v3336_v61  ;;  %v2460_v61 = vld [vmem:[%s5693_s1 + $0x80] sm:$0xf] }
  0x58   :  { %1771 = vmatpush.bf16.msra.mxu2 %v2993_v31  ;;  %v3289_v31 = vor.u32 %v3625_v28, %v3288_v23  ;;  %v3329_v23 = vor.u32 %v3635_v21, %v3328_v18  ;;  %v3376_v28 = vld [vmem:[%s5691_s0 + $0x620] sm:$0xf]  ;;  %v3421_v18 = vld [vmem:[%s5693_s1 + $0xb8] sm:$0xf0] }
  0x59   :  { %1800 = vmatpush.bf16.msra.mxu3 %v3057_v33  ;;  %1829 = vmatpush.bf16.msra.mxu0 %v3121_v43  ;;  %v3641_v33 = vld [vmem:[%s5691_s0 + $0x5f4] sm:$0xf0]  ;;  %v3385_v43 = vor.u32 %v3649_v41, %v3384_v40  ;;  %v3401_v40 = vld [vmem:[%s5693_s1 + $0x1c] sm:$0xf]  ;;  %v2410_v41 = vld [vmem:[%s5693_s1 + $0x4c] sm:$0xf0] }
  0x5a   :  { %v3353_v34 = vor.u32 %v3641_v33, %v3352_v29  ;;  %v3647_v29 = vld [vmem:[%s5691_s0 + $0x624] sm:$0xf0] }
  0x5b   :  { %1858 = vmatpush.bf16.msra.mxu1 %v3185_v48  ;;  %v3444_v48 = vld [vmem:[%s5693_s1 + $0x170] sm:$0xf0]  ;;  %v3377_v33 = vor.u32 %v3647_v29, %v3376_v28  ;;  %v2462_v28 = vld [vmem:[%s5693_s1 + $0xb4] sm:$0xf0] }
  0x5c   :  { %1772 = vmatpush.bf16.msra.mxu2 %v2985_v38  ;;  %v3281_v38 = vor.u32 %v3623_v36, %v3280_v35  ;;  %v4435_v55 = vor.u32 %v3444_v48, %v2548_v47  ;;  %v2408_v36 = vld [vmem:[%s5693_s1 + $0x18] sm:$0xf]  ;;  %v3256_v48 = vld [vmem:[%s5691_s0 + $0x530] sm:$0xf] }
  0x5d   :  { %1801 = vmatpush.bf16.msra.mxu3 %v3049_v42  ;;  %1830 = vmatpush.bf16.msra.mxu0 %v3113_v57  ;;  %v3345_v42 = vor.u32 %v3639_v39, %v3344_v37  ;;  %v4439_v57 = vor.u32 %v3438_v51, %v2550_v52  ;;  %v3407_v37 = vld [vmem:[%s5693_s1 + $0x48] sm:$0xf0]  ;;  %v3408_v39 = vld [vmem:[%s5693_s1 + $0x50] sm:$0xf0]  ;;  %v3633_v52 = vld [vmem:[%s5691_s0 + $0x5b4] sm:$0xf0] }
  0x5e   :  { %v4513_v44 = vor.u32 %v3407_v37, %v2408_v36 }
  0x5f   :  { %1859 = vmatpush.bf16.msra.mxu1 %v3177_v58 }
  0x60   :  { %1773 = vmatpush.bf16.msra.mxu2 %v2977_v49  ;;  %v2556_v49 = vld [vmem:[%s5693_s1 + $0x148] sm:$0xf] }
  0x61   :  { %1802 = vmatpush.bf16.msra.mxu3 %v3041_v53  ;;  %1831 = vmatpush.bf16.msra.mxu0 %v3105_v1  ;;  %v3439_v53 = vld [vmem:[%s5693_s1 + $0x14c] sm:$0xf]  ;;  %v4437_v56 = vor.u32 %v3445_v50, %v2556_v49  ;;  %v3462_v1 = vld [vmem:[%s5691_s0 + $0x64] sm:$0xf]  ;;  %v3617_v49 = vld [vmem:[%s5691_s0 + $0x534] sm:$0xf0] }
  0x62   :  { %v4441_v58 = vor.u32 %v3439_v53, %v2558_v54  ;;  %v2645_v4 = vor.u32 %v3462_v1, %v2642_v2  ;;  %v3320_v50 = vld [vmem:[%s5691_s0 + $0x5b0] sm:$0xf]  ;;  %v3257_v51 = vor.u32 %v3617_v49, %v3256_v48  ;;  %v3458_v54 = vld [vmem:[%s5691_s0 + $0x44] sm:$0xf]  ;;  %v3312_v2 = vld [vmem:[%s5691_s0 + $0x5a0] sm:$0xf] }
  0x63   :  { %1668 = vmatmul.bf16.gmra.mxu2 %v4357_v10  ;;  %1860 = vmatpush.bf16.msra.mxu1 %v3169_v22  ;;  %v3265_v22 = vor.u32 %v3619_v5, %v3264_v3  ;;  %v3321_v53 = vor.u32 %v3633_v52, %v3320_v50  ;;  %v2629_v63 = vor.u32 %v3458_v54, %v2626_v59  ;;  %v3631_v3 = vld [vmem:[%s5691_s0 + $0x5a4] sm:$0xf0]  ;;  %v3629_v49 = vld [vmem:[%s5691_s0 + $0x594] sm:$0xf0]  ;;  %v2610_v52 = vld [vmem:[%s5691_s0 + $0x28] sm:$0xf0] }
  0x64   :  { %1726 = vmatmul.bf16.gmra.mxu0 %v4359_v12  ;;  %1882 = vmatpush.bf16.msrb.mxu2 %v3289_v31  ;;  %5719 = vst [vmem:[#allocation2_spill] sm:$0xff] %v4441_v58  ;;  %v3460_v31 = vld [vmem:[%s5691_s0 + $0x54] sm:$0xf]  ;;  %v2468_v5 = vld [vmem:[%s5693_s1 + $0x88] sm:$0xf]  ;;  %v3313_v21 = vor.u32 %v3631_v3, %v3312_v2 }
  0x65   :  { %1911 = vmatpush.bf16.msrb.mxu3 %v3353_v34  ;;  %1944 = vmatpush.bf16.msrb.mxu0 %v3385_v43  ;;  %v2634_v34 = vld [vmem:[%s5691_s0 + $0x58] sm:$0xf0]  ;;  %v2418_v43 = vld [vmem:[%s5693_s1 + $0x54] sm:$0xf0]  ;;  %v2512_v54 = vld [vmem:[%s5693_s1 + $0xe8] sm:$0xf] }
  0x66   :  { %1697 = vmatmul.bf16.gmra.mxu3 %v4361_v14  ;;  %1755 = vmatmul.bf16.gmra.mxu1 %v4363_v16  ;;  %v2637_v35 = vor.u32 %v3460_v31, %v2634_v34  ;;  %v3415_v31 = vld [vmem:[%s5693_s1 + $0x8c] sm:$0xf]  ;;  %v3433_v59 = vld [vmem:[%s5693_s1 + $0x118] sm:$0xf0]  ;;  %v2520_v3 = vld [vmem:[%s5693_s1 + $0xf0] sm:$0xf] }
  0x67   :  { %1969 = vmatpush.bf16.msrb.mxu1 %v2653_v46  ;;  %v4517_v46 = vor.u32 %v3401_v40, %v2410_v41  ;;  %v3240_v41 = vld [vmem:[%s5691_s0 + $0x510] sm:$0xf] }
  0x68   :  { %1883 = vmatpush.bf16.msrb.mxu2 %v3281_v38  ;;  %v2416_v38 = vld [vmem:[%s5693_s1 + $0x20] sm:$0xf] }
  0x69   :  { %1912 = vmatpush.bf16.msrb.mxu3 %v3345_v42  ;;  %1945 = vmatpush.bf16.msrb.mxu0 %v3377_v33  ;;  %v3402_v42 = vld [vmem:[%s5693_s1 + $0x24] sm:$0xf]  ;;  %v4515_v45 = vor.u32 %v3408_v39, %v2416_v38  ;;  %v2470_v33 = vld [vmem:[%s5693_s1 + $0xbc] sm:$0xf0]  ;;  %v3456_v38 = vld [vmem:[%s5691_s0 + $0x34] sm:$0xf] }
  0x6a   :  { %v4519_v47 = vor.u32 %v3402_v42, %v2418_v43  ;;  %v4591_v37 = vor.u32 %v3415_v31, %v2470_v33  ;;  %v2618_v39 = vld [vmem:[%s5691_s0 + $0x38] sm:$0xf0]  ;;  %v3613_v42 = vld [vmem:[%s5691_s0 + $0x514] sm:$0xf0]  ;;  %v3304_v43 = vld [vmem:[%s5691_s0 + $0x590] sm:$0xf] }
  0x6b   :  { %1970 = vmatpush.bf16.msrb.mxu1 %v2645_v4  ;;  %v3368_v4 = vld [vmem:[%s5691_s0 + $0x610] sm:$0xf]  ;;  %v2621_v40 = vor.u32 %v3456_v38, %v2618_v39  ;;  %v3241_v48 = vor.u32 %v3613_v42, %v3240_v41  ;;  %v3305_v50 = vor.u32 %v3629_v49, %v3304_v43  ;;  %v3452_v31 = vld [vmem:[%s5691_s0 + $0x14] sm:$0xf]  ;;  %v2602_v33 = vld [vmem:[%s5691_s0 + $0x18] sm:$0xf0]  ;;  %v4671_v38 = vor.u32 %v3433_v59, %v2512_v54 }
  0x6c   :  { %1884 = vmatpush.bf16.msrb.mxu2 %v3273_v62  ;;  %5720 = vst [vmem:[#allocation3_spill] sm:$0xff] %v4519_v47  ;;  %v3420_v62 = vld [vmem:[%s5693_s1 + $0xb0] sm:$0xf0] }
  0x6d   :  { %1913 = vmatpush.bf16.msrb.mxu3 %v3337_v0  ;;  %v3615_v0 = vld [vmem:[%s5691_s0 + $0x524] sm:$0xf0]  ;;  %v4585_v34 = vor.u32 %v3420_v62, %v2460_v61  ;;  %5721 = vst [vmem:[#allocation4_spill] sm:$0xff] %v4591_v37  ;;  %v3480_v59 = vld [vmem:[%s5691_s0 + $0xf4] sm:$0xf] }
  0x6e   :  { %v3249_v1 = vor.u32 %v3615_v0, %v3248_v60  ;;  %v3611_v61 = vld [vmem:[%s5691_s0 + $0x504] sm:$0xf0] }
  0x6f   :  { %1971 = vmatpush.bf16.msrb.mxu1 %v2637_v35  ;;  %v4587_v35 = vor.u32 %v3421_v18, %v2468_v5  ;;  %v3627_v0 = vld [vmem:[%s5691_s0 + $0x584] sm:$0xf0] }
  0x70   :  { %1885 = vmatpush.bf16.msrb.mxu2 %v3265_v22  ;;  %v3645_v22 = vld [vmem:[%s5691_s0 + $0x614] sm:$0xf0]  ;;  %v3643_v18 = vld [vmem:[%s5691_s0 + $0x604] sm:$0xf0] }
  0x71   :  { %1914 = vmatpush.bf16.msrb.mxu3 %v3329_v23  ;;  %v3414_v23 = vld [vmem:[%s5693_s1 + $0x84] sm:$0xf]  ;;  %v3369_v29 = vor.u32 %v3645_v22, %v3368_v4  ;;  %v2514_v22 = vld [vmem:[%s5693_s1 + $0x11c] sm:$0xf0] }
  0x72   :  { %v4589_v36 = vor.u32 %v3414_v23, %v2462_v28  ;;  %v3434_v4 = vld [vmem:[%s5693_s1 + $0x120] sm:$0xf0]  ;;  %v3428_v23 = vld [vmem:[%s5693_s1 + $0xf4] sm:$0xf] }
  0x73   :  { %1673 = vmatmul.bf16.gmra.mxu2 %v4435_v55  ;;  %1972 = vmatpush.bf16.msrb.mxu1 %v2629_v63  ;;  %v3296_v63 = vld [vmem:[%s5691_s0 + $0x580] sm:$0xf]  ;;  %v4673_v39 = vor.u32 %v3434_v4, %v2520_v3 }
  0x74   :  { %1731 = vmatmul.bf16.gmra.mxu0 %v4437_v56  ;;  %1886 = vmatpush.bf16.msrb.mxu2 %v3257_v51  ;;  %v3454_v51 = vld [vmem:[%s5691_s0 + $0x24] sm:$0xf]  ;;  %v3297_v5 = vor.u32 %v3627_v0, %v3296_v63  ;;  %v2778_v63 = vld [vmem:[%s5691_s0 + $0x178] sm:$0xf0] }
  0x75   :  { %1915 = vmatpush.bf16.msrb.mxu3 %v3321_v53  ;;  %1946 = vmatpush.bf16.msrb.mxu0 %v3369_v29  ;;  %v3232_v53 = vld [vmem:[%s5691_s0 + $0x500] sm:$0xf]  ;;  %v2613_v60 = vor.u32 %v3454_v51, %v2610_v52  ;;  %v2522_v29 = vld [vmem:[%s5693_s1 + $0x124] sm:$0xf0]  ;;  %v3450_v51 = vld [vmem:[%s5691_s0 + $0x4] sm:$0xf] }
  0x76   :  { %1702 = vmatmul.bf16.gmra.mxu3 %v4439_v57  ;;  %1760 = vmatmul.bf16.gmra.mxu1 %v4441_v58  ;;  %v3233_v62 = vor.u32 %v3611_v61, %v3232_v53  ;;  %v2594_v52 = vld [vmem:[%s5691_s0 + $0x8] sm:$0xf0] }
  0x77   :  { %1973 = vmatpush.bf16.msrb.mxu1 %v2621_v40  ;;  %v2605_v40 = vor.u32 %v3452_v31, %v2602_v33  ;;  %v2597_v54 = vor.u32 %v3450_v51, %v2594_v52  ;;  %v3446_v31 = vld [vmem:[%s5693_s1 + $0x180] sm:$0xf0]  ;;  %v2572_v33 = vld [vmem:[%s5693_s1 + $0x158] sm:$0xf] }
  0x78   :  { %1887 = vmatpush.bf16.msrb.mxu2 %v3249_v1  ;;  %v3360_v1 = vld [vmem:[%s5691_s0 + $0x600] sm:$0xf]  ;;  %v3494_v51 = vld [vmem:[%s5691_s0 + $0x164] sm:$0xf] }
  0x79   :  { %1916 = vmatpush.bf16.msrb.mxu3 %v3313_v21  ;;  %v3427_v21 = vld [vmem:[%s5693_s1 + $0xec] sm:$0xf]  ;;  %v3361_v28 = vor.u32 %v3643_v18, %v3360_v1 }
  0x7a   :  { %v4675_v42 = vor.u32 %v3427_v21, %v2514_v22 }
  0x7b   :  { %1974 = vmatpush.bf16.msrb.mxu1 %v2613_v60  ;;  %1947 = vmatpush.bf16.msrb.mxu0 %v3361_v28  ;;  %v2714_v60 = vld [vmem:[%s5691_s0 + $0xf8] sm:$0xf0] }
  0x7c   :  { %1888 = vmatpush.bf16.msrb.mxu2 %v3241_v48  ;;  %v4642_v2 = vpop.permute.xlu0 %281  ;;  %v4678_v48 = vor.u32 %v3428_v23, %v2522_v29  ;;  %v2717_v61 = vor.u32 %v3480_v59, %v2714_v60  ;;  %v2564_v29 = vld [vmem:[%s5693_s1 + $0x150] sm:$0xf]  ;;  %v2770_v59 = vld [vmem:[%s5691_s0 + $0x168] sm:$0xf0]  ;;  %v3512_v60 = vld [vmem:[%s5691_s0 + $0x1f4] sm:$0xf] }
  0x7d   :  { %1917 = vmatpush.bf16.msrb.mxu3 %v3305_v50  ;;  %5722 = vst [vmem:[#allocation5_spill] sm:$0xff] %v4642_v2  ;;  %v4680_v50 = vpop.permute.xlu2 %301 }
  0x7e   :  { %5723 = vst [vmem:[#allocation6_spill] sm:$0xff] %v4678_v48 }
  0x7f   :  { %1975 = vmatpush.bf16.msrb.mxu1 %v2605_v40  ;;  %5724 = vst [vmem:[#allocation7_spill] sm:$0xff] %v4680_v50  ;;  %v3447_v40 = vld [vmem:[%s5693_s1 + $0x188] sm:$0xf0] }
  0x80   :  { %1889 = vmatpush.bf16.msrb.mxu2 %v3233_v62  ;;  %v3496_v62 = vld [vmem:[%s5691_s0 + $0x174] sm:$0xf] }
  0x81   :  { %1918 = vmatpush.bf16.msrb.mxu3 %v3297_v5  ;;  %v2781_v3 = vor.u32 %v3496_v62, %v2778_v63  ;;  %v3440_v62 = vld [vmem:[%s5693_s1 + $0x154] sm:$0xf]  ;;  %v2566_v63 = vld [vmem:[%s5693_s1 + $0x184] sm:$0xf0] }
  0x83   :  { %1774 = vmatmul.bf16.vlgmr.msra.gmra.mxu2 %v4513_v44  ;;  %1976 = vmatpush.bf16.msrb.mxu1 %v2597_v54 }
  0x84   :  { %1832 = vmatmul.bf16.vlgmr.msra.gmra.mxu0 %v4515_v45  ;;  %1998 = vmatpush.bf16.msra.mxu2 %v2717_v61  ;;  %v2842_v61 = vld [vmem:[%s5691_s0 + $0x1f8] sm:$0xf0] }
  0x85   :  { %v4706_v1 = vpop.permute.xlu0 %286 }
  0x86   :  { %1803 = vmatmul.bf16.vlgmr.msra.gmra.mxu3 %v4517_v46  ;;  %1861 = vmatmul.bf16.vlgmr.msra.gmra.mxu1 %v4519_v47  ;;  %5725 = vst [vmem:[#allocation8_spill] sm:$0xff] %v4706_v1  ;;  %v4737_v52 = vpop.permute.xlu2 %306 }
  0x87   :  { %2027 = vmatpush.bf16.msra.mxu3 %v2781_v3  ;;  %5727 = vst [vmem:[#allocation10_spill] sm:$0xff] %v4737_v52  ;;  %v2845_v3 = vor.u32 %v3512_v60, %v2842_v61 }
  0x88   :  { %v4709_v21 = vpop.permute.xlu1 %291 }
  0x89   :  { %5726 = vst [vmem:[#allocation9_spill] sm:$0xff] %v4709_v21  ;;  %2056 = vmatpush.bf16.msra.mxu0 %v2845_v3  ;;  %v3492_v3 = vld [vmem:[%s5691_s0 + $0x154] sm:$0xf] }
  0x93   :  { %1779 = vmatmul.bf16.gmra.mxu2 %v4585_v34 }
  0x94   :  { %1837 = vmatmul.bf16.gmra.mxu0 %v4587_v35 }
  0x96   :  { %1808 = vmatmul.bf16.gmra.mxu3 %v4589_v36  ;;  %1866 = vmatmul.bf16.gmra.mxu1 %v4591_v37 }
  0xa0   :  { %v1601_v41 = vpop.f32.mrf.mxu0 }
  0xa1   :  { %v1602_v43 = vadd.f32 %v1601_v41, %v4642_v2 }
  0xa3   :  { %v1630_v49 = vpop.f32.mrf.mxu1  ;;  %1784 = vmatmul.bf16.gmra.mxu2 %v4671_v38 }
  0xa4   :  { %v4689_v53 = vadd.f32 %v1630_v49, %v1602_v43  ;;  %1842 = vmatmul.bf16.gmra.mxu0 %v4673_v39  ;;  %v3478_v43 = vld [vmem:[%s5691_s0 + $0xe4] sm:$0xf]  ;;  %v2706_v49 = vld [vmem:[%s5691_s0 + $0xe8] sm:$0xf0] }
  0xa5   :  { %v2709_v54 = vor.u32 %v3478_v43, %v2706_v49  ;;  %v4761_v43 = vor.u32 %v3446_v31, %v2564_v29  ;;  %v4763_v49 = vor.u32 %v3447_v40, %v2572_v33  ;;  %v3528_v31 = vld [vmem:[%s5691_s0 + $0x274] sm:$0xf]  ;;  %v2906_v33 = vld [vmem:[%s5691_s0 + $0x278] sm:$0xf0]  ;;  %v4785_v40 = vpop.permute.xlu0 %311 }
  0xa6   :  { %1813 = vmatmul.bf16.gmra.mxu3 %v4675_v42  ;;  %1871 = vmatmul.bf16.gmra.mxu1 %v4678_v48  ;;  %v1611_v0 = vpop.f32.mrf.mxu2  ;;  %5733 = vst [vmem:[#allocation16_spill] sm:$0xff] %v4785_v40 }
  0xa7   :  { %v1612_v4 = vadd.f32 %v1611_v0, %v4680_v50  ;;  %v1640_v5 = vpop.f32.mrf.mxu3  ;;  %v2773_v0 = vor.u32 %v3494_v51, %v2770_v59  ;;  %1999 = vmatpush.bf16.msra.mxu2 %v2709_v54  ;;  %5728 = vst [vmem:[#allocation11_spill] sm:$0xff] %v4761_v43  ;;  %v4765_v59 = vor.u32 %v3440_v62, %v2566_v63  ;;  %v4772_v54 = vpop.permute.xlu1 %296  ;;  %v2698_v63 = vld [vmem:[%s5691_s0 + $0xd8] sm:$0xf0] }
  0xa8   :  { %v1603_v18 = vpop.f32.mrf.mxu0  ;;  %5729 = vst [vmem:[#allocation12_spill] sm:$0xff] %v4763_v49  ;;  %v2909_v62 = vor.u32 %v3528_v31, %v2906_v33 }
  0xa9   :  { %v4711_v22 = vadd.f32 %v1640_v5, %v1612_v4  ;;  %v1604_v23 = vadd.f32 %v1603_v18, %v4706_v1  ;;  %v3441_v5 = vld [vmem:[%s5693_s1 + $0x15c] sm:$0xf]  ;;  %v2574_v18 = vld [vmem:[%s5693_s1 + $0x18c] sm:$0xf0]  ;;  %2028 = vmatpush.bf16.msra.mxu3 %v2773_v0  ;;  %5730 = vst [vmem:[#allocation13_spill] sm:$0xff] %v4765_v59 }
  0xaa   :  { %v4770_v50 = vor.u32 %v3441_v5, %v2574_v18  ;;  %5732 = vst [vmem:[#allocation15_spill] sm:$0xff] %v4772_v54  ;;  %v3510_v5 = vld [vmem:[%s5691_s0 + $0x1e4] sm:$0xf]  ;;  %2085 = vmatpush.bf16.msra.mxu1 %v2909_v62  ;;  %v2424_v62 = vld [vmem:[%s5693_s1 + $0x28] sm:$0xf] }
  0xab   :  { %v1632_v28 = vpop.f32.mrf.mxu1 }
  0xac   :  { %v4726_v41 = vadd.f32 %v1632_v28, %v1604_v23  ;;  %5731 = vst [vmem:[#allocation14_spill] sm:$0xff] %v4770_v50 }
  0xae   :  { %v1613_v4 = vpop.f32.mrf.mxu2 }
  0xaf   :  { %v1614_v23 = vadd.f32 %v1613_v4, %v4737_v52  ;;  %v1642_v28 = vpop.f32.mrf.mxu3  ;;  %v2762_v4 = vld [vmem:[%s5691_s0 + $0x158] sm:$0xf0] }
  0xb1   :  { %v1606_v51 = vpop.f32.mrf.mxu0  ;;  %v4767_v60 = vadd.f32 %v1642_v28, %v1614_v23  ;;  %v2765_v23 = vor.u32 %v3492_v3, %v2762_v4  ;;  %v2834_v28 = vld [vmem:[%s5691_s0 + $0x1e8] sm:$0xf0]  ;;  %v3409_v3 = vld [vmem:[%s5693_s1 + $0x58] sm:$0xf0]  ;;  %v3410_v4 = vld [vmem:[%s5693_s1 + $0x60] sm:$0xf0] }
  0xb2   :  { %v1607_v61 = vadd.f32 %v1606_v51, %v4709_v21  ;;  %v2837_v31 = vor.u32 %v3510_v5, %v2834_v28  ;;  %v2898_v28 = vld [vmem:[%s5691_s0 + $0x268] sm:$0xf0]  ;;  %v4857_v47 = vor.u32 %v3409_v3, %v2424_v62  ;;  %v2746_v62 = vld [vmem:[%s5691_s0 + $0x138] sm:$0xf0]  ;;  %v3506_v3 = vld [vmem:[%s5691_s0 + $0x1c4] sm:$0xf] }
  0xb3   :  { %v1635_v48 = vpop.f32.mrf.mxu1  ;;  %1789 = vmatmul.bf16.gmra.mxu2 %v4761_v43  ;;  %2029 = vmatpush.bf16.msra.mxu3 %v2765_v23  ;;  %v3526_v23 = vld [vmem:[%s5691_s0 + $0x264] sm:$0xf] }
  0xb4   :  { %v4775_v29 = vadd.f32 %v1635_v48, %v1607_v61  ;;  %1847 = vmatmul.bf16.gmra.mxu0 %v4763_v49  ;;  %v3476_v48 = vld [vmem:[%s5691_s0 + $0xd4] sm:$0xf]  ;;  %5735 = vst [vmem:[#allocation18_spill] sm:$0xff] %v4857_v47 }
  0xb5   :  { %v2701_v0 = vor.u32 %v3476_v48, %v2698_v63  ;;  %2057 = vmatpush.bf16.msra.mxu0 %v2837_v31  ;;  %v2690_v31 = vld [vmem:[%s5691_s0 + $0xc8] sm:$0xf0] }
  0xb6   :  { %1818 = vmatmul.bf16.gmra.mxu3 %v4765_v59  ;;  %1876 = vmatmul.bf16.gmra.mxu1 %v4770_v50  ;;  %v1616_v18 = vpop.f32.mrf.mxu2 }
  0xb7   :  { %v1617_v51 = vadd.f32 %v1616_v18, %v4785_v40  ;;  %2000 = vmatpush.bf16.msra.mxu2 %v2701_v0  ;;  %v2432_v0 = vld [vmem:[%s5693_s1 + $0x30] sm:$0xf]  ;;  %v3403_v18 = vld [vmem:[%s5693_s1 + $0x2c] sm:$0xf]  ;;  %v2426_v40 = vld [vmem:[%s5693_s1 + $0x5c] sm:$0xf0] }
  0xb8   :  { %v4859_v49 = vor.u32 %v3410_v4, %v2432_v0 }
  0xb9   :  { %v1645_v61 = vpop.f32.mrf.mxu3  ;;  %v1608_v33 = vpop.f32.mrf.mxu0 }
  0xba   :  { %v4807_v48 = vadd.f32 %v1645_v61, %v1617_v51  ;;  %v1609_v63 = vadd.f32 %v1608_v33, %v4772_v54  ;;  %v3474_v51 = vld [vmem:[%s5691_s0 + $0xc4] sm:$0xf]  ;;  %v4836_v61 = vpop.permute.xlu1 %316  ;;  %5736 = vst [vmem:[#allocation19_spill] sm:$0xff] %v4859_v49 }
  0xbb   :  { %v1637_v50 = vpop.f32.mrf.mxu1  ;;  %5734 = vst [vmem:[#allocation17_spill] sm:$0xff] %v4836_v61  ;;  %v3490_v33 = vld [vmem:[%s5691_s0 + $0x144] sm:$0xf]  ;;  %v2693_v52 = vor.u32 %v3474_v51, %v2690_v31  ;;  %v4861_v31 = vor.u32 %v3403_v18, %v2426_v40  ;;  %v3488_v40 = vld [vmem:[%s5691_s0 + $0x134] sm:$0xf] }
  0xbc   :  { %v4822_v5 = vadd.f32 %v1637_v50, %v1609_v63  ;;  %v2901_v50 = vor.u32 %v3526_v23, %v2898_v28  ;;  %v2754_v63 = vld [vmem:[%s5691_s0 + $0x148] sm:$0xf0]  ;;  %v3508_v23 = vld [vmem:[%s5691_s0 + $0x1d4] sm:$0xf]  ;;  %v2826_v28 = vld [vmem:[%s5691_s0 + $0x1d8] sm:$0xf0]  ;;  %v2749_v4 = vor.u32 %v3488_v40, %v2746_v62 }
  0xbd   :  { %v2757_v54 = vor.u32 %v3490_v33, %v2754_v63  ;;  %v2829_v37 = vor.u32 %v3508_v23, %v2826_v28  ;;  %2001 = vmatpush.bf16.msra.mxu2 %v2693_v52  ;;  %5737 = vst [vmem:[#allocation20_spill] sm:$0xff] %v4861_v31  ;;  %v2890_v52 = vld [vmem:[%s5691_s0 + $0x258] sm:$0xf0]  ;;  %v3416_v40 = vld [vmem:[%s5693_s1 + $0x94] sm:$0xf] }
  0xbe   :  { %v1618_v21 = vpop.f32.mrf.mxu2  ;;  %2086 = vmatpush.bf16.msra.mxu1 %v2901_v50  ;;  %v3522_v62 = vld [vmem:[%s5691_s0 + $0x244] sm:$0xf] }
  0xbf   :  { %v1619_v1 = vadd.f32 %v1618_v21, %v4836_v61  ;;  %2030 = vmatpush.bf16.msra.mxu3 %v2757_v54  ;;  %2058 = vmatpush.bf16.msra.mxu0 %v2829_v37  ;;  %v3524_v21 = vld [vmem:[%s5691_s0 + $0x254] sm:$0xf] }
  0xc0   :  { %v2893_v54 = vor.u32 %v3524_v21, %v2890_v52  ;;  %v3472_v37 = vld [vmem:[%s5691_s0 + $0xb4] sm:$0xf] }
  0xc1   :  { %v1647_v2 = vpop.f32.mrf.mxu3  ;;  %v1717_v51 = vpop.f32.mrf.mxu0 }
  0xc2   :  { %v4863_v33 = vadd.f32 %v1647_v2, %v1619_v1  ;;  %v2682_v2 = vld [vmem:[%s5691_s0 + $0xb8] sm:$0xf0]  ;;  %2087 = vmatpush.bf16.msra.mxu1 %v2893_v54  ;;  %v3422_v54 = vld [vmem:[%s5693_s1 + $0xc0] sm:$0xf0] }
  0xc3   :  { %v1746_v63 = vpop.f32.mrf.mxu1  ;;  %1890 = vmatmul.bf16.vlgmr.msrb.gmra.mxu2 %v4857_v47  ;;  %v2685_v1 = vor.u32 %v3472_v37, %v2682_v2  ;;  %2031 = vmatpush.bf16.msra.mxu3 %v2749_v4  ;;  %v2476_v37 = vld [vmem:[%s5693_s1 + $0x90] sm:$0xf]  ;;  %v3423_v2 = vld [vmem:[%s5693_s1 + $0xc8] sm:$0xf0] }
  0xc4   :  { %3390 = vmatmul.msk.bf16.vlgmr.msrb.gmra.mxu0 %vm1579_vm0, %v4859_v49  ;;  %v4940_v59 = vor.u32 %v3422_v54, %v2476_v37  ;;  %v2730_v54 = vld [vmem:[%s5691_s0 + $0x118] sm:$0xf0] }
  0xc5   :  { %2002 = vmatpush.bf16.msra.mxu2 %v2685_v1 }
  0xc6   :  { %1919 = vmatmul.bf16.vlgmr.msrb.gmra.mxu3 %v4861_v31  ;;  %1977 = vmatmul.bf16.vlgmr.msrb.gmra.mxu1 %v3846_v7  ;;  %v1659_v0 = vpop.f32.mrf.mxu2  ;;  %v2818_v7 = vld [vmem:[%s5691_s0 + $0x1c8] sm:$0xf0]  ;;  %5738 = vst [vmem:[#allocation21_spill] sm:$0xff] %v4940_v59 }
  0xc7   :  { %v1660_v18 = vadd.f32 %v1659_v0, %v4689_v53  ;;  %v2821_v23 = vor.u32 %v3506_v3, %v2818_v7  ;;  %v2484_v53 = vld [vmem:[%s5693_s1 + $0x98] sm:$0xf]  ;;  %v2882_v3 = vld [vmem:[%s5691_s0 + $0x248] sm:$0xf0]  ;;  %v3470_v0 = vld [vmem:[%s5691_s0 + $0xa4] sm:$0xf] }
  0xc8   :  { %v2885_v4 = vor.u32 %v3522_v62, %v2882_v3  ;;  %v3486_v7 = vld [vmem:[%s5691_s0 + $0x124] sm:$0xf]  ;;  %v3504_v62 = vld [vmem:[%s5691_s0 + $0x1b4] sm:$0xf]  ;;  %v2810_v3 = vld [vmem:[%s5691_s0 + $0x1b8] sm:$0xf0] }
  0xc9   :  { %v1688_v50 = vpop.f32.mrf.mxu3  ;;  %v1719_v28 = vpop.f32.mrf.mxu0  ;;  %2059 = vmatpush.bf16.msra.mxu0 %v2821_v23  ;;  %v2813_v47 = vor.u32 %v3504_v62, %v2810_v3  ;;  %v3435_v3 = vld [vmem:[%s5693_s1 + $0x128] sm:$0xf0] }
  0xca   :  { %v1689_v21 = vadd.f32 %v1688_v50, %v1660_v18  ;;  %v2738_v18 = vld [vmem:[%s5691_s0 + $0x128] sm:$0xf0]  ;;  %v2478_v50 = vld [vmem:[%s5693_s1 + $0xc4] sm:$0xf0]  ;;  %2088 = vmatpush.bf16.msra.mxu1 %v2885_v4 }
  0xcb   :  { %v1748_v52 = vpop.f32.mrf.mxu1 }
  0xcc   :  { %v1718_v1 = vadd.f32 %v1717_v51, %v1689_v21  ;;  %v2674_v51 = vld [vmem:[%s5691_s0 + $0xa8] sm:$0xf0]  ;;  %v2741_v21 = vor.u32 %v3486_v7, %v2738_v18  ;;  %v4944_v7 = vor.u32 %v3416_v40, %v2478_v50 }
  0xcd   :  { %v2677_v23 = vor.u32 %v3470_v0, %v2674_v51  ;;  %v4942_v0 = vor.u32 %v3423_v2, %v2484_v53  ;;  %2060 = vmatpush.bf16.msra.mxu0 %v2813_v47  ;;  %v3468_v47 = vld [vmem:[%s5691_s0 + $0x94] sm:$0xf]  ;;  %v3502_v53 = vld [vmem:[%s5691_s0 + $0x1a4] sm:$0xf] }
  0xce   :  { %v4937_v61 = vadd.f32 %v1746_v63, %v1718_v1  ;;  %v1661_v49 = vpop.f32.mrf.mxu2  ;;  %2032 = vmatpush.bf16.msra.mxu3 %v2741_v21 }
  0xcf   :  { %v1662_v31 = vadd.f32 %v1661_v49, %v4726_v41  ;;  %5739 = vst [vmem:[#allocation22_spill] sm:$0xff] %v4942_v0  ;;  %2003 = vmatpush.bf16.msra.mxu2 %v2677_v23  ;;  %v3520_v41 = vld [vmem:[%s5691_s0 + $0x234] sm:$0xf]  ;;  %v2874_v49 = vld [vmem:[%s5691_s0 + $0x238] sm:$0xf0] }
  0xd0   :  { %v2877_v37 = vor.u32 %v3520_v41, %v2874_v49  ;;  %v3518_v41 = vld [vmem:[%s5691_s0 + $0x224] sm:$0xf]  ;;  %v2866_v49 = vld [vmem:[%s5691_s0 + $0x228] sm:$0xf0] }
  0xd1   :  { %v1690_v43 = vpop.f32.mrf.mxu3  ;;  %v1722_v51 = vpop.f32.mrf.mxu0 }
  0xd2   :  { %v1691_v18 = vadd.f32 %v1690_v43, %v1662_v31  ;;  %v2666_v43 = vld [vmem:[%s5691_s0 + $0x98] sm:$0xf0]  ;;  %2089 = vmatpush.bf16.msra.mxu1 %v2877_v37 }
  0xd3   :  { %v1751_v58 = vpop.f32.mrf.mxu1  ;;  %1895 = vmatmul.bf16.gmra.mxu2 %v4940_v59  ;;  %v2669_v31 = vor.u32 %v3468_v47, %v2666_v43  ;;  %v2869_v47 = vor.u32 %v3518_v41, %v2866_v49  ;;  %v3466_v43 = vld [vmem:[%s5691_s0 + $0x84] sm:$0xf]  ;;  %v3516_v49 = vld [vmem:[%s5691_s0 + $0x214] sm:$0xf] }
  0xd4   :  { %v1720_v63 = vadd.f32 %v1719_v28, %v1691_v18  ;;  %3391 = vmatmul.msk.bf16.gmra.mxu0 %vm1579_vm0, %v4942_v0  ;;  %v3484_v28 = vld [vmem:[%s5691_s0 + $0x114] sm:$0xf] }
  0xd5   :  { %v2733_v40 = vor.u32 %v3484_v28, %v2730_v54  ;;  %2004 = vmatpush.bf16.msra.mxu2 %v2669_v31  ;;  %v2658_v31 = vld [vmem:[%s5691_s0 + $0x88] sm:$0xf0]  ;;  %v3482_v28 = vld [vmem:[%s5691_s0 + $0x104] sm:$0xf] }
  0xd6   :  { %1924 = vmatmul.bf16.gmra.mxu3 %v4944_v7  ;;  %1982 = vmatmul.bf16.gmra.mxu1 %v3990_v9  ;;  %v4972_v2 = vadd.f32 %v1748_v52, %v1720_v63  ;;  %v1664_v1 = vpop.f32.mrf.mxu2  ;;  %v2802_v9 = vld [vmem:[%s5691_s0 + $0x1a8] sm:$0xf0]  ;;  %v2528_v52 = vld [vmem:[%s5693_s1 + $0xf8] sm:$0xf]  ;;  %v3436_v63 = vld [vmem:[%s5693_s1 + $0x130] sm:$0xf0]  ;;  %v2661_v54 = vor.u32 %v3466_v43, %v2658_v31 }
  0xd7   :  { %v1665_v4 = vadd.f32 %v1664_v1, %v4775_v29  ;;  %v2805_v23 = vor.u32 %v3502_v53, %v2802_v9  ;;  %2033 = vmatpush.bf16.msra.mxu3 %v2733_v40  ;;  %v2536_v29 = vld [vmem:[%s5693_s1 + $0x100] sm:$0xf]  ;;  %v2722_v53 = vld [vmem:[%s5691_s0 + $0x108] sm:$0xf0]  ;;  %v2794_v1 = vld [vmem:[%s5691_s0 + $0x198] sm:$0xf0]  ;;  %2090 = vmatpush.bf16.msra.mxu1 %v2869_v47  ;;  %v5022_v41 = vor.u32 %v3435_v3, %v2528_v52 }
  0xd8   :  { %v3429_v40 = vld [vmem:[%s5693_s1 + $0xfc] sm:$0xf]  ;;  %v2530_v9 = vld [vmem:[%s5693_s1 + $0x12c] sm:$0xf0]  ;;  %v5031_v47 = vor.u32 %v3436_v63, %v2536_v29  ;;  %v3498_v3 = vld [vmem:[%s5691_s0 + $0x184] sm:$0xf] }
  0xd9   :  { %v1693_v50 = vpop.f32.mrf.mxu3  ;;  %v1724_v21 = vpop.f32.mrf.mxu0  ;;  %2061 = vmatpush.bf16.msra.mxu0 %v2805_v23  ;;  %5740 = vst [vmem:[#allocation23_spill] sm:$0xff] %v5022_v41  ;;  %2005 = vmatpush.bf16.msra.mxu2 %v2661_v54  ;;  %v2858_v43 = vld [vmem:[%s5691_s0 + $0x218] sm:$0xf0]  ;;  %v5033_v52 = vor.u32 %v3429_v40, %v2530_v9  ;;  %v3514_v29 = vld [vmem:[%s5691_s0 + $0x204] sm:$0xf] }
  0xda   :  { %v1694_v62 = vadd.f32 %v1693_v50, %v1665_v4  ;;  %v2725_v4 = vor.u32 %v3482_v28, %v2722_v53  ;;  %5741 = vst [vmem:[#allocation24_spill] sm:$0xff] %v5031_v47  ;;  %v2786_v28 = vld [vmem:[%s5691_s0 + $0x188] sm:$0xf0]  ;;  %v2970_v40 = vld [vmem:[%s5691_s0 + $0x2f8] sm:$0xf0] }
  0xdb   :  { %v1753_v18 = vpop.f32.mrf.mxu1  ;;  %5742 = vst [vmem:[#allocation25_spill] sm:$0xff] %v5033_v52  ;;  %v2850_v63 = vld [vmem:[%s5691_s0 + $0x208] sm:$0xf0] }
  0xdc   :  { %v1723_v37 = vadd.f32 %v1722_v51, %v1694_v62  ;;  %v3500_v51 = vld [vmem:[%s5691_s0 + $0x194] sm:$0xf]  ;;  %2034 = vmatpush.bf16.msra.mxu3 %v2725_v4  ;;  %v3034_v4 = vld [vmem:[%s5691_s0 + $0x378] sm:$0xf0] }
  0xdd   :  { %v2797_v50 = vor.u32 %v3500_v51, %v2794_v1  ;;  %v2853_v1 = vor.u32 %v3514_v29, %v2850_v63  ;;  %v3542_v29 = vld [vmem:[%s5691_s0 + $0x2e4] sm:$0xf]  ;;  %v2962_v63 = vld [vmem:[%s5691_s0 + $0x2e8] sm:$0xf0] }
  0xde   :  { %v5020_v23 = vadd.f32 %v1751_v58, %v1723_v37  ;;  %v1666_v62 = vpop.f32.mrf.mxu2  ;;  %v2861_v58 = vor.u32 %v3516_v49, %v2858_v43 }
  0xdf   :  { %v1667_v31 = vadd.f32 %v1666_v62, %v4822_v5  ;;  %2062 = vmatpush.bf16.msra.mxu0 %v2797_v50  ;;  %v2789_v5 = vor.u32 %v3498_v3, %v2786_v28 }
  0xe0   :  { %2091 = vmatpush.bf16.msra.mxu1 %v2861_v58 }
  0xe1   :  { %v1695_v0 = vpop.f32.mrf.mxu3  ;;  %v1727_v37 = vpop.f32.mrf.mxu0 }
  0xe2   :  { %v1696_v54 = vadd.f32 %v1695_v0, %v1667_v31  ;;  %v3544_v0 = vld [vmem:[%s5691_s0 + $0x2f4] sm:$0xf] }
  0xe3   :  { %v1756_v53 = vpop.f32.mrf.mxu1  ;;  %1900 = vmatmul.bf16.gmra.mxu2 %v5022_v41  ;;  %2063 = vmatpush.bf16.msra.mxu0 %v2789_v5  ;;  %v2973_v9 = vor.u32 %v3544_v0, %v2970_v40  ;;  %v3026_v0 = vld [vmem:[%s5691_s0 + $0x368] sm:$0xf0]  ;;  %v3098_v40 = vld [vmem:[%s5691_s0 + $0x3f8] sm:$0xf0] }
  0xe4   :  { %v1725_v51 = vadd.f32 %v1724_v21, %v1696_v54  ;;  %3392 = vmatmul.msk.bf16.gmra.mxu0 %vm1579_vm0, %v5031_v47  ;;  %v3560_v21 = vld [vmem:[%s5691_s0 + $0x374] sm:$0xf]  ;;  %2092 = vmatpush.bf16.msra.mxu1 %v2853_v1  ;;  %v2588_v54 = vld [vmem:[%s5693_s1 + $0x168] sm:$0xf]  ;;  %v2965_v1 = vor.u32 %v3542_v29, %v2962_v63 }
  0xe5   :  { %v3037_v49 = vor.u32 %v3560_v21, %v3034_v4  ;;  %2114 = vmatpush.bf16.msrb.mxu2 %v2973_v9  ;;  %v3442_v21 = vld [vmem:[%s5693_s1 + $0x164] sm:$0xf]  ;;  %v2582_v9 = vld [vmem:[%s5693_s1 + $0x194] sm:$0xf0] }
  0xe6   :  { %1929 = vmatmul.bf16.gmra.mxu3 %v5033_v52  ;;  %1987 = vmatmul.bf16.gmra.mxu1 %v3844_v6  ;;  %v5064_v50 = vadd.f32 %v1753_v18, %v1725_v51  ;;  %v1669_v62 = vpop.f32.mrf.mxu2  ;;  %v2580_v6 = vld [vmem:[%s5693_s1 + $0x160] sm:$0xf]  ;;  %v3448_v18 = vld [vmem:[%s5693_s1 + $0x190] sm:$0xf0]  ;;  %v3558_v51 = vld [vmem:[%s5691_s0 + $0x364] sm:$0xf]  ;;  %v5110_v41 = vor.u32 %v3442_v21, %v2582_v9 }
  0xe7   :  { %v1670_v43 = vadd.f32 %v1669_v62, %v4711_v22  ;;  %2143 = vmatpush.bf16.msrb.mxu3 %v3037_v49  ;;  %v3449_v22 = vld [vmem:[%s5693_s1 + $0x198] sm:$0xf0]  ;;  %v3029_v4 = vor.u32 %v3558_v51, %v3026_v0  ;;  %v5106_v29 = vor.u32 %v3448_v18, %v2580_v6  ;;  %v3556_v18 = vld [vmem:[%s5691_s0 + $0x354] sm:$0xf] }
  0xe8   :  { %v5108_v63 = vor.u32 %v3449_v22, %v2588_v54  ;;  %v3018_v22 = vld [vmem:[%s5691_s0 + $0x358] sm:$0xf0] }
  0xe9   :  { %v1698_v31 = vpop.f32.mrf.mxu3  ;;  %v1729_v58 = vpop.f32.mrf.mxu0  ;;  %2115 = vmatpush.bf16.msrb.mxu2 %v2965_v1  ;;  %v3090_v1 = vld [vmem:[%s5691_s0 + $0x3e8] sm:$0xf0] }
  0xea   :  { %v1699_v3 = vadd.f32 %v1698_v31, %v1670_v43 }
  0xeb   :  { %v1758_v28 = vpop.f32.mrf.mxu1  ;;  %2144 = vmatpush.bf16.msrb.mxu3 %v3029_v4 }
  0xec   :  { %v1728_v5 = vadd.f32 %v1727_v37, %v1699_v3  ;;  %v3576_v37 = vld [vmem:[%s5691_s0 + $0x3f4] sm:$0xf] }
  0xed   :  { %v3101_v62 = vor.u32 %v3576_v37, %v3098_v40  ;;  %v3021_v40 = vor.u32 %v3556_v18, %v3018_v22  ;;  %v3082_v18 = vld [vmem:[%s5691_s0 + $0x3d8] sm:$0xf0] }
  0xee   :  { %v5103_v49 = vadd.f32 %v1756_v53, %v1728_v5  ;;  %v1671_v43 = vpop.f32.mrf.mxu2  ;;  %v3162_v53 = vld [vmem:[%s5691_s0 + $0x478] sm:$0xf0]  ;;  %v3574_v5 = vld [vmem:[%s5691_s0 + $0x3e4] sm:$0xf] }
  0xef   :  { %v1672_v31 = vadd.f32 %v1671_v43, %v4767_v60  ;;  %2172 = vmatpush.bf16.msrb.mxu0 %v3101_v62  ;;  %v3592_v60 = vld [vmem:[%s5691_s0 + $0x474] sm:$0xf]  ;;  %v3093_v21 = vor.u32 %v3574_v5, %v3090_v1  ;;  %2145 = vmatpush.bf16.msrb.mxu3 %v3021_v40 }
  0xf0   :  { %v3165_v6 = vor.u32 %v3592_v60, %v3162_v53  ;;  %v2946_v60 = vld [vmem:[%s5691_s0 + $0x2c8] sm:$0xf0] }
  0xf1   :  { %v1700_v3 = vpop.f32.mrf.mxu3  ;;  %v1732_v47 = vpop.f32.mrf.mxu0  ;;  %v3010_v53 = vld [vmem:[%s5691_s0 + $0x348] sm:$0xf0] }
  0xf2   :  { %v1701_v52 = vadd.f32 %v1700_v3, %v1672_v31  ;;  %2201 = vmatpush.bf16.msrb.mxu1 %v3165_v6  ;;  %v3590_v3 = vld [vmem:[%s5691_s0 + $0x464] sm:$0xf] }
  0xf3   :  { %v1761_v59 = vpop.f32.mrf.mxu1  ;;  %1905 = vmatmul.bf16.gmra.mxu2 %v5106_v29  ;;  %2173 = vmatpush.bf16.msrb.mxu0 %v3093_v21 }
  0xf4   :  { %v1730_v51 = vadd.f32 %v1729_v58, %v1701_v52  ;;  %3393 = vmatmul.msk.bf16.gmra.mxu0 %vm1579_vm0, %v5108_v63  ;;  %v3540_v52 = vld [vmem:[%s5691_s0 + $0x2d4] sm:$0xf]  ;;  %v2954_v58 = vld [vmem:[%s5691_s0 + $0x2d8] sm:$0xf0] }
  0xf5   :  { %v2957_v54 = vor.u32 %v3540_v52, %v2954_v58  ;;  %v3572_v58 = vld [vmem:[%s5691_s0 + $0x3d4] sm:$0xf] }
  0xf6   :  { %1934 = vmatmul.bf16.gmra.mxu3 %v5110_v41  ;;  %1992 = vmatmul.bf16.gmra.mxu1 %v3988_v8  ;;  %v5141_v0 = vadd.f32 %v1758_v28, %v1730_v51  ;;  %v1674_v37 = vpop.f32.mrf.mxu2  ;;  %v3154_v28 = vld [vmem:[%s5691_s0 + $0x468] sm:$0xf0]  ;;  %v3085_v5 = vor.u32 %v3572_v58, %v3082_v18 }
  0xf7   :  { %v1675_v8 = vadd.f32 %v1674_v37, %v4807_v48  ;;  %2116 = vmatpush.bf16.msrb.mxu2 %v2957_v54  ;;  %v3538_v48 = vld [vmem:[%s5691_s0 + $0x2c4] sm:$0xf]  ;;  %v3157_v51 = vor.u32 %v3590_v3, %v3154_v28  ;;  %v3074_v28 = vld [vmem:[%s5691_s0 + $0x3c8] sm:$0xf0] }
  0xf8   :  { %v2949_v6 = vor.u32 %v3538_v48, %v2946_v60  ;;  %2174 = vmatpush.bf16.msrb.mxu0 %v3085_v5  ;;  %v3570_v3 = vld [vmem:[%s5691_s0 + $0x3c4] sm:$0xf] }
  0xf9   :  { %v1703_v9 = vpop.f32.mrf.mxu3  ;;  %v1734_v4 = vpop.f32.mrf.mxu0  ;;  %2202 = vmatpush.bf16.msrb.mxu1 %v3157_v51 }
  0xfa   :  { %v1704_v62 = vadd.f32 %v1703_v9, %v1675_v8 }
  0xfb   :  { %v1763_v43 = vpop.f32.mrf.mxu1  ;;  %2117 = vmatpush.bf16.msrb.mxu2 %v2949_v6 }
  0xfc   :  { %v1733_v31 = vadd.f32 %v1732_v47, %v1704_v62  ;;  %v3554_v47 = vld [vmem:[%s5691_s0 + $0x344] sm:$0xf] }
  0xfd   :  { %v3013_v52 = vor.u32 %v3554_v47, %v3010_v53  ;;  %v3077_v47 = vor.u32 %v3570_v3, %v3074_v28 }
  0xfe   :  { %v5168_v54 = vadd.f32 %v1761_v59, %v1733_v31  ;;  %v1676_v22 = vpop.f32.mrf.mxu2  ;;  %v3588_v59 = vld [vmem:[%s5691_s0 + $0x454] sm:$0xf] }
  0xff   :  { %v1677_v1 = vadd.f32 %v1676_v22, %v4863_v33  ;;  %2146 = vmatpush.bf16.msrb.mxu3 %v3013_v52  ;;  %v3146_v33 = vld [vmem:[%s5691_s0 + $0x458] sm:$0xf0]  ;;  %v3536_v31 = vld [vmem:[%s5691_s0 + $0x2b4] sm:$0xf]  ;;  %2175 = vmatpush.bf16.msrb.mxu0 %v3077_v47  ;;  %v3586_v22 = vld [vmem:[%s5691_s0 + $0x444] sm:$0xf] }
 0x100   :  { %v3149_v62 = vor.u32 %v3588_v59, %v3146_v33  ;;  %v3568_v59 = vld [vmem:[%s5691_s0 + $0x3b4] sm:$0xf]  ;;  %v3066_v33 = vld [vmem:[%s5691_s0 + $0x3b8] sm:$0xf0] }
 0x101   :  { %v1705_v37 = vpop.f32.mrf.mxu3  ;;  %v1833_v40 = vpop.f32.mrf.mxu0  ;;  %v3532_v47 = vld [vmem:[%s5691_s0 + $0x294] sm:$0xf] }
 0x102   :  { %v1706_v21 = vadd.f32 %v1705_v37, %v1677_v1  ;;  %2203 = vmatpush.bf16.msrb.mxu1 %v3149_v62  ;;  %v2930_v1 = vld [vmem:[%s5691_s0 + $0x2a8] sm:$0xf0]  ;;  %v3550_v37 = vld [vmem:[%s5691_s0 + $0x324] sm:$0xf] }
 0x103   :  { %v1862_v8 = vpop.f32.mrf.mxu1  ;;  %2006 = vmatmul.bf16.vlgmr.msra.gmra.mxu2 %v3859_v13  ;;  %v2938_v13 = vld [vmem:[%s5691_s0 + $0x2b8] sm:$0xf0] }
 0x104   :  { %v1735_v9 = vadd.f32 %v1734_v4, %v1706_v21  ;;  %2064 = vmatmul.bf16.vlgmr.msra.gmra.mxu0 %v4145_v24  ;;  %v3552_v24 = vld [vmem:[%s5691_s0 + $0x334] sm:$0xf]  ;;  %v2941_v4 = vor.u32 %v3536_v31, %v2938_v13  ;;  %v3069_v13 = vor.u32 %v3568_v59, %v3066_v33  ;;  %v2914_v59 = vld [vmem:[%s5691_s0 + $0x288] sm:$0xf0]  ;;  %v3546_v33 = vld [vmem:[%s5691_s0 + $0x304] sm:$0xf] }
 0x106   :  { %2035 = vmatmul.bf16.vlgmr.msra.gmra.mxu3 %v4132_v19  ;;  %2093 = vmatmul.bf16.vlgmr.msra.gmra.mxu1 %v4134_v20  ;;  %v3002_v19 = vld [vmem:[%s5691_s0 + $0x338] sm:$0xf0]  ;;  %v5199_v48 = vadd.f32 %v1763_v43, %v1735_v9  ;;  %v1775_v51 = vpop.f32.mrf.mxu2  ;;  %v3138_v43 = vld [vmem:[%s5691_s0 + $0x448] sm:$0xf0] }
 0x107   :  { %v3005_v60 = vor.u32 %v3552_v24, %v3002_v19  ;;  %v1776_v20 = vadd.f32 %v1775_v51, %v4937_v61  ;;  %2118 = vmatpush.bf16.msrb.mxu2 %v2941_v4  ;;  %v3534_v61 = vld [vmem:[%s5691_s0 + $0x2a4] sm:$0xf]  ;;  %v3141_v5 = vor.u32 %v3586_v22, %v3138_v43  ;;  %2176 = vmatpush.bf16.msrb.mxu0 %v3069_v13  ;;  %v2978_v13 = vld [vmem:[%s5691_s0 + $0x308] sm:$0xf0] }
 0x108   :  { %v2933_v21 = vor.u32 %v3534_v61, %v2930_v1 }
 0x109   :  { %v1804_v53 = vpop.f32.mrf.mxu3  ;;  %v1835_v6 = vpop.f32.mrf.mxu0  ;;  %2147 = vmatpush.bf16.msrb.mxu3 %v3005_v60  ;;  %2204 = vmatpush.bf16.msrb.mxu1 %v3141_v5 }
 0x10a   :  { %v1805_v52 = vadd.f32 %v1804_v53, %v1776_v20  ;;  %v3566_v53 = vld [vmem:[%s5691_s0 + $0x3a4] sm:$0xf] }
 0x10b   :  { %v1864_v58 = vpop.f32.mrf.mxu1  ;;  %2119 = vmatpush.bf16.msrb.mxu2 %v2933_v21 }
 0x10c   :  { %v1834_v18 = vadd.f32 %v1833_v40, %v1805_v52  ;;  %v2994_v40 = vld [vmem:[%s5691_s0 + $0x328] sm:$0xf0] }
 0x10d   :  { %v2997_v9 = vor.u32 %v3550_v37, %v2994_v40  ;;  %v3582_v40 = vld [vmem:[%s5691_s0 + $0x424] sm:$0xf] }
 0x10e   :  { %v5226_v62 = vadd.f32 %v1862_v8, %v1834_v18  ;;  %v1777_v31 = vpop.f32.mrf.mxu2  ;;  %v3584_v8 = vld [vmem:[%s5691_s0 + $0x434] sm:$0xf] }
 0x10f   :  { %v1778_v24 = vadd.f32 %v1777_v31, %v4972_v2  ;;  %2148 = vmatpush.bf16.msrb.mxu3 %v2997_v9  ;;  %v3130_v2 = vld [vmem:[%s5691_s0 + $0x438] sm:$0xf0] }
 0x110   :  { %v3133_v60 = vor.u32 %v3584_v8, %v3130_v2  ;;  %v3580_v2 = vld [vmem:[%s5691_s0 + $0x414] sm:$0xf] }
 0x111   :  { %v1806_v4 = vpop.f32.mrf.mxu3  ;;  %v1838_v19 = vpop.f32.mrf.mxu0 }
 0x112   :  { %v1807_v3 = vadd.f32 %v1806_v4, %v1778_v24  ;;  %2205 = vmatpush.bf16.msrb.mxu1 %v3133_v60  ;;  %v3564_v24 = vld [vmem:[%s5691_s0 + $0x394] sm:$0xf]  ;;  %v3050_v4 = vld [vmem:[%s5691_s0 + $0x398] sm:$0xf0] }
 0x113   :  { %v1867_v28 = vpop.f32.mrf.mxu1  ;;  %2011 = vmatmul.bf16.gmra.mxu2 %v4003_v17  ;;  %v2922_v17 = vld [vmem:[%s5691_s0 + $0x298] sm:$0xf0] }
 0x114   :  { %v1836_v51 = vadd.f32 %v1835_v6, %v1807_v3  ;;  %2069 = vmatmul.bf16.gmra.mxu0 %v4271_v30  ;;  %v3548_v30 = vld [vmem:[%s5691_s0 + $0x314] sm:$0xf]  ;;  %v2925_v20 = vor.u32 %v3532_v47, %v2922_v17  ;;  %v3058_v6 = vld [vmem:[%s5691_s0 + $0x3a8] sm:$0xf0]  ;;  %v3053_v3 = vor.u32 %v3564_v24, %v3050_v4  ;;  %v3114_v60 = vld [vmem:[%s5691_s0 + $0x418] sm:$0xf0] }
 0x115   :  { %v3061_v43 = vor.u32 %v3566_v53, %v3058_v6 }
 0x116   :  { %2040 = vmatmul.bf16.gmra.mxu3 %v4261_v25  ;;  %2098 = vmatmul.bf16.gmra.mxu1 %v4263_v27  ;;  %v2986_v25 = vld [vmem:[%s5691_s0 + $0x318] sm:$0xf0]  ;;  %v5257_v52 = vadd.f32 %v1864_v58, %v1836_v51  ;;  %v1780_v18 = vpop.f32.mrf.mxu2  ;;  %v3122_v58 = vld [vmem:[%s5691_s0 + $0x428] sm:$0xf0] }
 0x117   :  { %v2989_v22 = vor.u32 %v3548_v30, %v2986_v25  ;;  %v1781_v27 = vadd.f32 %v1780_v18, %v5020_v23  ;;  %2120 = vmatpush.bf16.msrb.mxu2 %v2925_v20  ;;  %2177 = vmatpush.bf16.msrb.mxu0 %v3061_v43  ;;  %v3125_v9 = vor.u32 %v3582_v40, %v3122_v58  ;;  %v3530_v23 = vld [vmem:[%s5691_s0 + $0x284] sm:$0xf]  ;;  %v3042_v25 = vld [vmem:[%s5691_s0 + $0x388] sm:$0xf0] }
 0x118   :  { %v2917_v31 = vor.u32 %v3530_v23, %v2914_v59  ;;  %v3117_v30 = vor.u32 %v3580_v2, %v3114_v60 }
 0x119   :  { %v1809_v61 = vpop.f32.mrf.mxu3  ;;  %v1840_v5 = vpop.f32.mrf.mxu0  ;;  %2149 = vmatpush.bf16.msrb.mxu3 %v2989_v22  ;;  %2206 = vmatpush.bf16.msrb.mxu1 %v3125_v9  ;;  %v3106_v22 = vld [vmem:[%s5691_s0 + $0x408] sm:$0xf0] }
 0x11a   :  { %v1810_v1 = vadd.f32 %v1809_v61, %v1781_v27  ;;  %v3608_v61 = vld [vmem:[%s5691_s0 + $0x4f4] sm:$0xf] }
 0x11b   :  { %v1869_v37 = vpop.f32.mrf.mxu1  ;;  %2121 = vmatpush.bf16.msrb.mxu2 %v2917_v31  ;;  %2178 = vmatpush.bf16.msrb.mxu0 %v3053_v3  ;;  %v3640_v3 = vld [vmem:[%s5691_s0 + $0x5f4] sm:$0xf] }
 0x11c   :  { %v1839_v21 = vadd.f32 %v1838_v19, %v1810_v1  ;;  %v2981_v19 = vor.u32 %v3546_v33, %v2978_v13  ;;  %v3226_v1 = vld [vmem:[%s5691_s0 + $0x4f8] sm:$0xf0]  ;;  %v3622_v13 = vld [vmem:[%s5691_s0 + $0x564] sm:$0xf] }
 0x11d   :  { %2207 = vmatpush.bf16.msrb.mxu1 %v3117_v30 }
 0x11e   :  { %v5284_v51 = vadd.f32 %v1867_v28, %v1839_v21  ;;  %v1782_v8 = vpop.f32.mrf.mxu2  ;;  %2150 = vmatpush.bf16.msrb.mxu3 %v2981_v19  ;;  %v3562_v28 = vld [vmem:[%s5691_s0 + $0x384] sm:$0xf]  ;;  %v3282_v19 = vld [vmem:[%s5691_s0 + $0x568] sm:$0xf0] }
 0x11f   :  { %v1783_v47 = vadd.f32 %v1782_v8, %v5064_v50  ;;  %v3045_v6 = vor.u32 %v3562_v28, %v3042_v25  ;;  %v3578_v50 = vld [vmem:[%s5691_s0 + $0x404] sm:$0xf]  ;;  %v3354_v8 = vld [vmem:[%s5691_s0 + $0x5f8] sm:$0xf0] }
 0x120   :  { %v3109_v27 = vor.u32 %v3578_v50, %v3106_v22  ;;  %v3274_v50 = vld [vmem:[%s5691_s0 + $0x558] sm:$0xf0] }
 0x121   :  { %v1811_v17 = vpop.f32.mrf.mxu3  ;;  %v1843_v20 = vpop.f32.mrf.mxu0  ;;  %2179 = vmatpush.bf16.msrb.mxu0 %v3045_v6  ;;  %v3604_v6 = vld [vmem:[%s5691_s0 + $0x4d4] sm:$0xf] }
 0x122   :  { %v1812_v53 = vadd.f32 %v1811_v17, %v1783_v47  ;;  %2208 = vmatpush.bf16.msrb.mxu1 %v3109_v27  ;;  %v3285_v47 = vor.u32 %v3622_v13, %v3282_v19  ;;  %v3357_v17 = vor.u32 %v3640_v3, %v3354_v8  ;;  %v3338_v13 = vld [vmem:[%s5691_s0 + $0x5d8] sm:$0xf0] }
 0x123   :  { %v1872_v18 = vpop.f32.mrf.mxu1  ;;  %2016 = vmatmul.bf16.gmra.mxu2 %v3857_v11  ;;  %v3229_v11 = vor.u32 %v3608_v61, %v3226_v1  ;;  %v3638_v1 = vld [vmem:[%s5691_s0 + $0x5e4] sm:$0xf] }
 0x124   :  { %v1841_v43 = vadd.f32 %v1840_v5, %v1812_v53  ;;  %2074 = vmatmul.bf16.gmra.mxu0 %v4361_v14  ;;  %v3624_v5 = vld [vmem:[%s5691_s0 + $0x574] sm:$0xf]  ;;  %v3386_v53 = vld [vmem:[%s5691_s0 + $0x638] sm:$0xf0] }
 0x125   :  { %2230 = vmatpush.bf16.msra.mxu2 %v3229_v11  ;;  %2288 = vmatpush.bf16.msra.mxu0 %v3357_v17  ;;  %v3378_v17 = vld [vmem:[%s5691_s0 + $0x628] sm:$0xf0] }
 0x126   :  { %2045 = vmatmul.bf16.gmra.mxu3 %v4357_v10  ;;  %2103 = vmatmul.bf16.gmra.mxu1 %v4359_v12  ;;  %v3290_v10 = vld [vmem:[%s5691_s0 + $0x578] sm:$0xf0]  ;;  %v5321_v14 = vadd.f32 %v1869_v37, %v1841_v43  ;;  %v1785_v40 = vpop.f32.mrf.mxu2  ;;  %v3606_v12 = vld [vmem:[%s5691_s0 + $0x4e4] sm:$0xf]  ;;  %v3218_v37 = vld [vmem:[%s5691_s0 + $0x4e8] sm:$0xf0] }
 0x127   :  { %v3293_v58 = vor.u32 %v3624_v5, %v3290_v10  ;;  %v1786_v21 = vadd.f32 %v1785_v40, %v5103_v49  ;;  %v3221_v4 = vor.u32 %v3606_v12, %v3218_v37  ;;  %v3346_v5 = vld [vmem:[%s5691_s0 + $0x5e8] sm:$0xf0]  ;;  %v3636_v37 = vld [vmem:[%s5691_s0 + $0x5d4] sm:$0xf] }
 0x128   :  { %v3349_v10 = vor.u32 %v3638_v1, %v3346_v5  ;;  %v3266_v12 = vld [vmem:[%s5691_s0 + $0x548] sm:$0xf0]  ;;  %v3341_v3 = vor.u32 %v3636_v37, %v3338_v13  ;;  %v3614_v5 = vld [vmem:[%s5691_s0 + $0x524] sm:$0xf]  ;;  %v3370_v37 = vld [vmem:[%s5691_s0 + $0x618] sm:$0xf0] }
 0x129   :  { %v1814_v9 = vpop.f32.mrf.mxu3  ;;  %v1845_v23 = vpop.f32.mrf.mxu0  ;;  %2259 = vmatpush.bf16.msra.mxu3 %v3293_v58  ;;  %2231 = vmatpush.bf16.msra.mxu2 %v3221_v4 }
 0x12a   :  { %v1815_v59 = vadd.f32 %v1814_v9, %v1786_v21  ;;  %2289 = vmatpush.bf16.msra.mxu0 %v3349_v10  ;;  %v3602_v21 = vld [vmem:[%s5691_s0 + $0x4c4] sm:$0xf]  ;;  %v3202_v9 = vld [vmem:[%s5691_s0 + $0x4c8] sm:$0xf0]  ;;  %v3632_v10 = vld [vmem:[%s5691_s0 + $0x5b4] sm:$0xf] }
 0x12b   :  { %v1874_v33 = vpop.f32.mrf.mxu1 }
 0x12c   :  { %v1844_v31 = vadd.f32 %v1843_v20, %v1815_v59 }
 0x12d   :  { %2260 = vmatpush.bf16.msra.mxu3 %v3285_v47 }
 0x12e   :  { %v5333_v49 = vadd.f32 %v1872_v18, %v1844_v31  ;;  %v1787_v24 = vpop.f32.mrf.mxu2  ;;  %v3205_v31 = vor.u32 %v3602_v21, %v3202_v9  ;;  %2290 = vmatpush.bf16.msra.mxu0 %v3341_v3  ;;  %v3322_v21 = vld [vmem:[%s5691_s0 + $0x5b8] sm:$0xf0] }
 0x12f   :  { %v1788_v2 = vadd.f32 %v1787_v24, %v5141_v0  ;;  %v3648_v0 = vld [vmem:[%s5691_s0 + $0x634] sm:$0xf]  ;;  %v3242_v3 = vld [vmem:[%s5691_s0 + $0x518] sm:$0xf0] }
 0x131   :  { %v1816_v60 = vpop.f32.mrf.mxu3  ;;  %v1848_v30 = vpop.f32.mrf.mxu0 }
 0x132   :  { %v1817_v20 = vadd.f32 %v1816_v60, %v1788_v2 }
 0x133   :  { %v1877_v28 = vpop.f32.mrf.mxu1  ;;  %2021 = vmatmul.bf16.gmra.mxu2 %v4001_v15 }
 0x134   :  { %v1846_v25 = vadd.f32 %v1845_v23, %v1817_v20  ;;  %2079 = vmatmul.bf16.gmra.mxu0 %v4439_v57  ;;  %v3389_v57 = vor.u32 %v3648_v0, %v3386_v53  ;;  %v3618_v23 = vld [vmem:[%s5691_s0 + $0x544] sm:$0xf] }
 0x135   :  { %v3269_v19 = vor.u32 %v3618_v23, %v3266_v12  ;;  %v3325_v23 = vor.u32 %v3632_v10, %v3322_v21 }
 0x136   :  { %2050 = vmatmul.bf16.gmra.mxu3 %v4435_v55  ;;  %2108 = vmatmul.bf16.gmra.mxu1 %v4437_v56  ;;  %v5358_v18 = vadd.f32 %v1874_v33, %v1846_v25  ;;  %v1790_v15 = vpop.f32.mrf.mxu2  ;;  %v3210_v55 = vld [vmem:[%s5691_s0 + $0x4d8] sm:$0xf0]  ;;  %v3620_v56 = vld [vmem:[%s5691_s0 + $0x554] sm:$0xf] }
 0x137   :  { %v1791_v22 = vadd.f32 %v1790_v15, %v5168_v54  ;;  %v3213_v27 = vor.u32 %v3604_v6, %v3210_v55  ;;  %v3277_v61 = vor.u32 %v3620_v56, %v3274_v50  ;;  %2321 = vmatpush.bf16.msra.mxu1 %v3389_v57  ;;  %v3634_v15 = vld [vmem:[%s5691_s0 + $0x5c4] sm:$0xf]  ;;  %v3330_v57 = vld [vmem:[%s5691_s0 + $0x5c8] sm:$0xf0] }
 0x138   :  { %v3333_v56 = vor.u32 %v3634_v15, %v3330_v57  ;;  %v3234_v15 = vld [vmem:[%s5691_s0 + $0x508] sm:$0xf0] }
 0x139   :  { %v1819_v43 = vpop.f32.mrf.mxu3  ;;  %v1850_v11 = vpop.f32.mrf.mxu0  ;;  %2232 = vmatpush.bf16.msra.mxu2 %v3213_v27  ;;  %2261 = vmatpush.bf16.msra.mxu3 %v3277_v61  ;;  %v3186_v27 = vld [vmem:[%s5691_s0 + $0x4a8] sm:$0xf0] }
 0x13a   :  { %v1820_v40 = vadd.f32 %v1819_v43, %v1791_v22  ;;  %2291 = vmatpush.bf16.msra.mxu0 %v3333_v56  ;;  %v3598_v43 = vld [vmem:[%s5691_s0 + $0x4a4] sm:$0xf] }
 0x13b   :  { %v1879_v58 = vpop.f32.mrf.mxu1  ;;  %v3189_v1 = vor.u32 %v3598_v43, %v3186_v27  ;;  %v3626_v43 = vld [vmem:[%s5691_s0 + $0x584] sm:$0xf]  ;;  %v3298_v27 = vld [vmem:[%s5691_s0 + $0x588] sm:$0xf0] }
 0x13c   :  { %v1849_v54 = vadd.f32 %v1848_v30, %v1820_v40  ;;  %v3600_v30 = vld [vmem:[%s5691_s0 + $0x4b4] sm:$0xf] }
 0x13d   :  { %2233 = vmatpush.bf16.msra.mxu2 %v3205_v31  ;;  %2262 = vmatpush.bf16.msra.mxu3 %v3269_v19 }
 0x13e   :  { %v5385_v59 = vadd.f32 %v1877_v28, %v1849_v54  ;;  %v1792_v33 = vpop.f32.mrf.mxu2  ;;  %v3258_v28 = vld [vmem:[%s5691_s0 + $0x538] sm:$0xf0]  ;;  %2292 = vmatpush.bf16.msra.mxu0 %v3325_v23 }
 0x13f   :  { %v1793_v24 = vadd.f32 %v1792_v33, %v5199_v48  ;;  %v3646_v48 = vld [vmem:[%s5691_s0 + $0x624] sm:$0xf] }
 0x141   :  { %v1821_v4 = vpop.f32.mrf.mxu3  ;;  %v1949_v8 = vpop.f32.mrf.mxu0 }
 0x142   :  { %v1822_v2 = vadd.f32 %v1821_v4, %v1793_v24 }
 0x143   :  { %v5397_v60 = vpop.f32.mrf.mxu1  ;;  %2122 = vmatmul.bf16.vlgmr.msrb.gmra.mxu2 %v4147_v26 }
 0x144   :  { %v1851_v47 = vadd.f32 %v1850_v11, %v1822_v2  ;;  %2180 = vmatmul.bf16.vlgmr.msrb.gmra.mxu0 %v4517_v46  ;;  %v3381_v46 = vor.u32 %v3646_v48, %v3378_v17  ;;  %v3250_v11 = vld [vmem:[%s5691_s0 + $0x528] sm:$0xf0] }
 0x145   :  { %v3253_v54 = vor.u32 %v3614_v5, %v3250_v11  ;;  %v3314_v2 = vld [vmem:[%s5691_s0 + $0x5a8] sm:$0xf0] }
 0x146   :  { %2151 = vmatmul.bf16.vlgmr.msrb.gmra.mxu3 %v4513_v44  ;;  %2209 = vmatmul.bf16.vlgmr.msrb.gmra.mxu1 %v4515_v45  ;;  %v5412_v20 = vadd.f32 %v1879_v58, %v1851_v47  ;;  %v1891_v26 = vpop.f32.mrf.mxu2  ;;  %v3194_v44 = vld [vmem:[%s5691_s0 + $0x4b8] sm:$0xf0]  ;;  %v3616_v45 = vld [vmem:[%s5691_s0 + $0x534] sm:$0xf]  ;;  %v3362_v11 = vld [vmem:[%s5691_s0 + $0x608] sm:$0xf0] }
 0x147   :  { %v1892_v25 = vadd.f32 %v1891_v26, %v5226_v62  ;;  %v3197_v53 = vor.u32 %v3600_v30, %v3194_v44  ;;  %v3261_v6 = vor.u32 %v3616_v45, %v3258_v28  ;;  %2322 = vmatpush.bf16.msra.mxu1 %v3381_v46  ;;  %v3628_v46 = vld [vmem:[%s5691_s0 + $0x594] sm:$0xf]  ;;  %v3306_v44 = vld [vmem:[%s5691_s0 + $0x598] sm:$0xf0]  ;;  %v3594_v45 = vld [vmem:[%s5691_s0 + $0x484] sm:$0xf] }
 0x148   :  { %v3170_v28 = vld [vmem:[%s5691_s0 + $0x488] sm:$0xf0] }
 0x149   :  { %v1920_v0 = vpop.f32.mrf.mxu3  ;;  %v1951_v55 = vpop.f32.mrf.mxu0  ;;  %2234 = vmatpush.bf16.msra.mxu2 %v3197_v53  ;;  %2263 = vmatpush.bf16.msra.mxu3 %v3261_v6  ;;  %v3173_v53 = vor.u32 %v3594_v45, %v3170_v28  ;;  %v3610_v6 = vld [vmem:[%s5691_s0 + $0x504] sm:$0xf]  ;;  %v5748_v28 = vld [vmem:[#allocation3_spill] sm:$0xff] }
 0x14a   :  { %v1921_v50 = vadd.f32 %v1920_v0, %v1892_v25  ;;  %v3309_v25 = vor.u32 %v3628_v46, %v3306_v44  ;;  %v3237_v56 = vor.u32 %v3610_v6, %v3234_v15  ;;  %v5752_v6 = vld [vmem:[#allocation19_spill] sm:$0xff] }
 0x14b   :  { %v5430_v22 = vpop.f32.mrf.mxu1 }
 0x14c   :  { %v5432_v62 = vadd.f32 %v1949_v8, %v1921_v50  ;;  %v3630_v8 = vld [vmem:[%s5691_s0 + $0x5a4] sm:$0xf] }
 0x14d   :  { %2235 = vmatpush.bf16.msra.mxu2 %v3189_v1  ;;  %2264 = vmatpush.bf16.msra.mxu3 %v3253_v54  ;;  %v3317_v17 = vor.u32 %v3630_v8, %v3314_v2  ;;  %v3301_v1 = vor.u32 %v3626_v43, %v3298_v27  ;;  %v5753_v27 = vld [vmem:[#allocation8_spill] sm:$0xff] }
 0x14e   :  { %v1893_v61 = vpop.f32.mrf.mxu2 }
 0x14f   :  { %v1894_v40 = vadd.f32 %v1893_v61, %v5257_v52  ;;  %v3644_v52 = vld [vmem:[%s5691_s0 + $0x614] sm:$0xf]  ;;  %2293 = vmatpush.bf16.msra.mxu0 %v3317_v17 }
 0x150   :  { %v3373_v24 = vor.u32 %v3644_v52, %v3370_v37 }
 0x151   :  { %v1922_v58 = vpop.f32.mrf.mxu3  ;;  %v1954_v9 = vpop.f32.mrf.mxu0 }
 0x152   :  { %v1923_v33 = vadd.f32 %v1922_v58, %v1894_v40  ;;  %2323 = vmatpush.bf16.msra.mxu1 %v3373_v24 }
 0x153   :  { %v5453_v31 = vpop.f32.mrf.mxu1  ;;  %2127 = vmatmul.bf16.gmra.mxu2 %v4273_v32  ;;  %v3596_v32 = vld [vmem:[%s5691_s0 + $0x494] sm:$0xf]  ;;  %2294 = vmatpush.bf16.msra.mxu0 %v3309_v25 }
 0x154   :  { %v5455_v12 = vadd.f32 %v1951_v55, %v1923_v33  ;;  %2185 = vmatmul.bf16.gmra.mxu0 %v4589_v36  ;;  %v5749_v25 = vld [vmem:[#allocation20_spill] sm:$0xff] }
 0x156   :  { %2156 = vmatmul.bf16.gmra.mxu3 %v4585_v34  ;;  %2214 = vmatmul.bf16.gmra.mxu1 %v4587_v35  ;;  %v1896_v13 = vpop.f32.mrf.mxu2  ;;  %v3178_v34 = vld [vmem:[%s5691_s0 + $0x498] sm:$0xf0]  ;;  %v3612_v35 = vld [vmem:[%s5691_s0 + $0x514] sm:$0xf] }
 0x157   :  { %v1897_v36 = vadd.f32 %v1896_v13, %v5284_v51  ;;  %v3181_v19 = vor.u32 %v3596_v32, %v3178_v34  ;;  %v3245_v48 = vor.u32 %v3612_v35, %v3242_v3  ;;  %2295 = vmatpush.bf16.msra.mxu0 %v3301_v1  ;;  %v5743_v32 = vld [vmem:[#allocation2_spill] sm:$0xff]  ;;  %v5745_v34 = vld [vmem:[#allocation11_spill] sm:$0xff]  ;;  %v5746_v35 = vld [vmem:[#allocation12_spill] sm:$0xff] }
 0x159   :  { %v1925_v4 = vpop.f32.mrf.mxu3  ;;  %v1956_v47 = vpop.f32.mrf.mxu0  ;;  %2236 = vmatpush.bf16.msra.mxu2 %v3181_v19  ;;  %2265 = vmatpush.bf16.msra.mxu3 %v3245_v48 }
 0x15a   :  { %v1926_v30 = vadd.f32 %v1925_v4, %v1897_v36 }
 0x15b   :  { %v5486_v51 = vpop.f32.mrf.mxu1 }
 0x15c   :  { %v5488_v26 = vadd.f32 %v1954_v9, %v1926_v30 }
 0x15d   :  { %2237 = vmatpush.bf16.msra.mxu2 %v3173_v53  ;;  %2266 = vmatpush.bf16.msra.mxu3 %v3237_v56 }
 0x15e   :  { %v1898_v0 = vpop.f32.mrf.mxu2 }
 0x15f   :  { %v1899_v57 = vadd.f32 %v1898_v0, %v5321_v14  ;;  %v3642_v14 = vld [vmem:[%s5691_s0 + $0x604] sm:$0xf]  ;;  %v5751_v0 = vld [vmem:[#allocation5_spill] sm:$0xff] }
 0x160   :  { %v3365_v40 = vor.u32 %v3642_v14, %v3362_v11  ;;  %v1979_v53 = vadd.f32 %v5397_v60, %v5751_v0  ;;  %v5763_v0 = vld [vmem:[#allocation24_spill] sm:$0xff] }
 0x161   :  { %v1927_v55 = vpop.f32.mrf.mxu3  ;;  %v1959_v50 = vpop.f32.mrf.mxu0 }
 0x162   :  { %v1928_v61 = vadd.f32 %v1927_v55, %v1899_v57  ;;  %2324 = vmatpush.bf16.msra.mxu1 %v3365_v40 }
 0x163   :  { %v5515_v5 = vpop.f32.mrf.mxu1  ;;  %2132 = vmatmul.bf16.gmra.mxu2 %v4363_v16 }
 0x164   :  { %v5523_v10 = vadd.f32 %v1956_v47, %v1928_v61  ;;  %2190 = vmatmul.bf16.gmra.mxu0 %v4675_v42  ;;  %v1981_v61 = vadd.f32 %v5430_v22, %v5753_v27 }
 0x166   :  { %2161 = vmatmul.bf16.gmra.mxu3 %v4671_v38  ;;  %2219 = vmatmul.bf16.gmra.mxu1 %v4673_v39  ;;  %v1901_v58 = vpop.f32.mrf.mxu2 }
 0x167   :  { %v1902_v54 = vadd.f32 %v1901_v58, %v5333_v49  ;;  %v5744_v49 = vld [vmem:[#allocation13_spill] sm:$0xff] }
 0x169   :  { %v1930_v21 = vpop.f32.mrf.mxu3  ;;  %v1961_v9 = vpop.f32.mrf.mxu0 }
 0x16a   :  { %v1931_v23 = vadd.f32 %v1930_v21, %v1902_v54 }
 0x16b   :  { %v5530_v33 = vpop.f32.mrf.mxu1 }
 0x16c   :  { %v5532_v52 = vadd.f32 %v1959_v50, %v1931_v23  ;;  %v5755_v23 = vld [vmem:[#allocation21_spill] sm:$0xff] }
 0x16e   :  { %v1903_v16 = vpop.f32.mrf.mxu2 }
 0x16f   :  { %v1904_v42 = vadd.f32 %v1903_v16, %v5358_v18  ;;  %v5756_v16 = vld [vmem:[#allocation9_spill] sm:$0xff] }
 0x171   :  { %v1932_v37 = vpop.f32.mrf.mxu3  ;;  %v1964_v13 = vpop.f32.mrf.mxu0 }
 0x172   :  { %v1933_v38 = vadd.f32 %v1932_v37, %v1904_v42  ;;  %v1984_v42 = vadd.f32 %v5453_v31, %v5756_v16  ;;  %v5757_v37 = vld [vmem:[#allocation22_spill] sm:$0xff] }
 0x173   :  { %v5535_v24 = vpop.f32.mrf.mxu1  ;;  %2137 = vmatmul.bf16.gmra.mxu2 %v5743_v32 }
 0x174   :  { %v5537_v39 = vadd.f32 %v1961_v9, %v1933_v38  ;;  %2195 = vmatmul.bf16.gmra.mxu0 %v5744_v49  ;;  %v5754_v9 = vld [vmem:[#allocation4_spill] sm:$0xff] }
 0x176   :  { %2166 = vmatmul.bf16.gmra.mxu3 %v5745_v34  ;;  %2224 = vmatmul.bf16.gmra.mxu1 %v5746_v35  ;;  %v1906_v36 = vpop.f32.mrf.mxu2 }
 0x177   :  { %v1907_v4 = vadd.f32 %v1906_v36, %v5385_v59  ;;  %v5750_v59 = vld [vmem:[#allocation18_spill] sm:$0xff] }
 0x179   :  { %v1935_v19 = vpop.f32.mrf.mxu3  ;;  %v1966_v18 = vpop.f32.mrf.mxu0 }
 0x17a   :  { %v1936_v3 = vadd.f32 %v1935_v19, %v1907_v4  ;;  %v5758_v4 = vld [vmem:[#allocation15_spill] sm:$0xff] }
 0x17b   :  { %v5544_v8 = vpop.f32.mrf.mxu1 }
 0x17c   :  { %v5546_v2 = vadd.f32 %v1964_v13, %v1936_v3 }
 0x17e   :  { %v1908_v47 = vpop.f32.mrf.mxu2 }
 0x17f   :  { %v1909_v48 = vadd.f32 %v1908_v47, %v5412_v20 }
 0x181   :  { %v1937_v17 = vpop.f32.mrf.mxu3  ;;  %v2065_v30 = vpop.f32.mrf.mxu0 }
 0x182   :  { %v1938_v46 = vadd.f32 %v1937_v17, %v1909_v48 }
 0x183   :  { %v2094_v44 = vpop.f32.mrf.mxu1  ;;  %2238 = vmatmul.bf16.vlgmr.msra.gmra.mxu2 %v5748_v28  ;;  %v5761_v28 = vld [vmem:[#allocation23_spill] sm:$0xff] }
 0x184   :  { %v5549_v45 = vadd.f32 %v1966_v18, %v1938_v46  ;;  %2296 = vmatmul.bf16.vlgmr.msra.gmra.mxu0 %v5749_v25  ;;  %v5759_v46 = vld [vmem:[#allocation6_spill] sm:$0xff]  ;;  %v5762_v25 = vld [vmem:[#allocation7_spill] sm:$0xff] }
 0x186   :  { %5747 = vst [vmem:[#allocation2_spill] sm:$0xff] %v5549_v45  ;;  %2267 = vmatmul.bf16.vlgmr.msra.gmra.mxu3 %v5750_v59  ;;  %3394 = vmatmul.msk.bf16.vlgmr.msra.gmra.mxu1 %vm1579_vm0, %v5752_v6  ;;  %v2007_v15 = vpop.f32.mrf.mxu2  ;;  %v1989_v59 = vadd.f32 %v5515_v5, %v5762_v25 }
 0x187   :  { %v2008_v20 = vadd.f32 %v2007_v15, %v1979_v53 }
 0x189   :  { %v2036_v57 = vpop.f32.mrf.mxu3  ;;  %v2067_v55 = vpop.f32.mrf.mxu0 }
 0x18a   :  { %v2037_v56 = vadd.f32 %v2036_v57, %v2008_v20 }
 0x18b   :  { %v2096_v50 = vpop.f32.mrf.mxu1 }
 0x18c   :  { %v2066_v43 = vadd.f32 %v2065_v30, %v2037_v56 }
 0x18e   :  { %v5560_v1 = vadd.f32 %v2094_v44, %v2066_v43  ;;  %v2009_v14 = vpop.f32.mrf.mxu2  ;;  %v5760_v44 = vld [vmem:[#allocation25_spill] sm:$0xff] }
 0x18f   :  { %v2010_v11 = vadd.f32 %v2009_v14, %v1981_v61 }
 0x191   :  { %v2038_v40 = vpop.f32.mrf.mxu3  ;;  %v2070_v58 = vpop.f32.mrf.mxu0 }
 0x192   :  { %v2039_v60 = vadd.f32 %v2038_v40, %v2010_v11 }
 0x193   :  { %v2099_v54 = vpop.f32.mrf.mxu1  ;;  %2243 = vmatmul.bf16.gmra.mxu2 %v5754_v9 }
 0x194   :  { %v2068_v21 = vadd.f32 %v2067_v55, %v2039_v60  ;;  %2301 = vmatmul.bf16.gmra.mxu0 %v4944_v7  ;;  %v1986_v7 = vadd.f32 %v5486_v51, %v5758_v4 }
 0x196   :  { %2272 = vmatmul.bf16.gmra.mxu3 %v5755_v23  ;;  %3395 = vmatmul.msk.bf16.gmra.mxu1 %vm1579_vm0, %v5757_v37  ;;  %v5569_v22 = vadd.f32 %v2096_v50, %v2068_v21  ;;  %v2012_v13 = vpop.f32.mrf.mxu2  ;;  %v5764_v50 = vld [vmem:[#allocation10_spill] sm:$0xff]  ;;  %v5766_v21 = vld [vmem:[#allocation16_spill] sm:$0xff] }
 0x197   :  { %v2013_v38 = vadd.f32 %v2012_v13, %v1984_v42  ;;  %v1991_v43 = vadd.f32 %v5530_v33, %v5764_v50  ;;  %v1994_v9 = vadd.f32 %v5535_v24, %v5766_v21 }
 0x199   :  { %v2041_v32 = vpop.f32.mrf.mxu3  ;;  %v2072_v49 = vpop.f32.mrf.mxu0 }
 0x19a   :  { %v2042_v34 = vadd.f32 %v2041_v32, %v2013_v38 }
 0x19b   :  { %v2101_v35 = vpop.f32.mrf.mxu1 }
 0x19c   :  { %v2071_v36 = vadd.f32 %v2070_v58, %v2042_v34 }
 0x19e   :  { %v5573_v19 = vadd.f32 %v2099_v54, %v2071_v36  ;;  %v2014_v18 = vpop.f32.mrf.mxu2  ;;  %v5765_v54 = vld [vmem:[#allocation14_spill] sm:$0xff] }
 0x19f   :  { %v2015_v3 = vadd.f32 %v2014_v18, %v1986_v7 }
 0x1a1   :  { %v2043_v31 = vpop.f32.mrf.mxu3  ;;  %v2075_v47 = vpop.f32.mrf.mxu0 }
 0x1a2   :  { %v2044_v48 = vadd.f32 %v2043_v31, %v2015_v3 }
 0x1a3   :  { %v2104_v17 = vpop.f32.mrf.mxu1  ;;  %2248 = vmatmul.bf16.gmra.mxu2 %v5759_v46 }
 0x1a4   :  { %v2073_v30 = vadd.f32 %v2072_v49, %v2044_v48  ;;  %2306 = vmatmul.bf16.gmra.mxu0 %v5760_v44  ;;  %v5767_v49 = vld [vmem:[#allocation17_spill] sm:$0xff] }
 0x1a6   :  { %2277 = vmatmul.bf16.gmra.mxu3 %v5761_v28  ;;  %3396 = vmatmul.msk.bf16.gmra.mxu1 %vm1579_vm0, %v5763_v0  ;;  %v5582_v51 = vadd.f32 %v2101_v35, %v2073_v30  ;;  %v2017_v53 = vpop.f32.mrf.mxu2 }
 0x1a7   :  { %v2018_v6 = vadd.f32 %v2017_v53, %v1989_v59 }
 0x1a9   :  { %v2046_v15 = vpop.f32.mrf.mxu3  ;;  %v2077_v20 = vpop.f32.mrf.mxu0 }
 0x1aa   :  { %v2047_v57 = vadd.f32 %v2046_v15, %v2018_v6 }
 0x1ab   :  { %v2106_v55 = vpop.f32.mrf.mxu1 }
 0x1ac   :  { %v2076_v56 = vadd.f32 %v2075_v47, %v2047_v57 }
 0x1ae   :  { %v5586_v27 = vadd.f32 %v2104_v17, %v2076_v56  ;;  %v2019_v61 = vpop.f32.mrf.mxu2 }
 0x1af   :  { %v2020_v14 = vadd.f32 %v2019_v61, %v1991_v43 }
 0x1b1   :  { %v2048_v5 = vpop.f32.mrf.mxu3  ;;  %v2080_v11 = vpop.f32.mrf.mxu0 }
 0x1b2   :  { %v2049_v40 = vadd.f32 %v2048_v5, %v2020_v14 }
 0x1b3   :  { %v2109_v58 = vpop.f32.mrf.mxu1  ;;  %2253 = vmatmul.bf16.gmra.mxu2 %v5765_v54 }
 0x1b4   :  { %v2078_v60 = vadd.f32 %v2077_v20, %v2049_v40  ;;  %2311 = vmatmul.bf16.gmra.mxu0 %v5110_v41  ;;  %v1996_v41 = vadd.f32 %v5544_v8, %v5767_v49 }
 0x1b6   :  { %2282 = vmatmul.bf16.gmra.mxu3 %v5106_v29  ;;  %3397 = vmatmul.msk.bf16.gmra.mxu1 %vm1579_vm0, %v5108_v63  ;;  %v5595_v33 = vadd.f32 %v2106_v55, %v2078_v60  ;;  %v2022_v23 = vpop.f32.mrf.mxu2 }
 0x1b7   :  { %v2023_v16 = vadd.f32 %v2022_v23, %v1994_v9 }
 0x1b9   :  { %v2051_v42 = vpop.f32.mrf.mxu3  ;;  %v2082_v37 = vpop.f32.mrf.mxu0 }
 0x1ba   :  { %v2052_v13 = vadd.f32 %v2051_v42, %v2023_v16 }
 0x1bb   :  { %v2111_v38 = vpop.f32.mrf.mxu1 }
 0x1bc   :  { %v2081_v32 = vadd.f32 %v2080_v11, %v2052_v13 }
 0x1be   :  { %v5599_v34 = vadd.f32 %v2109_v58, %v2081_v32  ;;  %v2024_v29 = vpop.f32.mrf.mxu2 }
 0x1bf   :  { %v2025_v35 = vadd.f32 %v2024_v29, %v1996_v41 }
 0x1c1   :  { %v2053_v24 = vpop.f32.mrf.mxu3  ;;  %v2181_v36 = vpop.f32.mrf.mxu0 }
 0x1c2   :  { %v2054_v4 = vadd.f32 %v2053_v24, %v2025_v35 }
 0x1c3   :  { %v2210_v63 = vpop.f32.mrf.mxu1 }
 0x1c4   :  { %v2083_v7 = vadd.f32 %v2082_v37, %v2054_v4 }
 0x1c6   :  { %v5601_v18 = vadd.f32 %v2111_v38, %v2083_v7  ;;  %v2123_v3 = vpop.f32.mrf.mxu2 }
 0x1c7   :  { %v2124_v58 = vadd.f32 %v2123_v3, %v5560_v1 }
 0x1c9   :  { %v2152_v31 = vpop.f32.mrf.mxu3  ;;  %v2183_v47 = vpop.f32.mrf.mxu0 }
 0x1ca   :  { %v2153_v54 = vadd.f32 %v2152_v31, %v2124_v58 }
 0x1cb   :  { %v2212_v48 = vpop.f32.mrf.mxu1 }
 0x1cc   :  { %v2182_v16 = vadd.f32 %v2181_v36, %v2153_v54  ;;  %v2346_v36 = vmax.f32 %v5432_v62, 0.0  ;;  %v2348_v62 = vmax.f32 %v5455_v12, 0.0 }
 0x1ce   :  { %v2125_v17 = vpop.f32.mrf.mxu2  ;;  %v2211_v38 = vadd.f32 %v2210_v63, %v2182_v16 }
 0x1cf   :  { %v2126_v42 = vadd.f32 %v2125_v17, %v5569_v22 }
 0x1d1   :  { %v2154_v30 = vpop.f32.mrf.mxu3  ;;  %v2186_v46 = vpop.f32.mrf.mxu0 }
 0x1d2   :  { %v2155_v13 = vadd.f32 %v2154_v30, %v2126_v42 }
 0x1d3   :  { %v2215_v44 = vpop.f32.mrf.mxu1 }
 0x1d4   :  { %v2184_v35 = vadd.f32 %v2183_v47, %v2155_v13 }
 0x1d6   :  { %v2128_v8 = vpop.f32.mrf.mxu2  ;;  %v2213_v58 = vadd.f32 %v2212_v48, %v2184_v35 }
 0x1d7   :  { %v2129_v1 = vadd.f32 %v2128_v8, %v5573_v19 }
 0x1d9   :  { %v2157_v28 = vpop.f32.mrf.mxu3  ;;  %v2188_v25 = vpop.f32.mrf.mxu0 }
 0x1da   :  { %v2158_v3 = vadd.f32 %v2157_v28, %v2129_v1  ;;  %v2350_v1 = vmax.f32 %v5488_v26, 0.0 }
 0x1db   :  { %v5603_v59 = vpop.f32.mrf.mxu1 }
 0x1dc   :  { %v2187_v54 = vadd.f32 %v2186_v46, %v2158_v3 }
 0x1de   :  { %v2130_v0 = vpop.f32.mrf.mxu2  ;;  %v2216_v28 = vadd.f32 %v2215_v44, %v2187_v54 }
 0x1df   :  { %v2131_v16 = vadd.f32 %v2130_v0, %v5582_v51 }
 0x1e1   :  { %v2159_v53 = vpop.f32.mrf.mxu3  ;;  %v5605_v6 = vpop.f32.mrf.mxu0 }
 0x1e2   :  { %v2160_v8 = vadd.f32 %v2159_v53, %v2131_v16 }
 0x1e3   :  { %v5607_v15 = vpop.f32.mrf.mxu1 }
 0x1e4   :  { %v2189_v46 = vadd.f32 %v2188_v25, %v2160_v8 }
 0x1e6   :  { %v2133_v20 = vpop.f32.mrf.mxu2  ;;  %v2218_v12 = vadd.f32 %v5603_v59, %v2189_v46 }
 0x1e7   :  { %v2134_v51 = vadd.f32 %v2133_v20, %v5586_v27 }
 0x1e9   :  { %v5609_v57 = vpop.f32.mrf.mxu3  ;;  %v5611_v55 = vpop.f32.mrf.mxu0 }
 0x1ea   :  { %v2163_v44 = vadd.f32 %v5609_v57, %v2134_v51 }
 0x1eb   :  { %v5613_v56 = vpop.f32.mrf.mxu1 }
 0x1ec   :  { %v2192_v20 = vadd.f32 %v5605_v6, %v2163_v44  ;;  %v2352_v6 = vmax.f32 %v5523_v10, 0.0 }
 0x1ee   :  { %v5615_v50 = vpop.f32.mrf.mxu2  ;;  %v2221_v26 = vadd.f32 %v5607_v15, %v2192_v20  ;;  %v5768_v20 = vld [vmem:[#allocation2_spill] sm:$0xff] }
 0x1f1   :  { %v5617_v43 = vpop.f32.mrf.mxu3  ;;  %v5619_v61 = vpop.f32.mrf.mxu0 }
 0x1f3   :  { %v5621_v14 = vpop.f32.mrf.mxu1 }
 0x1f6   :  { %v5623_v5 = vpop.f32.mrf.mxu2 }
 0x1f9   :  { %v5625_v11 = vpop.f32.mrf.mxu3  ;;  %v5627_v40 = vpop.f32.mrf.mxu0 }
 0x1fb   :  { %v5630_v60 = vpop.f32.mrf.mxu1 }
 0x1fe   :  { %v5632_v21 = vpop.f32.mrf.mxu2 }
 0x201   :  { %v5634_v9 = vpop.f32.mrf.mxu3  ;;  %v2297_v23 = vpop.f32.mrf.mxu0 }
 0x203   :  { %v2326_v37 = vpop.f32.mrf.mxu1 }
 0x206   :  { %v2239_v32 = vpop.f32.mrf.mxu2 }
 0x207   :  { %v2240_v49 = vadd.f32 %v2239_v32, %v2211_v38 }
 0x209   :  { %v2268_v41 = vpop.f32.mrf.mxu3  ;;  %v2299_v29 = vpop.f32.mrf.mxu0 }
 0x20a   :  { %v2269_v24 = vadd.f32 %v2268_v41, %v2240_v49 }
 0x20b   :  { %v2328_v4 = vpop.f32.mrf.mxu1 }
 0x20c   :  { %v2298_v7 = vadd.f32 %v2297_v23, %v2269_v24 }
 0x20e   :  { %v2327_v31 = vadd.f32 %v2326_v37, %v2298_v7  ;;  %v2241_v45 = vpop.f32.mrf.mxu2 }
 0x20f   :  { %v2242_v17 = vadd.f32 %v2241_v45, %v2213_v58 }
 0x210   :  { %v2347_v22 = vmax.f32 %v2327_v31, 0.0 }
 0x211   :  { %v2270_v30 = vpop.f32.mrf.mxu3  ;;  %v2302_v63 = vpop.f32.mrf.mxu0 }
 0x212   :  { %v2362_v42 = vpack.c.bf16 %v2347_v22, %v2346_v36  ;;  %v2271_v47 = vadd.f32 %v2270_v30, %v2242_v17 }
 0x213   :  { %v2331_v13 = vpop.f32.mrf.mxu1 }
 0x214   :  { %2370 = vst [vmem:[%s5694_s3] sm:$0xff] %v2362_v42  ;;  %v2300_v19 = vadd.f32 %v2299_v29, %v2271_v47 }
 0x216   :  { %v2329_v48 = vadd.f32 %v2328_v4, %v2300_v19  ;;  %v2244_v23 = vpop.f32.mrf.mxu2  ;;  %v2136_v4 = vadd.f32 %v5615_v50, %v5595_v33  ;;  %v2354_v19 = vmax.f32 %v5532_v52, 0.0 }
 0x217   :  { %v2245_v37 = vadd.f32 %v2244_v23, %v2216_v28  ;;  %v2141_v28 = vadd.f32 %v5632_v21, %v5601_v18 }
 0x218   :  { %v2349_v45 = vmax.f32 %v2329_v48, 0.0  ;;  %v2165_v59 = vadd.f32 %v5617_v43, %v2136_v4  ;;  %v2360_v4 = vmax.f32 %v5768_v20, 0.0 }
 0x219   :  { %v2273_v38 = vpop.f32.mrf.mxu3  ;;  %v2304_v49 = vpop.f32.mrf.mxu0 }
 0x21a   :  { %v2363_v0 = vpack.c.bf16 %v2349_v45, %v2348_v62  ;;  %v2274_v32 = vadd.f32 %v2273_v38, %v2245_v37  ;;  %v2194_v50 = vadd.f32 %v5611_v55, %v2165_v59  ;;  %v2356_v38 = vmax.f32 %v5537_v39, 0.0 }
 0x21b   :  { %v2333_v53 = vpop.f32.mrf.mxu1  ;;  %v2358_v39 = vmax.f32 %v5546_v2, 0.0 }
 0x21c   :  { %2371 = vst [vmem:[%s5694_s3 + $0x8] sm:$0xff] %v2363_v0  ;;  %v2303_v41 = vadd.f32 %v2302_v63, %v2274_v32  ;;  %v2139_v63 = vadd.f32 %v5623_v5, %v5599_v34  ;;  %v2223_v10 = vadd.f32 %v5613_v56, %v2194_v50 }
 0x21e   :  { %v2332_v29 = vadd.f32 %v2331_v13, %v2303_v41  ;;  %v2246_v35 = vpop.f32.mrf.mxu2  ;;  %v2168_v15 = vadd.f32 %v5625_v11, %v2139_v63  ;;  %v2170_v11 = vadd.f32 %v5634_v9, %v2141_v28 }
 0x21f   :  { %v2247_v24 = vadd.f32 %v2246_v35, %v2218_v12 }
 0x220   :  { %v2351_v25 = vmax.f32 %v2332_v29, 0.0  ;;  %v2197_v5 = vadd.f32 %v5619_v61, %v2168_v15  ;;  %v2199_v18 = vadd.f32 %v5627_v40, %v2170_v11 }
 0x221   :  { %v2275_v27 = vpop.f32.mrf.mxu3  ;;  %v2307_v31 = vpop.f32.mrf.mxu0 }
 0x222   :  { %v2364_v7 = vpack.c.bf16 %v2351_v25, %v2350_v1  ;;  %v2276_v3 = vadd.f32 %v2275_v27, %v2247_v24  ;;  %v2226_v52 = vadd.f32 %v5621_v14, %v2197_v5  ;;  %v2228_v14 = vadd.f32 %v5630_v60, %v2199_v18 }
 0x223   :  { %v2336_v36 = vpop.f32.mrf.mxu1 }
 0x224   :  { %2372 = vst [vmem:[%s5694_s3 + $0x10] sm:$0xff] %v2364_v7  ;;  %v2305_v57 = vadd.f32 %v2304_v49, %v2276_v3 }
 0x226   :  { %v2334_v58 = vadd.f32 %v2333_v53, %v2305_v57  ;;  %v2249_v22 = vpop.f32.mrf.mxu2 }
 0x227   :  { %v2250_v30 = vadd.f32 %v2249_v22, %v2221_v26 }
 0x228   :  { %v2353_v17 = vmax.f32 %v2334_v58, 0.0 }
 0x229   :  { %v2278_v33 = vpop.f32.mrf.mxu3  ;;  %v2309_v47 = vpop.f32.mrf.mxu0 }
 0x22a   :  { %v2365_v54 = vpack.c.bf16 %v2353_v17, %v2352_v6  ;;  %v2279_v16 = vadd.f32 %v2278_v33, %v2250_v30 }
 0x22b   :  { %v2338_v34 = vpop.f32.mrf.mxu1 }
 0x22c   :  { %2373 = vst [vmem:[%s5694_s3 + $0x18] sm:$0xff] %v2365_v54  ;;  %v2308_v43 = vadd.f32 %v2307_v31, %v2279_v16 }
 0x22e   :  { %v2337_v42 = vadd.f32 %v2336_v36, %v2308_v43  ;;  %v2251_v13 = vpop.f32.mrf.mxu2 }
 0x22f   :  { %v2252_v8 = vadd.f32 %v2251_v13, %v2223_v10 }
 0x230   :  { %v2355_v55 = vmax.f32 %v2337_v42, 0.0 }
 0x231   :  { %v2280_v48 = vpop.f32.mrf.mxu3  ;;  %v2312_v0 = vpop.f32.mrf.mxu0 }
 0x232   :  { %v2366_v23 = vpack.c.bf16 %v2355_v55, %v2354_v19  ;;  %v2281_v62 = vadd.f32 %v2280_v48, %v2252_v8 }
 0x233   :  { %v2341_v49 = vpop.f32.mrf.mxu1 }
 0x234   :  { %2374 = vst [vmem:[%s5694_s3 + $0x20] sm:$0xff] %v2366_v23  ;;  %v2310_v56 = vadd.f32 %v2309_v47, %v2281_v62 }
 0x236   :  { %v2339_v45 = vadd.f32 %v2338_v34, %v2310_v56  ;;  %v2254_v37 = vpop.f32.mrf.mxu2 }
 0x237   :  { %v2255_v61 = vadd.f32 %v2254_v37, %v2226_v52 }
 0x238   :  { %v2357_v46 = vmax.f32 %v2339_v45, 0.0 }
 0x239   :  { %v2283_v51 = vpop.f32.mrf.mxu3  ;;  %v2314_v40 = vpop.f32.mrf.mxu0 }
 0x23a   :  { %v2367_v21 = vpack.c.bf16 %v2357_v46, %v2356_v38  ;;  %v2284_v32 = vadd.f32 %v2283_v51, %v2255_v61 }
 0x23b   :  { %v2343_v24 = vpop.f32.mrf.mxu1 }
 0x23c   :  { %2375 = vst [vmem:[%s5694_s3 + $0x28] sm:$0xff] %v2367_v21  ;;  %v2313_v9 = vadd.f32 %v2312_v0, %v2284_v32 }
 0x23e   :  { %v2342_v41 = vadd.f32 %v2341_v49, %v2313_v9  ;;  %v2256_v53 = vpop.f32.mrf.mxu2 }
 0x23f   :  { %v2257_v29 = vadd.f32 %v2256_v53, %v2228_v14 }
 0x240   :  { %v2359_v44 = vmax.f32 %v2342_v41, 0.0 }
 0x241   :  { %v2285_v12 = vpop.f32.mrf.mxu3 }
 0x242   :  { %v2368_v35 = vpack.c.bf16 %v2359_v44, %v2358_v39  ;;  %v2286_v1 = vadd.f32 %v2285_v12, %v2257_v29 }
 0x244   :  { %2376 = vst [vmem:[%s5694_s3 + $0x30] sm:$0xff] %v2368_v35  ;;  %v2315_v25 = vadd.f32 %v2314_v40, %v2286_v1 }
 0x246   :  { %v2344_v27 = vadd.f32 %v2343_v24, %v2315_v25 }
 0x248   :  { %v2361_v7 = vmax.f32 %v2344_v27, 0.0 }
 0x24a   :  { %v2369_v60 = vpack.c.bf16 %v2361_v7, %v2360_v4 }
 0x24c   :  { %2377 = vst [vmem:[%s5694_s3 + $0x38] sm:$0xff] %v2369_v60 }

// kernel: net_view_forward.14
= control target key start
LH: loop header
LB: loop body
LE: loop exit
PB: predicated region body
PF: predicated region fallthrough
CT: control target
= control target key end

     0   :  { %vm469_vm0 = vcmask 523264   ;;  %vm607_vm1 = vcmask 1041408   ;;  %s1468_s0 = inlined_call_operand.vmem [shape: bf16[576,256], index: 0, kind: input, shape index: {}]   ;;  %s1469_s1 = inlined_call_operand.vmem [shape: bf16[4,576], index: 1, kind: input, shape index: {}]   ;;  %s1470_s2 = inlined_call_operand.vmem [shape: f32[4,1], index: 2, kind: input, shape index: {}]   ;;  %s1471_s3 = inlined_call_operand.vmem [shape: bf16[4,256], index: 3, kind: output, shape index: {}]  }
   0x1   :  { %v675_v0 = vld [vmem:[%s1468_s0 + $0x70] sm:$0xf]  ;;  %v922_v1 = vld [vmem:[%s1468_s0 + $0x74] sm:$0xf0]  ;;  %v667_v11 = vld [vmem:[%s1468_s0 + $0x60] sm:$0xf] }
   0x2   :  { %v739_v2 = vld [vmem:[%s1468_s0 + $0xf0] sm:$0xf]  ;;  %v676_v3 = vor.u32 %v922_v1, %v675_v0  ;;  %v938_v4 = vld [vmem:[%s1468_s0 + $0xf4] sm:$0xf0]  ;;  %v920_v13 = vld [vmem:[%s1468_s0 + $0x64] sm:$0xf0] }
   0x3   :  { %v803_v5 = vld [vmem:[%s1468_s0 + $0x170] sm:$0xf]  ;;  %v954_v6 = vld [vmem:[%s1468_s0 + $0x174] sm:$0xf0]  ;;  %v740_v7 = vor.u32 %v938_v4, %v739_v2  ;;  %v731_v14 = vld [vmem:[%s1468_s0 + $0xe0] sm:$0xf]  ;;  %v668_v16 = vor.u32 %v920_v13, %v667_v11 }
   0x4   :  { %v804_v8 = vor.u32 %v954_v6, %v803_v5  ;;  %v867_v9 = vld [vmem:[%s1468_s0 + $0x1f0] sm:$0xf]  ;;  %v970_v10 = vld [vmem:[%s1468_s0 + $0x1f4] sm:$0xf0]  ;;  %472 = vmatpush.bf16.msra.mxu0 %v676_v3  ;;  %v936_v15 = vld [vmem:[%s1468_s0 + $0xe4] sm:$0xf0] }
   0x5   :  { %v868_v12 = vor.u32 %v970_v10, %v867_v9  ;;  %485 = vmatpush.bf16.msra.mxu1 %v740_v7  ;;  %v732_v17 = vor.u32 %v936_v15, %v731_v14  ;;  %v795_v18 = vld [vmem:[%s1468_s0 + $0x160] sm:$0xf]  ;;  %v952_v19 = vld [vmem:[%s1468_s0 + $0x164] sm:$0xf0]  ;;  %v659_v23 = vld [vmem:[%s1468_s0 + $0x50] sm:$0xf] }
   0x6   :  { %498 = vmatpush.bf16.msra.mxu2 %v804_v8  ;;  %v859_v20 = vld [vmem:[%s1468_s0 + $0x1e0] sm:$0xf]  ;;  %v796_v21 = vor.u32 %v952_v19, %v795_v18  ;;  %v968_v22 = vld [vmem:[%s1468_s0 + $0x1e4] sm:$0xf0]  ;;  %v918_v24 = vld [vmem:[%s1468_s0 + $0x54] sm:$0xf0] }
   0x7   :  { %511 = vmatpush.bf16.msra.mxu3 %v868_v12  ;;  %v860_v25 = vor.u32 %v968_v22, %v859_v20  ;;  %v723_v26 = vld [vmem:[%s1468_s0 + $0xd0] sm:$0xf]  ;;  %v934_v27 = vld [vmem:[%s1468_s0 + $0xd4] sm:$0xf0]  ;;  %v660_v29 = vor.u32 %v918_v24, %v659_v23  ;;  %v651_v35 = vld [vmem:[%s1468_s0 + $0x40] sm:$0xf] }
   0x8   :  { %v787_v28 = vld [vmem:[%s1468_s0 + $0x150] sm:$0xf]  ;;  %473 = vmatpush.bf16.msra.mxu0 %v668_v16  ;;  %v950_v30 = vld [vmem:[%s1468_s0 + $0x154] sm:$0xf0]  ;;  %v724_v33 = vor.u32 %v934_v27, %v723_v26  ;;  %v916_v36 = vld [vmem:[%s1468_s0 + $0x44] sm:$0xf0] }
   0x9   :  { %v851_v31 = vld [vmem:[%s1468_s0 + $0x1d0] sm:$0xf]  ;;  %v966_v32 = vld [vmem:[%s1468_s0 + $0x1d4] sm:$0xf0]  ;;  %486 = vmatpush.bf16.msra.mxu1 %v732_v17  ;;  %v788_v34 = vor.u32 %v950_v30, %v787_v28  ;;  %v715_v37 = vld [vmem:[%s1468_s0 + $0xc0] sm:$0xf]  ;;  %v652_v44 = vor.u32 %v916_v36, %v651_v35 }
   0xa   :  { %499 = vmatpush.bf16.msra.mxu2 %v796_v21  ;;  %v852_v38 = vor.u32 %v966_v32, %v851_v31  ;;  %v932_v39 = vld [vmem:[%s1468_s0 + $0xc4] sm:$0xf0]  ;;  %v779_v40 = vld [vmem:[%s1468_s0 + $0x140] sm:$0xf]  ;;  %v643_v47 = vld [vmem:[%s1468_s0 + $0x30] sm:$0xf] }
   0xb   :  { %512 = vmatpush.bf16.msra.mxu3 %v860_v25  ;;  %v948_v41 = vld [vmem:[%s1468_s0 + $0x144] sm:$0xf0]  ;;  %v843_v42 = vld [vmem:[%s1468_s0 + $0x1c0] sm:$0xf]  ;;  %v716_v45 = vor.u32 %v932_v39, %v715_v37  ;;  %v914_v48 = vld [vmem:[%s1468_s0 + $0x34] sm:$0xf0] }
   0xc   :  { %v964_v43 = vld [vmem:[%s1468_s0 + $0x1c4] sm:$0xf0]  ;;  %474 = vmatpush.bf16.msra.mxu0 %v660_v29  ;;  %v780_v46 = vor.u32 %v948_v41, %v779_v40  ;;  %v707_v49 = vld [vmem:[%s1468_s0 + $0xb0] sm:$0xf]  ;;  %v930_v51 = vld [vmem:[%s1468_s0 + $0xb4] sm:$0xf0]  ;;  %v644_v56 = vor.u32 %v914_v48, %v643_v47 }
   0xd   :  { %487 = vmatpush.bf16.msra.mxu1 %v724_v33  ;;  %v844_v50 = vor.u32 %v964_v43, %v843_v42  ;;  %v771_v52 = vld [vmem:[%s1468_s0 + $0x130] sm:$0xf]  ;;  %v946_v53 = vld [vmem:[%s1468_s0 + $0x134] sm:$0xf0]  ;;  %v708_v57 = vor.u32 %v930_v51, %v707_v49  ;;  %v635_v59 = vld [vmem:[%s1468_s0 + $0x20] sm:$0xf] }
   0xe   :  { %500 = vmatpush.bf16.msra.mxu2 %v788_v34  ;;  %v835_v54 = vld [vmem:[%s1468_s0 + $0x1b0] sm:$0xf]  ;;  %v962_v55 = vld [vmem:[%s1468_s0 + $0x1b4] sm:$0xf0]  ;;  %v772_v58 = vor.u32 %v946_v53, %v771_v52  ;;  %v912_v60 = vld [vmem:[%s1468_s0 + $0x24] sm:$0xf0] }
   0xf   :  { %513 = vmatpush.bf16.msra.mxu3 %v852_v38  ;;  %v699_v61 = vld [vmem:[%s1468_s0 + $0xa0] sm:$0xf]  ;;  %v836_v62 = vor.u32 %v962_v55, %v835_v54  ;;  %v928_v63 = vld [vmem:[%s1468_s0 + $0xa4] sm:$0xf0]  ;;  %v636_v4 = vor.u32 %v912_v60, %v635_v59  ;;  %v627_v5 = vld [vmem:[%s1468_s0 + $0x10] sm:$0xf] }
  0x10   :  { %475 = vmatpush.bf16.msra.mxu0 %v652_v44  ;;  %v763_v0 = vld [vmem:[%s1468_s0 + $0x120] sm:$0xf]  ;;  %v944_v1 = vld [vmem:[%s1468_s0 + $0x124] sm:$0xf0]  ;;  %v700_v6 = vor.u32 %v928_v63, %v699_v61  ;;  %v910_v8 = vld [vmem:[%s1468_s0 + $0x14] sm:$0xf0] }
  0x11   :  { %488 = vmatpush.bf16.msra.mxu1 %v716_v45  ;;  %v827_v2 = vld [vmem:[%s1468_s0 + $0x1a0] sm:$0xf]  ;;  %v960_v3 = vld [vmem:[%s1468_s0 + $0x1a4] sm:$0xf0]  ;;  %v764_v7 = vor.u32 %v944_v1, %v763_v0  ;;  %v691_v9 = vld [vmem:[%s1468_s0 + $0x90] sm:$0xf]  ;;  %v628_v18 = vor.u32 %v910_v8, %v627_v5 }
  0x12   :  { %501 = vmatpush.bf16.msra.mxu2 %v780_v46  ;;  %v926_v10 = vld [vmem:[%s1468_s0 + $0x94] sm:$0xf0]  ;;  %v828_v11 = vor.u32 %v960_v3, %v827_v2  ;;  %v755_v12 = vld [vmem:[%s1468_s0 + $0x110] sm:$0xf]  ;;  %v619_v16 = vld [vmem:[%s1468_s0] sm:$0xf] }
  0x13   :  { %514 = vmatpush.bf16.msra.mxu3 %v844_v50  ;;  %v942_v13 = vld [vmem:[%s1468_s0 + $0x114] sm:$0xf0]  ;;  %v819_v14 = vld [vmem:[%s1468_s0 + $0x190] sm:$0xf]  ;;  %v908_v17 = vld [vmem:[%s1468_s0 + $0x4] sm:$0xf0]  ;;  %v692_v22 = vor.u32 %v926_v10, %v691_v9 }
  0x14   :  { %476 = vmatpush.bf16.msra.mxu0 %v644_v56  ;;  %v958_v15 = vld [vmem:[%s1468_s0 + $0x194] sm:$0xf0]  ;;  %v683_v19 = vld [vmem:[%s1468_s0 + $0x80] sm:$0xf]  ;;  %v924_v20 = vld [vmem:[%s1468_s0 + $0x84] sm:$0xf0]  ;;  %v756_v23 = vor.u32 %v942_v13, %v755_v12  ;;  %v620_v34 = vor.u32 %v908_v17, %v619_v16 }
  0x15   :  { %489 = vmatpush.bf16.msra.mxu1 %v708_v57  ;;  %v747_v21 = vld [vmem:[%s1468_s0 + $0x100] sm:$0xf]  ;;  %v940_v24 = vld [vmem:[%s1468_s0 + $0x104] sm:$0xf0]  ;;  %v820_v27 = vor.u32 %v958_v15, %v819_v14  ;;  %v899_v28 = vld [vmem:[%s1468_s0 + $0x230] sm:$0xf]  ;;  %v684_v37 = vor.u32 %v924_v20, %v683_v19 }
  0x16   :  { %502 = vmatpush.bf16.msra.mxu2 %v772_v58  ;;  %v811_v25 = vld [vmem:[%s1468_s0 + $0x180] sm:$0xf]  ;;  %v956_v26 = vld [vmem:[%s1468_s0 + $0x184] sm:$0xf0]  ;;  %v978_v29 = vld [vmem:[%s1468_s0 + $0x234] sm:$0xf0]  ;;  %v748_v38 = vor.u32 %v940_v24, %v747_v21 }
  0x17   :  { %515 = vmatpush.bf16.msra.mxu3 %v836_v62  ;;  %v921_v30 = vld [vmem:[%s1468_s0 + $0x74] sm:$0xf]  ;;  %v677_v31 = vld [vmem:[%s1468_s0 + $0x78] sm:$0xf0]  ;;  %v15_v33 = vld [vmem:[%s1469_s1] sm:$0xff]  ;;  %v812_v41 = vor.u32 %v956_v26, %v811_v25  ;;  %v900_v42 = vor.u32 %v978_v29, %v899_v28 }
  0x18   :  { %477 = vmatpush.bf16.msra.mxu0 %v636_v4  ;;  %v937_v32 = vld [vmem:[%s1468_s0 + $0xf4] sm:$0xf]  ;;  %v741_v35 = vld [vmem:[%s1468_s0 + $0xf8] sm:$0xf0]  ;;  %v16_v36 = vld [vmem:[%s1469_s1 + $0x8] sm:$0x3]  ;;  %v680_v44 = vor.u32 %v921_v30, %v677_v31 }
  0x19   :  { %490 = vmatpush.bf16.msra.mxu1 %v700_v6  ;;  %96 = vst [vmem:[#allocation1] ss:$4 sm:$0xff] %v15_v33  ;;  %v953_v39 = vld [vmem:[%s1468_s0 + $0x174] sm:$0xf]  ;;  %v805_v40 = vld [vmem:[%s1468_s0 + $0x178] sm:$0xf0]  ;;  %v744_v45 = vor.u32 %v937_v32, %v741_v35 }
  0x1a   :  { %503 = vmatpush.bf16.msra.mxu2 %v764_v7  ;;  %99 = vst [vmem:[#allocation1 + $0x20] ss:$4 sm:$0xff] %v16_v36  ;;  %v891_v43 = vld [vmem:[%s1468_s0 + $0x220] sm:$0xf]  ;;  %v976_v46 = vld [vmem:[%s1468_s0 + $0x224] sm:$0xf0]  ;;  %v808_v49 = vor.u32 %v953_v39, %v805_v40 }
  0x1b   :  { %516 = vmatpush.bf16.msra.mxu3 %v828_v11  ;;  %v919_v47 = vld [vmem:[%s1468_s0 + $0x64] sm:$0xf]  ;;  %v669_v48 = vld [vmem:[%s1468_s0 + $0x68] sm:$0xf0]  ;;  %v883_v54 = vld [vmem:[%s1468_s0 + $0x210] sm:$0xf]  ;;  %v892_v56 = vor.u32 %v976_v46, %v891_v43 }
  0x1c   :  { %478 = vmatpush.bf16.msra.mxu0 %v628_v18  ;;  %v935_v50 = vld [vmem:[%s1468_s0 + $0xe4] sm:$0xf]  ;;  %v733_v51 = vld [vmem:[%s1468_s0 + $0xe8] sm:$0xf0]  ;;  %v974_v55 = vld [vmem:[%s1468_s0 + $0x214] sm:$0xf0]  ;;  %v672_v61 = vor.u32 %v919_v47, %v669_v48 }
  0x1d   :  { %491 = vmatpush.bf16.msra.mxu1 %v692_v22  ;;  %v951_v52 = vld [vmem:[%s1468_s0 + $0x164] sm:$0xf]  ;;  %v797_v53 = vld [vmem:[%s1468_s0 + $0x168] sm:$0xf0]  ;;  %v917_v57 = vld [vmem:[%s1468_s0 + $0x54] sm:$0xf]  ;;  %v736_v62 = vor.u32 %v935_v50, %v733_v51  ;;  %v884_v6 = vor.u32 %v974_v55, %v883_v54 }
  0x1e   :  { %504 = vmatpush.bf16.msra.mxu2 %v756_v23  ;;  %v661_v58 = vld [vmem:[%s1468_s0 + $0x58] sm:$0xf0]  ;;  %v933_v59 = vld [vmem:[%s1468_s0 + $0xd4] sm:$0xf]  ;;  %v800_v1 = vor.u32 %v951_v52, %v797_v53  ;;  %v875_v7 = vld [vmem:[%s1468_s0 + $0x200] sm:$0xf] }
  0x1f   :  { %517 = vmatpush.bf16.msra.mxu3 %v820_v27  ;;  %v725_v60 = vld [vmem:[%s1468_s0 + $0xd8] sm:$0xf0]  ;;  %v949_v4 = vld [vmem:[%s1468_s0 + $0x154] sm:$0xf]  ;;  %v664_v8 = vor.u32 %v917_v57, %v661_v58  ;;  %v972_v10 = vld [vmem:[%s1468_s0 + $0x204] sm:$0xf0] }
  0x20   :  { %479 = vmatpush.bf16.msra.mxu0 %v620_v34  ;;  %v1266_v63 = vld.sshfl [vmem:[#allocation1] sm:$0xff pattern:$0x73625140]  ;;  %v1268_v0 = vld.sshfl [vmem:[#allocation1 + $0x8] sm:$0xff pattern:$0x73625140]  ;;  %v728_v9 = vor.u32 %v933_v59, %v725_v60  ;;  %v876_v20 = vor.u32 %v972_v10, %v875_v7 }
  0x21   :  { %492 = vmatpush.bf16.msra.mxu1 %v684_v37  ;;  %v1271_v2 = vld.sshfl [vmem:[#allocation1 + $0x10] sm:$0xff pattern:$0x73625140]  ;;  %v1273_v3 = vld.sshfl [vmem:[#allocation1 + $0x18] sm:$0xff pattern:$0x73625140] }
  0x22   :  { %505 = vmatpush.bf16.msra.mxu2 %v748_v38  ;;  %v789_v5 = vld [vmem:[%s1468_s0 + $0x158] sm:$0xf0]  ;;  %v915_v11 = vld [vmem:[%s1468_s0 + $0x44] sm:$0xf]  ;;  %v653_v12 = vld [vmem:[%s1468_s0 + $0x48] sm:$0xf0] }
  0x23   :  { %518 = vmatpush.bf16.msra.mxu3 %v812_v41  ;;  %480 = vmatmul.bf16.vlgmr.msra.gmra.mxu0 %v1266_v63  ;;  %v792_v13 = vor.u32 %v949_v4, %v789_v5  ;;  %v931_v14 = vld [vmem:[%s1468_s0 + $0xc4] sm:$0xf]  ;;  %v717_v15 = vld [vmem:[%s1468_s0 + $0xc8] sm:$0xf0]  ;;  %v969_v18 = vld [vmem:[%s1468_s0 + $0x1f4] sm:$0xf]  ;;  %v656_v21 = vor.u32 %v915_v11, %v653_v12 }
  0x24   :  { %528 = vmatpush.bf16.msrb.mxu0 %v900_v42  ;;  %493 = vmatmul.bf16.vlgmr.msra.gmra.mxu1 %v1268_v0  ;;  %v947_v16 = vld [vmem:[%s1468_s0 + $0x144] sm:$0xf]  ;;  %v781_v17 = vld [vmem:[%s1468_s0 + $0x148] sm:$0xf0]  ;;  %v869_v19 = vld [vmem:[%s1468_s0 + $0x1f8] sm:$0xf0]  ;;  %v720_v22 = vor.u32 %v931_v14, %v717_v15 }
  0x25   :  { %537 = vmatpush.bf16.msrb.mxu1 %v680_v44  ;;  %506 = vmatmul.bf16.vlgmr.msra.gmra.mxu2 %v1271_v2  ;;  %v913_v23 = vld [vmem:[%s1468_s0 + $0x34] sm:$0xf]  ;;  %v645_v24 = vld [vmem:[%s1468_s0 + $0x38] sm:$0xf0]  ;;  %v89_v25 = vld [vmem:[%s1470_s2] sm:$0xf]  ;;  %v784_v26 = vor.u32 %v947_v16, %v781_v17  ;;  %v872_v27 = vor.u32 %v969_v18, %v869_v19 }
  0x26   :  { %550 = vmatpush.bf16.msrb.mxu2 %v744_v45  ;;  %519 = vmatmul.bf16.vlgmr.msra.gmra.mxu3 %v1273_v3  ;;  %v929_v28 = vld [vmem:[%s1468_s0 + $0xb4] sm:$0xf]  ;;  %v709_v29 = vld [vmem:[%s1468_s0 + $0xb8] sm:$0xf0]  ;;  %v981_v31 = vmov 0   ;;  %v648_v35 = vor.u32 %v913_v23, %v645_v24 }
  0x27   :  { %563 = vmatpush.bf16.msrb.mxu3 %v808_v49  ;;  %v945_v30 = vld [vmem:[%s1468_s0 + $0x134] sm:$0xf]  ;;  %980 = vset.pattern.permute.xlu0 %v981_v31  ;;  %v773_v32 = vld [vmem:[%s1468_s0 + $0x138] sm:$0xf0]  ;;  %v967_v33 = vld [vmem:[%s1468_s0 + $0x1e4] sm:$0xf]  ;;  %v712_v36 = vor.u32 %v929_v28, %v709_v29 }
  0x28   :  { %529 = vmatpush.bf16.msrb.mxu0 %v892_v56  ;;  %v861_v34 = vld [vmem:[%s1468_s0 + $0x1e8] sm:$0xf0]  ;;  %92 = vperm.xlu0 %980, %v89_v25   ;;  %v911_v37 = vld [vmem:[%s1468_s0 + $0x24] sm:$0xf]  ;;  %v776_v39 = vor.u32 %v945_v30, %v773_v32  ;;  %v965_v45 = vld [vmem:[%s1468_s0 + $0x1d4] sm:$0xf] }
  0x29   :  { %538 = vmatpush.bf16.msrb.mxu1 %v672_v61  ;;  %v637_v38 = vld [vmem:[%s1468_s0 + $0x28] sm:$0xf0]  ;;  %v864_v40 = vor.u32 %v967_v33, %v861_v34  ;;  %v927_v41 = vld [vmem:[%s1468_s0 + $0xa4] sm:$0xf]  ;;  %v853_v46 = vld [vmem:[%s1468_s0 + $0x1d8] sm:$0xf0] }
  0x2a   :  { %551 = vmatpush.bf16.msrb.mxu2 %v736_v62  ;;  %v701_v42 = vld [vmem:[%s1468_s0 + $0xa8] sm:$0xf0]  ;;  %v943_v43 = vld [vmem:[%s1468_s0 + $0x124] sm:$0xf]  ;;  %v640_v48 = vor.u32 %v911_v37, %v637_v38  ;;  %v909_v50 = vld [vmem:[%s1468_s0 + $0x14] sm:$0xf]  ;;  %v856_v53 = vor.u32 %v965_v45, %v853_v46 }
  0x2b   :  { %564 = vmatpush.bf16.msrb.mxu3 %v800_v1  ;;  %v765_v44 = vld [vmem:[%s1468_s0 + $0x128] sm:$0xf0]  ;;  %v1365_v47 = vld.sshfl [vmem:[#allocation1 + $0x20] sm:$0xff pattern:$0x73625140]  ;;  %v704_v49 = vor.u32 %v927_v41, %v701_v42 }
  0x2c   :  { %530 = vmatpush.bf16.msrb.mxu0 %v884_v6  ;;  %v629_v51 = vld [vmem:[%s1468_s0 + $0x18] sm:$0xf0]  ;;  %v768_v52 = vor.u32 %v943_v43, %v765_v44  ;;  %v925_v54 = vld [vmem:[%s1468_s0 + $0x94] sm:$0xf]  ;;  %v963_v58 = vld [vmem:[%s1468_s0 + $0x1c4] sm:$0xf] }
  0x2d   :  { %539 = vmatpush.bf16.msrb.mxu1 %v664_v8  ;;  %v693_v55 = vld [vmem:[%s1468_s0 + $0x98] sm:$0xf0]  ;;  %v941_v56 = vld [vmem:[%s1468_s0 + $0x114] sm:$0xf]  ;;  %v845_v59 = vld [vmem:[%s1468_s0 + $0x1c8] sm:$0xf0]  ;;  %v632_v60 = vor.u32 %v909_v50, %v629_v51 }
  0x2e   :  { %552 = vmatpush.bf16.msrb.mxu2 %v728_v9  ;;  %v757_v57 = vld [vmem:[%s1468_s0 + $0x118] sm:$0xf0]  ;;  %v696_v61 = vor.u32 %v925_v54, %v693_v55  ;;  %v907_v62 = vld [vmem:[%s1468_s0 + $0x4] sm:$0xf]  ;;  %v621_v1 = vld [vmem:[%s1468_s0 + $0x8] sm:$0xf0]  ;;  %v848_v5 = vor.u32 %v963_v58, %v845_v59 }
  0x2f   :  { %565 = vmatpush.bf16.msrb.mxu3 %v792_v13  ;;  %v760_v4 = vor.u32 %v941_v56, %v757_v57  ;;  %v923_v6 = vld [vmem:[%s1468_s0 + $0x84] sm:$0xf]  ;;  %v685_v7 = vld [vmem:[%s1468_s0 + $0x88] sm:$0xf0]  ;;  %v961_v10 = vld [vmem:[%s1468_s0 + $0x1b4] sm:$0xf]  ;;  %v624_v14 = vor.u32 %v907_v62, %v621_v1 }
  0x30   :  { %531 = vmatpush.bf16.msrb.mxu0 %v876_v20  ;;  %v939_v8 = vld [vmem:[%s1468_s0 + $0x104] sm:$0xf]  ;;  %v749_v9 = vld [vmem:[%s1468_s0 + $0x108] sm:$0xf0]  ;;  %v837_v11 = vld [vmem:[%s1468_s0 + $0x1b8] sm:$0xf0]  ;;  %v688_v15 = vor.u32 %v923_v6, %v685_v7 }
  0x31   :  { %540 = vmatpush.bf16.msrb.mxu1 %v656_v21  ;;  %v977_v12 = vld [vmem:[%s1468_s0 + $0x234] sm:$0xf]  ;;  %v901_v13 = vld [vmem:[%s1468_s0 + $0x238] sm:$0xf0]  ;;  %v752_v16 = vor.u32 %v939_v8, %v749_v9  ;;  %v840_v17 = vor.u32 %v961_v10, %v837_v11  ;;  %v959_v19 = vld [vmem:[%s1468_s0 + $0x1a4] sm:$0xf] }
  0x32   :  { %553 = vmatpush.bf16.msrb.mxu2 %v720_v22  ;;  %v904_v18 = vor.u32 %v977_v12, %v901_v13  ;;  %v829_v20 = vld [vmem:[%s1468_s0 + $0x1a8] sm:$0xf0]  ;;  %v975_v21 = vld [vmem:[%s1468_s0 + $0x224] sm:$0xf]  ;;  %v957_v25 = vld [vmem:[%s1468_s0 + $0x194] sm:$0xf] }
  0x33   :  { %566 = vmatpush.bf16.msrb.mxu3 %v784_v26  ;;  %905 = vmatmul.msk.bf16.vlgmr.msrb.gmra.mxu0 %vm469_vm0, %v1365_v47  ;;  %v893_v22 = vld [vmem:[%s1468_s0 + $0x228] sm:$0xf0]  ;;  %v832_v23 = vor.u32 %v959_v19, %v829_v20  ;;  %v821_v26 = vld [vmem:[%s1468_s0 + $0x198] sm:$0xf0]  ;;  %v971_v31 = vld [vmem:[%s1468_s0 + $0x204] sm:$0xf] }
  0x34   :  { %576 = vmatpush.bf16.msra.mxu0 %v872_v27  ;;  %v896_v24 = vor.u32 %v975_v21, %v893_v22  ;;  %v973_v27 = vld [vmem:[%s1468_s0 + $0x214] sm:$0xf]  ;;  %v885_v28 = vld [vmem:[%s1468_s0 + $0x218] sm:$0xf0]  ;;  %v824_v29 = vor.u32 %v957_v25, %v821_v26 }
  0x35   :  { %541 = vmatpush.bf16.msrb.mxu1 %v648_v35  ;;  %v888_v30 = vor.u32 %v973_v27, %v885_v28 }
  0x36   :  { %554 = vmatpush.bf16.msrb.mxu2 %v712_v36 }
  0x37   :  { %567 = vmatpush.bf16.msrb.mxu3 %v776_v39 }
  0x38   :  { %577 = vmatpush.bf16.msra.mxu0 %v864_v40 }
  0x39   :  { %542 = vmatpush.bf16.msrb.mxu1 %v640_v48 }
  0x3a   :  { %555 = vmatpush.bf16.msrb.mxu2 %v704_v49 }
  0x3b   :  { %568 = vmatpush.bf16.msrb.mxu3 %v768_v52 }
  0x3c   :  { %578 = vmatpush.bf16.msra.mxu0 %v856_v53 }
  0x3d   :  { %543 = vmatpush.bf16.msrb.mxu1 %v632_v60 }
  0x3e   :  { %556 = vmatpush.bf16.msrb.mxu2 %v696_v61 }
  0x3f   :  { %569 = vmatpush.bf16.msrb.mxu3 %v760_v4 }
  0x40   :  { %579 = vmatpush.bf16.msra.mxu0 %v848_v5 }
  0x41   :  { %544 = vmatpush.bf16.msrb.mxu1 %v624_v14 }
  0x42   :  { %557 = vmatpush.bf16.msrb.mxu2 %v688_v15 }
  0x43   :  { %570 = vmatpush.bf16.msrb.mxu3 %v752_v16 }
  0x44   :  { %580 = vmatpush.bf16.msra.mxu0 %v840_v17  ;;  %545 = vmatmul.bf16.vlgmr.msrb.gmra.mxu1 %v1266_v63  ;;  %v955_v63 = vld [vmem:[%s1468_s0 + $0x184] sm:$0xf] }
  0x45   :  { %593 = vmatpush.bf16.msra.mxu1 %v904_v18  ;;  %558 = vmatmul.bf16.vlgmr.msrb.gmra.mxu2 %v1268_v0  ;;  %v813_v0 = vld [vmem:[%s1468_s0 + $0x188] sm:$0xf0] }
  0x46   :  { %571 = vmatmul.bf16.vlgmr.msrb.gmra.mxu3 %v1271_v2  ;;  %v877_v2 = vld [vmem:[%s1468_s0 + $0x208] sm:$0xf0]  ;;  %v816_v32 = vor.u32 %v955_v63, %v813_v0 }
  0x47   :  { %v880_v33 = vor.u32 %v971_v31, %v877_v2 }
  0x48   :  { %581 = vmatpush.bf16.msra.mxu0 %v832_v23 }
  0x49   :  { %594 = vmatpush.bf16.msra.mxu1 %v896_v24 }
  0x4c   :  { %582 = vmatpush.bf16.msra.mxu0 %v824_v29 }
  0x4d   :  { %595 = vmatpush.bf16.msra.mxu1 %v888_v30 }
  0x50   :  { %583 = vmatpush.bf16.msra.mxu0 %v816_v32 }
  0x51   :  { %596 = vmatpush.bf16.msra.mxu1 %v880_v33 }
  0x53   :  { %584 = vmatmul.bf16.vlgmr.msra.gmra.mxu0 %v1273_v3 }
  0x54   :  { %906 = vmatmul.msk.bf16.vlgmr.msra.gmra.mxu1 %vm469_vm0, %v1365_v47 }
  0x9a   :  { %v93_v44 = vpop.permute.xlu0 %92 }
  0xa0   :  { %v481_v34 = vpop.f32.mrf.mxu0 }
  0xa1   :  { %v494_v35 = vpop.f32.mrf.mxu1  ;;  %v482_v45 = vadd.f32 %v481_v34, %v93_v44 }
  0xa3   :  { %v495_v48 = vadd.f32 %v494_v35, %v482_v45 }
  0xa8   :  { %v507_v36 = vpop.f32.mrf.mxu2  ;;  %v483_v37 = vpop.f32.mrf.mxu0 }
  0xa9   :  { %v520_v38 = vpop.f32.mrf.mxu3  ;;  %v496_v39 = vpop.f32.mrf.mxu1  ;;  %v508_v3 = vadd.f32 %v507_v36, %v495_v48 }
  0xab   :  { %v521_v53 = vadd.f32 %v520_v38, %v508_v3 }
  0xb0   :  { %v509_v40 = vpop.f32.mrf.mxu2  ;;  %v533_v42 = vpop.f32.mrf.mxu0 }
  0xb1   :  { %v522_v41 = vpop.f32.mrf.mxu3  ;;  %v534_v58 = vadd.f32 %v533_v42, %v521_v53 }
  0xb3   :  { %v602_v62 = vmax.f32 %v534_v58, 0.0 }
  0xb8   :  { %v535_v43 = vpop.f32.mrf.mxu0 }
  0xc1   :  { %v546_v46 = vpop.f32.mrf.mxu1 }
  0xc2   :  { %v547_v49 = vadd.f32 %v546_v46, %v93_v44 }
  0xc8   :  { %v559_v50 = vpop.f32.mrf.mxu2 }
  0xc9   :  { %v572_v51 = vpop.f32.mrf.mxu3  ;;  %v560_v52 = vadd.f32 %v559_v50, %v547_v49  ;;  %v548_v47 = vpop.f32.mrf.mxu1 }
  0xcb   :  { %v573_v54 = vadd.f32 %v572_v51, %v560_v52 }
  0xd0   :  { %v585_v55 = vpop.f32.mrf.mxu0  ;;  %v561_v57 = vpop.f32.mrf.mxu2 }
  0xd1   :  { %v586_v56 = vadd.f32 %v585_v55, %v573_v54  ;;  %v574_v59 = vpop.f32.mrf.mxu3  ;;  %v598_v60 = vpop.f32.mrf.mxu1 }
  0xd3   :  { %v599_v61 = vadd.f32 %v598_v60, %v586_v56 }
  0xd5   :  { %v603_v1 = vmax.f32 %v599_v61, 0.0 }
  0xd7   :  { %v604_v4 = vpack.c.bf16 %v603_v1, %v602_v62 }
  0xd8   :  { %v587_v5 = vpop.f32.mrf.mxu0 }
  0xd9   :  { %v606_v6 = vrot.slane %v604_v4, 2  ;;  %v600_v7 = vpop.f32.mrf.mxu1 }
  0xdb   :  { %v610_v8 = vsel %vm607_vm1, %v604_v4, %v606_v6 }
  0xdc   :  { %612 = vst [vmem:[%s1471_s3] sm:$0xf] %v610_v8 }

// kernel: net_view_forward.18
= control target key start
LH: loop header
LB: loop body
LE: loop exit
PB: predicated region body
PF: predicated region fallthrough
CT: control target
= control target key end

     0   :  { %v124_v1 = vmov 0   ;;  %vm56_vm0 = vcmask 1041408   ;;  %vm52_vm1 = vcmask 293888   ;;  %vm92_vm2 = vcmask 1043456   ;;  %s181_s0 = inlined_call_operand.vmem [shape: bf16[36,256], index: 0, kind: input, shape index: {}]   ;;  %s182_s2 = inlined_call_operand.vmem [shape: f32[4,1], index: 2, kind: input, shape index: {}]   ;;  %s183_s1 = inlined_call_operand.vmem [shape: bf16[4,36], index: 1, kind: input, shape index: {}]   ;;  %s184_s3 = inlined_call_operand.vmem [shape: f32[4,256], index: 3, kind: output, shape index: {}]  }
   0x1   :  { %v20_v0 = vld [vmem:[%s181_s0 + $0x20] sm:$0x33]  ;;  %123 = vset.pattern.permute.xlu0 %v124_v1  ;;  %v110_v4 = vld [vmem:[%s181_s0 + $0x10] sm:$0xf]  ;;  %v121_v5 = vld [vmem:[%s181_s0 + $0x14] sm:$0xf0] }
   0x2   :  { %v40_v2 = vunpack.c.l.b16 %v20_v0  ;;  %v41_v3 = vunpack.c.h.b16 %v20_v0  ;;  %v120_v8 = vld [vmem:[%s181_s0 + $0x14] sm:$0xf]  ;;  %v112_v9 = vld [vmem:[%s181_s0 + $0x18] sm:$0xf0]  ;;  %v21_v10 = vld [vmem:[%s182_s2] sm:$0xf]  ;;  %v111_v13 = vor.u32 %v121_v5, %v110_v4 }
   0x3   :  { %24 = vperm.xlu0 %123, %v21_v10   ;;  %v115_v14 = vor.u32 %v120_v8, %v112_v9  ;;  %v102_v15 = vld [vmem:[%s181_s0] sm:$0xf]  ;;  %v119_v16 = vld [vmem:[%s181_s0 + $0x4] sm:$0xf0]  ;;  %v118_v17 = vld [vmem:[%s181_s0 + $0x4] sm:$0xf] }
   0x4   :  { %v46_v6 = vpack.c.b16 %v40_v2, %v40_v2  ;;  %v47_v7 = vpack.c.b16 %v41_v3, %v41_v3  ;;  %v104_v18 = vld [vmem:[%s181_s0 + $0x8] sm:$0xf0]  ;;  %v103_v19 = vor.u32 %v119_v16, %v102_v15  ;;  %v15_v21 = vld [vmem:[%s183_s1] sm:$0x3] }
   0x5   :  { %v107_v20 = vor.u32 %v118_v17, %v104_v18 }
   0x6   :  { %v58_v11 = vsel %vm56_vm0, %v46_v6, 0  ;;  %v61_v12 = vsel %vm56_vm0, %v47_v7, 0 }
   0x7   :  { %68 = vmatpush.bf16.msra.mxu0 %v58_v11  ;;  %81 = vmatpush.bf16.msra.mxu1 %v61_v12 }
   0xb   :  { %69 = vmatpush.bf16.msra.mxu0 %v111_v13  ;;  %82 = vmatpush.bf16.msra.mxu1 %v115_v14 }
   0xf   :  { %70 = vmatpush.bf16.msra.mxu0 %v103_v19  ;;  %83 = vmatpush.bf16.msra.mxu1 %v107_v20 }
  0x12   :  { %116 = vmatmul.msk.bf16.vlgmr.msra.gmra.mxu0 %vm52_vm1, %v15_v21  ;;  %117 = vmatmul.msk.bf16.vlgmr.msra.gmra.mxu1 %vm52_vm1, %v15_v21 }
  0x75   :  { %v25_v22 = vpop.permute.xlu0 %24 }
  0x8f   :  { %v72_v23 = vpop.f32.mrf.mxu0  ;;  %v85_v24 = vpop.f32.mrf.mxu1 }
  0x90   :  { %v86_v25 = vadd.f32 %v85_v24, %v25_v22  ;;  %v73_v26 = vadd.f32 %v72_v23, %v25_v22 }
  0x92   :  { %v91_v27 = vrot.slane %v86_v25, 4 }
  0x94   :  { %v93_v28 = vsel %vm92_vm2, %v73_v26, %v91_v27 }
  0x95   :  { %95 = vst [vmem:[%s184_s3] sm:$0xff] %v93_v28 }
  0x97   :  { %v74_v29 = vpop.f32.mrf.mxu0  ;;  %v87_v30 = vpop.f32.mrf.mxu1 }

// kernel: net_view_forward.15
= control target key start
LH: loop header
LB: loop body
LE: loop exit
PB: predicated region body
PF: predicated region fallthrough
CT: control target
= control target key end

     0   :  { %v127_v1 = vmov 0   ;;  %vm56_vm0 = vcmask 1041408   ;;  %vm52_vm1 = vcmask 293888   ;;  %s187_s0 = inlined_call_operand.vmem [shape: bf16[36,256], index: 0, kind: input, shape index: {}]   ;;  %s188_s2 = inlined_call_operand.vmem [shape: f32[4,1], index: 2, kind: input, shape index: {}]   ;;  %s189_s1 = inlined_call_operand.vmem [shape: bf16[4,36], index: 1, kind: input, shape index: {}]   ;;  %s190_s3 = inlined_call_operand.vmem [shape: bf16[4,256], index: 3, kind: output, shape index: {}]  }
   0x1   :  { %v20_v0 = vld [vmem:[%s187_s0 + $0x20] sm:$0x33]  ;;  %126 = vset.pattern.permute.xlu0 %v127_v1  ;;  %v113_v4 = vld [vmem:[%s187_s0 + $0x10] sm:$0xf]  ;;  %v124_v5 = vld [vmem:[%s187_s0 + $0x14] sm:$0xf0] }
   0x2   :  { %v40_v2 = vunpack.c.l.b16 %v20_v0  ;;  %v41_v3 = vunpack.c.h.b16 %v20_v0  ;;  %v123_v8 = vld [vmem:[%s187_s0 + $0x14] sm:$0xf]  ;;  %v115_v9 = vld [vmem:[%s187_s0 + $0x18] sm:$0xf0]  ;;  %v21_v10 = vld [vmem:[%s188_s2] sm:$0xf]  ;;  %v114_v13 = vor.u32 %v124_v5, %v113_v4 }
   0x3   :  { %24 = vperm.xlu0 %126, %v21_v10   ;;  %v118_v14 = vor.u32 %v123_v8, %v115_v9  ;;  %v105_v15 = vld [vmem:[%s187_s0] sm:$0xf]  ;;  %v122_v16 = vld [vmem:[%s187_s0 + $0x4] sm:$0xf0]  ;;  %v121_v17 = vld [vmem:[%s187_s0 + $0x4] sm:$0xf] }
   0x4   :  { %v46_v6 = vpack.c.b16 %v40_v2, %v40_v2  ;;  %v47_v7 = vpack.c.b16 %v41_v3, %v41_v3  ;;  %v107_v18 = vld [vmem:[%s187_s0 + $0x8] sm:$0xf0]  ;;  %v106_v19 = vor.u32 %v122_v16, %v105_v15  ;;  %v15_v21 = vld [vmem:[%s189_s1] sm:$0x3] }
   0x5   :  { %v110_v20 = vor.u32 %v121_v17, %v107_v18 }
   0x6   :  { %v58_v11 = vsel %vm56_vm0, %v46_v6, 0  ;;  %v61_v12 = vsel %vm56_vm0, %v47_v7, 0 }
   0x7   :  { %68 = vmatpush.bf16.msra.mxu0 %v58_v11  ;;  %81 = vmatpush.bf16.msra.mxu1 %v61_v12 }
   0xb   :  { %69 = vmatpush.bf16.msra.mxu0 %v114_v13  ;;  %82 = vmatpush.bf16.msra.mxu1 %v118_v14 }
   0xf   :  { %70 = vmatpush.bf16.msra.mxu0 %v106_v19  ;;  %83 = vmatpush.bf16.msra.mxu1 %v110_v20 }
  0x12   :  { %119 = vmatmul.msk.bf16.vlgmr.msra.gmra.mxu0 %vm52_vm1, %v15_v21  ;;  %120 = vmatmul.msk.bf16.vlgmr.msra.gmra.mxu1 %vm52_vm1, %v15_v21 }
  0x75   :  { %v25_v22 = vpop.permute.xlu0 %24 }
  0x8f   :  { %v72_v23 = vpop.f32.mrf.mxu0  ;;  %v85_v24 = vpop.f32.mrf.mxu1 }
  0x90   :  { %v73_v25 = vadd.f32 %v72_v23, %v25_v22  ;;  %v86_v26 = vadd.f32 %v85_v24, %v25_v22 }
  0x92   :  { %v89_v27 = vmax.f32 %v73_v25, 0.0  ;;  %v90_v28 = vmax.f32 %v86_v26, 0.0 }
  0x94   :  { %v91_v29 = vpack.c.bf16 %v90_v28, %v89_v27 }
  0x96   :  { %v93_v30 = vrot.slane %v91_v29, 2 }
  0x97   :  { %v74_v31 = vpop.f32.mrf.mxu0  ;;  %v87_v32 = vpop.f32.mrf.mxu1 }
  0x98   :  { %v96_v33 = vsel %vm56_vm0, %v91_v29, %v93_v30 }
  0x99   :  { %98 = vst [vmem:[%s190_s3] sm:$0xf] %v96_v33 }

// kernel: net_view_forward.19
= control target key start
LH: loop header
LB: loop body
LE: loop exit
PB: predicated region body
PF: predicated region fallthrough
CT: control target
= control target key end

     0   :  { %10 = vsyncpa [#allocation3], 0  ;;  %s1663_s0 = inlined_call_operand.vmem [shape: f32[4,4], index: 0, kind: input, shape index: {}]   ;;  %s1664_s1 = inlined_call_operand.vmem [shape: f32[4,4], index: 1, kind: input, shape index: {}]   ;;  %s1665_s2 = inlined_call_operand.vmem [shape: f32[2,256], index: 2, kind: input, shape index: {}]   ;;  %s1666_s3 = inlined_call_operand.vmem [shape: f32[4,1,256], index: 3, kind: input, shape index: {}]   ;;  %s1667_s4 = inlined_call_operand.vmem [shape: f32[4,16,16], index: 4, kind: input, shape index: {}]   ;;  %s1668_s5 = inlined_call_operand.vmem [shape: f32[4,4,256], index: 5, kind: output, shape index: {}]  }
   0x1   :  { %11 = vsyncpa [#allocation5], 0  ;;  %s1234_s18 = smov 0  }
   0x2 LB: > { %s1052_s19 = sadd.s32 4294967295, %s1199_s18   ;;  %p1054_p0 = scmp.ge.s32.totalorder %s1199_s18, 1  ;;  %s1199_s18 = sphi %s1234_s18, %s17_s18  }
   0x3   : > { %p158_p1 = scmp.lt.s32.totalorder %s1199_s18, 5  ;;  %s170_s22 = sshll.u32 %s1663_s0, 4  ;;  %s171_s22 = int_to_ptr.vmem [resolvable:$true] %s170_s22 }
   0x4   : > { %p1138_p3 = scmp.eq.s32.totalorder %s1052_s19, 0  ;;  %s180_s25 = sshll.u32 %s1664_s1, 4  ;;  %s181_s25 = int_to_ptr.vmem [resolvable:$true] %s180_s25 }
   0x5   : > { %p159_p2 = pnand %p1054_p0, %p158_p1  ;;  %s1201_s26 = smov [#allocation2]  }
   0x6   : > { %s1202_s27 = smov [#allocation4]  }
   0x7   : > { %p1131_p4 = pneg %p159_p2 }
   0x8   : > { %206 = sbr.rel (%p159_p2) target bundleno = 247 (0xf7), region = 40 }
   0x9   : > { %p1132_p5 = pnand %p1138_p3, %p1131_p4 }
   0xb   : > { %1134 = dma.vmem_to_smem (!%p1132_p5), %s171_s22, 64, %s1201_s26, [#allocation3]  }
   0xc   : > { %1137 = dma.vmem_to_smem (!%p1132_p5), %s181_s25, 64, %s1202_s27, [#allocation5]  }
   0xd   : > { %1190 = dma.done.wait (%p1138_p3), [#allocation3], 64  }
   0xe   : > { %1192 = vsyncadd (%p1138_p3), [#allocation3], 4294967232 }
   0xf   : > { %1194 = dma.done.wait (%p1138_p3), [#allocation5], 64  }
  0x10   : > { %1196 = vsyncadd (%p1138_p3), [#allocation5], 4294967232 }
  0x11   : > { %218 = sfence }
  0x12   : > { %p240_p6 = scmp.lt.s32.totalorder %s1052_s19, 3  ;;  %s1253_s28 = sshll.u32 %s1052_s19, 7  ;;  %v1203_v0 = vmov 15.0   ;;  %v1064_v3 = vld [vmem:[%s1665_s2 + $0x1] ss:$2 sm:$0x3]  ;;  %v252_v36 = vlaneseq }
  0x13   : > { %s257_s29 = sld [smem:[#allocation4 + %s1253_s28]]  ;;  %1153 = vrcp.f32 %v1203_v0  ;;  %s437_s30 = sadd.s32 1, %s1253_s28  ;;  %vm331_vm4 = vcmask 130048  }
  0x14   : > { %s1728_s19 = smov (!%p240_p6, %s1052_s19), 3  ;;  %s785_s6 = sadd.s32 3, %s1253_s28  ;;  %v1286_v45 = vshrl.u32 %v252_v36, 7 }
  0x15   : > { %s1061_s7 = sshll.u32 %s1728_s19, 1  ;;  %s439_s8 = sld [smem:[#allocation4 + %s437_s30]] }
  0x16   : > { %s243_s11 = scalar_lea.vmem %s1666_s3, %s1061_s7  ;;  %s787_s12 = sld [smem:[#allocation4 + %s785_s6]]  ;;  %v1291_v54 = vadd.s32 8, %v1286_v45 }
  0x17   : > { %v1268_v1 = vld [vmem:[%s243_s11] sm:$0x3]  ;;  %s611_s13 = sadd.s32 2, %s1253_s28  ;;  %s256_s14 = sld [smem:[#allocation2 + %s1253_s28]] }
  0x18   : > { %s613_s16 = sld [smem:[#allocation4 + %s611_s13]]  ;;  %s1106_s28 = sshll.u32 %s1728_s19, 3 }
  0x19   : > { %v1154_v2 = vpop.eup %1153  ;;  %v262_v4 = vstv %s257_s29  ;;  %s438_s15 = sld [smem:[#allocation2 + %s437_s30]]  ;;  %s248_s21 = scalar_lea.vmem %s1668_s5, %s1106_s28 }
  0x1a   : > { %v263_v5 = vmul.f32 %v262_v4, %v1268_v1  ;;  %v267_v6 = vmul.f32 15.0, %v1154_v2  ;;  %vm271_vm0 = vweird.f32 %v1154_v2  ;;  %s612_s20 = sld [smem:[#allocation2 + %s611_s13]] }
  0x1b   : > { %v443_v9 = vstv %s439_s8  ;;  %s786_s30 = sld [smem:[#allocation2 + %s785_s6]] }
  0x1c   : > { %v264_v7 = vadd.f32 %v1064_v3, %v263_v5  ;;  %v268_v8 = vsub.f32 1.0, %v267_v6  ;;  %v444_v10 = vmul.f32 %v443_v9, %v1268_v1  ;;  %v791_v11 = vstv %s787_s12 }
  0x1d   : > { %v792_v13 = vmul.f32 %v791_v11, %v1268_v1 }
  0x1e   : > { %v269_v12 = vmul.f32 %v1154_v2, %v268_v8  ;;  %v275_v14 = vmul.f32 2.0, %v264_v7  ;;  %v445_v15 = vadd.f32 %v1064_v3, %v444_v10  ;;  %v617_v16 = vstv %s613_s16 }
  0x1f   : > { %v793_v18 = vadd.f32 %v1064_v3, %v792_v13  ;;  %v618_v19 = vmul.f32 %v617_v16, %v1268_v1 }
  0x20   : > { %v270_v17 = vadd.f32 %v1154_v2, %v269_v12  ;;  %v449_v20 = vmul.f32 2.0, %v445_v15 }
  0x21   : > { %v797_v22 = vmul.f32 2.0, %v793_v18  ;;  %v619_v23 = vadd.f32 %v1064_v3, %v618_v19 }
  0x22   : > { %v1280_v21 = vsel %vm271_vm0, %v1154_v2, %v270_v17 }
  0x23   : > { %v276_v24 = vmul.f32 %v275_v14, %v1280_v21  ;;  %v450_v25 = vmul.f32 %v449_v20, %v1280_v21  ;;  %v798_v26 = vmul.f32 %v797_v22, %v1280_v21  ;;  %v623_v27 = vmul.f32 2.0, %v619_v23 }
  0x25   : > { %v1067_v28 = vadd.f32 -1.0, %v276_v24  ;;  %v1075_v29 = vadd.f32 -1.0, %v450_v25  ;;  %v1095_v30 = vadd.f32 -1.0, %v798_v26  ;;  %v624_v31 = vmul.f32 %v623_v27, %v1280_v21 }
  0x27   : > { %v282_v32 = vadd.f32 1.0, %v1067_v28  ;;  %v456_v33 = vadd.f32 1.0, %v1075_v29  ;;  %v804_v34 = vadd.f32 1.0, %v1095_v30  ;;  %v1085_v35 = vadd.f32 -1.0, %v624_v31 }
  0x29   : > { %v283_v37 = vmul.f32 16.0, %v282_v32  ;;  %v457_v38 = vmul.f32 16.0, %v456_v33  ;;  %v805_v39 = vmul.f32 16.0, %v804_v34  ;;  %v630_v40 = vadd.f32 1.0, %v1085_v35 }
  0x2b   : > { %v1069_v41 = vadd.f32 -1.0, %v283_v37  ;;  %v1077_v42 = vadd.f32 -1.0, %v457_v38  ;;  %v1097_v43 = vadd.f32 -1.0, %v805_v39  ;;  %v631_v44 = vmul.f32 16.0, %v630_v40  ;;  %v329_v39 = vld [vmem:[%s1667_s4] sm:$0xff] }
  0x2d   : > { %v285_v46 = vmul.f32 0.5, %v1069_v41  ;;  %v459_v47 = vmul.f32 0.5, %v1077_v42  ;;  %v807_v48 = vmul.f32 0.5, %v1097_v43  ;;  %v1087_v49 = vadd.f32 -1.0, %v631_v44 }
  0x2f   : > { %v287_v50 = vfloor.f32 %v285_v46  ;;  %v461_v51 = vfloor.f32 %v459_v47  ;;  %v809_v52 = vfloor.f32 %v807_v48  ;;  %v1288_v53 = vmul.f32 0.5, %v1087_v49 }
  0x31   : > { %v1110_v55 = vcvt.f32.s32 %v287_v50  ;;  %v292_v56 = vsub.f32 %v285_v46, %v287_v50  ;;  %v1293_v57 = vsub.f32 %v459_v47, %v461_v51  ;;  %v1114_v58 = vcvt.f32.s32 %v461_v51 }
  0x32   : > { %v1295_v59 = vcvt.f32.s32 %v809_v52  ;;  %v1297_v60 = vsub.f32 %v807_v48, %v809_v52  ;;  %v635_v61 = vfloor.f32 %v1288_v53  ;;  %v1078_v48 = vld [vmem:[%s1667_s4 + $0x10] sm:$0xff] }
  0x33   : > { %v293_v62 = vsub.f32 1.0, %v292_v56  ;;  %v294_v63 = vperm.slane %v1110_v55, 0  ;;  %v309_v0 = vadd.s32 1, %v1110_v55  ;;  %v317_v2 = vperm.slane %v292_v56, 0 }
  0x34   : > { %v295_v3 = vperm.slane %v1110_v55, 1  ;;  %v318_v4 = vperm.slane %v292_v56, 1  ;;  %v467_v5 = vsub.f32 1.0, %v1293_v57  ;;  %v468_v6 = vperm.slane %v1114_v58, 0 }
  0x35   : > { %vm1302_vm1 = vcmp.eq.s32.totalorder %v1291_v54, %v294_v63  ;;  %v301_v8 = vperm.slane %v293_v62, 0  ;;  %v310_v9 = vperm.slane %v309_v0, 0  ;;  %v302_v10 = vperm.slane %v293_v62, 1 }
  0x36   : > { %vm1307_vm2 = vcmp.eq.s32.totalorder %v1291_v54, %v295_v3  ;;  %v311_v12 = vperm.slane %v309_v0, 1  ;;  %vm1312_vm3 = vcmp.eq.s32.totalorder %v1291_v54, %v468_v6  ;;  %v475_v14 = vperm.slane %v467_v5, 0 }
  0x37   : > { %v307_v15 = vsel %vm1302_vm1, %v301_v8, 0.0  ;;  %vm314_vm5 = vcmp.eq.s32.totalorder %v1291_v54, %v310_v9  ;;  %v308_v16 = vsel %vm1307_vm2, %v302_v10, 0.0  ;;  %v483_v17 = vadd.s32 1, %v1114_v58 }
  0x38   : > { %v323_v18 = vsel %vm314_vm5, %v317_v2, 0.0  ;;  %vm315_vm6 = vcmp.eq.s32.totalorder %v1291_v54, %v311_v12  ;;  %v481_v19 = vsel %vm1312_vm3, %v475_v14, 0.0  ;;  %v491_v20 = vperm.slane %v1293_v57, 0 }
  0x39   : > { %v327_v22 = vadd.f32 %v323_v18, %v307_v15  ;;  %v324_v23 = vsel %vm315_vm6, %v318_v4, 0.0  ;;  %v484_v24 = vperm.slane %v483_v17, 0  ;;  %v469_v25 = vperm.slane %v1114_v58, 1 }
  0x3a   : > { %v328_v26 = vadd.f32 %v324_v23, %v308_v16  ;;  %v476_v27 = vperm.slane %v467_v5, 1  ;;  %v485_v28 = vperm.slane %v483_v17, 1  ;;  %v492_v29 = vperm.slane %v1293_v57, 1 }
  0x3b   : > { %352 = vmatpush.msra.mxu0 %v327_v22  ;;  %vm488_vm7 = vcmp.eq.s32.totalorder %v1291_v54, %v484_v24  ;;  %vm473_vm8 = vcmp.eq.s32.totalorder %v1291_v54, %v469_v25  ;;  %vm296_vm9 = vcmp.eq.s32.totalorder %v1286_v45, %v294_v63  ;;  %vm312_vm10 = vcmp.eq.s32.totalorder %v1286_v45, %v310_v9 }
  0x3c   : > { %375 = vmatpush.msra.mxu1 %v328_v26  ;;  %v497_v30 = vsel %vm488_vm7, %v491_v20, 0.0  ;;  %v482_v31 = vsel %vm473_vm8, %v476_v27, 0.0  ;;  %vm489_vm11 = vcmp.eq.s32.totalorder %v1291_v54, %v485_v28  ;;  %v305_v32 = vsel %vm296_vm9, %v301_v8, 0.0 }
  0x3d   : > { %v501_v33 = vadd.f32 %v497_v30, %v481_v19  ;;  %v498_v34 = vsel %vm489_vm11, %v492_v29, 0.0  ;;  %v321_v35 = vsel %vm312_vm10, %v317_v2, 0.0  ;;  %vm297_vm12 = vcmp.eq.s32.totalorder %v1286_v45, %v295_v3 }
  0x3e   : > { %v502_v36 = vadd.f32 %v498_v34, %v482_v31  ;;  %v325_v37 = vadd.f32 %v321_v35, %v305_v32  ;;  %v306_v38 = vsel %vm297_vm12, %v302_v10, 0.0  ;;  %vm313_vm13 = vcmp.eq.s32.totalorder %v1286_v45, %v311_v12 }
  0x3f   : > { %526 = vmatpush.msra.mxu2 %v501_v33  ;;  %v322_v40 = vsel %vm313_vm13, %v318_v4, 0.0  ;;  %vm470_vm14 = vcmp.eq.s32.totalorder %v1286_v45, %v468_v6  ;;  %vm486_vm15 = vcmp.eq.s32.totalorder %v1286_v45, %v484_v24  ;;  %vm1339_vm0 = vcmp.eq.s32.totalorder %v1286_v45, %v469_v25 }
  0x40   : > { %549 = vmatpush.msra.mxu3 %v502_v36  ;;  %353 = vmatpush.msra.mxu0 %v325_v37  ;;  %v326_v42 = vadd.f32 %v322_v40, %v306_v38  ;;  %v479_v43 = vsel %vm470_vm14, %v475_v14, 0.0  ;;  %v495_v44 = vsel %vm486_vm15, %v491_v20, 0.0  ;;  %v480_v46 = vsel %vm1339_vm0, %v476_v27, 0.0  ;;  %v1079_v20 = vld [vmem:[%s1667_s4 + $0x18] sm:$0xff] }
  0x41   : > { %v499_v47 = vadd.f32 %v495_v44, %v479_v43  ;;  %vm487_vm1 = vcmp.eq.s32.totalorder %v1286_v45, %v485_v28  ;;  %1070 = vmatmul.msk.f32.vlgmr.msra.gmra.mxu0 %vm331_vm4, %v329_v39  ;;  %v815_v49 = vsub.f32 1.0, %v1297_v60  ;;  %v817_v50 = vperm.slane %v1295_v59, 1  ;;  %v1088_v43 = vld [vmem:[%s1667_s4 + $0x20] sm:$0xff] }
  0x42   : > { %376 = vmatpush.msra.mxu1 %v326_v42  ;;  %v496_v51 = vsel %vm487_vm1, %v492_v29, 0.0  ;;  %v831_v52 = vadd.s32 1, %v1295_v59  ;;  %v840_v55 = vperm.slane %v1297_v60, 1  ;;  %v816_v56 = vperm.slane %v1295_v59, 0 }
  0x43   : > { %527 = vmatpush.msra.mxu2 %v499_v47  ;;  %v500_v57 = vadd.f32 %v496_v51, %v480_v46  ;;  %1072 = vmatmul.msk.f32.vlgmr.msra.gmra.mxu1 %vm331_vm4, %v329_v39  ;;  %vm1357_vm2 = vcmp.eq.s32.totalorder %v1291_v54, %v817_v50  ;;  %v824_v62 = vperm.slane %v815_v49, 1  ;;  %v823_v63 = vperm.slane %v815_v49, 0  ;;  %v1098_v46 = vld [vmem:[%s1667_s4 + $0x30] sm:$0xff]  ;;  %v1089_v47 = vld [vmem:[%s1667_s4 + $0x28] sm:$0xff] }
  0x44   : > { %1080 = vmatmul.msk.f32.vlgmr.msra.gmra.mxu2 %vm331_vm4, %v1078_v48  ;;  %v833_v0 = vperm.slane %v831_v52, 1  ;;  %vm1363_vm3 = vcmp.eq.s32.totalorder %v1291_v54, %v816_v56  ;;  %v832_v59 = vperm.slane %v831_v52, 0  ;;  %v839_v3 = vperm.slane %v1297_v60, 0  ;;  %v330_v60 = vld [vmem:[%s1667_s4 + $0x8] sm:$0xff] }
  0x45   : > { %550 = vmatpush.msra.mxu3 %v500_v57  ;;  %v830_v4 = vsel %vm1357_vm2, %v824_v62, 0.0  ;;  %v829_v5 = vsel %vm1363_vm3, %v823_v63, 0.0  ;;  %v1118_v6 = vcvt.f32.s32 %v635_v61  ;;  %v640_v7 = vsub.f32 %v1288_v53, %v635_v61  ;;  %v249_v51 = vld [vmem:[%s1665_s2] ss:$2 sm:$0x3] }
  0x46   : > { %1082 = vmatmul.msk.f32.vlgmr.msra.gmra.mxu3 %vm331_vm4, %v1078_v48  ;;  %vm837_vm5 = vcmp.eq.s32.totalorder %v1291_v54, %v833_v0  ;;  %vm836_vm6 = vcmp.eq.s32.totalorder %v1291_v54, %v832_v59  ;;  %vm1384_vm7 = vcmp.eq.s32.totalorder %v1286_v45, %v817_v50  ;;  %vm1389_vm8 = vcmp.eq.s32.totalorder %v1286_v45, %v833_v0  ;;  %v1099_v48 = vld [vmem:[%s1667_s4 + $0x38] sm:$0xff] }
  0x47   : > { %v846_v53 = vsel %vm837_vm5, %v840_v55, 0.0  ;;  %v845_v61 = vsel %vm836_vm6, %v839_v3, 0.0  ;;  %v641_v10 = vsub.f32 1.0, %v640_v7  ;;  %v643_v11 = vperm.slane %v1118_v6, 1 }
  0x48   : > { %v850_v12 = vadd.f32 %v846_v53, %v830_v4  ;;  %v849_v13 = vadd.f32 %v845_v61, %v829_v5  ;;  %v657_v14 = vadd.s32 1, %v1118_v6  ;;  %v666_v15 = vperm.slane %v640_v7, 1 }
  0x49   : > { %vm1394_vm9 = vcmp.eq.s32.totalorder %v1291_v54, %v643_v11  ;;  %v650_v17 = vperm.slane %v641_v10, 1  ;;  %v642_v18 = vperm.slane %v1118_v6, 0  ;;  %v649_v19 = vperm.slane %v641_v10, 0  ;;  %1071 = vmatmul.msk.f32.gmra.mxu0 %vm331_vm4, %v330_v60 }
  0x4a   : > { %897 = vmatpush.msrb.mxu3 %v850_v12  ;;  %874 = vmatpush.msrb.mxu2 %v849_v13  ;;  %v659_v22 = vperm.slane %v657_v14, 1  ;;  %v658_v23 = vperm.slane %v657_v14, 0  ;;  %v665_v24 = vperm.slane %v640_v7, 0  ;;  %v828_v25 = vsel %vm1384_vm7, %v824_v62, 0.0 }
  0x4b   : > { %v656_v26 = vsel %vm1394_vm9, %v650_v17, 0.0  ;;  %vm646_vm10 = vcmp.eq.s32.totalorder %v1291_v54, %v642_v18  ;;  %1073 = vmatmul.msk.f32.gmra.mxu1 %vm331_vm4, %v330_v60  ;;  %v844_v27 = vsel %vm1389_vm8, %v840_v55, 0.0  ;;  %vm1411_vm11 = vcmp.eq.s32.totalorder %v1286_v45, %v816_v56 }
  0x4c   : > { %vm663_vm12 = vcmp.eq.s32.totalorder %v1291_v54, %v659_v22  ;;  %v655_v29 = vsel %vm646_vm10, %v649_v19, 0.0  ;;  %vm662_vm13 = vcmp.eq.s32.totalorder %v1291_v54, %v658_v23  ;;  %1081 = vmatmul.msk.f32.gmra.mxu2 %vm331_vm4, %v1079_v20  ;;  %v848_v30 = vadd.f32 %v844_v27, %v828_v25 }
  0x4d   : > { %v672_v31 = vsel %vm663_vm12, %v666_v15, 0.0  ;;  %v671_v32 = vsel %vm662_vm13, %v665_v24, 0.0  ;;  %v827_v33 = vsel %vm1411_vm11, %v823_v63, 0.0  ;;  %vm834_vm14 = vcmp.eq.s32.totalorder %v1286_v45, %v832_v59 }
  0x4e   : > { %v676_v34 = vadd.f32 %v672_v31, %v656_v26  ;;  %v675_v35 = vadd.f32 %v671_v32, %v655_v29  ;;  %1083 = vmatmul.msk.f32.gmra.mxu3 %vm331_vm4, %v1079_v20  ;;  %v843_v36 = vsel %vm834_vm14, %v839_v3, 0.0  ;;  %vm645_vm15 = vcmp.eq.s32.totalorder %v1286_v45, %v643_v11 }
  0x4f   : > { %898 = vmatpush.msrb.mxu3 %v848_v30  ;;  %v847_v37 = vadd.f32 %v843_v36, %v827_v33  ;;  %v654_v38 = vsel %vm645_vm15, %v650_v17, 0.0  ;;  %vm661_vm0 = vcmp.eq.s32.totalorder %v1286_v45, %v659_v22  ;;  %vm644_vm1 = vcmp.eq.s32.totalorder %v1286_v45, %v642_v18 }
  0x50   : > { %723 = vmatpush.msrb.mxu1 %v676_v34  ;;  %700 = vmatpush.msrb.mxu0 %v675_v35  ;;  %v670_v39 = vsel %vm661_vm0, %v666_v15, 0.0  ;;  %v653_v40 = vsel %vm644_vm1, %v649_v19, 0.0  ;;  %vm660_vm2 = vcmp.eq.s32.totalorder %v1286_v45, %v658_v23  ;;  %v259_v49 = vstv %s256_s14 }
  0x51   : > { %875 = vmatpush.msrb.mxu2 %v847_v37  ;;  %v674_v41 = vadd.f32 %v670_v39, %v654_v38  ;;  %v669_v42 = vsel %vm660_vm2, %v665_v24, 0.0  ;;  %v260_v50 = vmul.f32 %v259_v49, %v1268_v1  ;;  %v440_v56 = vstv %s438_s15 }
  0x52   : > { %v673_v44 = vadd.f32 %v669_v42, %v653_v40  ;;  %v441_v57 = vmul.f32 %v440_v56, %v1268_v1  ;;  %v614_v4 = vstv %s612_s20  ;;  %v788_v61 = vstv %s786_s30 }
  0x53   : > { %724 = vmatpush.msrb.mxu1 %v674_v41  ;;  %v261_v52 = vadd.f32 %v260_v50, %v249_v51  ;;  %v615_v7 = vmul.f32 %v614_v4, %v1268_v1  ;;  %v789_v13 = vmul.f32 %v788_v61, %v1268_v1 }
  0x54   : > { %701 = vmatpush.msrb.mxu0 %v673_v44  ;;  %1092 = vmatmul.msk.f32.vlgmr.msrb.gmra.mxu1 %vm331_vm4, %v1088_v43  ;;  %v442_v58 = vadd.f32 %v441_v57, %v249_v51 }
  0x55   : > { %1090 = vmatmul.msk.f32.vlgmr.msrb.gmra.mxu0 %vm331_vm4, %v1088_v43  ;;  %1100 = vmatmul.msk.f32.vlgmr.msrb.gmra.mxu2 %vm331_vm4, %v1098_v46  ;;  %v265_v55 = vmul.f32 2.0, %v261_v52  ;;  %v616_v60 = vadd.f32 %v615_v7, %v249_v51  ;;  %v790_v18 = vadd.f32 %v789_v13, %v249_v51 }
  0x56   : > { %1102 = vmatmul.msk.f32.vlgmr.msrb.gmra.mxu3 %vm331_vm4, %v1098_v46  ;;  %v446_v63 = vmul.f32 2.0, %v442_v58 }
  0x57   : > { %v273_v62 = vmul.f32 %v1280_v21, %v265_v55  ;;  %v620_v53 = vmul.f32 2.0, %v616_v60  ;;  %v794_v23 = vmul.f32 2.0, %v790_v18 }
  0x58   : > { %v447_v2 = vmul.f32 %v446_v63, %v1280_v21 }
  0x59   : > { %v1066_v0 = vadd.f32 -1.0, %v273_v62  ;;  %v621_v10 = vmul.f32 %v620_v53, %v1280_v21  ;;  %v795_v29 = vmul.f32 %v794_v23, %v1280_v21 }
  0x5a   : > { %v1074_v3 = vadd.f32 -1.0, %v447_v2 }
  0x5b   : > { %v278_v59 = vadd.f32 1.0, %v1066_v0  ;;  %v1084_v14 = vadd.f32 -1.0, %v621_v10  ;;  %v1094_v33 = vadd.f32 -1.0, %v795_v29 }
  0x5c   : > { %1093 = vmatmul.msk.f32.gmra.mxu1 %vm331_vm4, %v1089_v47  ;;  %v452_v6 = vadd.f32 1.0, %v1074_v3 }
  0x5d   : > { %1091 = vmatmul.msk.f32.gmra.mxu0 %vm331_vm4, %v1089_v47  ;;  %1101 = vmatmul.msk.f32.gmra.mxu2 %vm331_vm4, %v1099_v48  ;;  %v279_v5 = vmul.f32 16.0, %v278_v59  ;;  %v626_v17 = vadd.f32 1.0, %v1084_v14  ;;  %v800_v40 = vadd.f32 1.0, %v1094_v33 }
  0x5e   : > { %1103 = vmatmul.msk.f32.gmra.mxu3 %vm331_vm4, %v1099_v48  ;;  %v453_v9 = vmul.f32 16.0, %v452_v6 }
  0x5f   : > { %v1068_v8 = vadd.f32 -1.0, %v279_v5  ;;  %v627_v22 = vmul.f32 16.0, %v626_v17  ;;  %v801_v52 = vmul.f32 16.0, %v800_v40 }
  0x60   : > { %v1076_v12 = vadd.f32 -1.0, %v453_v9 }
  0x61   : > { %v281_v11 = vmul.f32 0.5, %v1068_v8  ;;  %v1086_v27 = vadd.f32 -1.0, %v627_v22  ;;  %v1096_v6 = vadd.f32 -1.0, %v801_v52 }
  0x62   : > { %v455_v16 = vmul.f32 0.5, %v1076_v12 }
  0x63   : > { %v286_v15 = vfloor.f32 %v281_v11  ;;  %v629_v35 = vmul.f32 0.5, %v1086_v27  ;;  %v803_v22 = vmul.f32 0.5, %v1096_v6 }
  0x64   : > { %v460_v20 = vfloor.f32 %v455_v16 }
  0x65   : > { %v1108_v19 = vcvt.f32.s32 %v286_v15  ;;  %v290_v24 = vsub.f32 %v281_v11, %v286_v15  ;;  %v634_v46 = vfloor.f32 %v629_v35  ;;  %v808_v36 = vfloor.f32 %v803_v22 }
  0x66   : > { %v1463_v26 = vcvt.f32.s32 %v460_v20  ;;  %v1466_v32 = vsub.f32 %v455_v16, %v460_v20 }
  0x67   : > { %v399_v25 = vadd.s32 1, %v1108_v19  ;;  %v384_v28 = vperm.slane %v1108_v19, 0  ;;  %v291_v30 = vsub.f32 1.0, %v290_v24  ;;  %v385_v1 = vperm.slane %v1108_v19, 1 }
  0x68   : > { %v1469_v34 = vadd.s32 1, %v1463_v26  ;;  %v407_v38 = vperm.slane %v290_v24, 0  ;;  %v465_v42 = vsub.f32 1.0, %v1466_v32  ;;  %v559_v43 = vperm.slane %v1463_v26, 1 }
  0x69   : > { %v400_v31 = vperm.slane %v399_v25, 0  ;;  %vm1472_vm4 = vcmp.eq.s32.totalorder %v1286_v45, %v384_v28  ;;  %v391_v37 = vperm.slane %v291_v30, 0  ;;  %v392_v21 = vperm.slane %v291_v30, 1 }
  0x6a   : > { %v401_v39 = vperm.slane %v399_v25, 1  ;;  %vm1478_vm5 = vcmp.eq.s32.totalorder %v1286_v45, %v385_v1  ;;  %v575_v44 = vperm.slane %v1469_v34, 1  ;;  %v408_v49 = vperm.slane %v290_v24, 1 }
  0x6b   : > { %vm402_vm3 = vcmp.eq.s32.totalorder %v1286_v45, %v400_v31  ;;  %v395_v47 = vsel %vm1472_vm4, %v391_v37, 0.0  ;;  %v396_v50 = vsel %vm1478_vm5, %v392_v21, 0.0  ;;  %v558_v51 = vperm.slane %v1463_v26, 0 }
  0x6c   : > { %v411_v48 = vsel %vm402_vm3, %v407_v38, 0.0  ;;  %vm403_vm6 = vcmp.eq.s32.totalorder %v1286_v45, %v401_v39  ;;  %v574_v55 = vperm.slane %v1469_v34, 0  ;;  %vm1493_vm7 = vcmp.eq.s32.totalorder %v1286_v45, %v559_v43 }
  0x6d   : > { %v1497_v57 = vperm.slane %v465_v42, 1  ;;  %v582_v58 = vperm.slane %v1466_v32, 1  ;;  %v1500_v62 = vperm.slane %v465_v42, 0  ;;  %vm577_vm8 = vcmp.eq.s32.totalorder %v1286_v45, %v575_v44 }
  0x6e   : > { %vm1504_vm9 = vcmp.eq.s32.totalorder %v1291_v54, %v384_v28  ;;  %v1508_v0 = vcvt.f32.s32 %v634_v46  ;;  %vm404_vm10 = vcmp.eq.s32.totalorder %v1291_v54, %v400_v31  ;;  %vm1512_vm11 = vcmp.eq.s32.totalorder %v1291_v54, %v385_v1 }
  0x6f   : > { %vm405_vm12 = vcmp.eq.s32.totalorder %v1291_v54, %v401_v39  ;;  %v1517_v59 = vsub.f32 %v629_v35, %v634_v46  ;;  %v412_v3 = vsel %vm403_vm6, %v408_v49, 0.0  ;;  %vm1520_vm13 = vcmp.eq.s32.totalorder %v1286_v45, %v558_v51 }
  0x70   : > { %v581_v5 = vperm.slane %v1466_v32, 0  ;;  %vm1526_vm14 = vcmp.eq.s32.totalorder %v1286_v45, %v574_v55  ;;  %v570_v8 = vsel %vm1493_vm7, %v1497_v57, 0.0  ;;  %v586_v9 = vsel %vm577_vm8, %v582_v58, 0.0 }
  0x71   : > { %v397_v53 = vsel %vm1504_vm9, %v391_v37, 0.0  ;;  %v413_v61 = vsel %vm404_vm10, %v407_v38, 0.0  ;;  %v398_v10 = vsel %vm1512_vm11, %v392_v21, 0.0  ;;  %v414_v11 = vsel %vm405_vm12, %v408_v49, 0.0 }
  0x72   : > { %v747_v12 = vadd.s32 1, %v1508_v0  ;;  %v415_v13 = vadd.f32 %v411_v48, %v395_v47  ;;  %v416_v15 = vadd.f32 %v412_v3, %v396_v50  ;;  %v569_v16 = vsel %vm1520_vm13, %v1500_v62, 0.0 }
  0x73   : > { %v639_v17 = vsub.f32 1.0, %v1517_v59  ;;  %vm1543_vm15 = vcmp.eq.s32.totalorder %v1291_v54, %v558_v51  ;;  %v732_v19 = vperm.slane %v1508_v0, 0  ;;  %v733_v20 = vperm.slane %v1508_v0, 1 }
  0x74   : > { %v585_v23 = vsel %vm1526_vm14, %v581_v5, 0.0  ;;  %v1551_v24 = vadd.f32 %v586_v9, %v570_v8  ;;  %v417_v25 = vadd.f32 %v413_v61, %v397_v53  ;;  %v418_v26 = vadd.f32 %v414_v11, %v398_v10 }
  0x75   : > { %vm578_vm0 = vcmp.eq.s32.totalorder %v1291_v54, %v574_v55  ;;  %vm1555_vm1 = vcmp.eq.s32.totalorder %v1291_v54, %v559_v43  ;;  %v748_v28 = vperm.slane %v747_v12, 0  ;;  %v749_v29 = vperm.slane %v747_v12, 1 }
  0x76   : > { %v571_v30 = vsel %vm1543_vm15, %v1500_v62, 0.0  ;;  %vm1563_vm2 = vcmp.eq.s32.totalorder %v1291_v54, %v575_v44  ;;  %v739_v1 = vperm.slane %v639_v17, 0  ;;  %v1567_v32 = vperm.slane %v639_v17, 1 }
  0x77   : > { %vm1570_vm4 = vcmp.eq.s32.totalorder %v1286_v45, %v732_v19  ;;  %vm1575_vm3 = vcmp.eq.s32.totalorder %v1286_v45, %v733_v20  ;;  %v587_v38 = vsel %vm578_vm0, %v581_v5, 0.0  ;;  %v755_v21 = vperm.slane %v1517_v59, 0 }
  0x78   : > { %v756_v39 = vperm.slane %v1517_v59, 1  ;;  %vm1582_vm5 = vcmp.eq.s32.totalorder %v1291_v54, %v732_v19  ;;  %vm750_vm6 = vcmp.eq.s32.totalorder %v1286_v45, %v748_v28  ;;  %vm751_vm7 = vcmp.eq.s32.totalorder %v1286_v45, %v749_v29 }
  0x79   : > { %vm752_vm8 = vcmp.eq.s32.totalorder %v1291_v54, %v748_v28  ;;  %v572_v44 = vsel %vm1555_vm1, %v1497_v57, 0.0  ;;  %v588_v46 = vsel %vm1563_vm2, %v582_v58, 0.0  ;;  %v743_v47 = vsel %vm1570_vm4, %v739_v1, 0.0 }
  0x7a   : > { %v744_v48 = vsel %vm1575_vm3, %v1567_v32, 0.0  ;;  %v1120_v55 = vcvt.f32.s32 %v808_v36  ;;  %v759_v56 = vsel %vm750_vm6, %v755_v21, 0.0  ;;  %v760_v62 = vsel %vm751_vm7, %v756_v39, 0.0 }
  0x7b   : > { %v745_v57 = vsel %vm1582_vm5, %v739_v1, 0.0  ;;  %v761_v63 = vsel %vm752_vm8, %v755_v21, 0.0  ;;  %v1601_v2 = vsub.f32 %v803_v22, %v808_v36  ;;  %vm1604_vm9 = vcmp.eq.s32.totalorder %v1291_v54, %v733_v20 }
  0x7c   : > { %v589_v3 = vadd.f32 %v585_v23, %v569_v16  ;;  %v591_v4 = vadd.f32 %v587_v38, %v571_v30  ;;  %v592_v5 = vadd.f32 %v588_v46, %v572_v44  ;;  %vm753_vm10 = vcmp.eq.s32.totalorder %v1291_v54, %v749_v29 }
  0x7d   : > { %v906_v60 = vperm.slane %v1120_v55, 0  ;;  %v921_v8 = vadd.s32 1, %v1120_v55  ;;  %v764_v53 = vadd.f32 %v760_v62, %v744_v48  ;;  %v765_v61 = vadd.f32 %v761_v63, %v745_v57 }
  0x7e   : > { %v746_v10 = vsel %vm1604_vm9, %v1567_v32, 0.0  ;;  %v813_v12 = vsub.f32 1.0, %v1601_v2  ;;  %v930_v27 = vperm.slane %v1601_v2, 1  ;;  %vm959_vm4 = vcmask 1040384  }
  0x7f   : > { %v922_v19 = vperm.slane %v921_v8, 0  ;;  %vm1615_vm11 = vcmp.eq.s32.totalorder %v1286_v45, %v906_v60  ;;  %vm1627_vm13 = vcmp.eq.s32.totalorder %v1291_v54, %v906_v60  ;;  %vm962_vm3 = vcmask 1041408  }
  0x80   : > { %vm965_vm5 = vcmask 1042432   ;;  %vm971_vm6 = vcmask 1043456  }
  0x81   : > { %vm924_vm15 = vcmp.eq.s32.totalorder %v1286_v45, %v922_v19  ;;  %vm1641_vm1 = vcmp.eq.s32.totalorder %v1291_v54, %v922_v19 }
  0xbe   : > { %v355_v7 = vpop.f32.mrf.mxu0 }
  0xbf   : > { %v419_v33 = vmul.f32 %v415_v13, %v355_v7  ;;  %v763_v7 = vadd.f32 %v759_v56, %v743_v47  ;;  %v929_v13 = vperm.slane %v1601_v2, 0 }
  0xc0   : > { %v378_v14 = vpop.f32.mrf.mxu1 }
  0xc1   : > { %v420_v49 = vmul.f32 %v416_v15, %v378_v14  ;;  %v907_v14 = vperm.slane %v1120_v55, 1  ;;  %v762_v15 = vsel %vm753_vm10, %v756_v39, 0.0 }
  0xc2   : > { %v766_v21 = vadd.f32 %v762_v15, %v746_v10 }
  0xc3   : > { %vm1622_vm12 = vcmp.eq.s32.totalorder %v1286_v45, %v907_v14  ;;  %vm1632_vm14 = vcmp.eq.s32.totalorder %v1291_v54, %v907_v14 }
  0xc6   : > { %v358_v37 = vpop.f32.mrf.mxu0 }
  0xc7   : > { %v529_v41 = vpop.f32.mrf.mxu2  ;;  %v421_v42 = vmul.f32 %v417_v25, %v358_v37  ;;  %v913_v25 = vperm.slane %v813_v12, 0 }
  0xc8   : > { %v381_v43 = vpop.f32.mrf.mxu1  ;;  %v593_v16 = vmul.f32 %v589_v3, %v529_v41 }
  0xc9   : > { %v552_v50 = vpop.f32.mrf.mxu3  ;;  %v423_v51 = vadd.f32 %v421_v42, %v419_v33  ;;  %v422_v52 = vmul.f32 %v418_v26, %v381_v43  ;;  %v923_v26 = vperm.slane %v921_v8, 1  ;;  %v914_v33 = vperm.slane %v813_v12, 1 }
  0xca   : > { %v594_v28 = vmul.f32 %v1551_v24, %v552_v50  ;;  %v917_v38 = vsel %vm1615_vm11, %v913_v25, 0.0  ;;  %v933_v43 = vsel %vm924_vm15, %v929_v13, 0.0  ;;  %v919_v46 = vsel %vm1627_vm13, %v913_v25, 0.0 }
  0xcb   : > { %v424_v0 = vrot.slane %v423_v51, 4  ;;  %v430_v58 = vadd.f32 %v422_v52, %v420_v49  ;;  %vm925_vm0 = vcmp.eq.s32.totalorder %v1286_v45, %v923_v26  ;;  %vm927_vm2 = vcmp.eq.s32.totalorder %v1291_v54, %v923_v26 }
  0xcc   : > { %v918_v44 = vsel %vm1622_vm12, %v914_v33, 0.0  ;;  %v920_v45 = vsel %vm1632_vm14, %v914_v33, 0.0  ;;  %v935_v54 = vsel %vm1641_vm1, %v929_v13, 0.0  ;;  %v936_v57 = vsel %vm927_vm2, %v930_v27, 0.0 }
  0xcd   : > { %v431_v6 = vrot.slane %v430_v58, 4  ;;  %v425_v9 = vadd.f32 %v424_v0, %v423_v51  ;;  %v934_v51 = vsel %vm925_vm0, %v930_v27, 0.0  ;;  %v937_v3 = vadd.f32 %v933_v43, %v917_v38 }
  0xce   : > { %v940_v10 = vadd.f32 %v936_v57, %v920_v45 }
  0xcf   : > { %v532_v11 = vpop.f32.mrf.mxu2  ;;  %v432_v17 = vadd.f32 %v431_v6, %v430_v58  ;;  %v426_v29 = vrot.slane %v425_v9, 2 }
  0xd0   : > { %v595_v18 = vmul.f32 %v591_v4, %v532_v11 }
  0xd1   : > { %v555_v20 = vpop.f32.mrf.mxu3  ;;  %v726_v22 = vpop.f32.mrf.mxu1  ;;  %v433_v24 = vrot.slane %v432_v17, 2  ;;  %v427_v40 = vadd.f32 %v426_v29, %v425_v9 }
  0xd2   : > { %v597_v30 = vadd.f32 %v595_v18, %v593_v16  ;;  %v596_v31 = vmul.f32 %v592_v5, %v555_v20  ;;  %v703_v1 = vpop.f32.mrf.mxu0  ;;  %v768_v55 = vmul.f32 %v764_v53, %v726_v22  ;;  %v939_v53 = vadd.f32 %v935_v54, %v919_v46 }
  0xd3   : > { %v434_v47 = vadd.f32 %v433_v24, %v432_v17  ;;  %v767_v52 = vmul.f32 %v763_v7, %v703_v1  ;;  %v428_v63 = vrot.slane %v427_v40, 1  ;;  %v938_v7 = vadd.f32 %v934_v51, %v918_v44 }
  0xd4   : > { %v598_v36 = vrot.slane %v597_v30, 4  ;;  %v604_v37 = vadd.f32 %v596_v31, %v594_v28 }
  0xd5   : > { %v435_v5 = vrot.slane %v434_v47, 1  ;;  %v429_v11 = vadd.f32 %v428_v63, %v427_v40 }
  0xd6   : > { %v599_v41 = vadd.f32 %v598_v36, %v597_v30  ;;  %v605_v42 = vrot.slane %v604_v37, 4 }
  0xd7   : > { %v436_v16 = vadd.f32 %v435_v5, %v434_v47 }
  0xd8   : > { %v600_v48 = vrot.slane %v599_v41, 2  ;;  %v606_v49 = vadd.f32 %v605_v42, %v604_v37  ;;  %v877_v50 = vpop.f32.mrf.mxu2 }
  0xd9   : > { %v900_v56 = vpop.f32.mrf.mxu3  ;;  %v729_v62 = vpop.f32.mrf.mxu1 }
  0xda   : > { %v601_v0 = vadd.f32 %v600_v48, %v599_v41  ;;  %v607_v58 = vrot.slane %v606_v49, 2  ;;  %v706_v2 = vpop.f32.mrf.mxu0  ;;  %v770_v59 = vmul.f32 %v766_v21, %v729_v62  ;;  %v942_v27 = vmul.f32 %v938_v7, %v900_v56 }
  0xdb   : > { %v769_v4 = vmul.f32 %v765_v61, %v706_v2  ;;  %v941_v61 = vmul.f32 %v937_v3, %v877_v50 }
  0xdc   : > { %v602_v6 = vrot.slane %v601_v0, 1  ;;  %v608_v60 = vadd.f32 %v607_v58, %v606_v49  ;;  %v778_v8 = vadd.f32 %v770_v59, %v768_v55 }
  0xdd   : > { %v771_v9 = vadd.f32 %v769_v4, %v767_v52 }
  0xde   : > { %v603_v12 = vadd.f32 %v602_v6, %v601_v0  ;;  %v609_v13 = vrot.slane %v608_v60, 1  ;;  %v779_v14 = vrot.slane %v778_v8, 4 }
  0xdf   : > { %v772_v15 = vrot.slane %v771_v9, 4 }
  0xe0   : > { %v960_v17 = vsel %vm959_vm4, %v429_v11, %v603_v12  ;;  %v610_v18 = vadd.f32 %v609_v13, %v608_v60  ;;  %v780_v19 = vadd.f32 %v779_v14, %v778_v8  ;;  %v880_v20 = vpop.f32.mrf.mxu2 }
  0xe1   : > { %v773_v22 = vadd.f32 %v772_v15, %v771_v9  ;;  %v943_v23 = vmul.f32 %v939_v53, %v880_v20  ;;  %v903_v25 = vpop.f32.mrf.mxu3 }
  0xe2   : > { %v961_v26 = vsel %vm959_vm4, %v436_v16, %v610_v18  ;;  %v781_v28 = vrot.slane %v780_v19, 2  ;;  %v944_v29 = vmul.f32 %v940_v10, %v903_v25 }
  0xe3   : > { %v774_v30 = vrot.slane %v773_v22, 2  ;;  %v945_v31 = vadd.f32 %v943_v23, %v941_v61 }
  0xe4   : > { %v782_v1 = vadd.f32 %v781_v28, %v780_v19  ;;  %v952_v32 = vadd.f32 %v944_v29, %v942_v27 }
  0xe5   : > { %v775_v33 = vadd.f32 %v774_v30, %v773_v22  ;;  %v946_v34 = vrot.slane %v945_v31, 4 }
  0xe6   : > { %v783_v35 = vrot.slane %v782_v1, 1  ;;  %v953_v24 = vrot.slane %v952_v32, 4 }
  0xe7   : > { %v776_v36 = vrot.slane %v775_v33, 1  ;;  %v947_v37 = vadd.f32 %v946_v34, %v945_v31 }
  0xe8   : > { %v784_v38 = vadd.f32 %v783_v35, %v782_v1  ;;  %v954_v21 = vadd.f32 %v953_v24, %v952_v32 }
  0xe9   : > { %v777_v39 = vadd.f32 %v776_v36, %v775_v33  ;;  %v948_v40 = vrot.slane %v947_v37, 2 }
  0xea   : > { %v964_v41 = vsel %vm962_vm3, %v961_v26, %v784_v38  ;;  %v955_v42 = vrot.slane %v954_v21, 2 }
  0xeb   : > { %v963_v43 = vsel %vm962_vm3, %v960_v17, %v777_v39  ;;  %v949_v44 = vadd.f32 %v948_v40, %v947_v37 }
  0xec   : > { %v956_v46 = vadd.f32 %v955_v42, %v954_v21 }
  0xed   : > { %v950_v45 = vrot.slane %v949_v44, 1 }
  0xee   : > { %v957_v47 = vrot.slane %v956_v46, 1 }
  0xef   : > { %v951_v48 = vadd.f32 %v950_v45, %v949_v44 }
  0xf0   : > { %v958_v49 = vadd.f32 %v957_v47, %v956_v46 }
  0xf1   : > { %v966_v50 = vsel %vm965_vm5, %v963_v43, %v951_v48 }
  0xf2   : > { %v967_v51 = vsel %vm965_vm5, %v964_v41, %v958_v49 }
  0xf3   : > { %v970_v52 = vrot.slane %v967_v51, 4 }
  0xf5   : > { %v972_v55 = vsel %vm971_vm6, %v966_v50, %v970_v52 }
  0xf6   : > { %974 = vst [vmem:[%s248_s21] sm:$0xff] %v972_v55 }
  0xf7 PF: > { %s17_s18 = sadd.s32 1, %s1199_s18  }
  0xf8   : > { %p14_p7 = scmp.ge.s32.totalorder %s17_s18, 6  }
  0xfa   :  { %16 = sbr.rel (!%p14_p7) target bundleno = 2 (0x2), region = 83 }
  0xff   :  { %996 = vsyncpa [#allocation3], 1 }
 0x100   :  { %998 = vsyncpa [#allocation3 + $0x1], 1 }
 0x101   :  { %999 = vsyncpa [#allocation5], 1 }

</bundles_post_ra>
